<compile_context>
chip_gen: v7x
topology: tpu7x:2x2x1
jax: 0.10.0
libtpu: 0.0.40
codegen_flags: <defaults>
</compile_context>

<pallas_src>
import jax
import jax.numpy as jnp
from jax import lax
from jax.experimental import pallas as pl
from jax.experimental.pallas import tpu as pltpu

BN_EPS = 1e-5

# Set to jnp.bfloat16 on v6e/v7x for MXU-native operands (accumulation stays f32).
# Kept at f32 here for bit-faithful parity with the PyTorch/f32 reference.
MATMUL_DTYPE = jnp.float32


def _make_kernel(N, H, W, Cp, G):
    """Build the residual-block kernel for static shape (N, H, W) with Cp padded
    channels and G guard rows (G is a multiple of 8 and >= Wp + 1)."""
    Hp, Wp = H + 2, W + 2
    M = N * Hp * Wp                       # rows of the flat padded image
    inv_count = 1.0 / float(N * H * W)    # BN statistics count (valid pixels only)

    def kernel(xbig_ref, mask_ref, w1_ref, g1_ref, b1_ref, w2_ref, g2_ref, b2_ref,
               o_ref, patch_ref, pad2_ref):
        # xbig_ref : (G + M + G, Cp)  flat, spatially padded input (guards zero)
        # mask_ref : (M, 1)           1.0 at valid pixels, 0.0 at padding rows
        # w*_ref   : (9*Cp, Cp)       im2col weight matrices
        # g*/b*    : (1, Cp)
        # o_ref    : (M, Cp)          flat padded output (interior rows valid)
        # patch_ref: (M, 9*Cp)        im2col scratch (reused by both convs)
        # pad2_ref : (G + M + G, Cp)  padded buffer feeding conv2
        mask = mask_ref[...]                                   # (M, 1)

        def build_patch(src_ref):
            # 9 contiguous shifted (M, Cp) row-window loads, stored into
            # lane-aligned column blocks of the patch matrix.  No reshapes.
            for di in range(3):
                for dj in range(3):
                    t = di * 3 + dj
                    off = G + (di - 1) * Wp + (dj - 1)         # static offset
                    patch_ref[:, t * Cp:(t + 1) * Cp] = (
                        src_ref[pl.ds(off, M), :].astype(patch_ref.dtype))

        def batchnorm(y, g_ref, b_ref):
            # one-pass masked batch statistics (biased variance, training fwd),
            # folded into a single per-channel scale/shift.
            ym = y * mask
            mean = jnp.sum(ym, axis=0, keepdims=True) * inv_count
            ex2 = jnp.sum(ym * ym, axis=0, keepdims=True) * inv_count
            var = ex2 - mean * mean
            scale = g_ref[...] * lax.rsqrt(var + BN_EPS)       # (1, Cp)
            shift = b_ref[...] - mean * scale                  # (1, Cp)
            return y * scale + shift                           # one FMA per element

        # Zero only the guard rows of the conv2 padding buffer (once). The interior
        # is fully overwritten below; intra-image zero padding comes from `mask`.
        pad2_ref[pl.ds(0, G), :] = jnp.zeros((G, Cp), jnp.float32)
        pad2_ref[pl.ds(G + M, G), :] = jnp.zeros((G, Cp), jnp.float32)

        # ---- conv1 (3x3, stride 1, pad 1) -> bn1 -> relu ----
        build_patch(xbig_ref)
        y1 = jnp.dot(patch_ref[...], w1_ref[...],
                     preferred_element_type=jnp.float32)       # (M, Cp)
        y1 = jnp.maximum(batchnorm(y1, g1_ref, b1_ref), 0.0) * mask
        pad2_ref[pl.ds(G, M), :] = y1                          # aligned (G % 8 == 0)

        # ---- conv2 (3x3, stride 1, pad 1) -> bn2 ----
        build_patch(pad2_ref)
        y2 = jnp.dot(patch_ref[...], w2_ref[...],
                     preferred_element_type=jnp.float32)       # (M, Cp)
        y2 = batchnorm(y2, g2_ref, b2_ref)

        # ---- identity shortcut + final relu; lane-dense aligned store ----
        o_ref[...] = jnp.maximum(y2 + xbig_ref[pl.ds(G, M), :], 0.0)

    return kernel


def residual_block(x_nchw, params):
    """x_nchw: (N, C, H, W) float32. params = (w1, g1, b1, w2, g2, b2) in PyTorch
    layouts: conv weights (Cout, Cin, 3, 3), BN gamma/beta (C,)."""
    w1, g1, b1, w2, g2, b2 = params
    N, C, H, W = x_nchw.shape
    Cp = ((C + 127) // 128) * 128          # pad channels to full lane width
    Hp, Wp = H + 2, W + 2
    M = N * Hp * Wp
    G = ((Wp + 1 + 7) // 8) * 8            # guard rows: multiple of 8, >= Wp + 1

    # --- input: NCHW -> NHWC, pad channels, pad spatial, flatten, add guards ---
    x_nhwc = jnp.transpose(x_nchw, (0, 2, 3, 1))
    x_pad = jnp.pad(x_nhwc, ((0, 0), (1, 1), (1, 1), (0, Cp - C)))
    x_flat = x_pad.reshape(M, Cp)
    xbig = jnp.pad(x_flat, ((G, G), (0, 0)))

    # --- validity mask over the flat padded rows ---
    m2d = jnp.zeros((Hp, Wp), jnp.float32).at[1:H + 1, 1:W + 1].set(1.0)
    mask = jnp.broadcast_to(m2d.reshape(1, Hp * Wp), (N, Hp * Wp)).reshape(M, 1)

    # --- weights: OIHW -> (9*Cp, Cp) im2col matrices (done once in XLA) ---
    def prep_w(w):
        w_hwio = jnp.transpose(w, (2, 3, 1, 0))                  # (3, 3, Cin, Cout)
        w_hwio = jnp.pad(w_hwio, ((0, 0), (0, 0), (0, Cp - C), (0, Cp - C)))
        return w_hwio.reshape(9 * Cp, Cp).astype(MATMUL_DTYPE)

    w1_k, w2_k = prep_w(w1), prep_w(w2)
    g1_k = jnp.pad(g1, (0, Cp - C)).reshape(1, Cp).astype(jnp.float32)
    b1_k = jnp.pad(b1, (0, Cp - C)).reshape(1, Cp).astype(jnp.float32)
    g2_k = jnp.pad(g2, (0, Cp - C)).reshape(1, Cp).astype(jnp.float32)
    b2_k = jnp.pad(b2, (0, Cp - C)).reshape(1, Cp).astype(jnp.float32)

    kernel = _make_kernel(N, H, W, Cp, G)
    out_flat = pl.pallas_call(
        kernel,
        out_shape=jax.ShapeDtypeStruct((M, Cp), jnp.float32),
        in_specs=[pl.BlockSpec(memory_space=pltpu.MemorySpace.VMEM)] * 8,
        out_specs=pl.BlockSpec(memory_space=pltpu.MemorySpace.VMEM),
        scratch_shapes=[
            pltpu.VMEM((M, 9 * Cp), MATMUL_DTYPE),    # im2col patch matrix
            pltpu.VMEM((2 * G + M, Cp), jnp.float32)  # padded buffer for conv2
        ],
        compiler_params=pltpu.CompilerParams(vmem_limit_bytes=32 * 1024 * 1024),
    )(xbig, mask, w1_k, g1_k, b1_k, w2_k, g2_k, b2_k)

    # un-pad: flat -> (N, Hp, Wp, Cp) -> interior, real channels -> NCHW
    out = out_flat.reshape(N, Hp, Wp, Cp)[:, 1:H + 1, 1:W + 1, :C]
    return jnp.transpose(out, (0, 3, 1, 2))


def _reference(x, params):
    """Pure-JAX reference (NCHW), mirrors the PyTorch forward exactly."""
    w1, g1, b1, w2, g2, b2 = params

    def conv(x, w):
        return lax.conv_general_dilated(x, w, (1, 1), ((1, 1), (1, 1)),
                                        dimension_numbers=('NCHW', 'OIHW', 'NCHW'))

    def bn(y, g, b):
        mean = jnp.mean(y, axis=(0, 2, 3), keepdims=True)
        var = jnp.mean((y - mean) ** 2, axis=(0, 2, 3), keepdims=True)
        return ((y - mean) / jnp.sqrt(var + BN_EPS)) * g.reshape(1, -1, 1, 1) \
               + b.reshape(1, -1, 1, 1)

    y = jnp.maximum(bn(conv(x, w1), g1, b1), 0.0)
    y = bn(conv(y, w2), g2, b2)
    return jnp.maximum(y + x, 0.0)


if __name__ == "__main__":
    N, C, H, W = 2, 8, 16, 16          # inchannel == outchannel, stride=1, shortcut=None
    key = jax.random.PRNGKey(0)
    kx, kw1, kw2 = jax.random.split(key, 3)

    x = jax.random.normal(kx, (N, C, H, W), dtype=jnp.float32)
    w1 = 0.1 * jax.random.normal(kw1, (C, C, 3, 3), dtype=jnp.float32)
    w2 = 0.1 * jax.random.normal(kw2, (C, C, 3, 3), dtype=jnp.float32)
    g1 = jnp.ones((C,), jnp.float32)
    b1 = jnp.zeros((C,), jnp.float32)
    g2 = jnp.ones((C,), jnp.float32)
    b2 = jnp.zeros((C,), jnp.float32)
    params = (w1, g1, b1, w2, g2, b2)

    out = jax.block_until_ready(residual_block(x, params))
    ref = jax.block_until_ready(_reference(x, params))

    assert out.shape == (N, C, H, W)
    assert jnp.allclose(out, ref, atol=2e-3, rtol=2e-3), \
        f"max abs err {jnp.max(jnp.abs(out - ref))}"

    print("KERNEL_OK")
</pallas_src>

<mosaic_0001>
module attributes {stable_mosaic.version = 11 : i64} {
  func.func @kernel(%arg0: memref<696x128xf32, #tpu.memory_space<vmem>>, %arg1: memref<648x1xf32, #tpu.memory_space<vmem>>, %arg2: memref<1152x128xf32, #tpu.memory_space<vmem>>, %arg3: memref<1x128xf32, #tpu.memory_space<vmem>>, %arg4: memref<1x128xf32, #tpu.memory_space<vmem>>, %arg5: memref<1152x128xf32, #tpu.memory_space<vmem>>, %arg6: memref<1x128xf32, #tpu.memory_space<vmem>>, %arg7: memref<1x128xf32, #tpu.memory_space<vmem>>, %arg8: memref<648x128xf32, #tpu.memory_space<vmem>>, %arg9: memref<648x1152xf32, #tpu.memory_space<vmem>>, %arg10: memref<696x128xf32, #tpu.memory_space<vmem>>) attributes {dimension_semantics = [], scalar_prefetch = 0 : i64, scratch_operands = 2 : i64, tpu.core_type = #tpu.core_type<tc>} {
    %c0 = arith.constant 0 : index
    %c0_0 = arith.constant 0 : index
    %0 = vector.load %arg1[%c0, %c0_0] : memref<648x1xf32, #tpu.memory_space<vmem>>, vector<648x1xf32>
    %cst = arith.constant 0.000000e+00 : f32
    %1 = vector.broadcast %cst : f32 to vector<24x128xf32>
    %c0_1 = arith.constant 0 : index
    %c0_2 = arith.constant 0 : index
    %2 = vector.load %arg10[%c0_1, %c0_2] : memref<696x128xf32, #tpu.memory_space<vmem>>, vector<24x128xf32>
    tpu.vector_store %arg10[%c0_1, %c0_2], %1 {strides = array<i32>} : memref<696x128xf32, #tpu.memory_space<vmem>>, vector<24x128xf32>,
    %cst_3 = arith.constant 0.000000e+00 : f32
    %3 = vector.broadcast %cst_3 : f32 to vector<24x128xf32>
    %c672 = arith.constant 672 : index
    %c0_4 = arith.constant 0 : index
    %4 = vector.load %arg10[%c672, %c0_4] : memref<696x128xf32, #tpu.memory_space<vmem>>, vector<24x128xf32>
    tpu.vector_store %arg10[%c672, %c0_4], %3 {strides = array<i32>} : memref<696x128xf32, #tpu.memory_space<vmem>>, vector<24x128xf32>,
    %c5 = arith.constant 5 : index
    %c0_5 = arith.constant 0 : index
    %5 = vector.load %arg0[%c5, %c0_5] : memref<696x128xf32, #tpu.memory_space<vmem>>, vector<648x128xf32>
    %c0_6 = arith.constant 0 : index
    %c0_7 = arith.constant 0 : index
    %6 = vector.load %arg9[%c0_6, %c0_7] : memref<648x1152xf32, #tpu.memory_space<vmem>>, vector<648x128xf32>
    tpu.vector_store %arg9[%c0_6, %c0_7], %5 {strides = array<i32>} : memref<648x1152xf32, #tpu.memory_space<vmem>>, vector<648x128xf32>,
    %c6 = arith.constant 6 : index
    %c0_8 = arith.constant 0 : index
    %7 = vector.load %arg0[%c6, %c0_8] : memref<696x128xf32, #tpu.memory_space<vmem>>, vector<648x128xf32>
    %c0_9 = arith.constant 0 : index
    %c128 = arith.constant 128 : index
    %8 = vector.load %arg9[%c0_9, %c128] : memref<648x1152xf32, #tpu.memory_space<vmem>>, vector<648x128xf32>
    tpu.vector_store %arg9[%c0_9, %c128], %7 {strides = array<i32>} : memref<648x1152xf32, #tpu.memory_space<vmem>>, vector<648x128xf32>,
    %c7 = arith.constant 7 : index
    %c0_10 = arith.constant 0 : index
    %9 = vector.load %arg0[%c7, %c0_10] : memref<696x128xf32, #tpu.memory_space<vmem>>, vector<648x128xf32>
    %c0_11 = arith.constant 0 : index
    %c256 = arith.constant 256 : index
    %10 = vector.load %arg9[%c0_11, %c256] : memref<648x1152xf32, #tpu.memory_space<vmem>>, vector<648x128xf32>
    tpu.vector_store %arg9[%c0_11, %c256], %9 {strides = array<i32>} : memref<648x1152xf32, #tpu.memory_space<vmem>>, vector<648x128xf32>,
    %c23 = arith.constant 23 : index
    %c0_12 = arith.constant 0 : index
    %11 = vector.load %arg0[%c23, %c0_12] : memref<696x128xf32, #tpu.memory_space<vmem>>, vector<648x128xf32>
    %c0_13 = arith.constant 0 : index
    %c384 = arith.constant 384 : index
    %12 = vector.load %arg9[%c0_13, %c384] : memref<648x1152xf32, #tpu.memory_space<vmem>>, vector<648x128xf32>
    tpu.vector_store %arg9[%c0_13, %c384], %11 {strides = array<i32>} : memref<648x1152xf32, #tpu.memory_space<vmem>>, vector<648x128xf32>,
    %c24 = arith.constant 24 : index
    %c0_14 = arith.constant 0 : index
    %13 = vector.load %arg0[%c24, %c0_14] : memref<696x128xf32, #tpu.memory_space<vmem>>, vector<648x128xf32>
    %c0_15 = arith.constant 0 : index
    %c512 = arith.constant 512 : index
    %14 = vector.load %arg9[%c0_15, %c512] : memref<648x1152xf32, #tpu.memory_space<vmem>>, vector<648x128xf32>
    tpu.vector_store %arg9[%c0_15, %c512], %13 {strides = array<i32>} : memref<648x1152xf32, #tpu.memory_space<vmem>>, vector<648x128xf32>,
    %c25 = arith.constant 25 : index
    %c0_16 = arith.constant 0 : index
    %15 = vector.load %arg0[%c25, %c0_16] : memref<696x128xf32, #tpu.memory_space<vmem>>, vector<648x128xf32>
    %c0_17 = arith.constant 0 : index
    %c640 = arith.constant 640 : index
    %16 = vector.load %arg9[%c0_17, %c640] : memref<648x1152xf32, #tpu.memory_space<vmem>>, vector<648x128xf32>
    tpu.vector_store %arg9[%c0_17, %c640], %15 {strides = array<i32>} : memref<648x1152xf32, #tpu.memory_space<vmem>>, vector<648x128xf32>,
    %c41 = arith.constant 41 : index
    %c0_18 = arith.constant 0 : index
    %17 = vector.load %arg0[%c41, %c0_18] : memref<696x128xf32, #tpu.memory_space<vmem>>, vector<648x128xf32>
    %c0_19 = arith.constant 0 : index
    %c768 = arith.constant 768 : index
    %18 = vector.load %arg9[%c0_19, %c768] : memref<648x1152xf32, #tpu.memory_space<vmem>>, vector<648x128xf32>
    tpu.vector_store %arg9[%c0_19, %c768], %17 {strides = array<i32>} : memref<648x1152xf32, #tpu.memory_space<vmem>>, vector<648x128xf32>,
    %c42 = arith.constant 42 : index
    %c0_20 = arith.constant 0 : index
    %19 = vector.load %arg0[%c42, %c0_20] : memref<696x128xf32, #tpu.memory_space<vmem>>, vector<648x128xf32>
    %c0_21 = arith.constant 0 : index
    %c896 = arith.constant 896 : index
    %20 = vector.load %arg9[%c0_21, %c896] : memref<648x1152xf32, #tpu.memory_space<vmem>>, vector<648x128xf32>
    tpu.vector_store %arg9[%c0_21, %c896], %19 {strides = array<i32>} : memref<648x1152xf32, #tpu.memory_space<vmem>>, vector<648x128xf32>,
    %c43 = arith.constant 43 : index
    %c0_22 = arith.constant 0 : index
    %21 = vector.load %arg0[%c43, %c0_22] : memref<696x128xf32, #tpu.memory_space<vmem>>, vector<648x128xf32>
    %c0_23 = arith.constant 0 : index
    %c1024 = arith.constant 1024 : index
    %22 = vector.load %arg9[%c0_23, %c1024] : memref<648x1152xf32, #tpu.memory_space<vmem>>, vector<648x128xf32>
    tpu.vector_store %arg9[%c0_23, %c1024], %21 {strides = array<i32>} : memref<648x1152xf32, #tpu.memory_space<vmem>>, vector<648x128xf32>,
    %c0_24 = arith.constant 0 : index
    %c0_25 = arith.constant 0 : index
    %23 = vector.load %arg9[%c0_24, %c0_25] : memref<648x1152xf32, #tpu.memory_space<vmem>>, vector<648x1152xf32>
    %c0_26 = arith.constant 0 : index
    %c0_27 = arith.constant 0 : index
    %24 = vector.load %arg2[%c0_26, %c0_27] : memref<1152x128xf32, #tpu.memory_space<vmem>>, vector<1152x128xf32>
    %cst_28 = arith.constant dense<0.000000e+00> : vector<648x128xf32>
    %25 = tpu.matmul %23, %24, %cst_28 {dimension_numbers = #tpu.dot_dimension_numbers<[1], [0], [0], [1], [0, 0, 1, 1], [], []>} : vector<648x1152xf32>, vector<1152x128xf32>, vector<648x128xf32> -> vector<648x128xf32>
    %26 = vector.broadcast %0 : vector<648x1xf32> to vector<648x128xf32>
    %27 = arith.mulf %25, %26 : vector<648x128xf32>
    %cst_29 = arith.constant dense<0.000000e+00> : vector<128xf32>
    %28 = vector.multi_reduction <add>, %27, %cst_29 [0] : vector<648x128xf32> to vector<128xf32>
    %29 = vector.shape_cast %28 : vector<128xf32> to vector<1x128xf32>
    %cst_30 = arith.constant 0.001953125 : f32
    %30 = vector.broadcast %cst_30 : f32 to vector<1x128xf32>
    %31 = arith.mulf %29, %30 : vector<1x128xf32>
    %32 = arith.mulf %27, %27 : vector<648x128xf32>
    %cst_31 = arith.constant dense<0.000000e+00> : vector<128xf32>
    %33 = vector.multi_reduction <add>, %32, %cst_31 [0] : vector<648x128xf32> to vector<128xf32>
    %34 = vector.shape_cast %33 : vector<128xf32> to vector<1x128xf32>
    %cst_32 = arith.constant 0.001953125 : f32
    %35 = vector.broadcast %cst_32 : f32 to vector<1x128xf32>
    %36 = arith.mulf %34, %35 : vector<1x128xf32>
    %37 = arith.mulf %31, %31 : vector<1x128xf32>
    %38 = arith.subf %36, %37 : vector<1x128xf32>
    %c0_33 = arith.constant 0 : index
    %c0_34 = arith.constant 0 : index
    %39 = vector.load %arg3[%c0_33, %c0_34] : memref<1x128xf32, #tpu.memory_space<vmem>>, vector<1x128xf32>
    %cst_35 = arith.constant 9.99999974E-6 : f32
    %40 = vector.broadcast %cst_35 : f32 to vector<1x128xf32>
    %41 = arith.addf %38, %40 : vector<1x128xf32>
    %42 = math.rsqrt %41 : vector<1x128xf32>
    %43 = arith.mulf %39, %42 : vector<1x128xf32>
    %c0_36 = arith.constant 0 : index
    %c0_37 = arith.constant 0 : index
    %44 = vector.load %arg4[%c0_36, %c0_37] : memref<1x128xf32, #tpu.memory_space<vmem>>, vector<1x128xf32>
    %45 = arith.mulf %31, %43 : vector<1x128xf32>
    %46 = arith.subf %44, %45 : vector<1x128xf32>
    %47 = vector.broadcast %43 : vector<1x128xf32> to vector<648x128xf32>
    %48 = arith.mulf %25, %47 : vector<648x128xf32>
    %49 = vector.broadcast %46 : vector<1x128xf32> to vector<648x128xf32>
    %50 = arith.addf %48, %49 : vector<648x128xf32>
    %cst_38 = arith.constant 0.000000e+00 : f32
    %51 = vector.broadcast %cst_38 : f32 to vector<648x128xf32>
    %52 = arith.maximumf %50, %51 : vector<648x128xf32>
    %53 = vector.broadcast %0 : vector<648x1xf32> to vector<648x128xf32>
    %54 = arith.mulf %52, %53 : vector<648x128xf32>
    %c24_39 = arith.constant 24 : index
    %c0_40 = arith.constant 0 : index
    %55 = vector.load %arg10[%c24_39, %c0_40] : memref<696x128xf32, #tpu.memory_space<vmem>>, vector<648x128xf32>
    tpu.vector_store %arg10[%c24_39, %c0_40], %54 {strides = array<i32>} : memref<696x128xf32, #tpu.memory_space<vmem>>, vector<648x128xf32>,
    %c5_41 = arith.constant 5 : index
    %c0_42 = arith.constant 0 : index
    %56 = vector.load %arg10[%c5_41, %c0_42] : memref<696x128xf32, #tpu.memory_space<vmem>>, vector<648x128xf32>
    %c0_43 = arith.constant 0 : index
    %c0_44 = arith.constant 0 : index
    %57 = vector.load %arg9[%c0_43, %c0_44] : memref<648x1152xf32, #tpu.memory_space<vmem>>, vector<648x128xf32>
    tpu.vector_store %arg9[%c0_43, %c0_44], %56 {strides = array<i32>} : memref<648x1152xf32, #tpu.memory_space<vmem>>, vector<648x128xf32>,
    %c6_45 = arith.constant 6 : index
    %c0_46 = arith.constant 0 : index
    %58 = vector.load %arg10[%c6_45, %c0_46] : memref<696x128xf32, #tpu.memory_space<vmem>>, vector<648x128xf32>
    %c0_47 = arith.constant 0 : index
    %c128_48 = arith.constant 128 : index
    %59 = vector.load %arg9[%c0_47, %c128_48] : memref<648x1152xf32, #tpu.memory_space<vmem>>, vector<648x128xf32>
    tpu.vector_store %arg9[%c0_47, %c128_48], %58 {strides = array<i32>} : memref<648x1152xf32, #tpu.memory_space<vmem>>, vector<648x128xf32>,
    %c7_49 = arith.constant 7 : index
    %c0_50 = arith.constant 0 : index
    %60 = vector.load %arg10[%c7_49, %c0_50] : memref<696x128xf32, #tpu.memory_space<vmem>>, vector<648x128xf32>
    %c0_51 = arith.constant 0 : index
    %c256_52 = arith.constant 256 : index
    %61 = vector.load %arg9[%c0_51, %c256_52] : memref<648x1152xf32, #tpu.memory_space<vmem>>, vector<648x128xf32>
    tpu.vector_store %arg9[%c0_51, %c256_52], %60 {strides = array<i32>} : memref<648x1152xf32, #tpu.memory_space<vmem>>, vector<648x128xf32>,
    %c23_53 = arith.constant 23 : index
    %c0_54 = arith.constant 0 : index
    %62 = vector.load %arg10[%c23_53, %c0_54] : memref<696x128xf32, #tpu.memory_space<vmem>>, vector<648x128xf32>
    %c0_55 = arith.constant 0 : index
    %c384_56 = arith.constant 384 : index
    %63 = vector.load %arg9[%c0_55, %c384_56] : memref<648x1152xf32, #tpu.memory_space<vmem>>, vector<648x128xf32>
    tpu.vector_store %arg9[%c0_55, %c384_56], %62 {strides = array<i32>} : memref<648x1152xf32, #tpu.memory_space<vmem>>, vector<648x128xf32>,
    %c24_57 = arith.constant 24 : index
    %c0_58 = arith.constant 0 : index
    %64 = vector.load %arg10[%c24_57, %c0_58] : memref<696x128xf32, #tpu.memory_space<vmem>>, vector<648x128xf32>
    %c0_59 = arith.constant 0 : index
    %c512_60 = arith.constant 512 : index
    %65 = vector.load %arg9[%c0_59, %c512_60] : memref<648x1152xf32, #tpu.memory_space<vmem>>, vector<648x128xf32>
    tpu.vector_store %arg9[%c0_59, %c512_60], %64 {strides = array<i32>} : memref<648x1152xf32, #tpu.memory_space<vmem>>, vector<648x128xf32>,
    %c25_61 = arith.constant 25 : index
    %c0_62 = arith.constant 0 : index
    %66 = vector.load %arg10[%c25_61, %c0_62] : memref<696x128xf32, #tpu.memory_space<vmem>>, vector<648x128xf32>
    %c0_63 = arith.constant 0 : index
    %c640_64 = arith.constant 640 : index
    %67 = vector.load %arg9[%c0_63, %c640_64] : memref<648x1152xf32, #tpu.memory_space<vmem>>, vector<648x128xf32>
    tpu.vector_store %arg9[%c0_63, %c640_64], %66 {strides = array<i32>} : memref<648x1152xf32, #tpu.memory_space<vmem>>, vector<648x128xf32>,
    %c41_65 = arith.constant 41 : index
    %c0_66 = arith.constant 0 : index
    %68 = vector.load %arg10[%c41_65, %c0_66] : memref<696x128xf32, #tpu.memory_space<vmem>>, vector<648x128xf32>
    %c0_67 = arith.constant 0 : index
    %c768_68 = arith.constant 768 : index
    %69 = vector.load %arg9[%c0_67, %c768_68] : memref<648x1152xf32, #tpu.memory_space<vmem>>, vector<648x128xf32>
    tpu.vector_store %arg9[%c0_67, %c768_68], %68 {strides = array<i32>} : memref<648x1152xf32, #tpu.memory_space<vmem>>, vector<648x128xf32>,
    %c42_69 = arith.constant 42 : index
    %c0_70 = arith.constant 0 : index
    %70 = vector.load %arg10[%c42_69, %c0_70] : memref<696x128xf32, #tpu.memory_space<vmem>>, vector<648x128xf32>
    %c0_71 = arith.constant 0 : index
    %c896_72 = arith.constant 896 : index
    %71 = vector.load %arg9[%c0_71, %c896_72] : memref<648x1152xf32, #tpu.memory_space<vmem>>, vector<648x128xf32>
    tpu.vector_store %arg9[%c0_71, %c896_72], %70 {strides = array<i32>} : memref<648x1152xf32, #tpu.memory_space<vmem>>, vector<648x128xf32>,
    %c43_73 = arith.constant 43 : index
    %c0_74 = arith.constant 0 : index
    %72 = vector.load %arg10[%c43_73, %c0_74] : memref<696x128xf32, #tpu.memory_space<vmem>>, vector<648x128xf32>
    %c0_75 = arith.constant 0 : index
    %c1024_76 = arith.constant 1024 : index
    %73 = vector.load %arg9[%c0_75, %c1024_76] : memref<648x1152xf32, #tpu.memory_space<vmem>>, vector<648x128xf32>
    tpu.vector_store %arg9[%c0_75, %c1024_76], %72 {strides = array<i32>} : memref<648x1152xf32, #tpu.memory_space<vmem>>, vector<648x128xf32>,
    %c0_77 = arith.constant 0 : index
    %c0_78 = arith.constant 0 : index
    %74 = vector.load %arg9[%c0_77, %c0_78] : memref<648x1152xf32, #tpu.memory_space<vmem>>, vector<648x1152xf32>
    %c0_79 = arith.constant 0 : index
    %c0_80 = arith.constant 0 : index
    %75 = vector.load %arg5[%c0_79, %c0_80] : memref<1152x128xf32, #tpu.memory_space<vmem>>, vector<1152x128xf32>
    %cst_81 = arith.constant dense<0.000000e+00> : vector<648x128xf32>
    %76 = tpu.matmul %74, %75, %cst_81 {dimension_numbers = #tpu.dot_dimension_numbers<[1], [0], [0], [1], [0, 0, 1, 1], [], []>} : vector<648x1152xf32>, vector<1152x128xf32>, vector<648x128xf32> -> vector<648x128xf32>
    %77 = vector.broadcast %0 : vector<648x1xf32> to vector<648x128xf32>
    %78 = arith.mulf %76, %77 : vector<648x128xf32>
    %cst_82 = arith.constant dense<0.000000e+00> : vector<128xf32>
    %79 = vector.multi_reduction <add>, %78, %cst_82 [0] : vector<648x128xf32> to vector<128xf32>
    %80 = vector.shape_cast %79 : vector<128xf32> to vector<1x128xf32>
    %cst_83 = arith.constant 0.001953125 : f32
    %81 = vector.broadcast %cst_83 : f32 to vector<1x128xf32>
    %82 = arith.mulf %80, %81 : vector<1x128xf32>
    %83 = arith.mulf %78, %78 : vector<648x128xf32>
    %cst_84 = arith.constant dense<0.000000e+00> : vector<128xf32>
    %84 = vector.multi_reduction <add>, %83, %cst_84 [0] : vector<648x128xf32> to vector<128xf32>
    %85 = vector.shape_cast %84 : vector<128xf32> to vector<1x128xf32>
    %cst_85 = arith.constant 0.001953125 : f32
    %86 = vector.broadcast %cst_85 : f32 to vector<1x128xf32>
    %87 = arith.mulf %85, %86 : vector<1x128xf32>
    %88 = arith.mulf %82, %82 : vector<1x128xf32>
    %89 = arith.subf %87, %88 : vector<1x128xf32>
    %c0_86 = arith.constant 0 : index
    %c0_87 = arith.constant 0 : index
    %90 = vector.load %arg6[%c0_86, %c0_87] : memref<1x128xf32, #tpu.memory_space<vmem>>, vector<1x128xf32>
    %cst_88 = arith.constant 9.99999974E-6 : f32
    %91 = vector.broadcast %cst_88 : f32 to vector<1x128xf32>
    %92 = arith.addf %89, %91 : vector<1x128xf32>
    %93 = math.rsqrt %92 : vector<1x128xf32>
    %94 = arith.mulf %90, %93 : vector<1x128xf32>
    %c0_89 = arith.constant 0 : index
    %c0_90 = arith.constant 0 : index
    %95 = vector.load %arg7[%c0_89, %c0_90] : memref<1x128xf32, #tpu.memory_space<vmem>>, vector<1x128xf32>
    %96 = arith.mulf %82, %94 : vector<1x128xf32>
    %97 = arith.subf %95, %96 : vector<1x128xf32>
    %98 = vector.broadcast %94 : vector<1x128xf32> to vector<648x128xf32>
    %99 = arith.mulf %76, %98 : vector<648x128xf32>
    %100 = vector.broadcast %97 : vector<1x128xf32> to vector<648x128xf32>
    %101 = arith.addf %99, %100 : vector<648x128xf32>
    %c24_91 = arith.constant 24 : index
    %c0_92 = arith.constant 0 : index
    %102 = vector.load %arg0[%c24_91, %c0_92] : memref<696x128xf32, #tpu.memory_space<vmem>>, vector<648x128xf32>
    %103 = arith.addf %101, %102 : vector<648x128xf32>
    %cst_93 = arith.constant 0.000000e+00 : f32
    %104 = vector.broadcast %cst_93 : f32 to vector<648x128xf32>
    %105 = arith.maximumf %103, %104 : vector<648x128xf32>
    %c0_94 = arith.constant 0 : index
    %c0_95 = arith.constant 0 : index
    %106 = vector.load %arg8[%c0_94, %c0_95] : memref<648x128xf32, #tpu.memory_space<vmem>>, vector<648x128xf32>
    tpu.vector_store %arg8[%c0_94, %c0_95], %105 {strides = array<i32>} : memref<648x128xf32, #tpu.memory_space<vmem>>, vector<648x128xf32>,
    return
  }
}

</mosaic_0001>

<bundles_post_ra>
// kernel: tpu_custom_call.1
= control target key start
LH: loop header
LB: loop body
LE: loop exit
PB: predicated region body
PF: predicated region fallthrough
CT: control target
= control target key end

     0   :  { %13 = vsyncpa [#allocation5], 0  ;;  %s18362_s0 = inlined_call_operand.hbm [shape: f32[696,128], index: 0, kind: input, shape index: {}]   ;;  %s18363_s1 = inlined_call_operand.vmem [shape: f32[648,1], index: 1, kind: input, shape index: {}]   ;;  %s18364_s2 = inlined_call_operand.hbm [shape: f32[1152,128], index: 2, kind: input, shape index: {}]   ;;  %s18365_s3 = inlined_call_operand.vmem [shape: f32[1,128], index: 3, kind: input, shape index: {}]   ;;  %s18366_s4 = inlined_call_operand.vmem [shape: f32[1,128], index: 4, kind: input, shape index: {}]   ;;  %s18367_s5 = inlined_call_operand.hbm [shape: f32[1152,128], index: 5, kind: input, shape index: {}]   ;;  %s18368_s6 = inlined_call_operand.vmem [shape: f32[1,128], index: 6, kind: input, shape index: {}]   ;;  %s18369_s7 = inlined_call_operand.vmem [shape: f32[1,128], index: 7, kind: input, shape index: {}]   ;;  %s18370_s8 = inlined_call_operand.hbm [shape: f32[648,128], index: 8, kind: output, shape index: {}]  }
   0x1   :  { %14 = vsyncpa [#allocation8], 0 }
   0x2   :  { %15 = vsyncpa [#allocation6], 0  ;;  %s14132_s27 = smov [#allocation7]   ;;  %s14133_s29 = smov [#allocation4]  }
   0x3   :  { %s35_s28 = sshll.u32 %s14132_s27, 4  ;;  %s21_s30 = sshll.u32 %s14133_s29, 4  ;;  %s36_s28 = int_to_ptr.vmem [resolvable:$true] %s35_s28  ;;  %s14187_s30 = int_to_ptr.vmem [resolvable:$true] %s21_s30 }
   0x4   :  { %s14038_s11 = scalar_lea.hbm %s18364_s2, 18432 }
   0x5   :  { %p14039_p0 = scmp.ne.s32.totalorder %s18364_s2, %s14038_s11  ;;  %p14042_p1 = scmp.lt.u32.totalorder %s14038_s11, %s18364_s2 }
   0x7   :  { %p14044_p2 = pnand %p14042_p1, %p14039_p0 }
   0x9   :  { %14047 = shalt.err (!%p14044_p2)
}
   0xa   :  { %s14048_s16 = scalar_lea.vmem %s36_s28, 18432  ;;  %p14053_p4 = scmp.lt.s32.totalorder %s36_s28, %s36_s28 }
   0xb   :  { %p14049_p3 = scmp.ne.s32.totalorder %s36_s28, %s14048_s16  ;;  %p14054_p5 = scmp.lt.s32.totalorder %s14048_s16, %s14048_s16 }
   0xd   :  { %p14055_p6 = por %p14054_p5, %p14053_p4 }
   0xf   :  { %p14056_p7 = pnand %p14055_p6, %p14049_p3 }
  0x11   :  { %14059 = shalt.err (!%p14056_p7)
}
  0x12   :  { %s14134_s17 = smov 128   ;;  %s14135_s18 = smov 8  }
  0x13   :  { %41 = dma.hbm_to_vmem [thread:$0]  %s18364_s2, 18432, %s36_s28, [#allocation8], %s14134_s17, %s14134_s17, %s14135_s18  }
  0x14   :  { %s14060_s23 = scalar_lea.hbm %s18362_s0, 11136 }
  0x15   :  { %p14061_p8 = scmp.ne.s32.totalorder %s18362_s0, %s14060_s23  ;;  %p14064_p9 = scmp.lt.u32.totalorder %s14060_s23, %s18362_s0 }
  0x17   :  { %p14066_p10 = pnand %p14064_p9, %p14061_p8 }
  0x19   :  { %14069 = shalt.err (!%p14066_p10)
}
  0x1a   :  { %s14070_s29 = scalar_lea.vmem %s14187_s30, 11136  ;;  %p14075_p12 = scmp.lt.s32.totalorder %s14187_s30, %s14187_s30 }
  0x1b   :  { %p14071_p11 = scmp.ne.s32.totalorder %s14187_s30, %s14070_s29  ;;  %p14076_p13 = scmp.lt.s32.totalorder %s14070_s29, %s14070_s29 }
  0x1d   :  { %p14077_p0 = por %p14076_p13, %p14075_p12 }
  0x1f   :  { %p14078_p1 = pnand %p14077_p0, %p14071_p11 }
  0x21   :  { %14081 = shalt.err (!%p14078_p1)
}
  0x22   :  { %27 = dma.hbm_to_vmem [thread:$0]  %s18362_s0, 11136, %s14187_s30, [#allocation5], %s14134_s17, %s14134_s17, %s14135_s18  }
  0x23   :  { %s14136_s9 = smov [#allocation9]   ;;  %s14082_s13 = scalar_lea.hbm %s18367_s5, 18432 }
  0x24   :  { %s51_s10 = sshll.u32 %s14136_s9, 4  ;;  %p14083_p2 = scmp.ne.s32.totalorder %s18367_s5, %s14082_s13  ;;  %s52_s10 = int_to_ptr.vmem [resolvable:$true] %s51_s10 }
  0x25   :  { %p14086_p3 = scmp.lt.u32.totalorder %s14082_s13, %s18367_s5 }
  0x27   :  { %p14088_p4 = pnand %p14086_p3, %p14083_p2 }
  0x29   :  { %14091 = shalt.err (!%p14088_p4)
}
  0x2a   :  { %s14092_s20 = scalar_lea.vmem %s52_s10, 18432  ;;  %p14097_p6 = scmp.lt.s32.totalorder %s52_s10, %s52_s10 }
  0x2b   :  { %p14093_p5 = scmp.ne.s32.totalorder %s52_s10, %s14092_s20  ;;  %p14098_p7 = scmp.lt.s32.totalorder %s14092_s20, %s14092_s20 }
  0x2d   :  { %p14099_p8 = por %p14098_p7, %p14097_p6 }
  0x2f   :  { %p14100_p9 = pnand %p14099_p8, %p14093_p5 }
  0x31   :  { %14103 = shalt.err (!%p14100_p9)
}
  0x32   :  { %57 = dma.hbm_to_vmem [thread:$0]  %s18367_s5, 18432, %s52_s10, [#allocation8], %s14134_s17, %s14134_s17, %s14135_s18  }
  0x33   :  { %14126 = dma.done.wait [#allocation5], 11136  }
  0x34   :  { %14127 = vsyncadd [#allocation5], 4294956160 }
  0x35   :  { %14128 = dma.done.wait [#allocation8], 36864  }
  0x36   :  { %14129 = vsyncadd [#allocation8], 4294930432  ;;  %v18371_v0 = vmov 0.0|0.0   ;;  %v2345_v1 = vld [vmem:[#allocation7] sm:$0xff]  ;;  %v2346_v2 = vld [vmem:[#allocation7 + $0x8] sm:$0xff]  ;;  %vm14140_vm0 = vmmov 0  }
  0x37   :  { %12292 = vmatprep.subr.bf16.mxu0 %v18371_v0  ;;  %12508 = vmatprep.subr.bf16.mxu1 %v18371_v0  ;;  %v2347_v3 = vld [vmem:[#allocation7 + $0x10] sm:$0xff]  ;;  %v12293_v4 = vpack.c.bf16 %v2346_v2, %v2345_v1  ;;  %v2348_v5 = vld [vmem:[#allocation7 + $0x18] sm:$0xff]  ;;  %v2349_v7 = vld [vmem:[#allocation7 + $0x20] sm:$0xff] }
  0x38   :  { %v12296_v6 = vpack.c.bf16 %v2348_v5, %v2347_v3  ;;  %v2350_v8 = vld [vmem:[#allocation7 + $0x28] sm:$0xff]  ;;  %v2351_v10 = vld [vmem:[#allocation7 + $0x30] sm:$0xff]  ;;  %v2352_v11 = vld [vmem:[#allocation7 + $0x38] sm:$0xff] }
  0x39   :  { %12294 = vmatpush1.bf16.msra.mxu0 %v12293_v4  ;;  %v12299_v9 = vpack.c.bf16 %v2350_v8, %v2349_v7  ;;  %v320_v12 = vld [vmem:[#allocation4 + $0x6] sm:$0xff]  ;;  %v12302_v13 = vpack.c.bf16 %v2352_v11, %v2351_v10  ;;  %v2353_v14 = vld [vmem:[#allocation7 + $0x40] sm:$0xff]  ;;  %v2356_v18 = vld [vmem:[#allocation7 + $0x58] sm:$0xff] }
  0x3a   :  { %12295 = vmatprep.subr.bf16.mxu0 %v18371_v0  ;;  %2553 = vmatprep.mubr.f32.mxu0 %v320_v12  ;;  %v2354_v15 = vld [vmem:[#allocation7 + $0x48] sm:$0xff]  ;;  %v2355_v17 = vld [vmem:[#allocation7 + $0x50] sm:$0xff]  ;;  %v2357_v20 = vld [vmem:[#allocation7 + $0x60] sm:$0xff] }
  0x3b   :  { %v12305_v16 = vpack.c.bf16 %v2354_v15, %v2353_v14  ;;  %v12308_v19 = vpack.c.bf16 %v2356_v18, %v2355_v17  ;;  %v2358_v21 = vld [vmem:[#allocation7 + $0x68] sm:$0xff]  ;;  %v2359_v23 = vld [vmem:[#allocation7 + $0x70] sm:$0xff]  ;;  %v2360_v24 = vld [vmem:[#allocation7 + $0x78] sm:$0xff] }
  0x3c   :  { %v12311_v22 = vpack.c.bf16 %v2358_v21, %v2357_v20  ;;  %v12314_v25 = vpack.c.bf16 %v2360_v24, %v2359_v23  ;;  %v2361_v26 = vld [vmem:[#allocation7 + $0x80] sm:$0xff]  ;;  %v2362_v27 = vld [vmem:[#allocation7 + $0x88] sm:$0xff]  ;;  %v2363_v29 = vld [vmem:[#allocation7 + $0x90] sm:$0xff] }
  0x3d   :  { %12297 = vmatpush1.bf16.msra.mxu0 %v12296_v6  ;;  %v12317_v28 = vpack.c.bf16 %v2362_v27, %v2361_v26  ;;  %v2364_v30 = vld [vmem:[#allocation7 + $0x98] sm:$0xff]  ;;  %v2365_v32 = vld [vmem:[#allocation7 + $0xa0] sm:$0xff]  ;;  %v2366_v33 = vld [vmem:[#allocation7 + $0xa8] sm:$0xff] }
  0x3e   :  { %12298 = vmatprep.subr.bf16.mxu0 %v18371_v0  ;;  %v12320_v31 = vpack.c.bf16 %v2364_v30, %v2363_v29  ;;  %v12323_v34 = vpack.c.bf16 %v2366_v33, %v2365_v32  ;;  %v2367_v35 = vld [vmem:[#allocation7 + $0xb0] sm:$0xff]  ;;  %v2368_v36 = vld [vmem:[#allocation7 + $0xb8] sm:$0xff]  ;;  %v2369_v38 = vld [vmem:[#allocation7 + $0xc0] sm:$0xff] }
  0x3f   :  { %v12326_v37 = vpack.c.bf16 %v2368_v36, %v2367_v35  ;;  %v2370_v39 = vld [vmem:[#allocation7 + $0xc8] sm:$0xff]  ;;  %v2371_v41 = vld [vmem:[#allocation7 + $0xd0] sm:$0xff]  ;;  %v2372_v42 = vld [vmem:[#allocation7 + $0xd8] sm:$0xff] }
  0x40   :  { %v12329_v40 = vpack.c.bf16 %v2370_v39, %v2369_v38  ;;  %v12332_v43 = vpack.c.bf16 %v2372_v42, %v2371_v41  ;;  %v2373_v44 = vld [vmem:[#allocation7 + $0xe0] sm:$0xff]  ;;  %v2374_v45 = vld [vmem:[#allocation7 + $0xe8] sm:$0xff]  ;;  %v2375_v47 = vld [vmem:[#allocation7 + $0xf0] sm:$0xff] }
  0x41   :  { %12300 = vmatpush1.bf16.msra.mxu0 %v12299_v9  ;;  %v12335_v46 = vpack.c.bf16 %v2374_v45, %v2373_v44  ;;  %v2376_v48 = vld [vmem:[#allocation7 + $0xf8] sm:$0xff]  ;;  %v2377_v50 = vld [vmem:[#allocation7 + $0x100] sm:$0xff]  ;;  %v2378_v51 = vld [vmem:[#allocation7 + $0x108] sm:$0xff] }
  0x42   :  { %12301 = vmatprep.subr.bf16.mxu0 %v18371_v0  ;;  %v12338_v49 = vpack.c.bf16 %v2376_v48, %v2375_v47  ;;  %v158_v52 = vld [vmem:[#allocation4 + $0x5] sm:$0xff]  ;;  %v12341_v53 = vpack.c.bf16 %v2378_v51, %v2377_v50  ;;  %v321_v54 = vld [vmem:[#allocation4 + $0xe] sm:$0xff]  ;;  %v322_v59 = vld [vmem:[#allocation4 + $0x16] sm:$0xff] }
  0x43   :  { %v2379_v55 = vld [vmem:[#allocation7 + $0x110] sm:$0xff]  ;;  %v2380_v56 = vld [vmem:[#allocation7 + $0x118] sm:$0xff]  ;;  %v2381_v60 = vld [vmem:[#allocation7 + $0x120] sm:$0xff] }
  0x44   :  { %v159_v57 = vld [vmem:[#allocation4 + $0xd] sm:$0xff]  ;;  %v12344_v58 = vpack.c.bf16 %v2380_v56, %v2379_v55  ;;  %v2382_v61 = vld [vmem:[#allocation7 + $0x128] sm:$0xff]  ;;  %v160_v62 = vld [vmem:[#allocation4 + $0x15] sm:$0xff] }
  0x45   :  { %12303 = vmatpush1.bf16.msra.mxu0 %v12302_v13  ;;  %v12347_v63 = vpack.c.bf16 %v2382_v61, %v2381_v60  ;;  %v323_v1 = vld [vmem:[#allocation4 + $0x1e] sm:$0xff]  ;;  %v2383_v2 = vld [vmem:[#allocation7 + $0x130] sm:$0xff]  ;;  %v2384_v3 = vld [vmem:[#allocation7 + $0x138] sm:$0xff] }
  0x46   :  { %12304 = vmatprep.subr.bf16.mxu0 %v18371_v0  ;;  %v161_v4 = vld [vmem:[#allocation4 + $0x1d] sm:$0xff]  ;;  %v12350_v5 = vpack.c.bf16 %v2384_v3, %v2383_v2  ;;  %v324_v6 = vld [vmem:[#allocation4 + $0x26] sm:$0xff]  ;;  %v325_v11 = vld [vmem:[#allocation4 + $0x2e] sm:$0xff] }
  0x47   :  { %v2385_v7 = vld [vmem:[#allocation7 + $0x140] sm:$0xff]  ;;  %v2386_v8 = vld [vmem:[#allocation7 + $0x148] sm:$0xff]  ;;  %v2387_v12 = vld [vmem:[#allocation7 + $0x150] sm:$0xff] }
  0x48   :  { %v162_v9 = vld [vmem:[#allocation4 + $0x25] sm:$0xff]  ;;  %v12353_v10 = vpack.c.bf16 %v2386_v8, %v2385_v7  ;;  %v2388_v13 = vld [vmem:[#allocation7 + $0x158] sm:$0xff]  ;;  %v2389_v17 = vld [vmem:[#allocation7 + $0x160] sm:$0xff] }
  0x49   :  { %12306 = vmatpush1.bf16.msra.mxu0 %v12305_v16  ;;  %v163_v14 = vld [vmem:[#allocation4 + $0x2d] sm:$0xff]  ;;  %v12356_v15 = vpack.c.bf16 %v2388_v13, %v2387_v12  ;;  %v326_v16 = vld [vmem:[#allocation4 + $0x36] sm:$0xff]  ;;  %v2390_v18 = vld [vmem:[#allocation7 + $0x168] sm:$0xff] }
  0x4a   :  { %12307 = vmatprep.subr.bf16.mxu0 %v18371_v0  ;;  %v12359_v20 = vpack.c.bf16 %v2390_v18, %v2389_v17  ;;  %v327_v21 = vld [vmem:[#allocation4 + $0x3e] sm:$0xff]  ;;  %v2392_v23 = vld [vmem:[#allocation7 + $0x178] sm:$0xff]  ;;  %v328_v26 = vld [vmem:[#allocation4 + $0x46] sm:$0xff] }
  0x4b   :  { %v165_v24 = vld [vmem:[#allocation4 + $0x3d] sm:$0xff]  ;;  %v166_v27 = vld [vmem:[#allocation4 + $0x45] sm:$0xff]  ;;  %v167_v29 = vld [vmem:[#allocation4 + $0x4d] sm:$0xff] }
  0x4c   :  { %v2393_v30 = vld [vmem:[#allocation7 + $0x180] sm:$0xff]  ;;  %v170_v38 = vld [vmem:[#allocation4 + $0x65] sm:$0xff]  ;;  %v333_v39 = vld [vmem:[#allocation4 + $0x6e] sm:$0xff] }
  0x4d   :  { %12309 = vmatpush1.bf16.msra.mxu0 %v12308_v19  ;;  %v164_v19 = vld [vmem:[#allocation4 + $0x35] sm:$0xff]  ;;  %v331_v35 = vld [vmem:[#allocation4 + $0x5e] sm:$0xff]  ;;  %v2395_v44 = vld [vmem:[#allocation7 + $0x190] sm:$0xff] }
  0x4e   :  { %12310 = vmatprep.subr.bf16.mxu0 %v18371_v0  ;;  %v330_v32 = vld [vmem:[#allocation4 + $0x56] sm:$0xff]  ;;  %v336_v48 = vld [vmem:[#allocation4 + $0x86] sm:$0xff]  ;;  %v337_v50 = vld [vmem:[#allocation4 + $0x8e] sm:$0xff] }
  0x4f   :  { %v169_v36 = vld [vmem:[#allocation4 + $0x5d] sm:$0xff]  ;;  %v172_v42 = vld [vmem:[#allocation4 + $0x75] sm:$0xff]  ;;  %v175_v51 = vld [vmem:[#allocation4 + $0x8d] sm:$0xff] }
  0x50   :  { %v334_v41 = vld [vmem:[#allocation4 + $0x76] sm:$0xff]  ;;  %v340_v56 = vld [vmem:[#allocation4 + $0xa6] sm:$0xff]  ;;  %v341_v61 = vld [vmem:[#allocation4 + $0xae] sm:$0xff] }
  0x51   :  { %12312 = vmatpush1.bf16.msra.mxu0 %v12311_v22  ;;  %v2391_v22 = vld [vmem:[#allocation7 + $0x170] sm:$0xff]  ;;  %v2396_v45 = vld [vmem:[#allocation7 + $0x198] sm:$0xff]  ;;  %v177_v55 = vld [vmem:[#allocation4 + $0x9d] sm:$0xff] }
  0x52   :  { %12313 = vmatprep.subr.bf16.mxu0 %v18371_v0  ;;  %v12368_v47 = vpack.c.bf16 %v2396_v45, %v2395_v44  ;;  %v343_v2 = vld [vmem:[#allocation4 + $0xbe] sm:$0xff]  ;;  %v2399_v7 = vld [vmem:[#allocation7 + $0x1b0] sm:$0xff]  ;;  %v2400_v8 = vld [vmem:[#allocation7 + $0x1b8] sm:$0xff] }
  0x53   :  { %v181_v3 = vld [vmem:[#allocation4 + $0xbd] sm:$0xff]  ;;  %v184_v12 = vld [vmem:[#allocation4 + $0xd5] sm:$0xff]  ;;  %v187_v18 = vld [vmem:[#allocation4 + $0xed] sm:$0xff] }
  0x54   :  { %v347_v13 = vld [vmem:[#allocation4 + $0xde] sm:$0xff]  ;;  %v349_v17 = vld [vmem:[#allocation4 + $0xee] sm:$0xff]  ;;  %v360_v45 = vld [vmem:[#allocation4 + $0x146] sm:$0xff] }
  0x55   :  { %12315 = vmatpush1.bf16.msra.mxu0 %v12314_v25  ;;  %v12362_v25 = vpack.c.bf16 %v2392_v23, %v2391_v22  ;;  %v188_v22 = vld [vmem:[#allocation4 + $0xf5] sm:$0xff]  ;;  %v197_v44 = vld [vmem:[#allocation4 + $0x13d] sm:$0xff] }
  0x56   :  { %12316 = vmatprep.subr.bf16.mxu0 %v18371_v0 }
  0x59   :  { %12318 = vmatpush1.bf16.msra.mxu0 %v12317_v28  ;;  %v329_v28 = vld [vmem:[#allocation4 + $0x4e] sm:$0xff] }
  0x5a   :  { %12319 = vmatprep.subr.bf16.mxu0 %v18371_v0 }
  0x5d   :  { %12321 = vmatpush1.bf16.msra.mxu0 %v12320_v31  ;;  %v2394_v31 = vld [vmem:[#allocation7 + $0x188] sm:$0xff] }
  0x5e   :  { %12322 = vmatprep.subr.bf16.mxu0 %v18371_v0  ;;  %v12365_v33 = vpack.c.bf16 %v2394_v31, %v2393_v30  ;;  %v354_v30 = vld [vmem:[#allocation4 + $0x116] sm:$0xff] }
  0x5f   :  { %v192_v31 = vld [vmem:[#allocation4 + $0x115] sm:$0xff] }
  0x61   :  { %12324 = vmatpush1.bf16.msra.mxu0 %v12323_v34  ;;  %v168_v34 = vld [vmem:[#allocation4 + $0x55] sm:$0xff] }
  0x62   :  { %12325 = vmatprep.subr.bf16.mxu0 %v18371_v0 }
  0x65   :  { %12327 = vmatpush1.bf16.msra.mxu0 %v12326_v37  ;;  %v332_v37 = vld [vmem:[#allocation4 + $0x66] sm:$0xff] }
  0x66   :  { %12328 = vmatprep.subr.bf16.mxu0 %v18371_v0 }
  0x69   :  { %12330 = vmatpush1.bf16.msra.mxu0 %v12329_v40  ;;  %v171_v40 = vld [vmem:[#allocation4 + $0x6d] sm:$0xff] }
  0x6a   :  { %12331 = vmatprep.subr.bf16.mxu0 %v18371_v0 }
  0x6d   :  { %12333 = vmatpush1.bf16.msra.mxu0 %v12332_v43  ;;  %v335_v43 = vld [vmem:[#allocation4 + $0x7e] sm:$0xff] }
  0x6e   :  { %12334 = vmatprep.subr.bf16.mxu0 %v18371_v0 }
  0x71   :  { %12336 = vmatpush1.bf16.msra.mxu0 %v12335_v46  ;;  %v173_v46 = vld [vmem:[#allocation4 + $0x7d] sm:$0xff] }
  0x72   :  { %12337 = vmatprep.subr.bf16.mxu0 %v18371_v0 }
  0x75   :  { %12339 = vmatpush1.bf16.msra.mxu0 %v12338_v49  ;;  %v174_v49 = vld [vmem:[#allocation4 + $0x85] sm:$0xff] }
  0x76   :  { %12340 = vmatprep.subr.bf16.mxu0 %v18371_v0 }
  0x78   :  { %2554 = vmatmul.mubr.f32.vlgmr.msra.gmra.mrb[0].mxu0 %v158_v52  ;;  %v338_v52 = vld [vmem:[#allocation4 + $0x96] sm:$0xff] }
  0x79   :  { %12342 = vmatpush1.bf16.msra.mxu0 %v12341_v53  ;;  %2558 = vmatprep.mubr.f32.mxu0 %v321_v54  ;;  %v176_v53 = vld [vmem:[#allocation4 + $0x95] sm:$0xff]  ;;  %v339_v54 = vld [vmem:[#allocation4 + $0x9e] sm:$0xff] }
  0x7a   :  { %12343 = vmatprep.subr.bf16.mxu0 %v18371_v0 }
  0x7c   :  { %2559 = vmatmul.mubr.f32.gmra.mrb[2].mxu0 %v159_v57  ;;  %v2397_v57 = vld [vmem:[#allocation7 + $0x1a0] sm:$0xff] }
  0x7d   :  { %2563 = vmatprep.mubr.f32.mxu0 %v322_v59  ;;  %12345 = vmatpush1.bf16.msra.mxu0 %v12344_v58  ;;  %v2398_v58 = vld [vmem:[#allocation7 + $0x1a8] sm:$0xff] }
  0x7e   :  { %12346 = vmatprep.subr.bf16.mxu0 %v18371_v0  ;;  %v178_v59 = vld [vmem:[#allocation4 + $0xa5] sm:$0xff]  ;;  %v12371_v60 = vpack.c.bf16 %v2398_v58, %v2397_v57  ;;  %v365_v58 = vld [vmem:[#allocation4 + $0x16e] sm:$0xff] }
  0x7f   :  { %v202_v57 = vld [vmem:[#allocation4 + $0x165] sm:$0xff] }
  0x80   :  { %2564 = vmatmul.mubr.f32.gmra.mrb[4].mxu0 %v160_v62  ;;  %v179_v62 = vld [vmem:[#allocation4 + $0xad] sm:$0xff] }
  0x81   :  { %2568 = vmatprep.mubr.f32.mxu0 %v323_v1  ;;  %12348 = vmatpush1.bf16.msra.mxu0 %v12347_v63  ;;  %v342_v63 = vld [vmem:[#allocation4 + $0xb6] sm:$0xff] }
  0x82   :  { %12349 = vmatprep.subr.bf16.mxu0 %v18371_v0  ;;  %v180_v1 = vld [vmem:[#allocation4 + $0xb5] sm:$0xff] }
  0x84   :  { %2569 = vmatmul.mubr.f32.gmra.mrb[6].mxu0 %v161_v4  ;;  %v344_v4 = vld [vmem:[#allocation4 + $0xc6] sm:$0xff] }
  0x85   :  { %2573 = vmatprep.mubr.f32.mxu0 %v324_v6  ;;  %12351 = vmatpush1.bf16.msra.mxu0 %v12350_v5  ;;  %v182_v5 = vld [vmem:[#allocation4 + $0xc5] sm:$0xff]  ;;  %v345_v6 = vld [vmem:[#allocation4 + $0xce] sm:$0xff] }
  0x86   :  { %12352 = vmatprep.subr.bf16.mxu0 %v18371_v0 }
  0x88   :  { %2574 = vmatmul.mubr.f32.gmra.mrb[8].mxu0 %v162_v9  ;;  %v183_v9 = vld [vmem:[#allocation4 + $0xcd] sm:$0xff] }
  0x89   :  { %2578 = vmatprep.mubr.f32.mxu0 %v325_v11  ;;  %12354 = vmatpush1.bf16.msra.mxu0 %v12353_v10  ;;  %v12374_v10 = vpack.c.bf16 %v2400_v8, %v2399_v7  ;;  %v346_v11 = vld [vmem:[#allocation4 + $0xd6] sm:$0xff]  ;;  %v207_v7 = vld [vmem:[#allocation4 + $0x18d] sm:$0xff] }
  0x8a   :  { %12355 = vmatprep.subr.bf16.mxu0 %v18371_v0  ;;  %v370_v8 = vld [vmem:[#allocation4 + $0x196] sm:$0xff] }
  0x8c   :  { %2579 = vmatmul.mubr.f32.gmra.mrb[10].mxu0 %v163_v14  ;;  %v185_v14 = vld [vmem:[#allocation4 + $0xdd] sm:$0xff] }
  0x8d   :  { %2583 = vmatprep.mubr.f32.mxu0 %v326_v16  ;;  %12357 = vmatpush1.bf16.msra.mxu0 %v12356_v15  ;;  %v348_v15 = vld [vmem:[#allocation4 + $0xe6] sm:$0xff] }
  0x8e   :  { %12358 = vmatprep.subr.bf16.mxu0 %v18371_v0  ;;  %v186_v16 = vld [vmem:[#allocation4 + $0xe5] sm:$0xff] }
  0x90   :  { %2584 = vmatmul.mubr.f32.gmra.mrb[12].mxu0 %v164_v19  ;;  %v350_v19 = vld [vmem:[#allocation4 + $0xf6] sm:$0xff] }
  0x91   :  { %2588 = vmatprep.mubr.f32.mxu0 %v327_v21  ;;  %12360 = vmatpush1.bf16.msra.mxu0 %v12359_v20  ;;  %v2401_v20 = vld [vmem:[#allocation7 + $0x1c0] sm:$0xff]  ;;  %v2402_v21 = vld [vmem:[#allocation7 + $0x1c8] sm:$0xff] }
  0x92   :  { %12361 = vmatprep.subr.bf16.mxu0 %v18371_v0  ;;  %v12377_v23 = vpack.c.bf16 %v2402_v21, %v2401_v20  ;;  %v376_v20 = vld [vmem:[#allocation4 + $0x1c6] sm:$0xff] }
  0x93   :  { %v214_v21 = vld [vmem:[#allocation4 + $0x1c5] sm:$0xff] }
  0x94   :  { %2589 = vmatmul.mubr.f32.gmra.mrb[14].mxu0 %v165_v24  ;;  %v351_v24 = vld [vmem:[#allocation4 + $0xfe] sm:$0xff] }
  0x95   :  { %2593 = vmatprep.mubr.f32.mxu0 %v328_v26  ;;  %12363 = vmatpush1.bf16.msra.mxu0 %v12362_v25  ;;  %v189_v25 = vld [vmem:[#allocation4 + $0xfd] sm:$0xff]  ;;  %v352_v26 = vld [vmem:[#allocation4 + $0x106] sm:$0xff] }
  0x96   :  { %12364 = vmatprep.subr.bf16.mxu0 %v18371_v0 }
  0x98   :  { %2594 = vmatmul.mubr.f32.gmra.mrb[16].mxu0 %v166_v27  ;;  %v190_v27 = vld [vmem:[#allocation4 + $0x105] sm:$0xff] }
  0x99   :  { %2598 = vmatprep.mubr.f32.mxu0 %v329_v28  ;;  %12366 = vmatpush1.bf16.msra.mxu0 %v12365_v33  ;;  %v353_v28 = vld [vmem:[#allocation4 + $0x10e] sm:$0xff] }
  0x9a   :  { %12367 = vmatprep.subr.bf16.mxu0 %v18371_v0  ;;  %v2403_v33 = vld [vmem:[#allocation7 + $0x1d0] sm:$0xff] }
  0x9c   :  { %2599 = vmatmul.mubr.f32.gmra.mrb[18].mxu0 %v167_v29  ;;  %v191_v29 = vld [vmem:[#allocation4 + $0x10d] sm:$0xff] }
  0x9d   :  { %2603 = vmatprep.mubr.f32.mxu0 %v330_v32  ;;  %12369 = vmatpush1.bf16.msra.mxu0 %v12368_v47  ;;  %v355_v32 = vld [vmem:[#allocation4 + $0x11e] sm:$0xff] }
  0x9e   :  { %12370 = vmatprep.subr.bf16.mxu0 %v18371_v0  ;;  %v2406_v47 = vld [vmem:[#allocation7 + $0x1e8] sm:$0xff] }
  0xa0   :  { %2604 = vmatmul.mubr.f32.gmra.mrb[20].mxu0 %v168_v34  ;;  %v2404_v34 = vld [vmem:[#allocation7 + $0x1d8] sm:$0xff] }
  0xa1   :  { %2608 = vmatprep.mubr.f32.mxu0 %v331_v35  ;;  %12372 = vmatpush1.bf16.msra.mxu0 %v12371_v60  ;;  %v193_v35 = vld [vmem:[#allocation4 + $0x11d] sm:$0xff]  ;;  %v2408_v60 = vld [vmem:[#allocation7 + $0x1f8] sm:$0xff] }
  0xa2   :  { %12373 = vmatprep.subr.bf16.mxu0 %v18371_v0 }
  0xa4   :  { %2609 = vmatmul.mubr.f32.gmra.mrb[22].mxu0 %v169_v36  ;;  %v12380_v36 = vpack.c.bf16 %v2404_v34, %v2403_v33  ;;  %v220_v33 = vld [vmem:[#allocation4 + $0x1f5] sm:$0xff]  ;;  %v383_v34 = vld [vmem:[#allocation4 + $0x1fe] sm:$0xff] }
  0xa5   :  { %2613 = vmatprep.mubr.f32.mxu0 %v332_v37  ;;  %12375 = vmatpush1.bf16.msra.mxu0 %v12374_v10  ;;  %v356_v37 = vld [vmem:[#allocation4 + $0x126] sm:$0xff]  ;;  %v371_v10 = vld [vmem:[#allocation4 + $0x19e] sm:$0xff] }
  0xa6   :  { %12376 = vmatprep.subr.bf16.mxu0 %v18371_v0 }
  0xa8   :  { %2614 = vmatmul.mubr.f32.gmra.mrb[24].mxu0 %v170_v38  ;;  %v194_v38 = vld [vmem:[#allocation4 + $0x125] sm:$0xff] }
  0xa9   :  { %2618 = vmatprep.mubr.f32.mxu0 %v333_v39  ;;  %12378 = vmatpush1.bf16.msra.mxu0 %v12377_v23  ;;  %v357_v39 = vld [vmem:[#allocation4 + $0x12e] sm:$0xff] }
  0xaa   :  { %12379 = vmatprep.subr.bf16.mxu0 %v18371_v0  ;;  %v215_v23 = vld [vmem:[#allocation4 + $0x1cd] sm:$0xff] }
  0xac   :  { %2619 = vmatmul.mubr.f32.gmra.mrb[26].mxu0 %v171_v40  ;;  %v195_v40 = vld [vmem:[#allocation4 + $0x12d] sm:$0xff] }
  0xad   :  { %2623 = vmatprep.mubr.f32.mxu0 %v334_v41  ;;  %12381 = vmatpush1.bf16.msra.mxu0 %v12380_v36  ;;  %v358_v41 = vld [vmem:[#allocation4 + $0x136] sm:$0xff]  ;;  %v384_v36 = vld [vmem:[#allocation4 + $0x206] sm:$0xff] }
  0xae   :  { %12382 = vmatprep.subr.bf16.mxu0 %v18371_v0 }
  0xb0   :  { %2624 = vmatmul.mubr.f32.gmra.mrb[28].mxu0 %v172_v42  ;;  %v196_v42 = vld [vmem:[#allocation4 + $0x135] sm:$0xff] }
  0xb1   :  { %2628 = vmatprep.mubr.f32.mxu0 %v335_v43  ;;  %v359_v43 = vld [vmem:[#allocation4 + $0x13e] sm:$0xff] }
  0xb4   :  { %2629 = vmatmul.mubr.f32.gmra.mrb[30].mxu0 %v173_v46  ;;  %v2405_v46 = vld [vmem:[#allocation7 + $0x1e0] sm:$0xff] }
  0xb5   :  { %2633 = vmatprep.mubr.f32.mxu0 %v336_v48  ;;  %v198_v48 = vld [vmem:[#allocation4 + $0x145] sm:$0xff] }
  0xb8   :  { %2634 = vmatmul.mubr.f32.gmra.mrb[32].mxu0 %v174_v49  ;;  %v12383_v49 = vpack.c.bf16 %v2406_v47, %v2405_v46  ;;  %v389_v46 = vld [vmem:[#allocation4 + $0x22e] sm:$0xff] }
  0xb9   :  { %2638 = vmatprep.mubr.f32.mxu0 %v337_v50  ;;  %v361_v50 = vld [vmem:[#allocation4 + $0x14e] sm:$0xff] }
  0xba   :  { %12384 = vmatpush1.bf16.msra.mxu0 %v12383_v49  ;;  %v227_v47 = vld [vmem:[#allocation4 + $0x22d] sm:$0xff]  ;;  %v228_v49 = vld [vmem:[#allocation4 + $0x235] sm:$0xff] }
  0xbb   :  { %12385 = vmatprep.subr.bf16.mxu0 %v18371_v0 }
  0xbc   :  { %2639 = vmatmul.mubr.f32.gmra.mrb[34].mxu0 %v175_v51  ;;  %v199_v51 = vld [vmem:[#allocation4 + $0x14d] sm:$0xff] }
  0xbd   :  { %2643 = vmatprep.mubr.f32.mxu0 %v338_v52  ;;  %v362_v52 = vld [vmem:[#allocation4 + $0x156] sm:$0xff] }
  0xc0   :  { %2644 = vmatmul.mubr.f32.gmra.mrb[36].mxu0 %v176_v53  ;;  %v200_v53 = vld [vmem:[#allocation4 + $0x155] sm:$0xff] }
  0xc1   :  { %2648 = vmatprep.mubr.f32.mxu0 %v339_v54  ;;  %v363_v54 = vld [vmem:[#allocation4 + $0x15e] sm:$0xff] }
  0xc4   :  { %2649 = vmatmul.mubr.f32.gmra.mrb[38].mxu0 %v177_v55  ;;  %v201_v55 = vld [vmem:[#allocation4 + $0x15d] sm:$0xff] }
  0xc5   :  { %2653 = vmatprep.mubr.f32.mxu0 %v340_v56  ;;  %v364_v56 = vld [vmem:[#allocation4 + $0x166] sm:$0xff] }
  0xc8   :  { %2654 = vmatmul.mubr.f32.gmra.mrb[40].mxu0 %v178_v59  ;;  %v2407_v59 = vld [vmem:[#allocation7 + $0x1f0] sm:$0xff] }
  0xc9   :  { %2658 = vmatprep.mubr.f32.mxu0 %v341_v61  ;;  %v203_v61 = vld [vmem:[#allocation4 + $0x16d] sm:$0xff] }
  0xcc   :  { %2659 = vmatmul.mubr.f32.gmra.mrb[42].mxu0 %v179_v62  ;;  %v12386_v62 = vpack.c.bf16 %v2408_v60, %v2407_v59  ;;  %v233_v59 = vld [vmem:[#allocation4 + $0x25d] sm:$0xff]  ;;  %v396_v60 = vld [vmem:[#allocation4 + $0x266] sm:$0xff] }
  0xcd   :  { %2663 = vmatprep.mubr.f32.mxu0 %v342_v63  ;;  %v366_v63 = vld [vmem:[#allocation4 + $0x176] sm:$0xff] }
  0xce   :  { %12387 = vmatpush1.bf16.msra.mxu0 %v12386_v62  ;;  %v397_v62 = vld [vmem:[#allocation4 + $0x26e] sm:$0xff] }
  0xcf   :  { %12388 = vmatprep.subr.bf16.mxu0 %v18371_v0 }
  0xd0   :  { %2664 = vmatmul.mubr.f32.gmra.mrb[44].mxu0 %v180_v1  ;;  %v204_v1 = vld [vmem:[#allocation4 + $0x175] sm:$0xff] }
  0xd1   :  { %2668 = vmatprep.mubr.f32.mxu0 %v343_v2  ;;  %v367_v2 = vld [vmem:[#allocation4 + $0x17e] sm:$0xff] }
  0xd4   :  { %2669 = vmatmul.mubr.f32.gmra.mrb[46].mxu0 %v181_v3  ;;  %v205_v3 = vld [vmem:[#allocation4 + $0x17d] sm:$0xff] }
  0xd5   :  { %2673 = vmatprep.mubr.f32.mxu0 %v344_v4  ;;  %v368_v4 = vld [vmem:[#allocation4 + $0x186] sm:$0xff] }
  0xd8   :  { %2674 = vmatmul.mubr.f32.gmra.mrb[48].mxu0 %v182_v5  ;;  %v206_v5 = vld [vmem:[#allocation4 + $0x185] sm:$0xff] }
  0xd9   :  { %2678 = vmatprep.mubr.f32.mxu0 %v345_v6  ;;  %v369_v6 = vld [vmem:[#allocation4 + $0x18e] sm:$0xff] }
  0xdc   :  { %2679 = vmatmul.mubr.f32.gmra.mrb[50].mxu0 %v183_v9  ;;  %v208_v9 = vld [vmem:[#allocation4 + $0x195] sm:$0xff] }
  0xdd   :  { %2683 = vmatprep.mubr.f32.mxu0 %v346_v11  ;;  %v209_v11 = vld [vmem:[#allocation4 + $0x19d] sm:$0xff] }
  0xe0   :  { %2684 = vmatmul.mubr.f32.gmra.mrb[52].mxu0 %v184_v12  ;;  %v372_v12 = vld [vmem:[#allocation4 + $0x1a6] sm:$0xff] }
  0xe1   :  { %2688 = vmatprep.mubr.f32.mxu0 %v347_v13  ;;  %v210_v13 = vld [vmem:[#allocation4 + $0x1a5] sm:$0xff] }
  0xe4   :  { %2689 = vmatmul.mubr.f32.gmra.mrb[54].mxu0 %v185_v14  ;;  %v373_v14 = vld [vmem:[#allocation4 + $0x1ae] sm:$0xff] }
  0xe5   :  { %2693 = vmatprep.mubr.f32.mxu0 %v348_v15  ;;  %v211_v15 = vld [vmem:[#allocation4 + $0x1ad] sm:$0xff] }
  0xe8   :  { %2694 = vmatmul.mubr.f32.gmra.mrb[56].mxu0 %v186_v16  ;;  %v374_v16 = vld [vmem:[#allocation4 + $0x1b6] sm:$0xff] }
  0xe9   :  { %2698 = vmatprep.mubr.f32.mxu0 %v349_v17  ;;  %v212_v17 = vld [vmem:[#allocation4 + $0x1b5] sm:$0xff] }
  0xec   :  { %2699 = vmatmul.mubr.f32.gmra.mrb[58].mxu0 %v187_v18  ;;  %v375_v18 = vld [vmem:[#allocation4 + $0x1be] sm:$0xff] }
  0xed   :  { %2703 = vmatprep.mubr.f32.mxu0 %v350_v19  ;;  %v213_v19 = vld [vmem:[#allocation4 + $0x1bd] sm:$0xff] }
  0xf0   :  { %2704 = vmatmul.mubr.f32.gmra.mrb[60].mxu0 %v188_v22  ;;  %v377_v22 = vld [vmem:[#allocation4 + $0x1ce] sm:$0xff] }
  0xf1   :  { %2708 = vmatprep.mubr.f32.mxu0 %v351_v24  ;;  %v378_v24 = vld [vmem:[#allocation4 + $0x1d6] sm:$0xff] }
  0xf4   :  { %2709 = vmatmul.mubr.f32.gmra.mrb[62].mxu0 %v189_v25  ;;  %v216_v25 = vld [vmem:[#allocation4 + $0x1d5] sm:$0xff] }
  0xf5   :  { %2713 = vmatprep.mubr.f32.mxu0 %v352_v26  ;;  %v379_v26 = vld [vmem:[#allocation4 + $0x1de] sm:$0xff] }
  0xf8   :  { %2714 = vmatmul.mubr.f32.gmra.mrb[64].mxu0 %v190_v27  ;;  %v217_v27 = vld [vmem:[#allocation4 + $0x1dd] sm:$0xff] }
  0xf9   :  { %2718 = vmatprep.mubr.f32.mxu0 %v353_v28  ;;  %v380_v28 = vld [vmem:[#allocation4 + $0x1e6] sm:$0xff] }
  0xfc   :  { %2719 = vmatmul.mubr.f32.gmra.mrb[66].mxu0 %v191_v29  ;;  %v218_v29 = vld [vmem:[#allocation4 + $0x1e5] sm:$0xff] }
  0xfd   :  { %2723 = vmatprep.mubr.f32.mxu0 %v354_v30  ;;  %v381_v30 = vld [vmem:[#allocation4 + $0x1ee] sm:$0xff] }
 0x100   :  { %2724 = vmatmul.mubr.f32.gmra.mrb[68].mxu0 %v192_v31  ;;  %v219_v31 = vld [vmem:[#allocation4 + $0x1ed] sm:$0xff] }
 0x101   :  { %2728 = vmatprep.mubr.f32.mxu0 %v355_v32  ;;  %v382_v32 = vld [vmem:[#allocation4 + $0x1f6] sm:$0xff] }
 0x104   :  { %2729 = vmatmul.mubr.f32.gmra.mrb[70].mxu0 %v193_v35  ;;  %v221_v35 = vld [vmem:[#allocation4 + $0x1fd] sm:$0xff] }
 0x105   :  { %2733 = vmatprep.mubr.f32.mxu0 %v356_v37  ;;  %v222_v37 = vld [vmem:[#allocation4 + $0x205] sm:$0xff] }
 0x108   :  { %2734 = vmatmul.mubr.f32.gmra.mrb[72].mxu0 %v194_v38  ;;  %v385_v38 = vld [vmem:[#allocation4 + $0x20e] sm:$0xff] }
 0x109   :  { %2738 = vmatprep.mubr.f32.mxu0 %v357_v39  ;;  %v223_v39 = vld [vmem:[#allocation4 + $0x20d] sm:$0xff] }
 0x10c   :  { %2739 = vmatmul.mubr.f32.gmra.mrb[74].mxu0 %v195_v40  ;;  %v386_v40 = vld [vmem:[#allocation4 + $0x216] sm:$0xff] }
 0x10d   :  { %2743 = vmatprep.mubr.f32.mxu0 %v358_v41  ;;  %v224_v41 = vld [vmem:[#allocation4 + $0x215] sm:$0xff] }
 0x110   :  { %2744 = vmatmul.mubr.f32.gmra.mrb[76].mxu0 %v196_v42  ;;  %v387_v42 = vld [vmem:[#allocation4 + $0x21e] sm:$0xff] }
 0x111   :  { %2748 = vmatprep.mubr.f32.mxu0 %v359_v43  ;;  %v225_v43 = vld [vmem:[#allocation4 + $0x21d] sm:$0xff] }
 0x114   :  { %2749 = vmatmul.mubr.f32.gmra.mrb[78].mxu0 %v197_v44  ;;  %v388_v44 = vld [vmem:[#allocation4 + $0x226] sm:$0xff] }
 0x115   :  { %2753 = vmatprep.mubr.f32.mxu0 %v360_v45  ;;  %v226_v45 = vld [vmem:[#allocation4 + $0x225] sm:$0xff] }
 0x118   :  { %2754 = vmatmul.mubr.f32.gmra.mrb[80].mxu0 %v198_v48  ;;  %v390_v48 = vld [vmem:[#allocation4 + $0x236] sm:$0xff] }
 0x119   :  { %2758 = vmatprep.mubr.f32.mxu0 %v361_v50  ;;  %v391_v50 = vld [vmem:[#allocation4 + $0x23e] sm:$0xff] }
 0x11c   :  { %2759 = vmatmul.mubr.f32.gmra.mrb[82].mxu0 %v199_v51  ;;  %v229_v51 = vld [vmem:[#allocation4 + $0x23d] sm:$0xff] }
 0x11d   :  { %2763 = vmatprep.mubr.f32.mxu0 %v362_v52  ;;  %v392_v52 = vld [vmem:[#allocation4 + $0x246] sm:$0xff] }
 0x120   :  { %2764 = vmatmul.mubr.f32.gmra.mrb[84].mxu0 %v200_v53  ;;  %v230_v53 = vld [vmem:[#allocation4 + $0x245] sm:$0xff] }
 0x121   :  { %2768 = vmatprep.mubr.f32.mxu0 %v363_v54  ;;  %v393_v54 = vld [vmem:[#allocation4 + $0x24e] sm:$0xff] }
 0x124   :  { %2769 = vmatmul.mubr.f32.gmra.mrb[86].mxu0 %v201_v55  ;;  %v231_v55 = vld [vmem:[#allocation4 + $0x24d] sm:$0xff] }
 0x125   :  { %2773 = vmatprep.mubr.f32.mxu0 %v364_v56  ;;  %v394_v56 = vld [vmem:[#allocation4 + $0x256] sm:$0xff] }
 0x128   :  { %2774 = vmatmul.mubr.f32.gmra.mrb[88].mxu0 %v202_v57  ;;  %v232_v57 = vld [vmem:[#allocation4 + $0x255] sm:$0xff] }
 0x129   :  { %2778 = vmatprep.mubr.f32.mxu0 %v365_v58  ;;  %v395_v58 = vld [vmem:[#allocation4 + $0x25e] sm:$0xff] }
 0x12c   :  { %2779 = vmatmul.mubr.f32.gmra.mrb[90].mxu0 %v203_v61  ;;  %v234_v61 = vld [vmem:[#allocation4 + $0x265] sm:$0xff] }
 0x12d   :  { %2783 = vmatprep.mubr.f32.mxu0 %v366_v63  ;;  %v235_v63 = vld [vmem:[#allocation4 + $0x26d] sm:$0xff] }
 0x130   :  { %2784 = vmatmul.mubr.f32.gmra.mrb[92].mxu0 %v204_v1  ;;  %v398_v1 = vld [vmem:[#allocation4 + $0x276] sm:$0xff] }
 0x131   :  { %2788 = vmatprep.mubr.f32.mxu0 %v367_v2  ;;  %v236_v2 = vld [vmem:[#allocation4 + $0x275] sm:$0xff] }
 0x134   :  { %2789 = vmatmul.mubr.f32.gmra.mrb[94].mxu0 %v205_v3  ;;  %v399_v3 = vld [vmem:[#allocation4 + $0x27e] sm:$0xff] }
 0x135   :  { %2793 = vmatprep.mubr.f32.mxu0 %v368_v4  ;;  %v237_v4 = vld [vmem:[#allocation4 + $0x27d] sm:$0xff] }
 0x138   :  { %2794 = vmatmul.mubr.f32.gmra.mrb[96].mxu0 %v206_v5  ;;  %v400_v5 = vld [vmem:[#allocation4 + $0x286] sm:$0xff] }
 0x139   :  { %2798 = vmatprep.mubr.f32.mxu0 %v369_v6  ;;  %v238_v6 = vld [vmem:[#allocation4 + $0x285] sm:$0xff] }
 0x13c   :  { %2799 = vmatmul.mubr.f32.gmra.mrb[98].mxu0 %v207_v7  ;;  %v644_v7 = vld [vmem:[#allocation4 + $0x17] sm:$0xff] }
 0x13d   :  { %2803 = vmatprep.mubr.f32.mxu0 %v370_v8  ;;  %v2409_v8 = vld [vmem:[#allocation7 + $0x200] sm:$0xff] }
 0x140   :  { %2804 = vmatmul.mubr.f32.gmra.mrb[100].mxu0 %v208_v9  ;;  %v2410_v9 = vld [vmem:[#allocation7 + $0x208] sm:$0xff] }
 0x141   :  { %2808 = vmatprep.mubr.f32.mxu0 %v371_v10  ;;  %v482_v10 = vld [vmem:[#allocation4 + $0x7] sm:$0xff] }
 0x144   :  { %2809 = vmatmul.mubr.f32.gmra.mrb[102].mxu0 %v209_v11  ;;  %v12389_v11 = vpack.c.bf16 %v2410_v9, %v2409_v8  ;;  %v670_v8 = vld [vmem:[#allocation4 + $0xe7] sm:$0xff]  ;;  %v671_v9 = vld [vmem:[#allocation4 + $0xef] sm:$0xff] }
 0x145   :  { %2813 = vmatprep.mubr.f32.mxu0 %v372_v12  ;;  %v645_v12 = vld [vmem:[#allocation4 + $0x1f] sm:$0xff] }
 0x148   :  { %2814 = vmatmul.mubr.f32.gmra.mrb[104].mxu0 %v210_v13  ;;  %v2411_v13 = vld [vmem:[#allocation7 + $0x210] sm:$0xff] }
 0x149   :  { %2818 = vmatprep.mubr.f32.mxu0 %v373_v14  ;;  %v2412_v14 = vld [vmem:[#allocation7 + $0x218] sm:$0xff] }
 0x14c   :  { %2819 = vmatmul.mubr.f32.gmra.mrb[106].mxu0 %v211_v15  ;;  %v483_v15 = vld [vmem:[#allocation4 + $0xf] sm:$0xff] }
 0x14d   :  { %2823 = vmatprep.mubr.f32.mxu0 %v374_v16  ;;  %v12392_v16 = vpack.c.bf16 %v2412_v14, %v2411_v13  ;;  %v2433_v13 = vld [vmem:[#allocation7 + $0x2c0] sm:$0xff]  ;;  %v2434_v14 = vld [vmem:[#allocation7 + $0x2c8] sm:$0xff] }
 0x150   :  { %2824 = vmatmul.mubr.f32.gmra.mrb[108].mxu0 %v212_v17  ;;  %v646_v17 = vld [vmem:[#allocation4 + $0x27] sm:$0xff] }
 0x151   :  { %2828 = vmatprep.mubr.f32.mxu0 %v375_v18  ;;  %v2413_v18 = vld [vmem:[#allocation7 + $0x220] sm:$0xff] }
 0x154   :  { %2829 = vmatmul.mubr.f32.gmra.mrb[110].mxu0 %v213_v19  ;;  %v2414_v19 = vld [vmem:[#allocation7 + $0x228] sm:$0xff] }
 0x155   :  { %2833 = vmatprep.mubr.f32.mxu0 %v376_v20  ;;  %v12395_v20 = vpack.c.bf16 %v2414_v19, %v2413_v18  ;;  %v677_v18 = vld [vmem:[#allocation4 + $0x11f] sm:$0xff]  ;;  %v678_v19 = vld [vmem:[#allocation4 + $0x127] sm:$0xff] }
 0x158   :  { %2834 = vmatmul.mubr.f32.gmra.mrb[112].mxu0 %v214_v21  ;;  %v647_v21 = vld [vmem:[#allocation4 + $0x2f] sm:$0xff] }
 0x159   :  { %2838 = vmatprep.mubr.f32.mxu0 %v377_v22  ;;  %v2415_v22 = vld [vmem:[#allocation7 + $0x230] sm:$0xff] }
 0x15c   :  { %2839 = vmatmul.mubr.f32.gmra.mrb[114].mxu0 %v215_v23  ;;  %v2416_v23 = vld [vmem:[#allocation7 + $0x238] sm:$0xff] }
 0x15d   :  { %2843 = vmatprep.mubr.f32.mxu0 %v378_v24  ;;  %v12398_v24 = vpack.c.bf16 %v2416_v23, %v2415_v22  ;;  %v2436_v22 = vld [vmem:[#allocation7 + $0x2d8] sm:$0xff] }
 0x160   :  { %2844 = vmatmul.mubr.f32.gmra.mrb[116].mxu0 %v216_v25  ;;  %v648_v25 = vld [vmem:[#allocation4 + $0x37] sm:$0xff] }
 0x161   :  { %2848 = vmatprep.mubr.f32.mxu0 %v379_v26  ;;  %v2417_v26 = vld [vmem:[#allocation7 + $0x240] sm:$0xff] }
 0x164   :  { %2849 = vmatmul.mubr.f32.gmra.mrb[118].mxu0 %v217_v27  ;;  %v2418_v27 = vld [vmem:[#allocation7 + $0x248] sm:$0xff] }
 0x165   :  { %2853 = vmatprep.mubr.f32.mxu0 %v380_v28  ;;  %v12401_v28 = vpack.c.bf16 %v2418_v27, %v2417_v26  ;;  %v682_v26 = vld [vmem:[#allocation4 + $0x147] sm:$0xff]  ;;  %v683_v27 = vld [vmem:[#allocation4 + $0x14f] sm:$0xff] }
 0x168   :  { %2854 = vmatmul.mubr.f32.gmra.mrb[120].mxu0 %v218_v29  ;;  %v649_v29 = vld [vmem:[#allocation4 + $0x3f] sm:$0xff] }
 0x169   :  { %2858 = vmatprep.mubr.f32.mxu0 %v381_v30  ;;  %v2419_v30 = vld [vmem:[#allocation7 + $0x250] sm:$0xff] }
 0x16c   :  { %2859 = vmatmul.mubr.f32.gmra.mrb[122].mxu0 %v219_v31  ;;  %v2420_v31 = vld [vmem:[#allocation7 + $0x258] sm:$0xff] }
 0x16d   :  { %2863 = vmatprep.mubr.f32.mxu0 %v382_v32  ;;  %v12404_v32 = vpack.c.bf16 %v2420_v31, %v2419_v30  ;;  %v2438_v30 = vld [vmem:[#allocation7 + $0x2e8] sm:$0xff] }
 0x170   :  { %2864 = vmatmul.mubr.f32.gmra.mrb[124].mxu0 %v220_v33  ;;  %v650_v33 = vld [vmem:[#allocation4 + $0x47] sm:$0xff] }
 0x171   :  { %2868 = vmatprep.mubr.f32.mxu0 %v383_v34  ;;  %v2421_v34 = vld [vmem:[#allocation7 + $0x260] sm:$0xff] }
 0x174   :  { %2869 = vmatmul.mubr.f32.gmra.mrb[126].mxu0 %v221_v35  ;;  %v2422_v35 = vld [vmem:[#allocation7 + $0x268] sm:$0xff] }
 0x175   :  { %2873 = vmatprep.mubr.f32.mxu0 %v384_v36  ;;  %v12407_v36 = vpack.c.bf16 %v2422_v35, %v2421_v34  ;;  %v687_v34 = vld [vmem:[#allocation4 + $0x16f] sm:$0xff]  ;;  %v688_v35 = vld [vmem:[#allocation4 + $0x177] sm:$0xff] }
 0x178   :  { %2874 = vmatmul.mubr.f32.gmra.mrb[128].mxu0 %v222_v37  ;;  %v651_v37 = vld [vmem:[#allocation4 + $0x4f] sm:$0xff] }
 0x179   :  { %2878 = vmatprep.mubr.f32.mxu0 %v385_v38  ;;  %v2423_v38 = vld [vmem:[#allocation7 + $0x270] sm:$0xff] }
 0x17c   :  { %2879 = vmatmul.mubr.f32.gmra.mrb[130].mxu0 %v223_v39  ;;  %v2424_v39 = vld [vmem:[#allocation7 + $0x278] sm:$0xff] }
 0x17d   :  { %2883 = vmatprep.mubr.f32.mxu0 %v386_v40  ;;  %v12410_v40 = vpack.c.bf16 %v2424_v39, %v2423_v38  ;;  %v2440_v38 = vld [vmem:[#allocation7 + $0x2f8] sm:$0xff] }
 0x180   :  { %2884 = vmatmul.mubr.f32.gmra.mrb[132].mxu0 %v224_v41  ;;  %v652_v41 = vld [vmem:[#allocation4 + $0x57] sm:$0xff] }
 0x181   :  { %2888 = vmatprep.mubr.f32.mxu0 %v387_v42  ;;  %v653_v42 = vld [vmem:[#allocation4 + $0x5f] sm:$0xff] }
 0x184   :  { %2889 = vmatmul.mubr.f32.gmra.mrb[134].mxu0 %v225_v43  ;;  %v2425_v43 = vld [vmem:[#allocation7 + $0x280] sm:$0xff] }
 0x185   :  { %2893 = vmatprep.mubr.f32.mxu0 %v388_v44  ;;  %v2426_v44 = vld [vmem:[#allocation7 + $0x288] sm:$0xff] }
 0x188   :  { %2894 = vmatmul.mubr.f32.gmra.mrb[136].mxu0 %v226_v45  ;;  %v654_v45 = vld [vmem:[#allocation4 + $0x67] sm:$0xff] }
 0x189   :  { %2898 = vmatprep.mubr.f32.mxu0 %v389_v46  ;;  %v12413_v46 = vpack.c.bf16 %v2426_v44, %v2425_v43  ;;  %v693_v43 = vld [vmem:[#allocation4 + $0x19f] sm:$0xff]  ;;  %v694_v44 = vld [vmem:[#allocation4 + $0x1a7] sm:$0xff] }
 0x18c   :  { %2899 = vmatmul.mubr.f32.gmra.mrb[138].mxu0 %v227_v47  ;;  %v655_v47 = vld [vmem:[#allocation4 + $0x6f] sm:$0xff] }
 0x18d   :  { %2903 = vmatprep.mubr.f32.mxu0 %v390_v48  ;;  %v656_v48 = vld [vmem:[#allocation4 + $0x77] sm:$0xff] }
 0x190   :  { %2904 = vmatmul.mubr.f32.gmra.mrb[140].mxu0 %v228_v49  ;;  %v657_v49 = vld [vmem:[#allocation4 + $0x7f] sm:$0xff] }
 0x191   :  { %2908 = vmatprep.mubr.f32.mxu0 %v391_v50  ;;  %v658_v50 = vld [vmem:[#allocation4 + $0x87] sm:$0xff] }
 0x194   :  { %2909 = vmatmul.mubr.f32.gmra.mrb[142].mxu0 %v229_v51  ;;  %v659_v51 = vld [vmem:[#allocation4 + $0x8f] sm:$0xff] }
 0x195   :  { %2913 = vmatprep.mubr.f32.mxu0 %v392_v52  ;;  %v2427_v52 = vld [vmem:[#allocation7 + $0x290] sm:$0xff] }
 0x198   :  { %2914 = vmatmul.mubr.f32.gmra.mrb[144].mxu0 %v230_v53  ;;  %v2428_v53 = vld [vmem:[#allocation7 + $0x298] sm:$0xff] }
 0x199   :  { %2918 = vmatprep.mubr.f32.mxu0 %v393_v54  ;;  %v12416_v54 = vpack.c.bf16 %v2428_v53, %v2427_v52  ;;  %v702_v52 = vld [vmem:[#allocation4 + $0x1e7] sm:$0xff]  ;;  %v703_v53 = vld [vmem:[#allocation4 + $0x1ef] sm:$0xff] }
 0x19c   :  { %2919 = vmatmul.mubr.f32.gmra.mrb[146].mxu0 %v231_v55  ;;  %v660_v55 = vld [vmem:[#allocation4 + $0x97] sm:$0xff] }
 0x19d   :  { %2923 = vmatprep.mubr.f32.mxu0 %v394_v56  ;;  %v661_v56 = vld [vmem:[#allocation4 + $0x9f] sm:$0xff] }
 0x1a0   :  { %2924 = vmatmul.mubr.f32.gmra.mrb[148].mxu0 %v232_v57  ;;  %v662_v57 = vld [vmem:[#allocation4 + $0xa7] sm:$0xff] }
 0x1a1   :  { %2928 = vmatprep.mubr.f32.mxu0 %v395_v58  ;;  %v663_v58 = vld [vmem:[#allocation4 + $0xaf] sm:$0xff] }
 0x1a4   :  { %2929 = vmatmul.mubr.f32.gmra.mrb[150].mxu0 %v233_v59  ;;  %v664_v59 = vld [vmem:[#allocation4 + $0xb7] sm:$0xff] }
 0x1a5   :  { %2933 = vmatprep.mubr.f32.mxu0 %v396_v60  ;;  %v2429_v60 = vld [vmem:[#allocation7 + $0x2a0] sm:$0xff] }
 0x1a8   :  { %2934 = vmatmul.mubr.f32.gmra.mrb[152].mxu0 %v234_v61  ;;  %v2430_v61 = vld [vmem:[#allocation7 + $0x2a8] sm:$0xff] }
 0x1a9   :  { %2938 = vmatprep.mubr.f32.mxu0 %v397_v62  ;;  %v12419_v62 = vpack.c.bf16 %v2430_v61, %v2429_v60  ;;  %v710_v60 = vld [vmem:[#allocation4 + $0x227] sm:$0xff]  ;;  %v711_v61 = vld [vmem:[#allocation4 + $0x22f] sm:$0xff] }
 0x1ac   :  { %2939 = vmatmul.mubr.f32.gmra.mrb[154].mxu0 %v235_v63  ;;  %v665_v63 = vld [vmem:[#allocation4 + $0xbf] sm:$0xff] }
 0x1ad   :  { %2943 = vmatprep.mubr.f32.mxu0 %v398_v1  ;;  %v666_v1 = vld [vmem:[#allocation4 + $0xc7] sm:$0xff] }
 0x1b0   :  { %2944 = vmatmul.mubr.f32.gmra.mrb[156].mxu0 %v236_v2  ;;  %v667_v2 = vld [vmem:[#allocation4 + $0xcf] sm:$0xff] }
 0x1b1   :  { %2948 = vmatprep.mubr.f32.mxu0 %v399_v3  ;;  %v668_v3 = vld [vmem:[#allocation4 + $0xd7] sm:$0xff] }
 0x1b4   :  { %2949 = vmatmul.mubr.f32.gmra.mrb[158].mxu0 %v237_v4  ;;  %v669_v4 = vld [vmem:[#allocation4 + $0xdf] sm:$0xff] }
 0x1b5   :  { %2953 = vmatprep.mubr.f32.mxu0 %v400_v5  ;;  %v2431_v5 = vld [vmem:[#allocation7 + $0x2b0] sm:$0xff] }
 0x1b8   :  { %2954 = vmatmul.mubr.f32.gmra.mrb[160].mxu0 %v238_v6  ;;  %v2432_v6 = vld [vmem:[#allocation7 + $0x2b8] sm:$0xff] }
 0x1b9   :  { %3023 = vmatprep.mubr.f32.mxu0 %v644_v7 }
 0x1bc   :  { %3024 = vmatmul.mubr.f32.vlgmr.msra.gmra.mrb[0].mxu0 %v482_v10  ;;  %v672_v10 = vld [vmem:[#allocation4 + $0xf7] sm:$0xff] }
 0x1bd   :  { %12390 = vmatpush1.bf16.msra.mxu0 %v12389_v11  ;;  %3028 = vmatprep.mubr.f32.mxu0 %v645_v12  ;;  %v673_v11 = vld [vmem:[#allocation4 + $0xff] sm:$0xff] }
 0x1be   :  { %12391 = vmatprep.subr.bf16.mxu0 %v18371_v0 }
 0x1c0   :  { %3029 = vmatmul.mubr.f32.gmra.mrb[2].mxu0 %v483_v15  ;;  %v12425_v15 = vpack.c.bf16 %v2434_v14, %v2433_v13  ;;  %v2441_v13 = vld [vmem:[#allocation7 + $0x300] sm:$0xff]  ;;  %v2442_v14 = vld [vmem:[#allocation7 + $0x308] sm:$0xff] }
 0x1c1   :  { %3033 = vmatprep.mubr.f32.mxu0 %v646_v17  ;;  %12393 = vmatpush1.bf16.msra.mxu0 %v12392_v16  ;;  %v675_v16 = vld [vmem:[#allocation4 + $0x10f] sm:$0xff] }
 0x1c2   :  { %12394 = vmatprep.subr.bf16.mxu0 %v18371_v0 }
 0x1c4   :  { %3034 = vmatmul.mubr.f32.gmra.mrb[4].mxu0 %v644_v7  ;;  %v12422_v7 = vpack.c.bf16 %v2432_v6, %v2431_v5  ;;  %v718_v5 = vld [vmem:[#allocation4 + $0x267] sm:$0xff]  ;;  %v719_v6 = vld [vmem:[#allocation4 + $0x26f] sm:$0xff] }
 0x1c5   :  { %3038 = vmatprep.mubr.f32.mxu0 %v647_v21  ;;  %12396 = vmatpush1.bf16.msra.mxu0 %v12395_v20  ;;  %v679_v20 = vld [vmem:[#allocation4 + $0x12f] sm:$0xff] }
 0x1c6   :  { %12397 = vmatprep.subr.bf16.mxu0 %v18371_v0 }
 0x1c8   :  { %3039 = vmatmul.mubr.f32.gmra.mrb[6].mxu0 %v645_v12  ;;  %v674_v12 = vld [vmem:[#allocation4 + $0x107] sm:$0xff] }
 0x1c9   :  { %3043 = vmatprep.mubr.f32.mxu0 %v648_v25  ;;  %12399 = vmatpush1.bf16.msra.mxu0 %v12398_v24  ;;  %v680_v24 = vld [vmem:[#allocation4 + $0x137] sm:$0xff] }
 0x1ca   :  { %12400 = vmatprep.subr.bf16.mxu0 %v18371_v0 }
 0x1cc   :  { %3044 = vmatmul.mubr.f32.gmra.mrb[8].mxu0 %v646_v17  ;;  %v676_v17 = vld [vmem:[#allocation4 + $0x117] sm:$0xff] }
 0x1cd   :  { %3048 = vmatprep.mubr.f32.mxu0 %v649_v29  ;;  %12402 = vmatpush1.bf16.msra.mxu0 %v12401_v28  ;;  %v684_v28 = vld [vmem:[#allocation4 + $0x157] sm:$0xff] }
 0x1ce   :  { %12403 = vmatprep.subr.bf16.mxu0 %v18371_v0 }
 0x1d0   :  { %3049 = vmatmul.mubr.f32.gmra.mrb[10].mxu0 %v647_v21  ;;  %v2435_v21 = vld [vmem:[#allocation7 + $0x2d0] sm:$0xff] }
 0x1d1   :  { %3053 = vmatprep.mubr.f32.mxu0 %v650_v33  ;;  %12405 = vmatpush1.bf16.msra.mxu0 %v12404_v32  ;;  %v12428_v23 = vpack.c.bf16 %v2436_v22, %v2435_v21  ;;  %v685_v32 = vld [vmem:[#allocation4 + $0x15f] sm:$0xff]  ;;  %v14289_v22 = vld [vmem:[#allocation4 + $0x29] sm:$0xff] }
 0x1d2   :  { %12406 = vmatprep.subr.bf16.mxu0 %v18371_v0 }
 0x1d4   :  { %3054 = vmatmul.mubr.f32.gmra.mrb[12].mxu0 %v648_v25  ;;  %v681_v25 = vld [vmem:[#allocation4 + $0x13f] sm:$0xff] }
 0x1d5   :  { %3058 = vmatprep.mubr.f32.mxu0 %v651_v37  ;;  %12408 = vmatpush1.bf16.msra.mxu0 %v12407_v36  ;;  %v689_v36 = vld [vmem:[#allocation4 + $0x17f] sm:$0xff] }
 0x1d6   :  { %12409 = vmatprep.subr.bf16.mxu0 %v18371_v0 }
 0x1d8   :  { %3059 = vmatmul.mubr.f32.gmra.mrb[14].mxu0 %v649_v29  ;;  %v2437_v29 = vld [vmem:[#allocation7 + $0x2e0] sm:$0xff] }
 0x1d9   :  { %3063 = vmatprep.mubr.f32.mxu0 %v652_v41  ;;  %12411 = vmatpush1.bf16.msra.mxu0 %v12410_v40  ;;  %v12431_v31 = vpack.c.bf16 %v2438_v30, %v2437_v29  ;;  %v690_v40 = vld [vmem:[#allocation4 + $0x187] sm:$0xff]  ;;  %v2448_v29 = vld [vmem:[#allocation7 + $0x338] sm:$0xff] }
 0x1da   :  { %12412 = vmatprep.subr.bf16.mxu0 %v18371_v0  ;;  %v809_v30 = vld [vmem:[#allocation4 + $0x30] sm:$0xff] }
 0x1dc   :  { %3064 = vmatmul.mubr.f32.gmra.mrb[16].mxu0 %v650_v33  ;;  %v686_v33 = vld [vmem:[#allocation4 + $0x167] sm:$0xff] }
 0x1dd   :  { %3068 = vmatprep.mubr.f32.mxu0 %v653_v42  ;;  %12414 = vmatpush1.bf16.msra.mxu0 %v12413_v46  ;;  %v696_v46 = vld [vmem:[#allocation4 + $0x1b7] sm:$0xff] }
 0x1de   :  { %12415 = vmatprep.subr.bf16.mxu0 %v18371_v0 }
 0x1e0   :  { %3069 = vmatmul.mubr.f32.gmra.mrb[18].mxu0 %v651_v37  ;;  %v2439_v37 = vld [vmem:[#allocation7 + $0x2f0] sm:$0xff] }
 0x1e1   :  { %3073 = vmatprep.mubr.f32.mxu0 %v654_v45  ;;  %12417 = vmatpush1.bf16.msra.mxu0 %v12416_v54  ;;  %v12434_v39 = vpack.c.bf16 %v2440_v38, %v2439_v37  ;;  %v704_v54 = vld [vmem:[#allocation4 + $0x1f7] sm:$0xff]  ;;  %v14301_v37 = vld [vmem:[#allocation4 + $0x41] sm:$0xff] }
 0x1e2   :  { %12418 = vmatprep.subr.bf16.mxu0 %v18371_v0  ;;  %v2451_v38 = vld [vmem:[#allocation7 + $0x350] sm:$0xff] }
 0x1e4   :  { %3074 = vmatmul.mubr.f32.gmra.mrb[20].mxu0 %v652_v41  ;;  %v691_v41 = vld [vmem:[#allocation4 + $0x18f] sm:$0xff] }
 0x1e5   :  { %3078 = vmatprep.mubr.f32.mxu0 %v655_v47  ;;  %12420 = vmatpush1.bf16.msra.mxu0 %v12419_v62  ;;  %v712_v62 = vld [vmem:[#allocation4 + $0x237] sm:$0xff] }
 0x1e6   :  { %12421 = vmatprep.subr.bf16.mxu0 %v18371_v0 }
 0x1e8   :  { %3079 = vmatmul.mubr.f32.gmra.mrb[22].mxu0 %v653_v42  ;;  %v692_v42 = vld [vmem:[#allocation4 + $0x197] sm:$0xff] }
 0x1e9   :  { %3083 = vmatprep.mubr.f32.mxu0 %v656_v48  ;;  %12423 = vmatpush1.bf16.msra.mxu0 %v12422_v7  ;;  %v720_v7 = vld [vmem:[#allocation4 + $0x277] sm:$0xff] }
 0x1ea   :  { %12424 = vmatprep.subr.bf16.mxu0 %v18371_v0 }
 0x1ec   :  { %3084 = vmatmul.mubr.f32.gmra.mrb[24].mxu0 %v654_v45  ;;  %v695_v45 = vld [vmem:[#allocation4 + $0x1af] sm:$0xff] }
 0x1ed   :  { %3088 = vmatprep.mubr.f32.mxu0 %v657_v49  ;;  %12426 = vmatpush1.bf16.msra.mxu0 %v12425_v15  ;;  %v806_v15 = vld [vmem:[#allocation4 + $0x18] sm:$0xff] }
 0x1ee   :  { %12427 = vmatprep.subr.bf16.mxu0 %v18371_v0 }
 0x1f0   :  { %3089 = vmatmul.mubr.f32.gmra.mrb[26].mxu0 %v655_v47  ;;  %v697_v47 = vld [vmem:[#allocation4 + $0x1bf] sm:$0xff] }
 0x1f1   :  { %3093 = vmatprep.mubr.f32.mxu0 %v658_v50  ;;  %12429 = vmatpush1.bf16.msra.mxu0 %v12428_v23  ;;  %v2445_v23 = vld [vmem:[#allocation7 + $0x320] sm:$0xff] }
 0x1f2   :  { %12430 = vmatprep.subr.bf16.mxu0 %v18371_v0 }
 0x1f4   :  { %3094 = vmatmul.mubr.f32.gmra.mrb[28].mxu0 %v656_v48  ;;  %v698_v48 = vld [vmem:[#allocation4 + $0x1c7] sm:$0xff] }
 0x1f5   :  { %3098 = vmatprep.mubr.f32.mxu0 %v659_v51  ;;  %12432 = vmatpush1.bf16.msra.mxu0 %v12431_v31 }
 0x1f6   :  { %12433 = vmatprep.subr.bf16.mxu0 %v18371_v0 }
 0x1f8   :  { %3099 = vmatmul.mubr.f32.gmra.mrb[30].mxu0 %v657_v49  ;;  %v699_v49 = vld [vmem:[#allocation4 + $0x1cf] sm:$0xff] }
 0x1f9   :  { %3103 = vmatprep.mubr.f32.mxu0 %v660_v55  ;;  %12435 = vmatpush1.bf16.msra.mxu0 %v12434_v39  ;;  %v2452_v39 = vld [vmem:[#allocation7 + $0x358] sm:$0xff] }
 0x1fa   :  { %12436 = vmatprep.subr.bf16.mxu0 %v18371_v0 }
 0x1fc   :  { %3104 = vmatmul.mubr.f32.gmra.mrb[32].mxu0 %v658_v50  ;;  %v700_v50 = vld [vmem:[#allocation4 + $0x1d7] sm:$0xff] }
 0x1fd   :  { %3108 = vmatprep.mubr.f32.mxu0 %v661_v56 }
 0x200   :  { %3109 = vmatmul.mubr.f32.gmra.mrb[34].mxu0 %v659_v51  ;;  %v701_v51 = vld [vmem:[#allocation4 + $0x1df] sm:$0xff] }
 0x201   :  { %3113 = vmatprep.mubr.f32.mxu0 %v662_v57 }
 0x204   :  { %3114 = vmatmul.mubr.f32.gmra.mrb[36].mxu0 %v660_v55  ;;  %v705_v55 = vld [vmem:[#allocation4 + $0x1ff] sm:$0xff] }
 0x205   :  { %3118 = vmatprep.mubr.f32.mxu0 %v663_v58 }
 0x208   :  { %3119 = vmatmul.mubr.f32.gmra.mrb[38].mxu0 %v661_v56  ;;  %v706_v56 = vld [vmem:[#allocation4 + $0x207] sm:$0xff] }
 0x209   :  { %3123 = vmatprep.mubr.f32.mxu0 %v664_v59 }
 0x20c   :  { %3124 = vmatmul.mubr.f32.gmra.mrb[40].mxu0 %v662_v57  ;;  %v707_v57 = vld [vmem:[#allocation4 + $0x20f] sm:$0xff] }
 0x20d   :  { %3128 = vmatprep.mubr.f32.mxu0 %v665_v63 }
 0x210   :  { %3129 = vmatmul.mubr.f32.gmra.mrb[42].mxu0 %v663_v58  ;;  %v708_v58 = vld [vmem:[#allocation4 + $0x217] sm:$0xff] }
 0x211   :  { %3133 = vmatprep.mubr.f32.mxu0 %v666_v1 }
 0x214   :  { %3134 = vmatmul.mubr.f32.gmra.mrb[44].mxu0 %v664_v59  ;;  %v709_v59 = vld [vmem:[#allocation4 + $0x21f] sm:$0xff] }
 0x215   :  { %3138 = vmatprep.mubr.f32.mxu0 %v667_v2 }
 0x218   :  { %3139 = vmatmul.mubr.f32.gmra.mrb[46].mxu0 %v665_v63  ;;  %v713_v63 = vld [vmem:[#allocation4 + $0x23f] sm:$0xff] }
 0x219   :  { %3143 = vmatprep.mubr.f32.mxu0 %v668_v3 }
 0x21c   :  { %3144 = vmatmul.mubr.f32.gmra.mrb[48].mxu0 %v666_v1  ;;  %v714_v1 = vld [vmem:[#allocation4 + $0x247] sm:$0xff] }
 0x21d   :  { %3148 = vmatprep.mubr.f32.mxu0 %v669_v4 }
 0x220   :  { %3149 = vmatmul.mubr.f32.gmra.mrb[50].mxu0 %v667_v2  ;;  %v715_v2 = vld [vmem:[#allocation4 + $0x24f] sm:$0xff] }
 0x221   :  { %3153 = vmatprep.mubr.f32.mxu0 %v670_v8 }
 0x224   :  { %3154 = vmatmul.mubr.f32.gmra.mrb[52].mxu0 %v668_v3  ;;  %v716_v3 = vld [vmem:[#allocation4 + $0x257] sm:$0xff] }
 0x225   :  { %3158 = vmatprep.mubr.f32.mxu0 %v671_v9 }
 0x228   :  { %3159 = vmatmul.mubr.f32.gmra.mrb[54].mxu0 %v669_v4  ;;  %v717_v4 = vld [vmem:[#allocation4 + $0x25f] sm:$0xff] }
 0x229   :  { %3163 = vmatprep.mubr.f32.mxu0 %v672_v10 }
 0x22c   :  { %3164 = vmatmul.mubr.f32.gmra.mrb[56].mxu0 %v670_v8  ;;  %v721_v8 = vld [vmem:[#allocation4 + $0x27f] sm:$0xff] }
 0x22d   :  { %3168 = vmatprep.mubr.f32.mxu0 %v673_v11 }
 0x230   :  { %3169 = vmatmul.mubr.f32.gmra.mrb[58].mxu0 %v671_v9  ;;  %v722_v9 = vld [vmem:[#allocation4 + $0x287] sm:$0xff] }
 0x231   :  { %3173 = vmatprep.mubr.f32.mxu0 %v674_v12 }
 0x234   :  { %3174 = vmatmul.mubr.f32.gmra.mrb[60].mxu0 %v672_v10  ;;  %v723_v10 = vld [vmem:[#allocation4 + $0x28f] sm:$0xff] }
 0x235   :  { %3178 = vmatprep.mubr.f32.mxu0 %v675_v16 }
 0x238   :  { %3179 = vmatmul.mubr.f32.gmra.mrb[62].mxu0 %v673_v11  ;;  %v724_v11 = vld [vmem:[#allocation4 + $0x297] sm:$0xff] }
 0x239   :  { %3183 = vmatprep.mubr.f32.mxu0 %v676_v17 }
 0x23c   :  { %3184 = vmatmul.mubr.f32.gmra.mrb[64].mxu0 %v674_v12  ;;  %v968_v12 = vld [vmem:[#allocation4 + $0x19] sm:$0xff] }
 0x23d   :  { %3188 = vmatprep.mubr.f32.mxu0 %v677_v18 }
 0x240   :  { %3189 = vmatmul.mubr.f32.gmra.mrb[66].mxu0 %v675_v16  ;;  %v12437_v16 = vpack.c.bf16 %v2442_v14, %v2441_v13  ;;  %v14344_v13 = vld [vmem:[#allocation4 + $0xa1] sm:$0xff] }
 0x241   :  { %3193 = vmatprep.mubr.f32.mxu0 %v678_v19  ;;  %v823_v14 = vld [vmem:[#allocation4 + $0xa0] sm:$0xff] }
 0x244   :  { %3194 = vmatmul.mubr.f32.gmra.mrb[68].mxu0 %v676_v17  ;;  %v969_v17 = vld [vmem:[#allocation4 + $0x21] sm:$0xff] }
 0x245   :  { %3198 = vmatprep.mubr.f32.mxu0 %v679_v20 }
 0x248   :  { %3199 = vmatmul.mubr.f32.gmra.mrb[70].mxu0 %v677_v18  ;;  %v2443_v18 = vld [vmem:[#allocation7 + $0x310] sm:$0xff] }
 0x249   :  { %3203 = vmatprep.mubr.f32.mxu0 %v680_v24 }
 0x24c   :  { %3204 = vmatmul.mubr.f32.gmra.mrb[72].mxu0 %v678_v19  ;;  %v2444_v19 = vld [vmem:[#allocation7 + $0x318] sm:$0xff] }
 0x24d   :  { %3208 = vmatprep.mubr.f32.mxu0 %v681_v25  ;;  %v12440_v21 = vpack.c.bf16 %v2444_v19, %v2443_v18  ;;  %v825_v18 = vld [vmem:[#allocation4 + $0xb0] sm:$0xff]  ;;  %v14353_v19 = vld [vmem:[#allocation4 + $0xb9] sm:$0xff] }
 0x250   :  { %3209 = vmatmul.mubr.f32.gmra.mrb[74].mxu0 %v679_v20  ;;  %v807_v20 = vld [vmem:[#allocation4 + $0x20] sm:$0xff] }
 0x251   :  { %3213 = vmatprep.mubr.f32.mxu0 %v682_v26 }
 0x254   :  { %3214 = vmatmul.mubr.f32.gmra.mrb[76].mxu0 %v680_v24  ;;  %v2446_v24 = vld [vmem:[#allocation7 + $0x328] sm:$0xff] }
 0x255   :  { %3218 = vmatprep.mubr.f32.mxu0 %v683_v27 }
 0x258   :  { %3219 = vmatmul.mubr.f32.gmra.mrb[78].mxu0 %v681_v25  ;;  %v808_v25 = vld [vmem:[#allocation4 + $0x28] sm:$0xff] }
 0x259   :  { %3223 = vmatprep.mubr.f32.mxu0 %v684_v28 }
 0x25c   :  { %3224 = vmatmul.mubr.f32.gmra.mrb[80].mxu0 %v682_v26  ;;  %v12443_v26 = vpack.c.bf16 %v2446_v24, %v2445_v23  ;;  %v826_v23 = vld [vmem:[#allocation4 + $0xb8] sm:$0xff] }
 0x25d   :  { %3228 = vmatprep.mubr.f32.mxu0 %v685_v32 }
 0x260   :  { %3229 = vmatmul.mubr.f32.gmra.mrb[82].mxu0 %v683_v27  ;;  %v14293_v27 = vld [vmem:[#allocation4 + $0x31] sm:$0xff] }
 0x261   :  { %3233 = vmatprep.mubr.f32.mxu0 %v686_v33 }
 0x264   :  { %3234 = vmatmul.mubr.f32.gmra.mrb[84].mxu0 %v684_v28  ;;  %v2447_v28 = vld [vmem:[#allocation7 + $0x330] sm:$0xff] }
 0x265   :  { %3238 = vmatprep.mubr.f32.mxu0 %v687_v34  ;;  %v12446_v31 = vpack.c.bf16 %v2448_v29, %v2447_v28  ;;  %v14360_v28 = vld [vmem:[#allocation4 + $0xc9] sm:$0xff] }
 0x266   :  { %v828_v29 = vld [vmem:[#allocation4 + $0xc8] sm:$0xff] }
 0x268   :  { %3239 = vmatmul.mubr.f32.gmra.mrb[86].mxu0 %v685_v32  ;;  %v14297_v32 = vld [vmem:[#allocation4 + $0x39] sm:$0xff] }
 0x269   :  { %3243 = vmatprep.mubr.f32.mxu0 %v688_v35 }
 0x26c   :  { %3244 = vmatmul.mubr.f32.gmra.mrb[88].mxu0 %v686_v33  ;;  %v2449_v33 = vld [vmem:[#allocation7 + $0x340] sm:$0xff] }
 0x26d   :  { %3248 = vmatprep.mubr.f32.mxu0 %v689_v36 }
 0x270   :  { %3249 = vmatmul.mubr.f32.gmra.mrb[90].mxu0 %v687_v34  ;;  %v2450_v34 = vld [vmem:[#allocation7 + $0x348] sm:$0xff] }
 0x271   :  { %3253 = vmatprep.mubr.f32.mxu0 %v690_v40 }
 0x274   :  { %3254 = vmatmul.mubr.f32.gmra.mrb[92].mxu0 %v688_v35  ;;  %v810_v35 = vld [vmem:[#allocation4 + $0x38] sm:$0xff] }
 0x275   :  { %3258 = vmatprep.mubr.f32.mxu0 %v691_v41 }
 0x278   :  { %3259 = vmatmul.mubr.f32.gmra.mrb[94].mxu0 %v689_v36  ;;  %v12449_v36 = vpack.c.bf16 %v2450_v34, %v2449_v33  ;;  %v14366_v33 = vld [vmem:[#allocation4 + $0xd9] sm:$0xff] }
 0x279   :  { %3263 = vmatprep.mubr.f32.mxu0 %v692_v42  ;;  %v830_v34 = vld [vmem:[#allocation4 + $0xd8] sm:$0xff] }
 0x27c   :  { %3264 = vmatmul.mubr.f32.gmra.mrb[96].mxu0 %v690_v40  ;;  %v811_v40 = vld [vmem:[#allocation4 + $0x40] sm:$0xff] }
 0x27d   :  { %3268 = vmatprep.mubr.f32.mxu0 %v693_v43 }
 0x280   :  { %3269 = vmatmul.mubr.f32.gmra.mrb[98].mxu0 %v691_v41  ;;  %v12452_v41 = vpack.c.bf16 %v2452_v39, %v2451_v38  ;;  %v2464_v38 = vld [vmem:[#allocation7 + $0x3b8] sm:$0xff]  ;;  %v831_v39 = vld [vmem:[#allocation4 + $0xe0] sm:$0xff] }
 0x281   :  { %3273 = vmatprep.mubr.f32.mxu0 %v694_v44 }
 0x284   :  { %3274 = vmatmul.mubr.f32.gmra.mrb[100].mxu0 %v692_v42  ;;  %v14305_v42 = vld [vmem:[#allocation4 + $0x49] sm:$0xff] }
 0x285   :  { %3278 = vmatprep.mubr.f32.mxu0 %v695_v45 }
 0x288   :  { %3279 = vmatmul.mubr.f32.gmra.mrb[102].mxu0 %v693_v43  ;;  %v2453_v43 = vld [vmem:[#allocation7 + $0x360] sm:$0xff] }
 0x289   :  { %3283 = vmatprep.mubr.f32.mxu0 %v696_v46 }
 0x28c   :  { %3284 = vmatmul.mubr.f32.gmra.mrb[104].mxu0 %v694_v44  ;;  %v2454_v44 = vld [vmem:[#allocation7 + $0x368] sm:$0xff] }
 0x28d   :  { %3288 = vmatprep.mubr.f32.mxu0 %v697_v47 }
 0x290   :  { %3289 = vmatmul.mubr.f32.gmra.mrb[106].mxu0 %v695_v45  ;;  %v812_v45 = vld [vmem:[#allocation4 + $0x48] sm:$0xff] }
 0x291   :  { %3293 = vmatprep.mubr.f32.mxu0 %v698_v48 }
 0x294   :  { %3294 = vmatmul.mubr.f32.gmra.mrb[108].mxu0 %v696_v46  ;;  %v12455_v46 = vpack.c.bf16 %v2454_v44, %v2453_v43  ;;  %v832_v43 = vld [vmem:[#allocation4 + $0xe8] sm:$0xff]  ;;  %v14376_v44 = vld [vmem:[#allocation4 + $0xf1] sm:$0xff] }
 0x295   :  { %3298 = vmatprep.mubr.f32.mxu0 %v699_v49 }
 0x298   :  { %3299 = vmatmul.mubr.f32.gmra.mrb[110].mxu0 %v697_v47  ;;  %v14309_v47 = vld [vmem:[#allocation4 + $0x51] sm:$0xff] }
 0x299   :  { %3303 = vmatprep.mubr.f32.mxu0 %v700_v50 }
 0x29c   :  { %3304 = vmatmul.mubr.f32.gmra.mrb[112].mxu0 %v698_v48  ;;  %v2455_v48 = vld [vmem:[#allocation7 + $0x370] sm:$0xff] }
 0x29d   :  { %3308 = vmatprep.mubr.f32.mxu0 %v701_v51 }
 0x2a0   :  { %3309 = vmatmul.mubr.f32.gmra.mrb[114].mxu0 %v699_v49  ;;  %v2456_v49 = vld [vmem:[#allocation7 + $0x378] sm:$0xff] }
 0x2a1   :  { %3313 = vmatprep.mubr.f32.mxu0 %v702_v52 }
 0x2a4   :  { %3314 = vmatmul.mubr.f32.gmra.mrb[116].mxu0 %v700_v50  ;;  %v813_v50 = vld [vmem:[#allocation4 + $0x50] sm:$0xff] }
 0x2a5   :  { %3318 = vmatprep.mubr.f32.mxu0 %v703_v53 }
 0x2a8   :  { %3319 = vmatmul.mubr.f32.gmra.mrb[118].mxu0 %v701_v51  ;;  %v12458_v51 = vpack.c.bf16 %v2456_v49, %v2455_v48  ;;  %v834_v48 = vld [vmem:[#allocation4 + $0xf8] sm:$0xff]  ;;  %v14382_v49 = vld [vmem:[#allocation4 + $0x101] sm:$0xff] }
 0x2a9   :  { %3323 = vmatprep.mubr.f32.mxu0 %v704_v54 }
 0x2ac   :  { %3324 = vmatmul.mubr.f32.gmra.mrb[120].mxu0 %v702_v52  ;;  %v14313_v52 = vld [vmem:[#allocation4 + $0x59] sm:$0xff] }
 0x2ad   :  { %3328 = vmatprep.mubr.f32.mxu0 %v705_v55 }
 0x2b0   :  { %3329 = vmatmul.mubr.f32.gmra.mrb[122].mxu0 %v703_v53  ;;  %v814_v53 = vld [vmem:[#allocation4 + $0x58] sm:$0xff] }
 0x2b1   :  { %3333 = vmatprep.mubr.f32.mxu0 %v706_v56 }
 0x2b4   :  { %3334 = vmatmul.mubr.f32.gmra.mrb[124].mxu0 %v704_v54  ;;  %v14317_v54 = vld [vmem:[#allocation4 + $0x61] sm:$0xff] }
 0x2b5   :  { %3338 = vmatprep.mubr.f32.mxu0 %v707_v57 }
 0x2b8   :  { %3339 = vmatmul.mubr.f32.gmra.mrb[126].mxu0 %v705_v55  ;;  %v815_v55 = vld [vmem:[#allocation4 + $0x60] sm:$0xff] }
 0x2b9   :  { %3343 = vmatprep.mubr.f32.mxu0 %v708_v58 }
 0x2bc   :  { %3344 = vmatmul.mubr.f32.gmra.mrb[128].mxu0 %v706_v56  ;;  %v2457_v56 = vld [vmem:[#allocation7 + $0x380] sm:$0xff] }
 0x2bd   :  { %3348 = vmatprep.mubr.f32.mxu0 %v709_v59 }
 0x2c0   :  { %3349 = vmatmul.mubr.f32.gmra.mrb[130].mxu0 %v707_v57  ;;  %v2458_v57 = vld [vmem:[#allocation7 + $0x388] sm:$0xff] }
 0x2c1   :  { %3353 = vmatprep.mubr.f32.mxu0 %v710_v60 }
 0x2c4   :  { %3354 = vmatmul.mubr.f32.gmra.mrb[132].mxu0 %v708_v58  ;;  %v14321_v58 = vld [vmem:[#allocation4 + $0x69] sm:$0xff] }
 0x2c5   :  { %3358 = vmatprep.mubr.f32.mxu0 %v711_v61 }
 0x2c8   :  { %3359 = vmatmul.mubr.f32.gmra.mrb[134].mxu0 %v709_v59  ;;  %v12461_v59 = vpack.c.bf16 %v2458_v57, %v2457_v56  ;;  %v836_v56 = vld [vmem:[#allocation4 + $0x108] sm:$0xff] }
 0x2c9   :  { %3363 = vmatprep.mubr.f32.mxu0 %v712_v62 }
 0x2cc   :  { %3364 = vmatmul.mubr.f32.gmra.mrb[136].mxu0 %v710_v60  ;;  %v816_v60 = vld [vmem:[#allocation4 + $0x68] sm:$0xff] }
 0x2cd   :  { %3368 = vmatprep.mubr.f32.mxu0 %v713_v63 }
 0x2d0   :  { %3369 = vmatmul.mubr.f32.gmra.mrb[138].mxu0 %v711_v61  ;;  %v14324_v61 = vld [vmem:[#allocation4 + $0x71] sm:$0xff] }
 0x2d1   :  { %3373 = vmatprep.mubr.f32.mxu0 %v714_v1 }
 0x2d4   :  { %3374 = vmatmul.mubr.f32.gmra.mrb[140].mxu0 %v712_v62  ;;  %v817_v62 = vld [vmem:[#allocation4 + $0x70] sm:$0xff] }
 0x2d5   :  { %3378 = vmatprep.mubr.f32.mxu0 %v715_v2 }
 0x2d8   :  { %3379 = vmatmul.mubr.f32.gmra.mrb[142].mxu0 %v713_v63  ;;  %v14328_v63 = vld [vmem:[#allocation4 + $0x79] sm:$0xff] }
 0x2d9   :  { %3383 = vmatprep.mubr.f32.mxu0 %v716_v3 }
 0x2dc   :  { %3384 = vmatmul.mubr.f32.gmra.mrb[144].mxu0 %v714_v1  ;;  %v818_v1 = vld [vmem:[#allocation4 + $0x78] sm:$0xff] }
 0x2dd   :  { %3388 = vmatprep.mubr.f32.mxu0 %v717_v4 }
 0x2e0   :  { %3389 = vmatmul.mubr.f32.gmra.mrb[146].mxu0 %v715_v2  ;;  %v14331_v2 = vld [vmem:[#allocation4 + $0x81] sm:$0xff] }
 0x2e1   :  { %3393 = vmatprep.mubr.f32.mxu0 %v718_v5 }
 0x2e4   :  { %3394 = vmatmul.mubr.f32.gmra.mrb[148].mxu0 %v716_v3  ;;  %v819_v3 = vld [vmem:[#allocation4 + $0x80] sm:$0xff] }
 0x2e5   :  { %3398 = vmatprep.mubr.f32.mxu0 %v719_v6 }
 0x2e8   :  { %3399 = vmatmul.mubr.f32.gmra.mrb[150].mxu0 %v717_v4  ;;  %v14334_v4 = vld [vmem:[#allocation4 + $0x89] sm:$0xff] }
 0x2e9   :  { %3403 = vmatprep.mubr.f32.mxu0 %v720_v7 }
 0x2ec   :  { %3404 = vmatmul.mubr.f32.gmra.mrb[152].mxu0 %v718_v5  ;;  %v820_v5 = vld [vmem:[#allocation4 + $0x88] sm:$0xff] }
 0x2ed   :  { %3408 = vmatprep.mubr.f32.mxu0 %v721_v8 }
 0x2f0   :  { %3409 = vmatmul.mubr.f32.gmra.mrb[154].mxu0 %v719_v6  ;;  %v14337_v6 = vld [vmem:[#allocation4 + $0x91] sm:$0xff] }
 0x2f1   :  { %3413 = vmatprep.mubr.f32.mxu0 %v722_v9 }
 0x2f4   :  { %3414 = vmatmul.mubr.f32.gmra.mrb[156].mxu0 %v720_v7  ;;  %v2459_v7 = vld [vmem:[#allocation7 + $0x390] sm:$0xff] }
 0x2f5   :  { %3418 = vmatprep.mubr.f32.mxu0 %v723_v10 }
 0x2f8   :  { %3419 = vmatmul.mubr.f32.gmra.mrb[158].mxu0 %v721_v8  ;;  %v2460_v8 = vld [vmem:[#allocation7 + $0x398] sm:$0xff] }
 0x2f9   :  { %3423 = vmatprep.mubr.f32.mxu0 %v724_v11  ;;  %v12464_v10 = vpack.c.bf16 %v2460_v8, %v2459_v7  ;;  %v14340_v11 = vld [vmem:[#allocation4 + $0x99] sm:$0xff]  ;;  %v14398_v7 = vld [vmem:[#allocation4 + $0x129] sm:$0xff] }
 0x2fa   :  { %v840_v8 = vld [vmem:[#allocation4 + $0x128] sm:$0xff] }
 0x2fc   :  { %3424 = vmatmul.mubr.f32.gmra.mrb[160].mxu0 %v722_v9  ;;  %v821_v9 = vld [vmem:[#allocation4 + $0x90] sm:$0xff] }
 0x2fd   :  { %3493 = vmatprep.mubr.f32.mxu0 %v968_v12  ;;  %v822_v12 = vld [vmem:[#allocation4 + $0x98] sm:$0xff] }
 0x300   :  { %3494 = vmatmul.mubr.f32.vlgmr.msra.gmra.mrb[0].mxu0 %v806_v15  ;;  %v14347_v15 = vld [vmem:[#allocation4 + $0xa9] sm:$0xff] }
 0x301   :  { %12438 = vmatpush1.bf16.msra.mxu0 %v12437_v16  ;;  %3498 = vmatprep.mubr.f32.mxu0 %v969_v17  ;;  %v824_v16 = vld [vmem:[#allocation4 + $0xa8] sm:$0xff]  ;;  %v14350_v17 = vld [vmem:[#allocation4 + $0xb1] sm:$0xff] }
 0x302   :  { %12439 = vmatprep.subr.bf16.mxu0 %v18371_v0 }
 0x304   :  { %3499 = vmatmul.mubr.f32.gmra.mrb[2].mxu0 %v807_v20  ;;  %v2461_v20 = vld [vmem:[#allocation7 + $0x3a0] sm:$0xff] }
 0x305   :  { %3503 = vmatprep.mubr.f32.mxu0 %v14289_v22  ;;  %12441 = vmatpush1.bf16.msra.mxu0 %v12440_v21  ;;  %v2462_v21 = vld [vmem:[#allocation7 + $0x3a8] sm:$0xff] }
 0x306   :  { %12442 = vmatprep.subr.bf16.mxu0 %v18371_v0  ;;  %v12467_v24 = vpack.c.bf16 %v2462_v21, %v2461_v20  ;;  %v842_v20 = vld [vmem:[#allocation4 + $0x138] sm:$0xff]  ;;  %v14408_v21 = vld [vmem:[#allocation4 + $0x141] sm:$0xff] }
 0x308   :  { %3504 = vmatmul.mubr.f32.gmra.mrb[4].mxu0 %v808_v25  ;;  %v14356_v25 = vld [vmem:[#allocation4 + $0xc1] sm:$0xff] }
 0x309   :  { %3508 = vmatprep.mubr.f32.mxu0 %v14293_v27  ;;  %12444 = vmatpush1.bf16.msra.mxu0 %v12443_v26  ;;  %v827_v26 = vld [vmem:[#allocation4 + $0xc0] sm:$0xff] }
 0x30a   :  { %12445 = vmatprep.subr.bf16.mxu0 %v18371_v0 }
 0x30c   :  { %3509 = vmatmul.mubr.f32.gmra.mrb[6].mxu0 %v809_v30  ;;  %v14363_v30 = vld [vmem:[#allocation4 + $0xd1] sm:$0xff] }
 0x30d   :  { %3513 = vmatprep.mubr.f32.mxu0 %v14297_v32  ;;  %12447 = vmatpush1.bf16.msra.mxu0 %v12446_v31  ;;  %v829_v31 = vld [vmem:[#allocation4 + $0xd0] sm:$0xff] }
 0x30e   :  { %12448 = vmatprep.subr.bf16.mxu0 %v18371_v0 }
 0x310   :  { %3514 = vmatmul.mubr.f32.gmra.mrb[8].mxu0 %v810_v35  ;;  %v14369_v35 = vld [vmem:[#allocation4 + $0xe1] sm:$0xff] }
 0x311   :  { %3518 = vmatprep.mubr.f32.mxu0 %v14301_v37  ;;  %12450 = vmatpush1.bf16.msra.mxu0 %v12449_v36  ;;  %v2463_v36 = vld [vmem:[#allocation7 + $0x3b0] sm:$0xff] }
 0x312   :  { %12451 = vmatprep.subr.bf16.mxu0 %v18371_v0 }
 0x314   :  { %3519 = vmatmul.mubr.f32.gmra.mrb[10].mxu0 %v811_v40  ;;  %v12470_v40 = vpack.c.bf16 %v2464_v38, %v2463_v36  ;;  %v2469_v36 = vld [vmem:[#allocation7 + $0x3e0] sm:$0xff]  ;;  %v2470_v38 = vld [vmem:[#allocation7 + $0x3e8] sm:$0xff] }
 0x315   :  { %3523 = vmatprep.mubr.f32.mxu0 %v14305_v42  ;;  %12453 = vmatpush1.bf16.msra.mxu0 %v12452_v41  ;;  %v14372_v41 = vld [vmem:[#allocation4 + $0xe9] sm:$0xff] }
 0x316   :  { %12454 = vmatprep.subr.bf16.mxu0 %v18371_v0 }
 0x318   :  { %3524 = vmatmul.mubr.f32.gmra.mrb[12].mxu0 %v812_v45  ;;  %v833_v45 = vld [vmem:[#allocation4 + $0xf0] sm:$0xff] }
 0x319   :  { %3528 = vmatprep.mubr.f32.mxu0 %v14309_v47  ;;  %12456 = vmatpush1.bf16.msra.mxu0 %v12455_v46  ;;  %v14379_v46 = vld [vmem:[#allocation4 + $0xf9] sm:$0xff] }
 0x31a   :  { %12457 = vmatprep.subr.bf16.mxu0 %v18371_v0 }
 0x31c   :  { %3529 = vmatmul.mubr.f32.gmra.mrb[14].mxu0 %v813_v50  ;;  %v835_v50 = vld [vmem:[#allocation4 + $0x100] sm:$0xff] }
 0x31d   :  { %3533 = vmatprep.mubr.f32.mxu0 %v14313_v52  ;;  %12459 = vmatpush1.bf16.msra.mxu0 %v12458_v51  ;;  %v14385_v51 = vld [vmem:[#allocation4 + $0x109] sm:$0xff] }
 0x31e   :  { %12460 = vmatprep.subr.bf16.mxu0 %v18371_v0 }
 0x320   :  { %3534 = vmatmul.mubr.f32.gmra.mrb[16].mxu0 %v814_v53  ;;  %v2465_v53 = vld [vmem:[#allocation7 + $0x3c0] sm:$0xff] }
 0x321   :  { %3538 = vmatprep.mubr.f32.mxu0 %v14317_v54  ;;  %12462 = vmatpush1.bf16.msra.mxu0 %v12461_v59  ;;  %v14388_v59 = vld [vmem:[#allocation4 + $0x111] sm:$0xff] }
 0x322   :  { %12463 = vmatprep.subr.bf16.mxu0 %v18371_v0 }
 0x324   :  { %3539 = vmatmul.mubr.f32.gmra.mrb[18].mxu0 %v815_v55  ;;  %v2466_v55 = vld [vmem:[#allocation7 + $0x3c8] sm:$0xff] }
 0x325   :  { %3543 = vmatprep.mubr.f32.mxu0 %v14321_v58  ;;  %12465 = vmatpush1.bf16.msra.mxu0 %v12464_v10  ;;  %v12473_v57 = vpack.c.bf16 %v2466_v55, %v2465_v53  ;;  %v2467_v10 = vld [vmem:[#allocation7 + $0x3d0] sm:$0xff]  ;;  %v14427_v53 = vld [vmem:[#allocation4 + $0x171] sm:$0xff] }
 0x326   :  { %12466 = vmatprep.subr.bf16.mxu0 %v18371_v0  ;;  %v849_v55 = vld [vmem:[#allocation4 + $0x170] sm:$0xff] }
 0x328   :  { %3544 = vmatmul.mubr.f32.gmra.mrb[20].mxu0 %v816_v60  ;;  %v837_v60 = vld [vmem:[#allocation4 + $0x110] sm:$0xff] }
 0x329   :  { %3548 = vmatprep.mubr.f32.mxu0 %v14324_v61  ;;  %12468 = vmatpush1.bf16.msra.mxu0 %v12467_v24  ;;  %v14411_v24 = vld [vmem:[#allocation4 + $0x149] sm:$0xff] }
 0x32a   :  { %12469 = vmatprep.subr.bf16.mxu0 %v18371_v0 }
 0x32c   :  { %3549 = vmatmul.mubr.f32.gmra.mrb[22].mxu0 %v817_v62  ;;  %v14392_v62 = vld [vmem:[#allocation4 + $0x119] sm:$0xff] }
 0x32d   :  { %3553 = vmatprep.mubr.f32.mxu0 %v14328_v63  ;;  %12471 = vmatpush1.bf16.msra.mxu0 %v12470_v40  ;;  %v12479_v40 = vpack.c.bf16 %v2470_v38, %v2469_v36  ;;  %v855_v36 = vld [vmem:[#allocation4 + $0x1a0] sm:$0xff]  ;;  %v14449_v38 = vld [vmem:[#allocation4 + $0x1a9] sm:$0xff] }
 0x32e   :  { %12472 = vmatprep.subr.bf16.mxu0 %v18371_v0 }
 0x330   :  { %3554 = vmatmul.mubr.f32.gmra.mrb[24].mxu0 %v818_v1  ;;  %v838_v1 = vld [vmem:[#allocation4 + $0x118] sm:$0xff] }
 0x331   :  { %3558 = vmatprep.mubr.f32.mxu0 %v14331_v2  ;;  %12474 = vmatpush1.bf16.msra.mxu0 %v12473_v57  ;;  %v850_v57 = vld [vmem:[#allocation4 + $0x178] sm:$0xff] }
 0x332   :  { %12475 = vmatprep.subr.bf16.mxu0 %v18371_v0 }
 0x334   :  { %3559 = vmatmul.mubr.f32.gmra.mrb[26].mxu0 %v819_v3  ;;  %v14395_v3 = vld [vmem:[#allocation4 + $0x121] sm:$0xff] }
 0x335   :  { %3563 = vmatprep.mubr.f32.mxu0 %v14334_v4 }
 0x338   :  { %3564 = vmatmul.mubr.f32.gmra.mrb[28].mxu0 %v820_v5  ;;  %v839_v5 = vld [vmem:[#allocation4 + $0x120] sm:$0xff] }
 0x339   :  { %3568 = vmatprep.mubr.f32.mxu0 %v14337_v6 }
 0x33c   :  { %3569 = vmatmul.mubr.f32.gmra.mrb[30].mxu0 %v821_v9  ;;  %v14401_v9 = vld [vmem:[#allocation4 + $0x131] sm:$0xff] }
 0x33d   :  { %3573 = vmatprep.mubr.f32.mxu0 %v14340_v11 }
 0x340   :  { %3574 = vmatmul.mubr.f32.gmra.mrb[32].mxu0 %v822_v12  ;;  %v2468_v12 = vld [vmem:[#allocation7 + $0x3d8] sm:$0xff] }
 0x341   :  { %3578 = vmatprep.mubr.f32.mxu0 %v14344_v13 }
 0x344   :  { %3579 = vmatmul.mubr.f32.gmra.mrb[34].mxu0 %v823_v14  ;;  %v841_v14 = vld [vmem:[#allocation4 + $0x130] sm:$0xff] }
 0x345   :  { %3583 = vmatprep.mubr.f32.mxu0 %v14347_v15 }
 0x348   :  { %3584 = vmatmul.mubr.f32.gmra.mrb[36].mxu0 %v824_v16  ;;  %v12476_v16 = vpack.c.bf16 %v2468_v12, %v2467_v10  ;;  %v14436_v12 = vld [vmem:[#allocation4 + $0x189] sm:$0xff] }
 0x349   :  { %3588 = vmatprep.mubr.f32.mxu0 %v14350_v17 }
 0x34a   :  { %12477 = vmatpush1.bf16.msra.mxu0 %v12476_v16  ;;  %v14440_v16 = vld [vmem:[#allocation4 + $0x191] sm:$0xff] }
 0x34b   :  { %12478 = vmatprep.subr.bf16.mxu0 %v18371_v0 }
 0x34c   :  { %3589 = vmatmul.mubr.f32.gmra.mrb[38].mxu0 %v825_v18  ;;  %v14404_v18 = vld [vmem:[#allocation4 + $0x139] sm:$0xff] }
 0x34d   :  { %3593 = vmatprep.mubr.f32.mxu0 %v14353_v19 }
 0x34e   :  { %12480 = vmatpush1.bf16.msra.mxu0 %v12479_v40  ;;  %v14452_v40 = vld [vmem:[#allocation4 + $0x1b1] sm:$0xff] }
 0x34f   :  { %12481 = vmatprep.subr.bf16.mxu0 %v18371_v0 }
 0x350   :  { %3594 = vmatmul.mubr.f32.gmra.mrb[40].mxu0 %v826_v23  ;;  %v843_v23 = vld [vmem:[#allocation4 + $0x140] sm:$0xff] }
 0x351   :  { %3598 = vmatprep.mubr.f32.mxu0 %v14356_v25 }
 0x354   :  { %3599 = vmatmul.mubr.f32.gmra.mrb[42].mxu0 %v827_v26  ;;  %v844_v26 = vld [vmem:[#allocation4 + $0x148] sm:$0xff] }
 0x355   :  { %3603 = vmatprep.mubr.f32.mxu0 %v14360_v28 }
 0x358   :  { %3604 = vmatmul.mubr.f32.gmra.mrb[44].mxu0 %v828_v29  ;;  %v14414_v29 = vld [vmem:[#allocation4 + $0x151] sm:$0xff] }
 0x359   :  { %3608 = vmatprep.mubr.f32.mxu0 %v14363_v30 }
 0x35c   :  { %3609 = vmatmul.mubr.f32.gmra.mrb[46].mxu0 %v829_v31  ;;  %v845_v31 = vld [vmem:[#allocation4 + $0x150] sm:$0xff] }
 0x35d   :  { %3613 = vmatprep.mubr.f32.mxu0 %v14366_v33 }
 0x360   :  { %3614 = vmatmul.mubr.f32.gmra.mrb[48].mxu0 %v830_v34  ;;  %v14417_v34 = vld [vmem:[#allocation4 + $0x159] sm:$0xff] }
 0x361   :  { %3618 = vmatprep.mubr.f32.mxu0 %v14369_v35 }
 0x364   :  { %3619 = vmatmul.mubr.f32.gmra.mrb[50].mxu0 %v831_v39  ;;  %v846_v39 = vld [vmem:[#allocation4 + $0x158] sm:$0xff] }
 0x365   :  { %3623 = vmatprep.mubr.f32.mxu0 %v14372_v41 }
 0x368   :  { %3624 = vmatmul.mubr.f32.gmra.mrb[52].mxu0 %v832_v43  ;;  %v14420_v43 = vld [vmem:[#allocation4 + $0x161] sm:$0xff] }
 0x369   :  { %3628 = vmatprep.mubr.f32.mxu0 %v14376_v44 }
 0x36c   :  { %3629 = vmatmul.mubr.f32.gmra.mrb[54].mxu0 %v833_v45  ;;  %v847_v45 = vld [vmem:[#allocation4 + $0x160] sm:$0xff] }
 0x36d   :  { %3633 = vmatprep.mubr.f32.mxu0 %v14379_v46 }
 0x370   :  { %3634 = vmatmul.mubr.f32.gmra.mrb[56].mxu0 %v834_v48  ;;  %v14424_v48 = vld [vmem:[#allocation4 + $0x169] sm:$0xff] }
 0x371   :  { %3638 = vmatprep.mubr.f32.mxu0 %v14382_v49 }
 0x374   :  { %3639 = vmatmul.mubr.f32.gmra.mrb[58].mxu0 %v835_v50  ;;  %v848_v50 = vld [vmem:[#allocation4 + $0x168] sm:$0xff] }
 0x375   :  { %3643 = vmatprep.mubr.f32.mxu0 %v14385_v51 }
 0x378   :  { %3644 = vmatmul.mubr.f32.gmra.mrb[60].mxu0 %v836_v56  ;;  %v14430_v56 = vld [vmem:[#allocation4 + $0x179] sm:$0xff] }
 0x379   :  { %3648 = vmatprep.mubr.f32.mxu0 %v14388_v59 }
 0x37c   :  { %3649 = vmatmul.mubr.f32.gmra.mrb[62].mxu0 %v837_v60  ;;  %v14433_v60 = vld [vmem:[#allocation4 + $0x181] sm:$0xff] }
 0x37d   :  { %3653 = vmatprep.mubr.f32.mxu0 %v14392_v62 }
 0x380   :  { %3654 = vmatmul.mubr.f32.gmra.mrb[64].mxu0 %v838_v1  ;;  %v2471_v1 = vld [vmem:[#allocation7 + $0x3f0] sm:$0xff] }
 0x381   :  { %3658 = vmatprep.mubr.f32.mxu0 %v14395_v3 }
 0x384   :  { %3659 = vmatmul.mubr.f32.gmra.mrb[66].mxu0 %v839_v5  ;;  %v2472_v5 = vld [vmem:[#allocation7 + $0x3f8] sm:$0xff] }
 0x385   :  { %3663 = vmatprep.mubr.f32.mxu0 %v14398_v7  ;;  %v12482_v10 = vpack.c.bf16 %v2472_v5, %v2471_v1  ;;  %v859_v1 = vld [vmem:[#allocation4 + $0x1c0] sm:$0xff]  ;;  %v14461_v5 = vld [vmem:[#allocation4 + $0x1c9] sm:$0xff] }
 0x386   :  { %18717 = vst [vmem:[#allocation15_spill] sm:$0xff] %v14461_v5 }
 0x387   :  { %12483 = vmatpush1.bf16.msra.mxu0 %v12482_v10  ;;  %v14464_v10 = vld [vmem:[#allocation4 + $0x1d1] sm:$0xff] }
 0x388   :  { %3664 = vmatmul.mubr.f32.gmra.mrb[68].mxu0 %v840_v8  ;;  %v851_v8 = vld [vmem:[#allocation4 + $0x180] sm:$0xff]  ;;  %12484 = vmatprep.subr.bf16.mxu0 %v18371_v0  ;;  %18718 = vst [vmem:[#allocation16_spill] sm:$0xff] %v14464_v10 }
 0x389   :  { %3668 = vmatprep.mubr.f32.mxu0 %v14401_v9  ;;  %v14482_v0 = vld [vmem:[#allocation4 + $0x201] sm:$0xff] }
 0x38a   :  { %18724 = vst [vmem:[#allocation22_spill] sm:$0xff] %v14482_v0 }
 0x38c   :  { %3669 = vmatmul.mubr.f32.gmra.mrb[70].mxu0 %v841_v14  ;;  %v852_v14 = vld [vmem:[#allocation4 + $0x188] sm:$0xff] }
 0x38d   :  { %3673 = vmatprep.mubr.f32.mxu0 %v14404_v18 }
 0x390   :  { %3674 = vmatmul.mubr.f32.gmra.mrb[72].mxu0 %v842_v20  ;;  %v853_v20 = vld [vmem:[#allocation4 + $0x190] sm:$0xff] }
 0x391   :  { %3678 = vmatprep.mubr.f32.mxu0 %v14408_v21 }
 0x394   :  { %3679 = vmatmul.mubr.f32.gmra.mrb[74].mxu0 %v843_v23  ;;  %v14443_v23 = vld [vmem:[#allocation4 + $0x199] sm:$0xff] }
 0x395   :  { %3683 = vmatprep.mubr.f32.mxu0 %v14411_v24 }
 0x398   :  { %3684 = vmatmul.mubr.f32.gmra.mrb[76].mxu0 %v844_v26  ;;  %v854_v26 = vld [vmem:[#allocation4 + $0x198] sm:$0xff] }
 0x399   :  { %3688 = vmatprep.mubr.f32.mxu0 %v14414_v29 }
 0x39c   :  { %3689 = vmatmul.mubr.f32.gmra.mrb[78].mxu0 %v845_v31  ;;  %v14446_v31 = vld [vmem:[#allocation4 + $0x1a1] sm:$0xff] }
 0x39d   :  { %3693 = vmatprep.mubr.f32.mxu0 %v14417_v34 }
 0x3a0   :  { %3694 = vmatmul.mubr.f32.gmra.mrb[80].mxu0 %v846_v39  ;;  %v856_v39 = vld [vmem:[#allocation4 + $0x1a8] sm:$0xff] }
 0x3a1   :  { %3698 = vmatprep.mubr.f32.mxu0 %v14420_v43 }
 0x3a4   :  { %3699 = vmatmul.mubr.f32.gmra.mrb[82].mxu0 %v847_v45  ;;  %v857_v45 = vld [vmem:[#allocation4 + $0x1b0] sm:$0xff] }
 0x3a5   :  { %3703 = vmatprep.mubr.f32.mxu0 %v14424_v48 }
 0x3a8   :  { %3704 = vmatmul.mubr.f32.gmra.mrb[84].mxu0 %v848_v50  ;;  %v14455_v50 = vld [vmem:[#allocation4 + $0x1b9] sm:$0xff] }
 0x3a9   :  { %3708 = vmatprep.mubr.f32.mxu0 %v14427_v53 }
 0x3ac   :  { %3709 = vmatmul.mubr.f32.gmra.mrb[86].mxu0 %v849_v55  ;;  %v858_v55 = vld [vmem:[#allocation4 + $0x1b8] sm:$0xff] }
 0x3ad   :  { %3713 = vmatprep.mubr.f32.mxu0 %v14430_v56 }
 0x3b0   :  { %3714 = vmatmul.mubr.f32.gmra.mrb[88].mxu0 %v850_v57  ;;  %v14458_v57 = vld [vmem:[#allocation4 + $0x1c1] sm:$0xff] }
 0x3b1   :  { %3718 = vmatprep.mubr.f32.mxu0 %v14433_v60  ;;  %18716 = vst [vmem:[#allocation14_spill] sm:$0xff] %v14458_v57 }
 0x3b4   :  { %3719 = vmatmul.mubr.f32.gmra.mrb[90].mxu0 %v851_v8  ;;  %v860_v8 = vld [vmem:[#allocation4 + $0x1c8] sm:$0xff] }
 0x3b5   :  { %3723 = vmatprep.mubr.f32.mxu0 %v14436_v12 }
 0x3b8   :  { %3724 = vmatmul.mubr.f32.gmra.mrb[92].mxu0 %v852_v14  ;;  %v861_v14 = vld [vmem:[#allocation4 + $0x1d0] sm:$0xff] }
 0x3b9   :  { %3728 = vmatprep.mubr.f32.mxu0 %v14440_v16 }
 0x3bc   :  { %3729 = vmatmul.mubr.f32.gmra.mrb[94].mxu0 %v853_v20  ;;  %v14467_v20 = vld [vmem:[#allocation4 + $0x1d9] sm:$0xff] }
 0x3bd   :  { %3733 = vmatprep.mubr.f32.mxu0 %v14443_v23  ;;  %18719 = vst [vmem:[#allocation17_spill] sm:$0xff] %v14467_v20 }
 0x3c0   :  { %3734 = vmatmul.mubr.f32.gmra.mrb[96].mxu0 %v854_v26  ;;  %v862_v26 = vld [vmem:[#allocation4 + $0x1d8] sm:$0xff] }
 0x3c1   :  { %3738 = vmatprep.mubr.f32.mxu0 %v14446_v31 }
 0x3c4   :  { %3739 = vmatmul.mubr.f32.gmra.mrb[98].mxu0 %v855_v36  ;;  %v14470_v36 = vld [vmem:[#allocation4 + $0x1e1] sm:$0xff] }
 0x3c5   :  { %3743 = vmatprep.mubr.f32.mxu0 %v14449_v38  ;;  %18720 = vst [vmem:[#allocation18_spill] sm:$0xff] %v14470_v36 }
 0x3c8   :  { %3744 = vmatmul.mubr.f32.gmra.mrb[100].mxu0 %v856_v39  ;;  %v863_v39 = vld [vmem:[#allocation4 + $0x1e0] sm:$0xff] }
 0x3c9   :  { %3748 = vmatprep.mubr.f32.mxu0 %v14452_v40 }
 0x3cc   :  { %3749 = vmatmul.mubr.f32.gmra.mrb[102].mxu0 %v857_v45  ;;  %v14473_v45 = vld [vmem:[#allocation4 + $0x1e9] sm:$0xff] }
 0x3cd   :  { %3753 = vmatprep.mubr.f32.mxu0 %v14455_v50  ;;  %18721 = vst [vmem:[#allocation19_spill] sm:$0xff] %v14473_v45 }
 0x3d0   :  { %3754 = vmatmul.mubr.f32.gmra.mrb[104].mxu0 %v858_v55  ;;  %v864_v55 = vld [vmem:[#allocation4 + $0x1e8] sm:$0xff] }
 0x3d1   :  { %3758 = vmatprep.mubr.f32.mxu0 %v14458_v57  ;;  %v18744_v57 = vmov 0.0|0.0  }
 0x3d4   :  { %3759 = vmatmul.mubr.f32.gmra.mrb[106].mxu0 %v859_v1  ;;  %v14476_v1 = vld [vmem:[#allocation4 + $0x1f1] sm:$0xff] }
 0x3d5   :  { %3763 = vmatprep.mubr.f32.mxu0 %v14461_v5  ;;  %18722 = vst [vmem:[#allocation20_spill] sm:$0xff] %v14476_v1  ;;  %v2476_v5 = vld [vmem:[#allocation7 + $0x418] sm:$0xff] }
 0x3d8   :  { %3764 = vmatmul.mubr.f32.gmra.mrb[108].mxu0 %v860_v8  ;;  %v865_v8 = vld [vmem:[#allocation4 + $0x1f0] sm:$0xff] }
 0x3d9   :  { %3768 = vmatprep.mubr.f32.mxu0 %v14464_v10  ;;  %v2475_v10 = vld [vmem:[#allocation7 + $0x410] sm:$0xff] }
 0x3dc   :  { %3769 = vmatmul.mubr.f32.gmra.mrb[110].mxu0 %v861_v14  ;;  %v14479_v14 = vld [vmem:[#allocation4 + $0x1f9] sm:$0xff] }
 0x3dd   :  { %3773 = vmatprep.mubr.f32.mxu0 %v14467_v20  ;;  %18723 = vst [vmem:[#allocation21_spill] sm:$0xff] %v14479_v14  ;;  %v2474_v20 = vld [vmem:[#allocation7 + $0x408] sm:$0xff] }
 0x3e0   :  { %3774 = vmatmul.mubr.f32.gmra.mrb[112].mxu0 %v862_v26  ;;  %v866_v26 = vld [vmem:[#allocation4 + $0x1f8] sm:$0xff] }
 0x3e1   :  { %3778 = vmatprep.mubr.f32.mxu0 %v14470_v36  ;;  %v2473_v36 = vld [vmem:[#allocation7 + $0x400] sm:$0xff] }
 0x3e4   :  { %3779 = vmatmul.mubr.f32.gmra.mrb[114].mxu0 %v863_v39  ;;  %v867_v39 = vld [vmem:[#allocation4 + $0x200] sm:$0xff] }
 0x3e5   :  { %3783 = vmatprep.mubr.f32.mxu0 %v14473_v45  ;;  %v14485_v45 = vld [vmem:[#allocation4 + $0x209] sm:$0xff] }
 0x3e6   :  { %18725 = vst [vmem:[#allocation23_spill] sm:$0xff] %v14485_v45 }
 0x3e8   :  { %3784 = vmatmul.mubr.f32.gmra.mrb[116].mxu0 %v864_v55  ;;  %v868_v55 = vld [vmem:[#allocation4 + $0x208] sm:$0xff] }
 0x3e9   :  { %3788 = vmatprep.mubr.f32.mxu0 %v14476_v1  ;;  %v14488_v1 = vld [vmem:[#allocation4 + $0x211] sm:$0xff] }
 0x3ea   :  { %18726 = vst [vmem:[#allocation24_spill] sm:$0xff] %v14488_v1 }
 0x3ec   :  { %3789 = vmatmul.mubr.f32.gmra.mrb[118].mxu0 %v865_v8  ;;  %v869_v8 = vld [vmem:[#allocation4 + $0x210] sm:$0xff] }
 0x3ed   :  { %3793 = vmatprep.mubr.f32.mxu0 %v14479_v14  ;;  %v14491_v14 = vld [vmem:[#allocation4 + $0x219] sm:$0xff] }
 0x3ee   :  { %18727 = vst [vmem:[#allocation25_spill] sm:$0xff] %v14491_v14 }
 0x3f0   :  { %3794 = vmatmul.mubr.f32.gmra.mrb[120].mxu0 %v866_v26  ;;  %v870_v26 = vld [vmem:[#allocation4 + $0x218] sm:$0xff] }
 0x3f1   :  { %3798 = vmatprep.mubr.f32.mxu0 %v14482_v0  ;;  %v14494_v0 = vld [vmem:[#allocation4 + $0x221] sm:$0xff] }
 0x3f2   :  { %18728 = vst [vmem:[#allocation26_spill] sm:$0xff] %v14494_v0 }
 0x3f4   :  { %3799 = vmatmul.mubr.f32.gmra.mrb[122].mxu0 %v867_v39  ;;  %v871_v39 = vld [vmem:[#allocation4 + $0x220] sm:$0xff] }
 0x3f5   :  { %3803 = vmatprep.mubr.f32.mxu0 %v14485_v45  ;;  %v14497_v45 = vld [vmem:[#allocation4 + $0x229] sm:$0xff] }
 0x3f6   :  { %18729 = vst [vmem:[#allocation27_spill] sm:$0xff] %v14497_v45 }
 0x3f8   :  { %3804 = vmatmul.mubr.f32.gmra.mrb[124].mxu0 %v868_v55  ;;  %v872_v55 = vld [vmem:[#allocation4 + $0x228] sm:$0xff] }
 0x3f9   :  { %3808 = vmatprep.mubr.f32.mxu0 %v14488_v1  ;;  %v14500_v1 = vld [vmem:[#allocation4 + $0x231] sm:$0xff] }
 0x3fa   :  { %18730 = vst [vmem:[#allocation28_spill] sm:$0xff] %v14500_v1 }
 0x3fc   :  { %3809 = vmatmul.mubr.f32.gmra.mrb[126].mxu0 %v869_v8  ;;  %v873_v8 = vld [vmem:[#allocation4 + $0x230] sm:$0xff] }
 0x3fd   :  { %3813 = vmatprep.mubr.f32.mxu0 %v14491_v14  ;;  %v14503_v14 = vld [vmem:[#allocation4 + $0x239] sm:$0xff] }
 0x3fe   :  { %18731 = vst [vmem:[#allocation29_spill] sm:$0xff] %v14503_v14 }
 0x400   :  { %3814 = vmatmul.mubr.f32.gmra.mrb[128].mxu0 %v870_v26  ;;  %v874_v26 = vld [vmem:[#allocation4 + $0x238] sm:$0xff] }
 0x401   :  { %3818 = vmatprep.mubr.f32.mxu0 %v14494_v0  ;;  %v14506_v0 = vld [vmem:[#allocation4 + $0x241] sm:$0xff] }
 0x402   :  { %18732 = vst [vmem:[#allocation30_spill] sm:$0xff] %v14506_v0 }
 0x404   :  { %3819 = vmatmul.mubr.f32.gmra.mrb[130].mxu0 %v871_v39  ;;  %v875_v39 = vld [vmem:[#allocation4 + $0x240] sm:$0xff] }
 0x405   :  { %3823 = vmatprep.mubr.f32.mxu0 %v14497_v45  ;;  %v14509_v45 = vld [vmem:[#allocation4 + $0x249] sm:$0xff] }
 0x406   :  { %18733 = vst [vmem:[#allocation31_spill] sm:$0xff] %v14509_v45 }
 0x408   :  { %3824 = vmatmul.mubr.f32.gmra.mrb[132].mxu0 %v872_v55  ;;  %v876_v55 = vld [vmem:[#allocation4 + $0x248] sm:$0xff] }
 0x409   :  { %3828 = vmatprep.mubr.f32.mxu0 %v14500_v1  ;;  %v14512_v1 = vld [vmem:[#allocation4 + $0x251] sm:$0xff] }
 0x40a   :  { %18734 = vst [vmem:[#allocation32_spill] sm:$0xff] %v14512_v1 }
 0x40c   :  { %3829 = vmatmul.mubr.f32.gmra.mrb[134].mxu0 %v873_v8  ;;  %v877_v8 = vld [vmem:[#allocation4 + $0x250] sm:$0xff] }
 0x40d   :  { %3833 = vmatprep.mubr.f32.mxu0 %v14503_v14  ;;  %v14515_v14 = vld [vmem:[#allocation4 + $0x259] sm:$0xff] }
 0x40e   :  { %18735 = vst [vmem:[#allocation33_spill] sm:$0xff] %v14515_v14 }
 0x410   :  { %3834 = vmatmul.mubr.f32.gmra.mrb[136].mxu0 %v874_v26  ;;  %v878_v26 = vld [vmem:[#allocation4 + $0x258] sm:$0xff] }
 0x411   :  { %3838 = vmatprep.mubr.f32.mxu0 %v14506_v0  ;;  %v14518_v0 = vld [vmem:[#allocation4 + $0x261] sm:$0xff] }
 0x412   :  { %18736 = vst [vmem:[#allocation34_spill] sm:$0xff] %v14518_v0 }
 0x414   :  { %3839 = vmatmul.mubr.f32.gmra.mrb[138].mxu0 %v875_v39  ;;  %v879_v39 = vld [vmem:[#allocation4 + $0x260] sm:$0xff] }
 0x415   :  { %3843 = vmatprep.mubr.f32.mxu0 %v14509_v45  ;;  %v14521_v45 = vld [vmem:[#allocation4 + $0x269] sm:$0xff] }
 0x416   :  { %18737 = vst [vmem:[#allocation35_spill] sm:$0xff] %v14521_v45 }
 0x418   :  { %3844 = vmatmul.mubr.f32.gmra.mrb[140].mxu0 %v876_v55  ;;  %v880_v55 = vld [vmem:[#allocation4 + $0x268] sm:$0xff] }
 0x419   :  { %3848 = vmatprep.mubr.f32.mxu0 %v14512_v1  ;;  %v14524_v1 = vld [vmem:[#allocation4 + $0x271] sm:$0xff] }
 0x41a   :  { %18738 = vst [vmem:[#allocation36_spill] sm:$0xff] %v14524_v1 }
 0x41c   :  { %3849 = vmatmul.mubr.f32.gmra.mrb[142].mxu0 %v877_v8  ;;  %v881_v8 = vld [vmem:[#allocation4 + $0x270] sm:$0xff] }
 0x41d   :  { %3853 = vmatprep.mubr.f32.mxu0 %v14515_v14  ;;  %v14527_v14 = vld [vmem:[#allocation4 + $0x279] sm:$0xff] }
 0x41e   :  { %18739 = vst [vmem:[#allocation37_spill] sm:$0xff] %v14527_v14 }
 0x420   :  { %3854 = vmatmul.mubr.f32.gmra.mrb[144].mxu0 %v878_v26  ;;  %v882_v26 = vld [vmem:[#allocation4 + $0x278] sm:$0xff] }
 0x421   :  { %3858 = vmatprep.mubr.f32.mxu0 %v14518_v0  ;;  %v14530_v0 = vld [vmem:[#allocation4 + $0x281] sm:$0xff] }
 0x422   :  { %18740 = vst [vmem:[#allocation38_spill] sm:$0xff] %v14530_v0 }
 0x424   :  { %3859 = vmatmul.mubr.f32.gmra.mrb[146].mxu0 %v879_v39  ;;  %v883_v39 = vld [vmem:[#allocation4 + $0x280] sm:$0xff] }
 0x425   :  { %3863 = vmatprep.mubr.f32.mxu0 %v14521_v45  ;;  %v14533_v45 = vld [vmem:[#allocation4 + $0x289] sm:$0xff] }
 0x426   :  { %18741 = vst [vmem:[#allocation39_spill] sm:$0xff] %v14533_v45 }
 0x428   :  { %3864 = vmatmul.mubr.f32.gmra.mrb[148].mxu0 %v880_v55  ;;  %v884_v55 = vld [vmem:[#allocation4 + $0x288] sm:$0xff] }
 0x429   :  { %3868 = vmatprep.mubr.f32.mxu0 %v14524_v1  ;;  %v14536_v1 = vld [vmem:[#allocation4 + $0x291] sm:$0xff] }
 0x42a   :  { %18742 = vst [vmem:[#allocation40_spill] sm:$0xff] %v14536_v1 }
 0x42c   :  { %3869 = vmatmul.mubr.f32.gmra.mrb[150].mxu0 %v881_v8  ;;  %v885_v8 = vld [vmem:[#allocation4 + $0x290] sm:$0xff] }
 0x42d   :  { %3873 = vmatprep.mubr.f32.mxu0 %v14527_v14  ;;  %v14539_v14 = vld [vmem:[#allocation4 + $0x299] sm:$0xff] }
 0x42e   :  { %18743 = vst [vmem:[#allocation41_spill] sm:$0xff] %v14539_v14 }
 0x430   :  { %3874 = vmatmul.mubr.f32.gmra.mrb[152].mxu0 %v882_v26  ;;  %v886_v26 = vld [vmem:[#allocation4 + $0x298] sm:$0xff] }
 0x431   :  { %3878 = vmatprep.mubr.f32.mxu0 %v14530_v0  ;;  %v1292_v0 = vld [vmem:[#allocation4 + $0x2a] sm:$0xff] }
 0x434   :  { %3879 = vmatmul.mubr.f32.gmra.mrb[154].mxu0 %v883_v39  ;;  %v12485_v39 = vpack.c.bf16 %v2474_v20, %v2473_v36  ;;  %v2479_v20 = vld [vmem:[#allocation7 + $0x430] sm:$0xff]  ;;  %v2480_v36 = vld [vmem:[#allocation7 + $0x438] sm:$0xff] }
 0x435   :  { %3883 = vmatprep.mubr.f32.mxu0 %v14533_v45  ;;  %v1293_v45 = vld [vmem:[#allocation4 + $0x32] sm:$0xff] }
 0x438   :  { %3884 = vmatmul.mubr.f32.gmra.mrb[156].mxu0 %v884_v55  ;;  %v12488_v55 = vpack.c.bf16 %v2476_v5, %v2475_v10  ;;  %v1296_v5 = vld [vmem:[#allocation4 + $0x4a] sm:$0xff]  ;;  %v1298_v10 = vld [vmem:[#allocation4 + $0x5a] sm:$0xff] }
 0x439   :  { %3888 = vmatprep.mubr.f32.mxu0 %v14536_v1  ;;  %v1294_v1 = vld [vmem:[#allocation4 + $0x3a] sm:$0xff] }
 0x43c   :  { %3889 = vmatmul.mubr.f32.gmra.mrb[158].mxu0 %v885_v8  ;;  %v2477_v8 = vld [vmem:[#allocation7 + $0x420] sm:$0xff] }
 0x43d   :  { %3893 = vmatprep.mubr.f32.mxu0 %v14539_v14  ;;  %v2478_v14 = vld [vmem:[#allocation7 + $0x428] sm:$0xff] }
 0x440   :  { %3894 = vmatmul.mubr.f32.gmra.mrb[160].mxu0 %v886_v26  ;;  %v12491_v26 = vpack.c.bf16 %v2478_v14, %v2477_v8  ;;  %v2482_v14 = vld [vmem:[#allocation7 + $0x448] sm:$0xff]  ;;  %v2484_v8 = vld [vmem:[#allocation7 + $0x458] sm:$0xff] }
 0x441   :  { %3963 = vmatprep.mubr.f32.mxu0 %v1292_v0  ;;  %v1295_v0 = vld [vmem:[#allocation4 + $0x42] sm:$0xff] }
 0x444   :  { %3964 = vmatmul.mubr.f32.vlgmr.msra.gmra.mrb[0].mxu0 %v14289_v22  ;;  %v12494_v22 = vpack.c.bf16 %v2480_v36, %v2479_v20  ;;  %v2486_v20 = vld [vmem:[#allocation7 + $0x468] sm:$0xff] }
 0x445   :  { %12486 = vmatpush3.bf16.msra.mxu0 %v12485_v39  ;;  %3968 = vmatprep.mubr.f32.mxu0 %v1293_v45  ;;  %v1300_v45 = vld [vmem:[#allocation4 + $0x6a] sm:$0xff]  ;;  %v1323_v36 = vld [vmem:[#allocation4 + $0x122] sm:$0xff] }
 0x446   :  { %12487 = vmatprep.subr.bf16.mxu0 %v18744_v57 }
 0x448   :  { %3969 = vmatmul.mubr.f32.gmra.mrb[2].mxu0 %v14293_v27  ;;  %v1297_v27 = vld [vmem:[#allocation4 + $0x52] sm:$0xff] }
 0x449   :  { %3973 = vmatprep.mubr.f32.mxu0 %v1294_v1  ;;  %12489 = vmatpush3.bf16.msra.mxu0 %v12488_v55  ;;  %v2481_v1 = vld [vmem:[#allocation7 + $0x440] sm:$0xff]  ;;  %v1308_v55 = vld [vmem:[#allocation4 + $0xaa] sm:$0xff] }
 0x44a   :  { %12490 = vmatprep.subr.bf16.mxu0 %v18744_v57  ;;  %v12497_v39 = vpack.c.bf16 %v2482_v14, %v2481_v1  ;;  %v1347_v1 = vld [vmem:[#allocation4 + $0x1e2] sm:$0xff]  ;;  %v18748_v14 = vld [vmem:[#allocation17_spill] sm:$0xff] }
 0x44c   :  { %3974 = vmatmul.mubr.f32.gmra.mrb[4].mxu0 %v14297_v32  ;;  %v1299_v32 = vld [vmem:[#allocation4 + $0x62] sm:$0xff] }
 0x44d   :  { %3978 = vmatprep.mubr.f32.mxu0 %v1295_v0  ;;  %12492 = vmatpush3.bf16.msra.mxu0 %v12491_v26  ;;  %v1313_v26 = vld [vmem:[#allocation4 + $0xd2] sm:$0xff]  ;;  %v1319_v0 = vld [vmem:[#allocation4 + $0x102] sm:$0xff] }
 0x44e   :  { %12493 = vmatprep.subr.bf16.mxu0 %v18744_v57 }
 0x450   :  { %3979 = vmatmul.mubr.f32.gmra.mrb[6].mxu0 %v14301_v37  ;;  %v1301_v37 = vld [vmem:[#allocation4 + $0x72] sm:$0xff] }
 0x451   :  { %3983 = vmatprep.mubr.f32.mxu0 %v1296_v5  ;;  %12495 = vmatpush3.bf16.msra.mxu0 %v12494_v22  ;;  %v1329_v22 = vld [vmem:[#allocation4 + $0x152] sm:$0xff] }
 0x452   :  { %12496 = vmatprep.subr.bf16.mxu0 %v18744_v57  ;;  %v2488_v5 = vld [vmem:[#allocation7 + $0x478] sm:$0xff] }
 0x454   :  { %3984 = vmatmul.mubr.f32.gmra.mrb[8].mxu0 %v14305_v42  ;;  %v1302_v42 = vld [vmem:[#allocation4 + $0x7a] sm:$0xff] }
 0x455   :  { %3988 = vmatprep.mubr.f32.mxu0 %v1297_v27  ;;  %12498 = vmatpush3.bf16.msra.mxu0 %v12497_v39  ;;  %v1333_v27 = vld [vmem:[#allocation4 + $0x172] sm:$0xff]  ;;  %v18750_v39 = vld [vmem:[#allocation19_spill] sm:$0xff] }
 0x456   :  { %12499 = vmatprep.subr.bf16.mxu0 %v18744_v57 }
 0x458   :  { %3989 = vmatmul.mubr.f32.gmra.mrb[10].mxu0 %v14309_v47  ;;  %v1303_v47 = vld [vmem:[#allocation4 + $0x82] sm:$0xff] }
 0x459   :  { %3993 = vmatprep.mubr.f32.mxu0 %v1298_v10  ;;  %v1338_v10 = vld [vmem:[#allocation4 + $0x19a] sm:$0xff] }
 0x45c   :  { %3994 = vmatmul.mubr.f32.gmra.mrb[12].mxu0 %v14313_v52  ;;  %v1304_v52 = vld [vmem:[#allocation4 + $0x8a] sm:$0xff] }
 0x45d   :  { %3998 = vmatprep.mubr.f32.mxu0 %v1299_v32  ;;  %v18746_v32 = vld [vmem:[#allocation15_spill] sm:$0xff] }
 0x460   :  { %3999 = vmatmul.mubr.f32.gmra.mrb[14].mxu0 %v14317_v54  ;;  %v1305_v54 = vld [vmem:[#allocation4 + $0x92] sm:$0xff] }
 0x461   :  { %4003 = vmatprep.mubr.f32.mxu0 %v1300_v45  ;;  %v1346_v45 = vld [vmem:[#allocation4 + $0x1da] sm:$0xff] }
 0x464   :  { %4004 = vmatmul.mubr.f32.gmra.mrb[16].mxu0 %v14321_v58  ;;  %v1306_v58 = vld [vmem:[#allocation4 + $0x9a] sm:$0xff] }
 0x465   :  { %4008 = vmatprep.mubr.f32.mxu0 %v1301_v37  ;;  %v18747_v37 = vld [vmem:[#allocation16_spill] sm:$0xff] }
 0x468   :  { %4009 = vmatmul.mubr.f32.gmra.mrb[18].mxu0 %v14324_v61  ;;  %v1307_v61 = vld [vmem:[#allocation4 + $0xa2] sm:$0xff] }
 0x469   :  { %4013 = vmatprep.mubr.f32.mxu0 %v1302_v42  ;;  %v18749_v42 = vld [vmem:[#allocation18_spill] sm:$0xff] }
 0x46c   :  { %4014 = vmatmul.mubr.f32.gmra.mrb[20].mxu0 %v14328_v63  ;;  %v1309_v63 = vld [vmem:[#allocation4 + $0xb2] sm:$0xff] }
 0x46d   :  { %4018 = vmatprep.mubr.f32.mxu0 %v1303_v47  ;;  %v1350_v47 = vld [vmem:[#allocation4 + $0x1fa] sm:$0xff] }
 0x470   :  { %4019 = vmatmul.mubr.f32.gmra.mrb[22].mxu0 %v14331_v2  ;;  %v1310_v2 = vld [vmem:[#allocation4 + $0xba] sm:$0xff] }
 0x471   :  { %4023 = vmatprep.mubr.f32.mxu0 %v1304_v52  ;;  %v18751_v52 = vld [vmem:[#allocation20_spill] sm:$0xff] }
 0x474   :  { %4024 = vmatmul.mubr.f32.gmra.mrb[24].mxu0 %v14334_v4  ;;  %v1311_v4 = vld [vmem:[#allocation4 + $0xc2] sm:$0xff] }
 0x475   :  { %4028 = vmatprep.mubr.f32.mxu0 %v1305_v54  ;;  %v1351_v54 = vld [vmem:[#allocation4 + $0x202] sm:$0xff] }
 0x478   :  { %4029 = vmatmul.mubr.f32.gmra.mrb[26].mxu0 %v14337_v6  ;;  %v1312_v6 = vld [vmem:[#allocation4 + $0xca] sm:$0xff] }
 0x479   :  { %4033 = vmatprep.mubr.f32.mxu0 %v1306_v58  ;;  %v18752_v58 = vld [vmem:[#allocation21_spill] sm:$0xff] }
 0x47c   :  { %4034 = vmatmul.mubr.f32.gmra.mrb[28].mxu0 %v14340_v11  ;;  %v2483_v11 = vld [vmem:[#allocation7 + $0x450] sm:$0xff] }
 0x47d   :  { %4038 = vmatprep.mubr.f32.mxu0 %v1307_v61  ;;  %v1352_v61 = vld [vmem:[#allocation4 + $0x20a] sm:$0xff] }
 0x480   :  { %4039 = vmatmul.mubr.f32.gmra.mrb[30].mxu0 %v14344_v13  ;;  %v12500_v13 = vpack.c.bf16 %v2484_v8, %v2483_v11  ;;  %v1355_v11 = vld [vmem:[#allocation4 + $0x222] sm:$0xff]  ;;  %v18756_v8 = vld [vmem:[#allocation25_spill] sm:$0xff] }
 0x481   :  { %4043 = vmatprep.mubr.f32.mxu0 %v1308_v55  ;;  %v18753_v55 = vld [vmem:[#allocation22_spill] sm:$0xff] }
 0x482   :  { %12501 = vmatpush3.bf16.msra.mxu0 %v12500_v13  ;;  %v1356_v13 = vld [vmem:[#allocation4 + $0x22a] sm:$0xff] }
 0x483   :  { %12502 = vmatprep.subr.bf16.mxu0 %v18744_v57 }
 0x484   :  { %4044 = vmatmul.mubr.f32.gmra.mrb[32].mxu0 %v14347_v15  ;;  %v1314_v15 = vld [vmem:[#allocation4 + $0xda] sm:$0xff] }
 0x485   :  { %4048 = vmatprep.mubr.f32.mxu0 %v1309_v63  ;;  %v1353_v63 = vld [vmem:[#allocation4 + $0x212] sm:$0xff] }
 0x488   :  { %4049 = vmatmul.mubr.f32.gmra.mrb[34].mxu0 %v14350_v17  ;;  %v1315_v17 = vld [vmem:[#allocation4 + $0xe2] sm:$0xff] }
 0x489   :  { %4053 = vmatprep.mubr.f32.mxu0 %v1310_v2  ;;  %v18754_v2 = vld [vmem:[#allocation23_spill] sm:$0xff] }
 0x48c   :  { %4054 = vmatmul.mubr.f32.gmra.mrb[36].mxu0 %v14353_v19  ;;  %v1316_v19 = vld [vmem:[#allocation4 + $0xea] sm:$0xff] }
 0x48d   :  { %4058 = vmatprep.mubr.f32.mxu0 %v1311_v4  ;;  %v1354_v4 = vld [vmem:[#allocation4 + $0x21a] sm:$0xff] }
 0x490   :  { %4059 = vmatmul.mubr.f32.gmra.mrb[38].mxu0 %v14356_v25  ;;  %v1317_v25 = vld [vmem:[#allocation4 + $0xf2] sm:$0xff] }
 0x491   :  { %4063 = vmatprep.mubr.f32.mxu0 %v1312_v6  ;;  %v18755_v6 = vld [vmem:[#allocation24_spill] sm:$0xff] }
 0x494   :  { %4064 = vmatmul.mubr.f32.gmra.mrb[40].mxu0 %v14360_v28  ;;  %v1318_v28 = vld [vmem:[#allocation4 + $0xfa] sm:$0xff] }
 0x495   :  { %4068 = vmatprep.mubr.f32.mxu0 %v1313_v26  ;;  %v18757_v26 = vld [vmem:[#allocation26_spill] sm:$0xff] }
 0x498   :  { %4069 = vmatmul.mubr.f32.gmra.mrb[42].mxu0 %v14363_v30  ;;  %v1320_v30 = vld [vmem:[#allocation4 + $0x10a] sm:$0xff] }
 0x499   :  { %4073 = vmatprep.mubr.f32.mxu0 %v1314_v15  ;;  %v1357_v15 = vld [vmem:[#allocation4 + $0x232] sm:$0xff] }
 0x49c   :  { %4074 = vmatmul.mubr.f32.gmra.mrb[44].mxu0 %v14366_v33  ;;  %v1321_v33 = vld [vmem:[#allocation4 + $0x112] sm:$0xff] }
 0x49d   :  { %4078 = vmatprep.mubr.f32.mxu0 %v1315_v17  ;;  %v18758_v17 = vld [vmem:[#allocation27_spill] sm:$0xff] }
 0x4a0   :  { %4079 = vmatmul.mubr.f32.gmra.mrb[46].mxu0 %v14369_v35  ;;  %v1322_v35 = vld [vmem:[#allocation4 + $0x11a] sm:$0xff] }
 0x4a1   :  { %4083 = vmatprep.mubr.f32.mxu0 %v1316_v19  ;;  %v1358_v19 = vld [vmem:[#allocation4 + $0x23a] sm:$0xff] }
 0x4a4   :  { %4084 = vmatmul.mubr.f32.gmra.mrb[48].mxu0 %v14372_v41  ;;  %v2485_v41 = vld [vmem:[#allocation7 + $0x460] sm:$0xff] }
 0x4a5   :  { %4088 = vmatprep.mubr.f32.mxu0 %v1317_v25  ;;  %v18759_v25 = vld [vmem:[#allocation28_spill] sm:$0xff] }
 0x4a8   :  { %4089 = vmatmul.mubr.f32.gmra.mrb[50].mxu0 %v14376_v44  ;;  %v12503_v44 = vpack.c.bf16 %v2486_v20, %v2485_v41  ;;  %v18762_v41 = vld [vmem:[#allocation31_spill] sm:$0xff]  ;;  %v1362_v20 = vld [vmem:[#allocation4 + $0x25a] sm:$0xff] }
 0x4a9   :  { %4093 = vmatprep.mubr.f32.mxu0 %v1318_v28  ;;  %v1359_v28 = vld [vmem:[#allocation4 + $0x242] sm:$0xff] }
 0x4aa   :  { %12504 = vmatpush3.bf16.msra.mxu0 %v12503_v44  ;;  %v18763_v44 = vld [vmem:[#allocation32_spill] sm:$0xff] }
 0x4ab   :  { %12505 = vmatprep.subr.bf16.mxu0 %v18744_v57 }
 0x4ac   :  { %4094 = vmatmul.mubr.f32.gmra.mrb[52].mxu0 %v14379_v46  ;;  %v1324_v46 = vld [vmem:[#allocation4 + $0x12a] sm:$0xff] }
 0x4ad   :  { %4098 = vmatprep.mubr.f32.mxu0 %v1319_v0  ;;  %v18760_v0 = vld [vmem:[#allocation29_spill] sm:$0xff] }
 0x4b0   :  { %4099 = vmatmul.mubr.f32.gmra.mrb[54].mxu0 %v14382_v49  ;;  %v1325_v49 = vld [vmem:[#allocation4 + $0x132] sm:$0xff] }
 0x4b1   :  { %4103 = vmatprep.mubr.f32.mxu0 %v1320_v30  ;;  %v1360_v30 = vld [vmem:[#allocation4 + $0x24a] sm:$0xff] }
 0x4b4   :  { %4104 = vmatmul.mubr.f32.gmra.mrb[56].mxu0 %v14385_v51  ;;  %v1326_v51 = vld [vmem:[#allocation4 + $0x13a] sm:$0xff] }
 0x4b5   :  { %4108 = vmatprep.mubr.f32.mxu0 %v1321_v33  ;;  %v18761_v33 = vld [vmem:[#allocation30_spill] sm:$0xff] }
 0x4b8   :  { %4109 = vmatmul.mubr.f32.gmra.mrb[58].mxu0 %v14388_v59  ;;  %v1327_v59 = vld [vmem:[#allocation4 + $0x142] sm:$0xff] }
 0x4b9   :  { %4113 = vmatprep.mubr.f32.mxu0 %v1322_v35  ;;  %v1361_v35 = vld [vmem:[#allocation4 + $0x252] sm:$0xff] }
 0x4bc   :  { %4114 = vmatmul.mubr.f32.gmra.mrb[60].mxu0 %v14392_v62  ;;  %v1328_v62 = vld [vmem:[#allocation4 + $0x14a] sm:$0xff] }
 0x4bd   :  { %4118 = vmatprep.mubr.f32.mxu0 %v1323_v36  ;;  %v14139_v36 = vmov 0  }
 0x4be   :  { %14030 = vset.pattern.permute.xlu0 %v14139_v36  ;;  %14031 = vset.pattern.permute.xlu1 %v14139_v36  ;;  %v105_v36 = vld [vmem:[%s18363_s1 + $0x110] sm:$0xff] }
 0x4c0   :  { %4119 = vmatmul.mubr.f32.gmra.mrb[62].mxu0 %v14395_v3  ;;  %v1330_v3 = vld [vmem:[#allocation4 + $0x15a] sm:$0xff] }
 0x4c1   :  { %4123 = vmatprep.mubr.f32.mxu0 %v1324_v46  ;;  %v71_v46 = vld [vmem:[%s18363_s1] sm:$0xff] }
 0x4c2   :  { %4841 = vperm.xlu0 %14030, %v71_v46   ;;  %v1461_v46 = vld [vmem:[#allocation4 + $0x63] sm:$0xff] }
 0x4c4   :  { %4124 = vmatmul.mubr.f32.gmra.mrb[64].mxu0 %v14398_v7  ;;  %v1331_v7 = vld [vmem:[#allocation4 + $0x162] sm:$0xff] }
 0x4c5   :  { %4128 = vmatprep.mubr.f32.mxu0 %v1325_v49  ;;  %v1363_v49 = vld [vmem:[#allocation4 + $0x262] sm:$0xff] }
 0x4c8   :  { %4129 = vmatmul.mubr.f32.gmra.mrb[66].mxu0 %v14401_v9  ;;  %v1332_v9 = vld [vmem:[#allocation4 + $0x16a] sm:$0xff] }
 0x4c9   :  { %4133 = vmatprep.mubr.f32.mxu0 %v1326_v51  ;;  %v18764_v51 = vld [vmem:[#allocation33_spill] sm:$0xff] }
 0x4cc   :  { %4134 = vmatmul.mubr.f32.gmra.mrb[68].mxu0 %v14404_v18  ;;  %v2487_v18 = vld [vmem:[#allocation7 + $0x470] sm:$0xff] }
 0x4cd   :  { %4138 = vmatprep.mubr.f32.mxu0 %v1327_v59  ;;  %v72_v59 = vld [vmem:[%s18363_s1 + $0x8] sm:$0xff] }
 0x4ce   :  { %4846 = vperm.xlu0 %14030, %v72_v59   ;;  %v1462_v59 = vld [vmem:[#allocation4 + $0x6b] sm:$0xff] }
 0x4d0   :  { %4139 = vmatmul.mubr.f32.gmra.mrb[70].mxu0 %v14408_v21  ;;  %v12506_v21 = vpack.c.bf16 %v2488_v5, %v2487_v18  ;;  %v18766_v18 = vld [vmem:[#allocation35_spill] sm:$0xff]  ;;  %v74_v5 = vld [vmem:[%s18363_s1 + $0x18] sm:$0xff] }
 0x4d1   :  { %4143 = vmatprep.mubr.f32.mxu0 %v1328_v62  ;;  %v1364_v62 = vld [vmem:[#allocation4 + $0x26a] sm:$0xff] }
 0x4d2   :  { %12507 = vmatpush3.bf16.msra.mxu0 %v12506_v21  ;;  %v77_v21 = vld [vmem:[%s18363_s1 + $0x30] sm:$0xff] }
 0x4d4   :  { %4144 = vmatmul.mubr.f32.gmra.mrb[72].mxu0 %v14411_v24  ;;  %v1334_v24 = vld [vmem:[#allocation4 + $0x17a] sm:$0xff] }
 0x4d5   :  { %4148 = vmatprep.mubr.f32.mxu0 %v1329_v22  ;;  %v18765_v22 = vld [vmem:[#allocation34_spill] sm:$0xff] }
 0x4d8   :  { %4149 = vmatmul.mubr.f32.gmra.mrb[74].mxu0 %v14414_v29  ;;  %v1335_v29 = vld [vmem:[#allocation4 + $0x182] sm:$0xff] }
 0x4d9   :  { %4153 = vmatprep.mubr.f32.mxu0 %v1330_v3  ;;  %v73_v3 = vld [vmem:[%s18363_s1 + $0x10] sm:$0xff] }
 0x4da   :  { %4851 = vperm.xlu1 %14031, %v73_v3   ;;  %v1463_v3 = vld [vmem:[#allocation4 + $0x73] sm:$0xff] }
 0x4dc   :  { %4154 = vmatmul.mubr.f32.gmra.mrb[76].mxu0 %v14417_v34  ;;  %v1336_v34 = vld [vmem:[#allocation4 + $0x18a] sm:$0xff] }
 0x4dd   :  { %4158 = vmatprep.mubr.f32.mxu0 %v1331_v7  ;;  %v75_v7 = vld [vmem:[%s18363_s1 + $0x20] sm:$0xff] }
 0x4de   :  { %4861 = vperm.xlu0 %14030, %v75_v7   ;;  %4856 = vperm.xlu1 %14031, %v74_v5   ;;  %v108_v7 = vld [vmem:[%s18363_s1 + $0x128] sm:$0xff]  ;;  %v110_v5 = vld [vmem:[%s18363_s1 + $0x138] sm:$0xff] }
 0x4e0   :  { %4159 = vmatmul.mubr.f32.gmra.mrb[78].mxu0 %v14420_v43  ;;  %v1337_v43 = vld [vmem:[#allocation4 + $0x192] sm:$0xff] }
 0x4e1   :  { %4163 = vmatprep.mubr.f32.mxu0 %v1332_v9  ;;  %v1365_v9 = vld [vmem:[#allocation4 + $0x272] sm:$0xff] }
 0x4e2   :  { %4871 = vperm.xlu0 %14030, %v77_v21   ;;  %v113_v21 = vld [vmem:[%s18363_s1 + $0x150] sm:$0xff] }
 0x4e4   :  { %4164 = vmatmul.mubr.f32.gmra.mrb[80].mxu0 %v14424_v48  ;;  %v1339_v48 = vld [vmem:[#allocation4 + $0x1a2] sm:$0xff] }
 0x4e5   :  { %4168 = vmatprep.mubr.f32.mxu0 %v1333_v27  ;;  %v1366_v27 = vld [vmem:[#allocation4 + $0x27a] sm:$0xff] }
 0x4e8   :  { %4169 = vmatmul.mubr.f32.gmra.mrb[82].mxu0 %v14427_v53  ;;  %v1340_v53 = vld [vmem:[#allocation4 + $0x1aa] sm:$0xff] }
 0x4e9   :  { %4173 = vmatprep.mubr.f32.mxu0 %v1334_v24  ;;  %v18767_v24 = vld [vmem:[#allocation36_spill] sm:$0xff] }
 0x4ec   :  { %4174 = vmatmul.mubr.f32.gmra.mrb[84].mxu0 %v14430_v56  ;;  %v1341_v56 = vld [vmem:[#allocation4 + $0x1b2] sm:$0xff] }
 0x4ed   :  { %4178 = vmatprep.mubr.f32.mxu0 %v1335_v29  ;;  %v76_v29 = vld [vmem:[%s18363_s1 + $0x28] sm:$0xff] }
 0x4ee   :  { %4866 = vperm.xlu1 %14031, %v76_v29   ;;  %v115_v29 = vld [vmem:[%s18363_s1 + $0x160] sm:$0xff] }
 0x4f0   :  { %4179 = vmatmul.mubr.f32.gmra.mrb[86].mxu0 %v14433_v60  ;;  %v14138_v60 = vmov 0.0  }
 0x4f1   :  { %4183 = vmatprep.mubr.f32.mxu0 %v1336_v34  ;;  %152 = vst [vmem:[#allocation3] sm:$0xff] %v14138_v60  ;;  %153 = vst [vmem:[#allocation3 + $0x8] sm:$0xff] %v14138_v60  ;;  %v79_v34 = vld [vmem:[%s18363_s1 + $0x40] sm:$0xff] }
 0x4f2   :  { %154 = vst [vmem:[#allocation3 + $0x10] sm:$0xff] %v14138_v60  ;;  %155 = vst [vmem:[#allocation3 + $0x2a0] sm:$0xff] %v14138_v60  ;;  %4881 = vperm.xlu0 %14030, %v79_v34   ;;  %v1466_v34 = vld [vmem:[#allocation4 + $0x8b] sm:$0xff] }
 0x4f3   :  { %156 = vst [vmem:[#allocation3 + $0x2a8] sm:$0xff] %v14138_v60  ;;  %157 = vst [vmem:[#allocation3 + $0x2b0] sm:$0xff] %v14138_v60 }
 0x4f4   :  { %4184 = vmatmul.mubr.f32.gmra.mrb[88].mxu0 %v14436_v12  ;;  %v1342_v12 = vld [vmem:[#allocation4 + $0x1ba] sm:$0xff] }
 0x4f5   :  { %4188 = vmatprep.mubr.f32.mxu0 %v1337_v43  ;;  %v1367_v43 = vld [vmem:[#allocation4 + $0x282] sm:$0xff] }
 0x4f8   :  { %4189 = vmatmul.mubr.f32.gmra.mrb[90].mxu0 %v14440_v16  ;;  %v1343_v16 = vld [vmem:[#allocation4 + $0x1c2] sm:$0xff] }
 0x4f9   :  { %4193 = vmatprep.mubr.f32.mxu0 %v1338_v10  ;;  %v18768_v10 = vld [vmem:[#allocation37_spill] sm:$0xff] }
 0x4fc   :  { %4194 = vmatmul.mubr.f32.gmra.mrb[92].mxu0 %v14443_v23  ;;  %v1344_v23 = vld [vmem:[#allocation4 + $0x1ca] sm:$0xff] }
 0x4fd   :  { %4198 = vmatprep.mubr.f32.mxu0 %v1339_v48  ;;  %v78_v48 = vld [vmem:[%s18363_s1 + $0x38] sm:$0xff] }
 0x4fe   :  { %4876 = vperm.xlu1 %14031, %v78_v48   ;;  %v1467_v48 = vld [vmem:[#allocation4 + $0x93] sm:$0xff] }
 0x500   :  { %4199 = vmatmul.mubr.f32.gmra.mrb[94].mxu0 %v14446_v31  ;;  %v18745_v31 = vld [vmem:[#allocation14_spill] sm:$0xff] }
 0x501   :  { %4203 = vmatprep.mubr.f32.mxu0 %v1340_v53  ;;  %v81_v53 = vld [vmem:[%s18363_s1 + $0x50] sm:$0xff] }
 0x502   :  { %4891 = vperm.xlu0 %14030, %v81_v53   ;;  %v116_v53 = vld [vmem:[%s18363_s1 + $0x168] sm:$0xff] }
 0x504   :  { %4204 = vmatmul.mubr.f32.gmra.mrb[96].mxu0 %v14449_v38  ;;  %v1345_v38 = vld [vmem:[#allocation4 + $0x1d2] sm:$0xff] }
 0x505   :  { %4208 = vmatprep.mubr.f32.mxu0 %v1341_v56  ;;  %v1368_v56 = vld [vmem:[#allocation4 + $0x28a] sm:$0xff] }
 0x508   :  { %4209 = vmatmul.mubr.f32.gmra.mrb[98].mxu0 %v14452_v40  ;;  %v1348_v40 = vld [vmem:[#allocation4 + $0x1ea] sm:$0xff] }
 0x509   :  { %4213 = vmatprep.mubr.f32.mxu0 %v1342_v12  ;;  %v18769_v12 = vld [vmem:[#allocation38_spill] sm:$0xff] }
 0x50c   :  { %4214 = vmatmul.mubr.f32.gmra.mrb[100].mxu0 %v14455_v50  ;;  %v1349_v50 = vld [vmem:[#allocation4 + $0x1f2] sm:$0xff] }
 0x50d   :  { %4218 = vmatprep.mubr.f32.mxu0 %v1343_v16  ;;  %v80_v16 = vld [vmem:[%s18363_s1 + $0x48] sm:$0xff] }
 0x50e   :  { %4886 = vperm.xlu1 %14031, %v80_v16   ;;  %v118_v16 = vld [vmem:[%s18363_s1 + $0x178] sm:$0xff] }
 0x510   :  { %4219 = vmatmul.mubr.f32.gmra.mrb[102].mxu0 %v18745_v31  ;;  %v1369_v31 = vld [vmem:[#allocation4 + $0x292] sm:$0xff] }
 0x511   :  { %4223 = vmatprep.mubr.f32.mxu0 %v1344_v23  ;;  %v83_v23 = vld [vmem:[%s18363_s1 + $0x60] sm:$0xff] }
 0x512   :  { %4901 = vperm.xlu0 %14030, %v83_v23   ;;  %v121_v23 = vld [vmem:[%s18363_s1 + $0x190] sm:$0xff] }
 0x514   :  { %4224 = vmatmul.mubr.f32.gmra.mrb[104].mxu0 %v18746_v32  ;;  %v82_v32 = vld [vmem:[%s18363_s1 + $0x58] sm:$0xff] }
 0x515   :  { %4228 = vmatprep.mubr.f32.mxu0 %v1345_v38  ;;  %v18770_v38 = vld [vmem:[#allocation39_spill] sm:$0xff]  ;;  %4896 = vperm.xlu1 %14031, %v82_v32  }
 0x516   :  { %v123_v32 = vld [vmem:[%s18363_s1 + $0x1a0] sm:$0xff] }
 0x518   :  { %4229 = vmatmul.mubr.f32.gmra.mrb[106].mxu0 %v18747_v37  ;;  %v1370_v37 = vld [vmem:[#allocation4 + $0x29a] sm:$0xff] }
 0x519   :  { %4233 = vmatprep.mubr.f32.mxu0 %v1346_v45  ;;  %v85_v45 = vld [vmem:[%s18363_s1 + $0x70] sm:$0xff] }
 0x51a   :  { %4911 = vperm.xlu0 %14030, %v85_v45   ;;  %v1470_v45 = vld [vmem:[#allocation4 + $0xab] sm:$0xff] }
 0x51c   :  { %4234 = vmatmul.mubr.f32.gmra.mrb[108].mxu0 %v18748_v14  ;;  %v84_v14 = vld [vmem:[%s18363_s1 + $0x68] sm:$0xff] }
 0x51d   :  { %4238 = vmatprep.mubr.f32.mxu0 %v1347_v1  ;;  %v18771_v1 = vld [vmem:[#allocation40_spill] sm:$0xff]  ;;  %4906 = vperm.xlu1 %14031, %v84_v14  }
 0x51e   :  { %v1471_v14 = vld [vmem:[#allocation4 + $0xb3] sm:$0xff] }
 0x520   :  { %4239 = vmatmul.mubr.f32.gmra.mrb[110].mxu0 %v18749_v42  ;;  %v1371_v42 = vld [vmem:[#allocation4 + $0x2a2] sm:$0xff] }
 0x521   :  { %4243 = vmatprep.mubr.f32.mxu0 %v1348_v40  ;;  %v87_v40 = vld [vmem:[%s18363_s1 + $0x80] sm:$0xff] }
 0x522   :  { %4921 = vperm.xlu0 %14030, %v87_v40   ;;  %v124_v40 = vld [vmem:[%s18363_s1 + $0x1a8] sm:$0xff] }
 0x524   :  { %4244 = vmatmul.mubr.f32.gmra.mrb[112].mxu0 %v18750_v39  ;;  %v1209_v39 = vld [vmem:[#allocation4 + $0x2a1] sm:$0xff] }
 0x525   :  { %4248 = vmatprep.mubr.f32.mxu0 %v1349_v50  ;;  %v18772_v50 = vld [vmem:[#allocation41_spill] sm:$0xff] }
 0x528   :  { %4249 = vmatmul.mubr.f32.gmra.mrb[114].mxu0 %v18751_v52  ;;  %v89_v52 = vld [vmem:[%s18363_s1 + $0x90] sm:$0xff] }
 0x529   :  { %4253 = vmatprep.mubr.f32.mxu0 %v1350_v47  ;;  %v86_v47 = vld [vmem:[%s18363_s1 + $0x78] sm:$0xff]  ;;  %4931 = vperm.xlu0 %14030, %v89_v52  }
 0x52a   :  { %4916 = vperm.xlu1 %14031, %v86_v47   ;;  %v129_v47 = vld [vmem:[%s18363_s1 + $0x1d0] sm:$0xff]  ;;  %v1473_v52 = vld [vmem:[#allocation4 + $0xc3] sm:$0xff] }
 0x52c   :  { %4254 = vmatmul.mubr.f32.gmra.mrb[116].mxu0 %v18752_v58  ;;  %v1210_v58 = vld [vmem:[#allocation4 + $0x2a9] sm:$0xff] }
 0x52d   :  { %4258 = vmatprep.mubr.f32.mxu0 %v1351_v54  ;;  %v1372_v54 = vld [vmem:[#allocation4 + $0x2aa] sm:$0xff] }
 0x530   :  { %4259 = vmatmul.mubr.f32.gmra.mrb[118].mxu0 %v18753_v55  ;;  %v91_v55 = vld [vmem:[%s18363_s1 + $0xa0] sm:$0xff] }
 0x531   :  { %4263 = vmatprep.mubr.f32.mxu0 %v1352_v61  ;;  %v88_v61 = vld [vmem:[%s18363_s1 + $0x88] sm:$0xff]  ;;  %4941 = vperm.xlu0 %14030, %v91_v55   ;;  %v130_v55 = vld [vmem:[%s18363_s1 + $0x1d8] sm:$0xff] }
 0x532   :  { %4926 = vperm.xlu1 %14031, %v88_v61   ;;  %v1474_v61 = vld [vmem:[#allocation4 + $0xcb] sm:$0xff] }
 0x534   :  { %4264 = vmatmul.mubr.f32.gmra.mrb[120].mxu0 %v18754_v2  ;;  %v90_v2 = vld [vmem:[%s18363_s1 + $0x98] sm:$0xff] }
 0x535   :  { %4268 = vmatprep.mubr.f32.mxu0 %v1353_v63  ;;  %v1454_v63 = vld [vmem:[#allocation4 + $0x2b] sm:$0xff] }
 0x536   :  { %4936 = vperm.xlu1 %14031, %v90_v2   ;;  %v1475_v2 = vld [vmem:[#allocation4 + $0xd3] sm:$0xff] }
 0x538   :  { %4269 = vmatmul.mubr.f32.gmra.mrb[122].mxu0 %v18755_v6  ;;  %v1455_v6 = vld [vmem:[#allocation4 + $0x33] sm:$0xff] }
 0x539   :  { %4273 = vmatprep.mubr.f32.mxu0 %v1354_v4  ;;  %v93_v4 = vld [vmem:[%s18363_s1 + $0xb0] sm:$0xff] }
 0x53a   :  { %4951 = vperm.xlu0 %14030, %v93_v4   ;;  %v132_v4 = vld [vmem:[%s18363_s1 + $0x1e8] sm:$0xff] }
 0x53c   :  { %4274 = vmatmul.mubr.f32.gmra.mrb[124].mxu0 %v18756_v8  ;;  %v95_v8 = vld [vmem:[%s18363_s1 + $0xc0] sm:$0xff] }
 0x53d   :  { %4278 = vmatprep.mubr.f32.mxu0 %v1355_v11  ;;  %v92_v11 = vld [vmem:[%s18363_s1 + $0xa8] sm:$0xff] }
 0x53e   :  { %4946 = vperm.xlu1 %14031, %v92_v11   ;;  %4961 = vperm.xlu0 %14030, %v95_v8   ;;  %v1476_v11 = vld [vmem:[#allocation4 + $0xdb] sm:$0xff] }
 0x53f   :  { %v134_v8 = vld [vmem:[%s18363_s1 + $0x1f8] sm:$0xff] }
 0x540   :  { %4279 = vmatmul.mubr.f32.gmra.mrb[126].mxu0 %v18757_v26  ;;  %v94_v26 = vld [vmem:[%s18363_s1 + $0xb8] sm:$0xff] }
 0x541   :  { %4283 = vmatprep.mubr.f32.mxu0 %v1356_v13  ;;  %v1456_v13 = vld [vmem:[#allocation4 + $0x3b] sm:$0xff] }
 0x542   :  { %4956 = vperm.xlu1 %14031, %v94_v26   ;;  %v1477_v26 = vld [vmem:[#allocation4 + $0xe3] sm:$0xff] }
 0x544   :  { %4284 = vmatmul.mubr.f32.gmra.mrb[128].mxu0 %v18758_v17  ;;  %v1457_v17 = vld [vmem:[#allocation4 + $0x43] sm:$0xff] }
 0x545   :  { %4288 = vmatprep.mubr.f32.mxu0 %v1357_v15  ;;  %v97_v15 = vld [vmem:[%s18363_s1 + $0xd0] sm:$0xff] }
 0x546   :  { %4971 = vperm.xlu0 %14030, %v97_v15   ;;  %v136_v15 = vld [vmem:[%s18363_s1 + $0x208] sm:$0xff] }
 0x548   :  { %4289 = vmatmul.mubr.f32.gmra.mrb[130].mxu0 %v18759_v25  ;;  %v99_v25 = vld [vmem:[%s18363_s1 + $0xe0] sm:$0xff] }
 0x549   :  { %4293 = vmatprep.mubr.f32.mxu0 %v1358_v19  ;;  %v96_v19 = vld [vmem:[%s18363_s1 + $0xc8] sm:$0xff] }
 0x54a   :  { %4966 = vperm.xlu1 %14031, %v96_v19   ;;  %4981 = vperm.xlu0 %14030, %v99_v25   ;;  %v1478_v19 = vld [vmem:[#allocation4 + $0xeb] sm:$0xff]  ;;  %v138_v25 = vld [vmem:[%s18363_s1 + $0x218] sm:$0xff] }
 0x54c   :  { %4294 = vmatmul.mubr.f32.gmra.mrb[132].mxu0 %v18760_v0  ;;  %v98_v0 = vld [vmem:[%s18363_s1 + $0xd8] sm:$0xff] }
 0x54d   :  { %4298 = vmatprep.mubr.f32.mxu0 %v1359_v28  ;;  %v1458_v28 = vld [vmem:[#allocation4 + $0x4b] sm:$0xff] }
 0x54e   :  { %4976 = vperm.xlu1 %14031, %v98_v0   ;;  %v1479_v0 = vld [vmem:[#allocation4 + $0xf3] sm:$0xff] }
 0x550   :  { %4299 = vmatmul.mubr.f32.gmra.mrb[134].mxu0 %v18761_v33  ;;  %v1459_v33 = vld [vmem:[#allocation4 + $0x53] sm:$0xff] }
 0x551   :  { %4303 = vmatprep.mubr.f32.mxu0 %v1360_v30  ;;  %v101_v30 = vld [vmem:[%s18363_s1 + $0xf0] sm:$0xff] }
 0x552   :  { %4991 = vperm.xlu0 %14030, %v101_v30   ;;  %v140_v30 = vld [vmem:[%s18363_s1 + $0x228] sm:$0xff] }
 0x554   :  { %4304 = vmatmul.mubr.f32.gmra.mrb[136].mxu0 %v18762_v41  ;;  %v103_v41 = vld [vmem:[%s18363_s1 + $0x100] sm:$0xff] }
 0x555   :  { %4308 = vmatprep.mubr.f32.mxu0 %v1361_v35  ;;  %v100_v35 = vld [vmem:[%s18363_s1 + $0xe8] sm:$0xff] }
 0x556   :  { %4986 = vperm.xlu1 %14031, %v100_v35   ;;  %5001 = vperm.xlu0 %14030, %v103_v41   ;;  %v1480_v35 = vld [vmem:[#allocation4 + $0xfb] sm:$0xff] }
 0x557   :  { %v142_v41 = vld [vmem:[%s18363_s1 + $0x238] sm:$0xff] }
 0x558   :  { %4309 = vmatmul.mubr.f32.gmra.mrb[138].mxu0 %v18763_v44  ;;  %v102_v44 = vld [vmem:[%s18363_s1 + $0xf8] sm:$0xff] }
 0x559   :  { %4313 = vmatprep.mubr.f32.mxu0 %v1362_v20  ;;  %v1460_v20 = vld [vmem:[#allocation4 + $0x5b] sm:$0xff] }
 0x55a   :  { %4996 = vperm.xlu1 %14031, %v102_v44   ;;  %5011 = vperm.xlu0 %14030, %v105_v36   ;;  %v1481_v44 = vld [vmem:[#allocation4 + $0x103] sm:$0xff]  ;;  %v144_v36 = vld [vmem:[%s18363_s1 + $0x248] sm:$0xff] }
 0x55c   :  { %4314 = vmatmul.mubr.f32.gmra.mrb[140].mxu0 %v18764_v51  ;;  %v107_v51 = vld [vmem:[%s18363_s1 + $0x120] sm:$0xff] }
 0x55d   :  { %4318 = vmatprep.mubr.f32.mxu0 %v1363_v49  ;;  %v104_v49 = vld [vmem:[%s18363_s1 + $0x108] sm:$0xff] }
 0x55e   :  { %5006 = vperm.xlu1 %14031, %v104_v49   ;;  %5021 = vperm.xlu0 %14030, %v107_v51   ;;  %v1482_v49 = vld [vmem:[#allocation4 + $0x10b] sm:$0xff]  ;;  %v146_v51 = vld [vmem:[%s18363_s1 + $0x258] sm:$0xff] }
 0x560   :  { %4319 = vmatmul.mubr.f32.gmra.mrb[142].mxu0 %v18765_v22  ;;  %v109_v22 = vld [vmem:[%s18363_s1 + $0x130] sm:$0xff] }
 0x561   :  { %4323 = vmatprep.mubr.f32.mxu0 %v1364_v62  ;;  %v106_v62 = vld [vmem:[%s18363_s1 + $0x118] sm:$0xff] }
 0x562   :  { %5016 = vperm.xlu1 %14031, %v106_v62   ;;  %5031 = vperm.xlu0 %14030, %v109_v22   ;;  %v1483_v62 = vld [vmem:[#allocation4 + $0x113] sm:$0xff] }
 0x563   :  { %v148_v22 = vld [vmem:[%s18363_s1 + $0x268] sm:$0xff] }
 0x564   :  { %4324 = vmatmul.mubr.f32.gmra.mrb[144].mxu0 %v18766_v18  ;;  %v1464_v18 = vld [vmem:[#allocation4 + $0x7b] sm:$0xff] }
 0x565   :  { %4328 = vmatprep.mubr.f32.mxu0 %v1365_v9  ;;  %v111_v9 = vld [vmem:[%s18363_s1 + $0x140] sm:$0xff] }
 0x566   :  { %5026 = vperm.xlu1 %14031, %v108_v7   ;;  %5041 = vperm.xlu0 %14030, %v111_v9   ;;  %v1484_v7 = vld [vmem:[#allocation4 + $0x11b] sm:$0xff] }
 0x567   :  { %v150_v9 = vld [vmem:[%s18363_s1 + $0x278] sm:$0xff] }
 0x568   :  { %4329 = vmatmul.mubr.f32.gmra.mrb[146].mxu0 %v18767_v24  ;;  %v112_v24 = vld [vmem:[%s18363_s1 + $0x148] sm:$0xff] }
 0x569   :  { %4333 = vmatprep.mubr.f32.mxu0 %v1366_v27  ;;  %v1465_v27 = vld [vmem:[#allocation4 + $0x83] sm:$0xff] }
 0x56a   :  { %5036 = vperm.xlu1 %14031, %v110_v5   ;;  %5051 = vperm.xlu0 %14030, %v113_v21   ;;  %v1486_v5 = vld [vmem:[#allocation4 + $0x12b] sm:$0xff]  ;;  %v1487_v21 = vld [vmem:[#allocation4 + $0x133] sm:$0xff] }
 0x56c   :  { %4334 = vmatmul.mubr.f32.gmra.mrb[148].mxu0 %v18768_v10  ;;  %v117_v10 = vld [vmem:[%s18363_s1 + $0x170] sm:$0xff] }
 0x56d   :  { %4338 = vmatprep.mubr.f32.mxu0 %v1367_v43  ;;  %v114_v43 = vld [vmem:[%s18363_s1 + $0x158] sm:$0xff] }
 0x56e   :  { %5046 = vperm.xlu1 %14031, %v112_v24   ;;  %5061 = vperm.xlu0 %14030, %v115_v29   ;;  %v1489_v24 = vld [vmem:[#allocation4 + $0x143] sm:$0xff]  ;;  %v1490_v29 = vld [vmem:[#allocation4 + $0x14b] sm:$0xff] }
 0x570   :  { %4339 = vmatmul.mubr.f32.gmra.mrb[150].mxu0 %v18769_v12  ;;  %v1468_v12 = vld [vmem:[#allocation4 + $0x9b] sm:$0xff] }
 0x571   :  { %4343 = vmatprep.mubr.f32.mxu0 %v1368_v56  ;;  %v119_v56 = vld [vmem:[%s18363_s1 + $0x180] sm:$0xff] }
 0x572   :  { %5056 = vperm.xlu1 %14031, %v114_v43   ;;  %5071 = vperm.xlu0 %14030, %v117_v10   ;;  %v1492_v43 = vld [vmem:[#allocation4 + $0x15b] sm:$0xff]  ;;  %v1493_v10 = vld [vmem:[#allocation4 + $0x163] sm:$0xff] }
 0x574   :  { %4344 = vmatmul.mubr.f32.gmra.mrb[152].mxu0 %v18770_v38  ;;  %v120_v38 = vld [vmem:[%s18363_s1 + $0x188] sm:$0xff] }
 0x575   :  { %4348 = vmatprep.mubr.f32.mxu0 %v1369_v31  ;;  %v1469_v31 = vld [vmem:[#allocation4 + $0xa3] sm:$0xff] }
 0x576   :  { %5066 = vperm.xlu1 %14031, %v116_v53   ;;  %5081 = vperm.xlu0 %14030, %v119_v56   ;;  %v1495_v53 = vld [vmem:[#allocation4 + $0x173] sm:$0xff]  ;;  %v1496_v56 = vld [vmem:[#allocation4 + $0x17b] sm:$0xff] }
 0x578   :  { %4349 = vmatmul.mubr.f32.gmra.mrb[154].mxu0 %v18771_v1  ;;  %v125_v1 = vld [vmem:[%s18363_s1 + $0x1b0] sm:$0xff] }
 0x579   :  { %4353 = vmatprep.mubr.f32.mxu0 %v1370_v37  ;;  %v122_v37 = vld [vmem:[%s18363_s1 + $0x198] sm:$0xff] }
 0x57a   :  { %5076 = vperm.xlu1 %14031, %v118_v16   ;;  %5091 = vperm.xlu0 %14030, %v121_v23   ;;  %v1498_v16 = vld [vmem:[#allocation4 + $0x18b] sm:$0xff]  ;;  %v1499_v23 = vld [vmem:[#allocation4 + $0x193] sm:$0xff] }
 0x57c   :  { %4354 = vmatmul.mubr.f32.gmra.mrb[156].mxu0 %v18772_v50  ;;  %v1472_v50 = vld [vmem:[#allocation4 + $0xbb] sm:$0xff] }
 0x57d   :  { %4358 = vmatprep.mubr.f32.mxu0 %v1371_v42  ;;  %v127_v42 = vld [vmem:[%s18363_s1 + $0x1c0] sm:$0xff] }
 0x57e   :  { %5086 = vperm.xlu1 %14031, %v120_v38   ;;  %5101 = vperm.xlu0 %14030, %v123_v32   ;;  %v1501_v38 = vld [vmem:[#allocation4 + $0x1a3] sm:$0xff]  ;;  %v1502_v32 = vld [vmem:[#allocation4 + $0x1ab] sm:$0xff] }
 0x580   :  { %4359 = vmatmul.mubr.f32.gmra.mrb[158].mxu0 %v1209_v39  ;;  %v126_v39 = vld [vmem:[%s18363_s1 + $0x1b8] sm:$0xff] }
 0x581   :  { %4363 = vmatprep.mubr.f32.mxu0 %v1372_v54  ;;  %v128_v54 = vld [vmem:[%s18363_s1 + $0x1c8] sm:$0xff] }
 0x582   :  { %5096 = vperm.xlu1 %14031, %v122_v37   ;;  %5111 = vperm.xlu0 %14030, %v125_v1   ;;  %v1504_v37 = vld [vmem:[#allocation4 + $0x1bb] sm:$0xff]  ;;  %v1505_v1 = vld [vmem:[#allocation4 + $0x1c3] sm:$0xff] }
 0x584   :  { %4364 = vmatmul.mubr.f32.gmra.mrb[160].mxu0 %v1210_v58  ;;  %v131_v58 = vld [vmem:[%s18363_s1 + $0x1e0] sm:$0xff] }
 0x585   :  { %11774 = vmatprep.mubr.msk.f32.mxu0 %vm14140_vm0, %v14138_v60 }
 0x586   :  { %5106 = vperm.xlu1 %14031, %v124_v40   ;;  %5121 = vperm.xlu0 %14030, %v127_v42   ;;  %v14983_v40 = vpop.permute.xlu0 %4841  ;;  %v1507_v42 = vld [vmem:[#allocation4 + $0x1d3] sm:$0xff] }
 0x587   :  { %18773 = vst [vmem:[#allocation14_spill] sm:$0xff] %v14983_v40 }
 0x588   :  { %11775 = vmatmul.mubr.f32.vlgmr.msra.gmra.mrb[0].mxu0 %v1454_v63  ;;  %v133_v63 = vld [vmem:[%s18363_s1 + $0x1f0] sm:$0xff] }
 0x589   :  { %11777 = vmatprep.mubr.msk.f32.mxu0 %vm14140_vm0, %v14138_v60 }
 0x58a   :  { %5116 = vperm.xlu1 %14031, %v126_v39   ;;  %5131 = vperm.xlu0 %14030, %v129_v47   ;;  %v1508_v47 = vld [vmem:[#allocation4 + $0x1db] sm:$0xff] }
 0x58c   :  { %11778 = vmatmul.mubr.f32.gmra.mrb[2].mxu0 %v1455_v6  ;;  %v135_v6 = vld [vmem:[%s18363_s1 + $0x200] sm:$0xff] }
 0x58d   :  { %11780 = vmatprep.mubr.msk.f32.mxu0 %vm14140_vm0, %v14138_v60 }
 0x58e   :  { %5126 = vperm.xlu1 %14031, %v128_v54   ;;  %5141 = vperm.xlu0 %14030, %v131_v58   ;;  %v14993_v54 = vpop.permute.xlu0 %4846 }
 0x58f   :  { %18774 = vst [vmem:[#allocation15_spill] sm:$0xff] %v14993_v54 }
 0x590   :  { %11781 = vmatmul.mubr.f32.gmra.mrb[4].mxu0 %v1456_v13  ;;  %v137_v13 = vld [vmem:[%s18363_s1 + $0x210] sm:$0xff] }
 0x591   :  { %11783 = vmatprep.mubr.msk.f32.mxu0 %vm14140_vm0, %v14138_v60 }
 0x592   :  { %5136 = vperm.xlu1 %14031, %v130_v55   ;;  %5151 = vperm.xlu0 %14030, %v133_v63   ;;  %v14999_v63 = vpop.permute.xlu1 %4851 }
 0x593   :  { %18775 = vst [vmem:[#allocation16_spill] sm:$0xff] %v14999_v63 }
 0x594   :  { %11784 = vmatmul.mubr.f32.gmra.mrb[6].mxu0 %v1457_v17  ;;  %v139_v17 = vld [vmem:[%s18363_s1 + $0x220] sm:$0xff] }
 0x595   :  { %11786 = vmatprep.mubr.msk.f32.mxu0 %vm14140_vm0, %v14138_v60 }
 0x596   :  { %5146 = vperm.xlu1 %14031, %v132_v4   ;;  %5161 = vperm.xlu0 %14030, %v135_v6  }
 0x598   :  { %11787 = vmatmul.mubr.f32.gmra.mrb[8].mxu0 %v1458_v28  ;;  %v141_v28 = vld [vmem:[%s18363_s1 + $0x230] sm:$0xff] }
 0x599   :  { %11789 = vmatprep.mubr.msk.f32.mxu0 %vm14140_vm0, %v14138_v60 }
 0x59a   :  { %5156 = vperm.xlu1 %14031, %v134_v8   ;;  %5171 = vperm.xlu0 %14030, %v137_v13  }
 0x59c   :  { %11790 = vmatmul.mubr.f32.gmra.mrb[10].mxu0 %v1459_v33  ;;  %v143_v33 = vld [vmem:[%s18363_s1 + $0x240] sm:$0xff] }
 0x59d   :  { %11792 = vmatprep.mubr.msk.f32.mxu0 %vm14140_vm0, %v14138_v60 }
 0x59e   :  { %5166 = vperm.xlu1 %14031, %v136_v15   ;;  %5181 = vperm.xlu0 %14030, %v139_v17   ;;  %v1510_v17 = vld [vmem:[#allocation4 + $0x1eb] sm:$0xff] }
 0x5a0   :  { %11793 = vmatmul.mubr.f32.gmra.mrb[12].mxu0 %v1460_v20  ;;  %v145_v20 = vld [vmem:[%s18363_s1 + $0x250] sm:$0xff] }
 0x5a1   :  { %11795 = vmatprep.mubr.msk.f32.mxu0 %vm14140_vm0, %v14138_v60 }
 0x5a2   :  { %5176 = vperm.xlu1 %14031, %v138_v25   ;;  %5191 = vperm.xlu0 %14030, %v141_v28   ;;  %v15009_v28 = vpop.permute.xlu1 %4856 }
 0x5a3   :  { %18776 = vst [vmem:[#allocation17_spill] sm:$0xff] %v15009_v28 }
 0x5a4   :  { %11796 = vmatmul.mubr.f32.gmra.mrb[14].mxu0 %v1461_v46  ;;  %v147_v46 = vld [vmem:[%s18363_s1 + $0x260] sm:$0xff] }
 0x5a5   :  { %11798 = vmatprep.mubr.msk.f32.mxu0 %vm14140_vm0, %v14138_v60 }
 0x5a6   :  { %5186 = vperm.xlu1 %14031, %v140_v30   ;;  %5201 = vperm.xlu0 %14030, %v143_v33  }
 0x5a8   :  { %11799 = vmatmul.mubr.f32.gmra.mrb[16].mxu0 %v1462_v59  ;;  %v149_v59 = vld [vmem:[%s18363_s1 + $0x270] sm:$0xff] }
 0x5a9   :  { %11801 = vmatprep.mubr.msk.f32.mxu0 %vm14140_vm0, %v14138_v60 }
 0x5aa   :  { %5196 = vperm.xlu1 %14031, %v142_v41   ;;  %5211 = vperm.xlu0 %14030, %v145_v20   ;;  %v1511_v41 = vld [vmem:[#allocation4 + $0x1f3] sm:$0xff] }
 0x5ac   :  { %11802 = vmatmul.mubr.f32.gmra.mrb[18].mxu0 %v1463_v3  ;;  %v151_v3 = vld [vmem:[%s18363_s1 + $0x280] sm:$0xff] }
 0x5ad   :  { %11804 = vmatprep.mubr.msk.f32.mxu0 %vm14140_vm0, %v14138_v60 }
 0x5ae   :  { %5206 = vperm.xlu1 %14031, %v144_v36   ;;  %5221 = vperm.xlu0 %14030, %v147_v46   ;;  %v15017_v36 = vpop.permute.xlu0 %4861 }
 0x5af   :  { %18777 = vst [vmem:[#allocation18_spill] sm:$0xff] %v15017_v36 }
 0x5b0   :  { %11805 = vmatmul.mubr.f32.gmra.mrb[20].mxu0 %v1464_v18  ;;  %v1485_v18 = vld [vmem:[#allocation4 + $0x123] sm:$0xff] }
 0x5b1   :  { %11807 = vmatprep.mubr.msk.f32.mxu0 %vm14140_vm0, %v14138_v60 }
 0x5b2   :  { %5216 = vperm.xlu1 %14031, %v146_v51   ;;  %5231 = vperm.xlu0 %14030, %v149_v59  }
 0x5b4   :  { %11808 = vmatmul.mubr.f32.gmra.mrb[22].mxu0 %v1465_v27  ;;  %v1488_v27 = vld [vmem:[#allocation4 + $0x13b] sm:$0xff] }
 0x5b5   :  { %11810 = vmatprep.mubr.msk.f32.mxu0 %vm14140_vm0, %v14138_v60 }
 0x5b6   :  { %5226 = vperm.xlu1 %14031, %v148_v22   ;;  %5241 = vperm.xlu0 %14030, %v151_v3  }
 0x5b8   :  { %11811 = vmatmul.mubr.f32.gmra.mrb[24].mxu0 %v1466_v34  ;;  %v1491_v34 = vld [vmem:[#allocation4 + $0x153] sm:$0xff] }
 0x5b9   :  { %11813 = vmatprep.mubr.msk.f32.mxu0 %vm14140_vm0, %v14138_v60 }
 0x5ba   :  { %5236 = vperm.xlu1 %14031, %v150_v9  }
 0x5bc   :  { %11814 = vmatmul.mubr.f32.gmra.mrb[26].mxu0 %v1467_v48  ;;  %v1494_v48 = vld [vmem:[#allocation4 + $0x16b] sm:$0xff] }
 0x5bd   :  { %11816 = vmatprep.mubr.msk.f32.mxu0 %vm14140_vm0, %v14138_v60 }
 0x5c0   :  { %11817 = vmatmul.mubr.f32.gmra.mrb[28].mxu0 %v1468_v12  ;;  %v1497_v12 = vld [vmem:[#allocation4 + $0x183] sm:$0xff] }
 0x5c1   :  { %11819 = vmatprep.mubr.msk.f32.mxu0 %vm14140_vm0, %v14138_v60 }
 0x5c4   :  { %11820 = vmatmul.mubr.f32.gmra.mrb[30].mxu0 %v1469_v31  ;;  %v1500_v31 = vld [vmem:[#allocation4 + $0x19b] sm:$0xff] }
 0x5c5   :  { %11822 = vmatprep.mubr.msk.f32.mxu0 %vm14140_vm0, %v14138_v60 }
 0x5c8   :  { %11823 = vmatmul.mubr.f32.gmra.mrb[32].mxu0 %v1470_v45  ;;  %v1503_v45 = vld [vmem:[#allocation4 + $0x1b3] sm:$0xff] }
 0x5c9   :  { %11825 = vmatprep.mubr.msk.f32.mxu0 %vm14140_vm0, %v14138_v60 }
 0x5cc   :  { %11826 = vmatmul.mubr.f32.gmra.mrb[34].mxu0 %v1471_v14  ;;  %v1506_v14 = vld [vmem:[#allocation4 + $0x1cb] sm:$0xff] }
 0x5cd   :  { %11828 = vmatprep.mubr.msk.f32.mxu0 %vm14140_vm0, %v14138_v60 }
 0x5d0   :  { %11829 = vmatmul.mubr.f32.gmra.mrb[36].mxu0 %v1472_v50 }
 0x5d1   :  { %11831 = vmatprep.mubr.msk.f32.mxu0 %vm14140_vm0, %v14138_v60 }
 0x5d4   :  { %11832 = vmatmul.mubr.f32.gmra.mrb[38].mxu0 %v1473_v52 }
 0x5d5   :  { %11834 = vmatprep.mubr.msk.f32.mxu0 %vm14140_vm0, %v14138_v60 }
 0x5d8   :  { %11835 = vmatmul.mubr.f32.gmra.mrb[40].mxu0 %v1474_v61 }
 0x5d9   :  { %11837 = vmatprep.mubr.msk.f32.mxu0 %vm14140_vm0, %v14138_v60 }
 0x5dc   :  { %11838 = vmatmul.mubr.f32.gmra.mrb[42].mxu0 %v1475_v2  ;;  %v1509_v2 = vld [vmem:[#allocation4 + $0x1e3] sm:$0xff] }
 0x5dd   :  { %11840 = vmatprep.mubr.msk.f32.mxu0 %vm14140_vm0, %v14138_v60 }
 0x5e0   :  { %11841 = vmatmul.mubr.f32.gmra.mrb[44].mxu0 %v1476_v11 }
 0x5e1   :  { %11843 = vmatprep.mubr.msk.f32.mxu0 %vm14140_vm0, %v14138_v60 }
 0x5e4   :  { %11844 = vmatmul.mubr.f32.gmra.mrb[46].mxu0 %v1477_v26 }
 0x5e5   :  { %11846 = vmatprep.mubr.msk.f32.mxu0 %vm14140_vm0, %v14138_v60 }
 0x5e8   :  { %11847 = vmatmul.mubr.f32.gmra.mrb[48].mxu0 %v1478_v19 }
 0x5e9   :  { %11849 = vmatprep.mubr.msk.f32.mxu0 %vm14140_vm0, %v14138_v60 }
 0x5ec   :  { %11850 = vmatmul.mubr.f32.gmra.mrb[50].mxu0 %v1479_v0 }
 0x5ed   :  { %11852 = vmatprep.mubr.msk.f32.mxu0 %vm14140_vm0, %v14138_v60 }
 0x5f0   :  { %11853 = vmatmul.mubr.f32.gmra.mrb[52].mxu0 %v1480_v35 }
 0x5f1   :  { %11855 = vmatprep.mubr.msk.f32.mxu0 %vm14140_vm0, %v14138_v60 }
 0x5f4   :  { %11856 = vmatmul.mubr.f32.gmra.mrb[54].mxu0 %v1481_v44 }
 0x5f5   :  { %11858 = vmatprep.mubr.msk.f32.mxu0 %vm14140_vm0, %v14138_v60 }
 0x5f8   :  { %11859 = vmatmul.mubr.f32.gmra.mrb[56].mxu0 %v1482_v49 }
 0x5f9   :  { %11861 = vmatprep.mubr.msk.f32.mxu0 %vm14140_vm0, %v14138_v60 }
 0x5fc   :  { %11862 = vmatmul.mubr.f32.gmra.mrb[58].mxu0 %v1483_v62  ;;  %v1512_v62 = vld [vmem:[#allocation4 + $0x1fb] sm:$0xff] }
 0x5fd   :  { %11864 = vmatprep.mubr.msk.f32.mxu0 %vm14140_vm0, %v14138_v60 }
 0x600   :  { %11865 = vmatmul.mubr.f32.gmra.mrb[60].mxu0 %v1484_v7  ;;  %v15025_v7 = vpop.permute.xlu1 %4866 }
 0x601   :  { %11867 = vmatprep.mubr.msk.f32.mxu0 %vm14140_vm0, %v14138_v60  ;;  %18778 = vst [vmem:[#allocation19_spill] sm:$0xff] %v15025_v7 }
 0x604   :  { %11868 = vmatmul.mubr.f32.gmra.mrb[62].mxu0 %v1485_v18 }
 0x605   :  { %11870 = vmatprep.mubr.msk.f32.mxu0 %vm14140_vm0, %v14138_v60 }
 0x608   :  { %11871 = vmatmul.mubr.f32.gmra.mrb[64].mxu0 %v1486_v5 }
 0x609   :  { %11873 = vmatprep.mubr.msk.f32.mxu0 %vm14140_vm0, %v14138_v60 }
 0x60c   :  { %11874 = vmatmul.mubr.f32.gmra.mrb[66].mxu0 %v1487_v21 }
 0x60d   :  { %11876 = vmatprep.mubr.msk.f32.mxu0 %vm14140_vm0, %v14138_v60 }
 0x610   :  { %11877 = vmatmul.mubr.f32.gmra.mrb[68].mxu0 %v1488_v27  ;;  %v1513_v27 = vld [vmem:[#allocation4 + $0x203] sm:$0xff] }
 0x611   :  { %11879 = vmatprep.mubr.msk.f32.mxu0 %vm14140_vm0, %v14138_v60 }
 0x614   :  { %11880 = vmatmul.mubr.f32.gmra.mrb[70].mxu0 %v1489_v24 }
 0x615   :  { %11882 = vmatprep.mubr.msk.f32.mxu0 %vm14140_vm0, %v14138_v60 }
 0x618   :  { %11883 = vmatmul.mubr.f32.gmra.mrb[72].mxu0 %v1490_v29 }
 0x619   :  { %11885 = vmatprep.mubr.msk.f32.mxu0 %vm14140_vm0, %v14138_v60 }
 0x61c   :  { %11886 = vmatmul.mubr.f32.gmra.mrb[74].mxu0 %v1491_v34  ;;  %v15033_v34 = vpop.permute.xlu0 %4871 }
 0x61d   :  { %11888 = vmatprep.mubr.msk.f32.mxu0 %vm14140_vm0, %v14138_v60  ;;  %18779 = vst [vmem:[#allocation20_spill] sm:$0xff] %v15033_v34 }
 0x620   :  { %11889 = vmatmul.mubr.f32.gmra.mrb[76].mxu0 %v1492_v43 }
 0x621   :  { %11891 = vmatprep.mubr.msk.f32.mxu0 %vm14140_vm0, %v14138_v60 }
 0x624   :  { %11892 = vmatmul.mubr.f32.gmra.mrb[78].mxu0 %v1493_v10 }
 0x625   :  { %11894 = vmatprep.mubr.msk.f32.mxu0 %vm14140_vm0, %v14138_v60 }
 0x628   :  { %11895 = vmatmul.mubr.f32.gmra.mrb[80].mxu0 %v1494_v48 }
 0x629   :  { %11897 = vmatprep.mubr.msk.f32.mxu0 %vm14140_vm0, %v14138_v60 }
 0x62c   :  { %11898 = vmatmul.mubr.f32.gmra.mrb[82].mxu0 %v1495_v53 }
 0x62d   :  { %11900 = vmatprep.mubr.msk.f32.mxu0 %vm14140_vm0, %v14138_v60 }
 0x630   :  { %11901 = vmatmul.mubr.f32.gmra.mrb[84].mxu0 %v1496_v56  ;;  %v1514_v56 = vld [vmem:[#allocation4 + $0x20b] sm:$0xff] }
 0x631   :  { %11903 = vmatprep.mubr.msk.f32.mxu0 %vm14140_vm0, %v14138_v60 }
 0x634   :  { %11904 = vmatmul.mubr.f32.gmra.mrb[86].mxu0 %v1497_v12 }
 0x635   :  { %11906 = vmatprep.mubr.msk.f32.mxu0 %vm14140_vm0, %v14138_v60 }
 0x638   :  { %11907 = vmatmul.mubr.f32.gmra.mrb[88].mxu0 %v1498_v16 }
 0x639   :  { %11909 = vmatprep.mubr.msk.f32.mxu0 %vm14140_vm0, %v14138_v60 }
 0x63c   :  { %11910 = vmatmul.mubr.f32.gmra.mrb[90].mxu0 %v1499_v23  ;;  %v15041_v23 = vpop.permute.xlu1 %4876 }
 0x63d   :  { %11912 = vmatprep.mubr.msk.f32.mxu0 %vm14140_vm0, %v14138_v60  ;;  %18780 = vst [vmem:[#allocation21_spill] sm:$0xff] %v15041_v23 }
 0x640   :  { %11913 = vmatmul.mubr.f32.gmra.mrb[92].mxu0 %v1500_v31 }
 0x641   :  { %11915 = vmatprep.mubr.msk.f32.mxu0 %vm14140_vm0, %v14138_v60 }
 0x644   :  { %11916 = vmatmul.mubr.f32.gmra.mrb[94].mxu0 %v1501_v38 }
 0x645   :  { %11918 = vmatprep.mubr.msk.f32.mxu0 %vm14140_vm0, %v14138_v60 }
 0x648   :  { %11919 = vmatmul.mubr.f32.gmra.mrb[96].mxu0 %v1502_v32 }
 0x649   :  { %11921 = vmatprep.mubr.msk.f32.mxu0 %vm14140_vm0, %v14138_v60 }
 0x64c   :  { %11922 = vmatmul.mubr.f32.gmra.mrb[98].mxu0 %v1503_v45 }
 0x64d   :  { %11924 = vmatprep.mubr.msk.f32.mxu0 %vm14140_vm0, %v14138_v60 }
 0x650   :  { %11925 = vmatmul.mubr.f32.gmra.mrb[100].mxu0 %v1504_v37  ;;  %v1515_v37 = vld [vmem:[#allocation4 + $0x213] sm:$0xff] }
 0x651   :  { %11927 = vmatprep.mubr.msk.f32.mxu0 %vm14140_vm0, %v14138_v60 }
 0x654   :  { %11928 = vmatmul.mubr.f32.gmra.mrb[102].mxu0 %v1505_v1 }
 0x655   :  { %11930 = vmatprep.mubr.msk.f32.mxu0 %vm14140_vm0, %v14138_v60 }
 0x658   :  { %11931 = vmatmul.mubr.f32.gmra.mrb[104].mxu0 %v1506_v14 }
 0x659   :  { %11933 = vmatprep.mubr.msk.f32.mxu0 %vm14140_vm0, %v14138_v60 }
 0x65b   :  { %v14987_v50 = vpop.f32.mrb[0].mxu0 }
 0x65c   :  { %v11776_v39 = vpop.f32.mrb[1].mxu0  ;;  %11934 = vmatmul.mubr.f32.gmra.mrb[106].mxu0 %v1507_v42  ;;  %v5244_v52 = vmul.f32 %v14983_v40, %v14987_v50  ;;  %v15049_v42 = vpop.permute.xlu0 %4881 }
 0x65d   :  { %11936 = vmatprep.mubr.msk.f32.mxu0 %vm14140_vm0, %v14138_v60  ;;  %18781 = vst [vmem:[#allocation22_spill] sm:$0xff] %v15049_v42 }
 0x65e   :  { %v5412_v4 = vmul.f32 %v5244_v52, %v5244_v52 }
 0x65f   :  { %v14995_v58 = vpop.f32.mrb[2].mxu0 }
 0x660   :  { %v5245_v61 = vmul.f32 %v14993_v54, %v14995_v58  ;;  %v11779_v55 = vpop.f32.mrb[3].mxu0  ;;  %11937 = vmatmul.mubr.f32.gmra.mrb[108].mxu0 %v1508_v47 }
 0x661   :  { %11939 = vmatprep.mubr.msk.f32.mxu0 %vm14140_vm0, %v14138_v60  ;;  %v15055_v55 = vld [vmem:[#allocation3] sm:$0xff] }
 0x662   :  { %v5325_v6 = vadd.f32 %v5245_v61, %v5244_v52  ;;  %v5413_v11 = vmul.f32 %v5245_v61, %v5245_v61 }
 0x663   :  { %v15003_v8 = vpop.f32.mrb[4].mxu0 }
 0x664   :  { %v5493_v13 = vadd.f32 %v5413_v11, %v5412_v4  ;;  %v5246_v26 = vmul.f32 %v14999_v63, %v15003_v8  ;;  %v11782_v15 = vpop.f32.mrb[5].mxu0  ;;  %11940 = vmatmul.mubr.f32.gmra.mrb[110].mxu0 %v1509_v2  ;;  %v1516_v2 = vld [vmem:[#allocation4 + $0x21b] sm:$0xff] }
 0x665   :  { %11942 = vmatprep.mubr.msk.f32.mxu0 %vm14140_vm0, %v14138_v60 }
 0x666   :  { %v5326_v19 = vadd.f32 %v5325_v6, %v5246_v26  ;;  %v5414_v25 = vmul.f32 %v5246_v26, %v5246_v26  ;;  %v15059_v6 = vpop.permute.xlu1 %4886 }
 0x667   :  { %v15011_v0 = vpop.f32.mrb[6].mxu0  ;;  %18782 = vst [vmem:[#allocation23_spill] sm:$0xff] %v15059_v6 }
 0x668   :  { %v5494_v30 = vadd.f32 %v5493_v13, %v5414_v25  ;;  %v5247_v33 = vmul.f32 %v15009_v28, %v15011_v0  ;;  %v11785_v35 = vpop.f32.mrb[7].mxu0  ;;  %11943 = vmatmul.mubr.f32.gmra.mrb[112].mxu0 %v1510_v17  ;;  %v1517_v17 = vld [vmem:[#allocation4 + $0x223] sm:$0xff] }
 0x669   :  { %11945 = vmatprep.mubr.msk.f32.mxu0 %vm14140_vm0, %v14138_v60 }
 0x66a   :  { %v5327_v20 = vadd.f32 %v5326_v19, %v5247_v33  ;;  %v5415_v44 = vmul.f32 %v5247_v33, %v5247_v33 }
 0x66b   :  { %v15019_v46 = vpop.f32.mrb[8].mxu0 }
 0x66c   :  { %v5495_v49 = vadd.f32 %v5494_v30, %v5415_v44  ;;  %v5248_v51 = vmul.f32 %v15017_v36, %v15019_v46  ;;  %v11788_v59 = vpop.f32.mrb[9].mxu0  ;;  %11946 = vmatmul.mubr.f32.gmra.mrb[114].mxu0 %v1511_v41  ;;  %v15067_v30 = vpop.permute.xlu0 %4891  ;;  %v1518_v44 = vld [vmem:[#allocation4 + $0x22b] sm:$0xff] }
 0x66d   :  { %11948 = vmatprep.mubr.msk.f32.mxu0 %vm14140_vm0, %v14138_v60  ;;  %18783 = vst [vmem:[#allocation24_spill] sm:$0xff] %v15067_v30  ;;  %v15075_v59 = vpop.permute.xlu1 %4896 }
 0x66e   :  { %v5328_v22 = vadd.f32 %v5327_v20, %v5248_v51  ;;  %v5416_v3 = vmul.f32 %v5248_v51, %v5248_v51  ;;  %18784 = vst [vmem:[#allocation25_spill] sm:$0xff] %v15075_v59 }
 0x66f   :  { %v15027_v9 = vpop.f32.mrb[10].mxu0 }
 0x670   :  { %v5496_v18 = vadd.f32 %v5495_v49, %v5416_v3  ;;  %v5249_v5 = vmul.f32 %v15025_v7, %v15027_v9  ;;  %v11791_v21 = vpop.f32.mrb[11].mxu0  ;;  %11949 = vmatmul.mubr.f32.gmra.mrb[116].mxu0 %v1512_v62 }
 0x671   :  { %11951 = vmatprep.mubr.msk.f32.mxu0 %vm14140_vm0, %v14138_v60 }
 0x672   :  { %v5329_v24 = vadd.f32 %v5328_v22, %v5249_v5  ;;  %v5417_v29 = vmul.f32 %v5249_v5, %v5249_v5  ;;  %v1519_v5 = vld [vmem:[#allocation4 + $0x233] sm:$0xff] }
 0x673   :  { %v15035_v43 = vpop.f32.mrb[12].mxu0 }
 0x674   :  { %v5497_v10 = vadd.f32 %v5496_v18, %v5417_v29  ;;  %v5250_v48 = vmul.f32 %v15033_v34, %v15035_v43  ;;  %v11794_v53 = vpop.f32.mrb[13].mxu0  ;;  %11952 = vmatmul.mubr.f32.gmra.mrb[118].mxu0 %v1513_v27 }
 0x675   :  { %11954 = vmatprep.mubr.msk.f32.mxu0 %vm14140_vm0, %v14138_v60 }
 0x676   :  { %v5330_v12 = vadd.f32 %v5329_v24, %v5250_v48  ;;  %v5418_v16 = vmul.f32 %v5250_v48, %v5250_v48  ;;  %v15083_v24 = vpop.permute.xlu0 %4901 }
 0x677   :  { %v15043_v31 = vpop.f32.mrb[14].mxu0  ;;  %18785 = vst [vmem:[#allocation26_spill] sm:$0xff] %v15083_v24 }
 0x678   :  { %v5498_v38 = vadd.f32 %v5497_v10, %v5418_v16  ;;  %v5251_v32 = vmul.f32 %v15041_v23, %v15043_v31  ;;  %v11797_v45 = vpop.f32.mrb[15].mxu0  ;;  %11955 = vmatmul.mubr.f32.gmra.mrb[120].mxu0 %v1514_v56  ;;  %v1520_v56 = vld [vmem:[#allocation4 + $0x23b] sm:$0xff] }
 0x679   :  { %11957 = vmatprep.mubr.msk.f32.mxu0 %vm14140_vm0, %v14138_v60 }
 0x67a   :  { %v5331_v1 = vadd.f32 %v5330_v12, %v5251_v32  ;;  %v5419_v14 = vmul.f32 %v5251_v32, %v5251_v32 }
 0x67b   :  { %v15051_v39 = vpop.f32.mrb[16].mxu0 }
 0x67c   :  { %v5499_v47 = vadd.f32 %v5498_v38, %v5419_v14  ;;  %v5252_v52 = vmul.f32 %v15049_v42, %v15051_v39  ;;  %v11800_v61 = vpop.f32.mrb[17].mxu0  ;;  %11958 = vmatmul.mubr.f32.gmra.mrb[122].mxu0 %v1515_v37  ;;  %v15091_v38 = vpop.permute.xlu1 %4906  ;;  %v1521_v14 = vld [vmem:[#allocation4 + $0x243] sm:$0xff] }
 0x67d   :  { %11960 = vmatprep.mubr.msk.f32.mxu0 %vm14140_vm0, %v15055_v55  ;;  %18786 = vst [vmem:[#allocation27_spill] sm:$0xff] %v15091_v38  ;;  %v15099_v61 = vpop.permute.xlu0 %4911 }
 0x67e   :  { %v5332_v60 = vadd.f32 %v5331_v1, %v5252_v52  ;;  %v5420_v4 = vmul.f32 %v5252_v52, %v5252_v52  ;;  %18787 = vst [vmem:[#allocation28_spill] sm:$0xff] %v15099_v61 }
 0x67f   :  { %v15061_v11 = vpop.f32.mrb[18].mxu0 }
 0x680   :  { %v5500_v13 = vadd.f32 %v5499_v47, %v5420_v4  ;;  %v5253_v26 = vmul.f32 %v15059_v6, %v15061_v11  ;;  %v11803_v15 = vpop.f32.mrb[19].mxu0  ;;  %11961 = vmatmul.mubr.f32.gmra.mrb[124].mxu0 %v1516_v2 }
 0x681   :  { %11963 = vmatprep.mubr.msk.f32.mxu0 %vm14140_vm0, %v15055_v55 }
 0x682   :  { %v5333_v19 = vadd.f32 %v5332_v60, %v5253_v26  ;;  %v5421_v25 = vmul.f32 %v5253_v26, %v5253_v26  ;;  %v1522_v26 = vld [vmem:[#allocation4 + $0x24b] sm:$0xff] }
 0x683   :  { %v15069_v33 = vpop.f32.mrb[20].mxu0 }
 0x684   :  { %v5501_v35 = vadd.f32 %v5500_v13, %v5421_v25  ;;  %v5254_v41 = vmul.f32 %v15067_v30, %v15069_v33  ;;  %v11806_v20 = vpop.f32.mrb[21].mxu0  ;;  %11964 = vmatmul.mubr.f32.gmra.mrb[126].mxu0 %v1517_v17 }
 0x685   :  { %11966 = vmatprep.mubr.msk.f32.mxu0 %vm14140_vm0, %v15055_v55 }
 0x686   :  { %v5334_v49 = vadd.f32 %v5333_v19, %v5254_v41  ;;  %v5422_v51 = vmul.f32 %v5254_v41, %v5254_v41  ;;  %v15107_v19 = vpop.permute.xlu1 %4916 }
 0x687   :  { %v15077_v62 = vpop.f32.mrb[22].mxu0  ;;  %18788 = vst [vmem:[#allocation29_spill] sm:$0xff] %v15107_v19 }
 0x688   :  { %v5502_v22 = vadd.f32 %v5501_v35, %v5422_v51  ;;  %v5255_v3 = vmul.f32 %v15075_v59, %v15077_v62  ;;  %v11809_v18 = vpop.f32.mrb[23].mxu0  ;;  %11967 = vmatmul.mubr.f32.gmra.mrb[128].mxu0 %v1518_v44  ;;  %v1523_v44 = vld [vmem:[#allocation4 + $0x253] sm:$0xff] }
 0x689   :  { %11969 = vmatprep.mubr.msk.f32.mxu0 %vm14140_vm0, %v15055_v55 }
 0x68a   :  { %v5335_v21 = vadd.f32 %v5334_v49, %v5255_v3  ;;  %v5423_v27 = vmul.f32 %v5255_v3, %v5255_v3 }
 0x68b   :  { %v15085_v29 = vpop.f32.mrb[24].mxu0 }
 0x68c   :  { %v5503_v10 = vadd.f32 %v5502_v22, %v5423_v27  ;;  %v5256_v48 = vmul.f32 %v15083_v24, %v15085_v29  ;;  %v11812_v53 = vpop.f32.mrb[25].mxu0  ;;  %11970 = vmatmul.mubr.f32.gmra.mrb[130].mxu0 %v1519_v5  ;;  %v15115_v22 = vpop.permute.xlu0 %4921  ;;  %v1524_v27 = vld [vmem:[#allocation4 + $0x25b] sm:$0xff] }
 0x68d   :  { %11972 = vmatprep.mubr.msk.f32.mxu0 %vm14140_vm0, %v15055_v55  ;;  %18789 = vst [vmem:[#allocation30_spill] sm:$0xff] %v15115_v22  ;;  %v15123_v53 = vpop.permute.xlu1 %4926 }
 0x68e   :  { %v5336_v12 = vadd.f32 %v5335_v21, %v5256_v48  ;;  %v5424_v16 = vmul.f32 %v5256_v48, %v5256_v48  ;;  %18790 = vst [vmem:[#allocation31_spill] sm:$0xff] %v15123_v53 }
 0x68f   :  { %v15093_v32 = vpop.f32.mrb[26].mxu0 }
 0x690   :  { %v5504_v45 = vadd.f32 %v5503_v10, %v5424_v16  ;;  %v5257_v37 = vmul.f32 %v15091_v38, %v15093_v32  ;;  %v11815_v1 = vpop.f32.mrb[27].mxu0  ;;  %11973 = vmatmul.mubr.f32.gmra.mrb[132].mxu0 %v1520_v56 }
 0x691   :  { %11975 = vmatprep.mubr.msk.f32.mxu0 %vm14140_vm0, %v15055_v55 }
 0x692   :  { %v5337_v47 = vadd.f32 %v5336_v12, %v5257_v37  ;;  %v5425_v52 = vmul.f32 %v5257_v37, %v5257_v37  ;;  %v1525_v37 = vld [vmem:[#allocation4 + $0x263] sm:$0xff] }
 0x693   :  { %v15101_v2 = vpop.f32.mrb[28].mxu0 }
 0x694   :  { %v5505_v60 = vadd.f32 %v5504_v45, %v5425_v52  ;;  %v5258_v4 = vmul.f32 %v15099_v61, %v15101_v2  ;;  %v11818_v13 = vpop.f32.mrb[29].mxu0  ;;  %11976 = vmatmul.mubr.f32.gmra.mrb[134].mxu0 %v1521_v14 }
 0x695   :  { %11978 = vmatprep.mubr.msk.f32.mxu0 %vm14140_vm0, %v15055_v55 }
 0x696   :  { %v5338_v15 = vadd.f32 %v5337_v47, %v5258_v4  ;;  %v5426_v17 = vmul.f32 %v5258_v4, %v5258_v4  ;;  %v15131_v47 = vpop.permute.xlu0 %4931 }
 0x697   :  { %v15109_v25 = vpop.f32.mrb[30].mxu0  ;;  %18791 = vst [vmem:[#allocation32_spill] sm:$0xff] %v15131_v47 }
 0x698   :  { %v5506_v35 = vadd.f32 %v5505_v60, %v5426_v17  ;;  %v5259_v41 = vmul.f32 %v15107_v19, %v15109_v25  ;;  %v11821_v20 = vpop.f32.mrb[31].mxu0  ;;  %11979 = vmatmul.mubr.f32.gmra.mrb[136].mxu0 %v1522_v26  ;;  %v1526_v26 = vld [vmem:[#allocation4 + $0x26b] sm:$0xff] }
 0x699   :  { %11981 = vmatprep.mubr.msk.f32.mxu0 %vm14140_vm0, %v15055_v55 }
 0x69a   :  { %v5339_v49 = vadd.f32 %v5338_v15, %v5259_v41  ;;  %v5427_v51 = vmul.f32 %v5259_v41, %v5259_v41 }
 0x69b   :  { %v15117_v3 = vpop.f32.mrb[32].mxu0 }
 0x69c   :  { %v5507_v18 = vadd.f32 %v5506_v35, %v5427_v51  ;;  %v5260_v5 = vmul.f32 %v15115_v22, %v15117_v3  ;;  %v11824_v21 = vpop.f32.mrb[33].mxu0  ;;  %11982 = vmatmul.mubr.f32.gmra.mrb[138].mxu0 %v1523_v44  ;;  %v15139_v35 = vpop.permute.xlu1 %4936  ;;  %v1527_v51 = vld [vmem:[#allocation4 + $0x273] sm:$0xff] }
 0x69d   :  { %11984 = vmatprep.mubr.msk.f32.mxu0 %vm14140_vm0, %v15055_v55  ;;  %18792 = vst [vmem:[#allocation33_spill] sm:$0xff] %v15139_v35  ;;  %v15147_v21 = vpop.permute.xlu0 %4941 }
 0x69e   :  { %v5340_v10 = vadd.f32 %v5339_v49, %v5260_v5  ;;  %v5428_v48 = vmul.f32 %v5260_v5, %v5260_v5  ;;  %18793 = vst [vmem:[#allocation34_spill] sm:$0xff] %v15147_v21 }
 0x69f   :  { %v15125_v56 = vpop.f32.mrb[34].mxu0 }
 0x6a0   :  { %v5508_v12 = vadd.f32 %v5507_v18, %v5428_v48  ;;  %v5261_v16 = vmul.f32 %v15123_v53, %v15125_v56  ;;  %v11827_v45 = vpop.f32.mrb[35].mxu0  ;;  %11985 = vmatmul.mubr.f32.gmra.mrb[140].mxu0 %v1524_v27 }
 0x6a1   :  { %11987 = vmatprep.mubr.msk.f32.mxu0 %vm14140_vm0, %v15055_v55 }
 0x6a2   :  { %v5341_v1 = vadd.f32 %v5340_v10, %v5261_v16  ;;  %v5429_v14 = vmul.f32 %v5261_v16, %v5261_v16  ;;  %v1528_v16 = vld [vmem:[#allocation4 + $0x27b] sm:$0xff] }
 0x6a3   :  { %v15133_v52 = vpop.f32.mrb[36].mxu0 }
 0x6a4   :  { %v5509_v60 = vadd.f32 %v5508_v12, %v5429_v14  ;;  %v5262_v4 = vmul.f32 %v15131_v47, %v15133_v52  ;;  %v11830_v13 = vpop.f32.mrb[37].mxu0  ;;  %11988 = vmatmul.mubr.f32.gmra.mrb[142].mxu0 %v1525_v37 }
 0x6a5   :  { %11990 = vmatprep.mubr.msk.f32.mxu0 %vm14140_vm0, %v15055_v55 }
 0x6a6   :  { %v5342_v15 = vadd.f32 %v5341_v1, %v5262_v4  ;;  %v5430_v17 = vmul.f32 %v5262_v4, %v5262_v4  ;;  %v15155_v1 = vpop.permute.xlu1 %4946 }
 0x6a7   :  { %v15141_v41 = vpop.f32.mrb[38].mxu0  ;;  %18794 = vst [vmem:[#allocation35_spill] sm:$0xff] %v15155_v1 }
 0x6a8   :  { %v5510_v20 = vadd.f32 %v5509_v60, %v5430_v17  ;;  %v5263_v44 = vmul.f32 %v15139_v35, %v15141_v41  ;;  %v11833_v49 = vpop.f32.mrb[39].mxu0  ;;  %11991 = vmatmul.mubr.f32.gmra.mrb[144].mxu0 %v1526_v26  ;;  %v1529_v26 = vld [vmem:[#allocation4 + $0x283] sm:$0xff] }
 0x6a9   :  { %11993 = vmatprep.mubr.msk.f32.mxu0 %vm14140_vm0, %v15055_v55 }
 0x6aa   :  { %v5343_v18 = vadd.f32 %v5342_v15, %v5263_v44  ;;  %v5431_v5 = vmul.f32 %v5263_v44, %v5263_v44 }
 0x6ab   :  { %v15149_v27 = vpop.f32.mrb[40].mxu0 }
 0x6ac   :  { %v5511_v10 = vadd.f32 %v5510_v20, %v5431_v5  ;;  %v5264_v48 = vmul.f32 %v15147_v21, %v15149_v27  ;;  %v11836_v12 = vpop.f32.mrb[41].mxu0  ;;  %11994 = vmatmul.mubr.f32.gmra.mrb[146].mxu0 %v1527_v51  ;;  %v15163_v20 = vpop.permute.xlu0 %4951  ;;  %v1530_v5 = vld [vmem:[#allocation4 + $0x28b] sm:$0xff] }
 0x6ad   :  { %11996 = vmatprep.mubr.msk.f32.mxu0 %vm14140_vm0, %v15055_v55  ;;  %18795 = vst [vmem:[#allocation36_spill] sm:$0xff] %v15163_v20  ;;  %v15171_v12 = vpop.permute.xlu1 %4956 }
 0x6ae   :  { %v5344_v45 = vadd.f32 %v5343_v18, %v5264_v48  ;;  %v5432_v37 = vmul.f32 %v5264_v48, %v5264_v48  ;;  %18796 = vst [vmem:[#allocation37_spill] sm:$0xff] %v15171_v12 }
 0x6af   :  { %v15157_v14 = vpop.f32.mrb[42].mxu0 }
 0x6b0   :  { %v5512_v60 = vadd.f32 %v5511_v10, %v5432_v37  ;;  %v5265_v4 = vmul.f32 %v15155_v1, %v15157_v14  ;;  %v11839_v13 = vpop.f32.mrb[43].mxu0  ;;  %11997 = vmatmul.mubr.f32.gmra.mrb[148].mxu0 %v1528_v16 }
 0x6b1   :  { %11999 = vmatprep.mubr.msk.f32.mxu0 %vm14140_vm0, %v15055_v55 }
 0x6b2   :  { %v5345_v15 = vadd.f32 %v5344_v45, %v5265_v4  ;;  %v5433_v17 = vmul.f32 %v5265_v4, %v5265_v4  ;;  %v1531_v4 = vld [vmem:[#allocation4 + $0x293] sm:$0xff] }
 0x6b3   :  { %v15165_v44 = vpop.f32.mrb[44].mxu0 }
 0x6b4   :  { %v5513_v49 = vadd.f32 %v5512_v60, %v5433_v17  ;;  %v5266_v51 = vmul.f32 %v15163_v20, %v15165_v44  ;;  %v11842_v18 = vpop.f32.mrb[45].mxu0  ;;  %12000 = vmatmul.mubr.f32.gmra.mrb[150].mxu0 %v1529_v26  ;;  %v15179_v17 = vpop.permute.xlu0 %4961 }
 0x6b5   :  { %12002 = vmatprep.mubr.msk.f32.mxu0 %vm14140_vm0, %v15055_v55  ;;  %18797 = vst [vmem:[#allocation38_spill] sm:$0xff] %v15179_v17 }
 0x6b6   :  { %v5346_v10 = vadd.f32 %v5345_v15, %v5266_v51  ;;  %v5434_v48 = vmul.f32 %v5266_v51, %v5266_v51 }
 0x6b7   :  { %v15173_v16 = vpop.f32.mrb[46].mxu0 }
 0x6b8   :  { %v5514_v45 = vadd.f32 %v5513_v49, %v5434_v48  ;;  %v5267_v37 = vmul.f32 %v15171_v12, %v15173_v16  ;;  %v11845_v60 = vpop.f32.mrb[47].mxu0  ;;  %12003 = vmatmul.mubr.f32.gmra.mrb[152].mxu0 %v1530_v5  ;;  %v1532_v5 = vld [vmem:[#allocation4 + $0x29b] sm:$0xff]  ;;  %v15187_v12 = vpop.permute.xlu1 %4966 }
 0x6b9   :  { %12005 = vmatprep.mubr.msk.f32.mxu0 %vm14140_vm0, %v15055_v55  ;;  %18798 = vst [vmem:[#allocation39_spill] sm:$0xff] %v15187_v12 }
 0x6ba   :  { %v5347_v13 = vadd.f32 %v5346_v10, %v5267_v37  ;;  %v5435_v26 = vmul.f32 %v5267_v37, %v5267_v37 }
 0x6bb   :  { %v15181_v15 = vpop.f32.mrb[48].mxu0 }
 0x6bc   :  { %v5515_v51 = vadd.f32 %v5514_v45, %v5435_v26  ;;  %v5268_v18 = vmul.f32 %v15179_v17, %v15181_v15  ;;  %v11848_v49 = vpop.f32.mrb[49].mxu0  ;;  %12006 = vmatmul.mubr.f32.gmra.mrb[154].mxu0 %v1531_v4  ;;  %v1533_v4 = vld [vmem:[#allocation4 + $0x2a3] sm:$0xff]  ;;  %v15195_v17 = vpop.permute.xlu0 %4971 }
 0x6bd   :  { %12008 = vmatprep.mubr.msk.f32.mxu0 %vm14140_vm0, %v15055_v55  ;;  %18799 = vst [vmem:[#allocation40_spill] sm:$0xff] %v15195_v17 }
 0x6be   :  { %v5348_v48 = vadd.f32 %v5347_v13, %v5268_v18  ;;  %v5436_v60 = vmul.f32 %v5268_v18, %v5268_v18 }
 0x6bf   :  { %v15189_v10 = vpop.f32.mrb[50].mxu0 }
 0x6c0   :  { %v5516_v37 = vadd.f32 %v5515_v51, %v5436_v60  ;;  %v5269_v20 = vmul.f32 %v15187_v12, %v15189_v10  ;;  %v11851_v45 = vpop.f32.mrb[51].mxu0  ;;  %12009 = vmatmul.mubr.f32.gmra.mrb[156].mxu0 %v1532_v5  ;;  %v1534_v5 = vld [vmem:[#allocation4 + $0x2ab] sm:$0xff]  ;;  %v15203_v12 = vpop.permute.xlu1 %4976 }
 0x6c1   :  { %12011 = vmatprep.mubr.msk.f32.mxu0 %vm14140_vm0, %v15055_v55  ;;  %18800 = vst [vmem:[#allocation41_spill] sm:$0xff] %v15203_v12 }
 0x6c2   :  { %v5349_v26 = vadd.f32 %v5348_v48, %v5269_v20  ;;  %v5437_v49 = vmul.f32 %v5269_v20, %v5269_v20 }
 0x6c3   :  { %v15197_v13 = vpop.f32.mrb[52].mxu0 }
 0x6c4   :  { %v5517_v18 = vadd.f32 %v5516_v37, %v5437_v49  ;;  %v5270_v1 = vmul.f32 %v15195_v17, %v15197_v13  ;;  %v11854_v51 = vpop.f32.mrb[53].mxu0  ;;  %12012 = vmatmul.mubr.f32.gmra.mrb[158].mxu0 %v1533_v4  ;;  %v15215_v53 = vpop.permute.xlu1 %4986 }
 0x6c5   :  { %12014 = vmatprep.mubr.msk.f32.mxu0 %vm14140_vm0, %v15055_v55  ;;  %v15209_v51 = vpop.permute.xlu0 %4981  ;;  %18802 = vst [vmem:[#allocation43_spill] sm:$0xff] %v15215_v53 }
 0x6c6   :  { %v5350_v60 = vadd.f32 %v5349_v26, %v5270_v1  ;;  %v5438_v45 = vmul.f32 %v5270_v1, %v5270_v1  ;;  %18801 = vst [vmem:[#allocation42_spill] sm:$0xff] %v15209_v51 }
 0x6c7   :  { %v15205_v48 = vpop.f32.mrb[54].mxu0 }
 0x6c8   :  { %v5518_v20 = vadd.f32 %v5517_v18, %v5438_v45  ;;  %v5271_v21 = vmul.f32 %v15203_v12, %v15205_v48  ;;  %v11857_v37 = vpop.f32.mrb[55].mxu0  ;;  %12015 = vmatmul.mubr.f32.gmra.mrb[160].mxu0 %v1534_v5  ;;  %v15227_v22 = vpop.permute.xlu1 %4996 }
 0x6c9   :  { %v15221_v12 = vpop.permute.xlu0 %4991  ;;  %18804 = vst [vmem:[#allocation45_spill] sm:$0xff] %v15227_v22 }
 0x6ca   :  { %v5351_v49 = vadd.f32 %v5350_v60, %v5271_v21  ;;  %v5439_v17 = vmul.f32 %v5271_v21, %v5271_v21  ;;  %18803 = vst [vmem:[#allocation44_spill] sm:$0xff] %v15221_v12 }
 0x6cb   :  { %v15211_v4 = vpop.f32.mrb[56].mxu0 }
 0x6cc   :  { %v5519_v55 = vadd.f32 %v5518_v20, %v5439_v17  ;;  %v5272_v1 = vmul.f32 %v15209_v51, %v15211_v4  ;;  %v11860_v26 = vpop.f32.mrb[57].mxu0  ;;  %v15239_v61 = vpop.permute.xlu1 %5006 }
 0x6cd   :  { %v15233_v19 = vpop.permute.xlu0 %5001  ;;  %18806 = vst [vmem:[#allocation47_spill] sm:$0xff] %v15239_v61 }
 0x6ce   :  { %v5352_v35 = vadd.f32 %v5351_v49, %v5272_v1  ;;  %v5440_v47 = vmul.f32 %v5272_v1, %v5272_v1  ;;  %18805 = vst [vmem:[#allocation46_spill] sm:$0xff] %v15233_v19 }
 0x6cf   :  { %v15217_v18 = vpop.f32.mrb[58].mxu0 }
 0x6d0   :  { %v5520_v45 = vadd.f32 %v5519_v55, %v5440_v47  ;;  %v5273_v5 = vmul.f32 %v15215_v53, %v15217_v18  ;;  %v11863_v21 = vpop.f32.mrb[59].mxu0  ;;  %v15251_v24 = vpop.permute.xlu1 %5016 }
 0x6d1   :  { %v15245_v38 = vpop.permute.xlu0 %5011  ;;  %18808 = vst [vmem:[#allocation49_spill] sm:$0xff] %v15251_v24 }
 0x6d2   :  { %v5353_v60 = vadd.f32 %v5352_v35, %v5273_v5  ;;  %v5441_v37 = vmul.f32 %v5273_v5, %v5273_v5  ;;  %18807 = vst [vmem:[#allocation48_spill] sm:$0xff] %v15245_v38 }
 0x6d3   :  { %v15223_v17 = vpop.f32.mrb[60].mxu0 }
 0x6d4   :  { %v5521_v20 = vadd.f32 %v5520_v45, %v5441_v37  ;;  %v5274_v49 = vmul.f32 %v15221_v12, %v15223_v17  ;;  %v11866_v1 = vpop.f32.mrb[61].mxu0  ;;  %v15263_v30 = vpop.permute.xlu1 %5026 }
 0x6d5   :  { %v15257_v59 = vpop.permute.xlu0 %5021  ;;  %18810 = vst [vmem:[#allocation51_spill] sm:$0xff] %v15263_v30 }
 0x6d6   :  { %v5354_v26 = vadd.f32 %v5353_v60, %v5274_v49  ;;  %v5442_v51 = vmul.f32 %v5274_v49, %v5274_v49  ;;  %18809 = vst [vmem:[#allocation50_spill] sm:$0xff] %v15257_v59 }
 0x6d7   :  { %v15229_v47 = vpop.f32.mrb[62].mxu0 }
 0x6d8   :  { %v5522_v55 = vadd.f32 %v5521_v20, %v5442_v51  ;;  %v5275_v35 = vmul.f32 %v15227_v22, %v15229_v47  ;;  %v11869_v5 = vpop.f32.mrb[63].mxu0  ;;  %v15275_v42 = vpop.permute.xlu1 %5036 }
 0x6d9   :  { %v15269_v6 = vpop.permute.xlu0 %5031  ;;  %18813 = vst [vmem:[#allocation54_spill] sm:$0xff] %v15275_v42 }
 0x6da   :  { %v5355_v21 = vadd.f32 %v5354_v26, %v5275_v35  ;;  %v5443_v53 = vmul.f32 %v5275_v35, %v5275_v35  ;;  %18811 = vst [vmem:[#allocation52_spill] sm:$0xff] %v15269_v6 }
 0x6db   :  { %v15235_v45 = vpop.f32.mrb[64].mxu0 }
 0x6dc   :  { %v5523_v37 = vadd.f32 %v5522_v55, %v5443_v53  ;;  %v5276_v60 = vmul.f32 %v15233_v19, %v15235_v45  ;;  %v11872_v49 = vpop.f32.mrb[65].mxu0  ;;  %v15287_v34 = vpop.permute.xlu1 %5046 }
 0x6dd   :  { %v15281_v23 = vpop.permute.xlu0 %5041  ;;  %18817 = vst [vmem:[#allocation58_spill] sm:$0xff] %v15287_v34 }
 0x6de   :  { %v5356_v1 = vadd.f32 %v5355_v21, %v5276_v60  ;;  %v5444_v12 = vmul.f32 %v5276_v60, %v5276_v60  ;;  %18815 = vst [vmem:[#allocation56_spill] sm:$0xff] %v15281_v23 }
 0x6df   :  { %v15241_v51 = vpop.f32.mrb[66].mxu0 }
 0x6e0   :  { %v5524_v20 = vadd.f32 %v5523_v37, %v5444_v12  ;;  %v5277_v26 = vmul.f32 %v15239_v61, %v15241_v51  ;;  %v11875_v35 = vpop.f32.mrb[67].mxu0  ;;  %v15299_v36 = vpop.permute.xlu1 %5056 }
 0x6e1   :  { %v15293_v7 = vpop.permute.xlu0 %5051  ;;  %18821 = vst [vmem:[#allocation62_spill] sm:$0xff] %v15299_v36 }
 0x6e2   :  { %v5357_v5 = vadd.f32 %v5356_v1, %v5277_v26  ;;  %v5445_v22 = vmul.f32 %v5277_v26, %v5277_v26  ;;  %18819 = vst [vmem:[#allocation60_spill] sm:$0xff] %v15293_v7 }
 0x6e3   :  { %v15247_v53 = vpop.f32.mrb[68].mxu0 }
 0x6e4   :  { %v5525_v55 = vadd.f32 %v5524_v20, %v5445_v22  ;;  %v5278_v21 = vmul.f32 %v15245_v38, %v15247_v53  ;;  %v11878_v60 = vpop.f32.mrb[69].mxu0 }
 0x6e5   :  { %v15305_v28 = vpop.permute.xlu0 %5061 }
 0x6e6   :  { %v5358_v49 = vadd.f32 %v5357_v5, %v5278_v21  ;;  %v5446_v19 = vmul.f32 %v5278_v21, %v5278_v21  ;;  %18823 = vst [vmem:[#allocation64_spill] sm:$0xff] %v15305_v28 }
 0x6e7   :  { %v15253_v12 = vpop.f32.mrb[70].mxu0 }
 0x6e8   :  { %v5526_v37 = vadd.f32 %v5525_v55, %v5446_v19  ;;  %v5279_v1 = vmul.f32 %v15251_v24, %v15253_v12  ;;  %v11881_v26 = vpop.f32.mrb[71].mxu0 }
 0x6ea   :  { %v5359_v35 = vadd.f32 %v5358_v49, %v5279_v1  ;;  %v5447_v61 = vmul.f32 %v5279_v1, %v5279_v1 }
 0x6eb   :  { %v15259_v22 = vpop.f32.mrb[72].mxu0 }
 0x6ec   :  { %v5527_v20 = vadd.f32 %v5526_v37, %v5447_v61  ;;  %v5280_v5 = vmul.f32 %v15257_v59, %v15259_v22  ;;  %v11884_v21 = vpop.f32.mrb[73].mxu0 }
 0x6ee   :  { %v5360_v60 = vadd.f32 %v5359_v35, %v5280_v5  ;;  %v5448_v38 = vmul.f32 %v5280_v5, %v5280_v5 }
 0x6ef   :  { %v15265_v19 = vpop.f32.mrb[74].mxu0 }
 0x6f0   :  { %v5528_v55 = vadd.f32 %v5527_v20, %v5448_v38  ;;  %v5281_v49 = vmul.f32 %v15263_v30, %v15265_v19  ;;  %v11887_v1 = vpop.f32.mrb[75].mxu0 }
 0x6f2   :  { %v5361_v26 = vadd.f32 %v5360_v60, %v5281_v49  ;;  %v5449_v24 = vmul.f32 %v5281_v49, %v5281_v49 }
 0x6f3   :  { %v15271_v61 = vpop.f32.mrb[76].mxu0 }
 0x6f4   :  { %18812 = vst [vmem:[#allocation53_spill] sm:$0xff] %v15271_v61  ;;  %v5529_v37 = vadd.f32 %v5528_v55, %v5449_v24  ;;  %v5282_v35 = vmul.f32 %v15269_v6, %v15271_v61  ;;  %v11890_v5 = vpop.f32.mrb[77].mxu0 }
 0x6f6   :  { %v5362_v21 = vadd.f32 %v5361_v26, %v5282_v35  ;;  %v5450_v59 = vmul.f32 %v5282_v35, %v5282_v35 }
 0x6f7   :  { %v15277_v38 = vpop.f32.mrb[78].mxu0 }
 0x6f8   :  { %18814 = vst [vmem:[#allocation55_spill] sm:$0xff] %v15277_v38  ;;  %v5530_v20 = vadd.f32 %v5529_v37, %v5450_v59  ;;  %v5283_v60 = vmul.f32 %v15275_v42, %v15277_v38  ;;  %v11893_v49 = vpop.f32.mrb[79].mxu0 }
 0x6fa   :  { %v5363_v1 = vadd.f32 %v5362_v21, %v5283_v60  ;;  %v5451_v30 = vmul.f32 %v5283_v60, %v5283_v60 }
 0x6fb   :  { %v15283_v24 = vpop.f32.mrb[80].mxu0 }
 0x6fc   :  { %18816 = vst [vmem:[#allocation57_spill] sm:$0xff] %v15283_v24  ;;  %v5531_v55 = vadd.f32 %v5530_v20, %v5451_v30  ;;  %v5284_v26 = vmul.f32 %v15281_v23, %v15283_v24  ;;  %v11896_v35 = vpop.f32.mrb[81].mxu0 }
 0x6fe   :  { %v5364_v5 = vadd.f32 %v5363_v1, %v5284_v26  ;;  %v5452_v6 = vmul.f32 %v5284_v26, %v5284_v26 }
 0x6ff   :  { %v15289_v59 = vpop.f32.mrb[82].mxu0 }
 0x700   :  { %18818 = vst [vmem:[#allocation59_spill] sm:$0xff] %v15289_v59  ;;  %v5532_v37 = vadd.f32 %v5531_v55, %v5452_v6  ;;  %v5285_v21 = vmul.f32 %v15287_v34, %v15289_v59  ;;  %v11899_v60 = vpop.f32.mrb[83].mxu0 }
 0x702   :  { %v5365_v49 = vadd.f32 %v5364_v5, %v5285_v21  ;;  %v5453_v42 = vmul.f32 %v5285_v21, %v5285_v21 }
 0x703   :  { %v15295_v30 = vpop.f32.mrb[84].mxu0 }
 0x704   :  { %18820 = vst [vmem:[#allocation61_spill] sm:$0xff] %v15295_v30  ;;  %v5533_v20 = vadd.f32 %v5532_v37, %v5453_v42  ;;  %v5286_v1 = vmul.f32 %v15293_v7, %v15295_v30  ;;  %v11902_v26 = vpop.f32.mrb[85].mxu0  ;;  %v8194_v7 = vld [vmem:[#allocation9 + $0x8] sm:$0xff] }
 0x705   :  { %v8193_v26 = vld [vmem:[#allocation9] sm:$0xff] }
 0x706   :  { %v5366_v35 = vadd.f32 %v5365_v49, %v5286_v1  ;;  %v5454_v23 = vmul.f32 %v5286_v1, %v5286_v1  ;;  %v12509_v63 = vpack.c.bf16 %v8194_v7, %v8193_v26  ;;  %v15318_v7 = vpop.permute.xlu0 %5071  ;;  %v8197_v26 = vld [vmem:[#allocation9 + $0x20] sm:$0xff] }
 0x707   :  { %v15301_v6 = vpop.f32.mrb[86].mxu0  ;;  %18827 = vst [vmem:[#allocation68_spill] sm:$0xff] %v15318_v7 }
 0x708   :  { %18822 = vst [vmem:[#allocation63_spill] sm:$0xff] %v15301_v6  ;;  %v5534_v55 = vadd.f32 %v5533_v20, %v5454_v23  ;;  %v5287_v5 = vmul.f32 %v15299_v36, %v15301_v6  ;;  %v11905_v21 = vpop.f32.mrb[87].mxu0  ;;  %v15311_v20 = vpop.permute.xlu1 %5066  ;;  %12510 = vmatpush1.bf16.msra.mxu1 %v12509_v63 }
 0x709   :  { %18825 = vst [vmem:[#allocation66_spill] sm:$0xff] %v15311_v20  ;;  %12511 = vmatprep.subr.bf16.mxu1 %v18744_v57 }
 0x70a   :  { %v5367_v60 = vadd.f32 %v5366_v35, %v5287_v5  ;;  %v5455_v34 = vmul.f32 %v5287_v5, %v5287_v5 }
 0x70b   :  { %v15307_v42 = vpop.f32.mrb[88].mxu0 }
 0x70c   :  { %18824 = vst [vmem:[#allocation65_spill] sm:$0xff] %v15307_v42  ;;  %v5535_v37 = vadd.f32 %v5534_v55, %v5455_v34  ;;  %v5288_v49 = vmul.f32 %v15305_v28, %v15307_v42  ;;  %v11908_v1 = vpop.f32.mrb[89].mxu0  ;;  %v8195_v34 = vld [vmem:[#allocation9 + $0x10] sm:$0xff]  ;;  %v8196_v55 = vld [vmem:[#allocation9 + $0x18] sm:$0xff] }
 0x70d   :  { %v12512_v1 = vpack.c.bf16 %v8196_v55, %v8195_v34  ;;  %v15325_v34 = vpop.permute.xlu1 %5076 }
 0x70e   :  { %v5368_v54 = vadd.f32 %v5367_v60, %v5288_v49  ;;  %v5456_v23 = vmul.f32 %v5288_v49, %v5288_v49  ;;  %18829 = vst [vmem:[#allocation70_spill] sm:$0xff] %v15325_v34 }
 0x70f   :  { %v15313_v36 = vpop.f32.mrb[90].mxu0  ;;  %12513 = vmatpush1.bf16.msra.mxu1 %v12512_v1 }
 0x710   :  { %18826 = vst [vmem:[#allocation67_spill] sm:$0xff] %v15313_v36  ;;  %v5536_v35 = vadd.f32 %v5535_v37, %v5456_v23  ;;  %v5289_v5 = vmul.f32 %v15311_v20, %v15313_v36  ;;  %v11911_v21 = vpop.f32.mrb[91].mxu0  ;;  %12514 = vmatprep.subr.bf16.mxu1 %v18744_v57  ;;  %v8198_v23 = vld [vmem:[#allocation9 + $0x28] sm:$0xff] }
 0x711   :  { %v12515_v21 = vpack.c.bf16 %v8198_v23, %v8197_v26 }
 0x712   :  { %v5369_v28 = vadd.f32 %v5368_v54, %v5289_v5  ;;  %v5457_v40 = vmul.f32 %v5289_v5, %v5289_v5 }
 0x713   :  { %v15320_v60 = vpop.f32.mrb[92].mxu0  ;;  %12516 = vmatpush1.bf16.msra.mxu1 %v12515_v21 }
 0x714   :  { %18828 = vst [vmem:[#allocation69_spill] sm:$0xff] %v15320_v60  ;;  %v5537_v49 = vadd.f32 %v5536_v35, %v5457_v40  ;;  %v5290_v63 = vmul.f32 %v15318_v7, %v15320_v60  ;;  %v11914_v37 = vpop.f32.mrb[93].mxu0  ;;  %12517 = vmatprep.subr.bf16.mxu1 %v18744_v57 }
 0x715   :  { %v15332_v37 = vpop.permute.xlu0 %5081 }
 0x716   :  { %v5370_v20 = vadd.f32 %v5369_v28, %v5290_v63  ;;  %v5458_v36 = vmul.f32 %v5290_v63, %v5290_v63  ;;  %18831 = vst [vmem:[#allocation72_spill] sm:$0xff] %v15332_v37 }
 0x717   :  { %v15327_v54 = vpop.f32.mrb[94].mxu0 }
 0x718   :  { %18830 = vst [vmem:[#allocation71_spill] sm:$0xff] %v15327_v54  ;;  %v5538_v5 = vadd.f32 %v5537_v49, %v5458_v36  ;;  %v5291_v40 = vmul.f32 %v15325_v34, %v15327_v54  ;;  %v11917_v35 = vpop.f32.mrb[95].mxu0  ;;  %v15338_v36 = vpop.permute.xlu1 %5086 }
 0x719   :  { %18833 = vst [vmem:[#allocation74_spill] sm:$0xff] %v15338_v36  ;;  %v15344_v60 = vpop.permute.xlu0 %5091 }
 0x71a   :  { %v5371_v55 = vadd.f32 %v5370_v20, %v5291_v40  ;;  %v5459_v1 = vmul.f32 %v5291_v40, %v5291_v40  ;;  %18835 = vst [vmem:[#allocation76_spill] sm:$0xff] %v15344_v60 }
 0x71b   :  { %v15334_v7 = vpop.f32.mrb[96].mxu0 }
 0x71c   :  { %18832 = vst [vmem:[#allocation73_spill] sm:$0xff] %v15334_v7  ;;  %v5539_v28 = vadd.f32 %v5538_v5, %v5459_v1  ;;  %v5292_v63 = vmul.f32 %v15332_v37, %v15334_v7  ;;  %v11920_v26 = vpop.f32.mrb[97].mxu0  ;;  %v15350_v7 = vpop.permute.xlu1 %5096 }
 0x71d   :  { %18837 = vst [vmem:[#allocation78_spill] sm:$0xff] %v15350_v7 }
 0x71e   :  { %v5372_v23 = vadd.f32 %v5371_v55, %v5292_v63  ;;  %v5460_v21 = vmul.f32 %v5292_v63, %v5292_v63 }
 0x71f   :  { %v15340_v49 = vpop.f32.mrb[98].mxu0 }
 0x720   :  { %18834 = vst [vmem:[#allocation75_spill] sm:$0xff] %v15340_v49  ;;  %v5540_v35 = vadd.f32 %v5539_v28, %v5460_v21  ;;  %v5293_v20 = vmul.f32 %v15338_v36, %v15340_v49  ;;  %v11923_v40 = vpop.f32.mrb[99].mxu0  ;;  %v15356_v49 = vpop.permute.xlu0 %5101 }
 0x721   :  { %18839 = vst [vmem:[#allocation80_spill] sm:$0xff] %v15356_v49 }
 0x722   :  { %v5373_v34 = vadd.f32 %v5372_v23, %v5293_v20  ;;  %v5461_v54 = vmul.f32 %v5293_v20, %v5293_v20 }
 0x723   :  { %v15346_v5 = vpop.f32.mrb[100].mxu0 }
 0x724   :  { %18836 = vst [vmem:[#allocation77_spill] sm:$0xff] %v15346_v5  ;;  %v5541_v1 = vadd.f32 %v5540_v35, %v5461_v54  ;;  %v5294_v55 = vmul.f32 %v15344_v60, %v15346_v5  ;;  %v11926_v63 = vpop.f32.mrb[101].mxu0  ;;  %v15362_v5 = vpop.permute.xlu1 %5106 }
 0x725   :  { %18841 = vst [vmem:[#allocation82_spill] sm:$0xff] %v15362_v5 }
 0x726   :  { %v5374_v26 = vadd.f32 %v5373_v34, %v5294_v55  ;;  %v5462_v37 = vmul.f32 %v5294_v55, %v5294_v55 }
 0x727   :  { %v15352_v28 = vpop.f32.mrb[102].mxu0 }
 0x728   :  { %18838 = vst [vmem:[#allocation79_spill] sm:$0xff] %v15352_v28  ;;  %v5542_v21 = vadd.f32 %v5541_v1, %v5462_v37  ;;  %v5295_v23 = vmul.f32 %v15350_v7, %v15352_v28  ;;  %v11929_v20 = vpop.f32.mrb[103].mxu0  ;;  %v15368_v28 = vpop.permute.xlu0 %5111 }
 0x729   :  { %18843 = vst [vmem:[#allocation84_spill] sm:$0xff] %v15368_v28 }
 0x72a   :  { %v5375_v40 = vadd.f32 %v5374_v26, %v5295_v23  ;;  %v5463_v36 = vmul.f32 %v5295_v23, %v5295_v23 }
 0x72b   :  { %v15358_v54 = vpop.f32.mrb[104].mxu0 }
 0x72c   :  { %18840 = vst [vmem:[#allocation81_spill] sm:$0xff] %v15358_v54  ;;  %v5543_v35 = vadd.f32 %v5542_v21, %v5463_v36  ;;  %v5296_v34 = vmul.f32 %v15356_v49, %v15358_v54  ;;  %v11932_v55 = vpop.f32.mrb[105].mxu0  ;;  %v15374_v54 = vpop.permute.xlu1 %5116 }
 0x72d   :  { %18845 = vst [vmem:[#allocation86_spill] sm:$0xff] %v15374_v54 }
 0x72e   :  { %v5376_v63 = vadd.f32 %v5375_v40, %v5296_v34  ;;  %v5464_v60 = vmul.f32 %v5296_v34, %v5296_v34 }
 0x72f   :  { %v15364_v37 = vpop.f32.mrb[106].mxu0 }
 0x730   :  { %18842 = vst [vmem:[#allocation83_spill] sm:$0xff] %v15364_v37  ;;  %v5544_v1 = vadd.f32 %v5543_v35, %v5464_v60  ;;  %v5297_v26 = vmul.f32 %v15362_v5, %v15364_v37  ;;  %v11935_v23 = vpop.f32.mrb[107].mxu0  ;;  %v15380_v37 = vpop.permute.xlu0 %5121 }
 0x731   :  { %18847 = vst [vmem:[#allocation88_spill] sm:$0xff] %v15380_v37 }
 0x732   :  { %v5377_v20 = vadd.f32 %v5376_v63, %v5297_v26  ;;  %v5465_v7 = vmul.f32 %v5297_v26, %v5297_v26 }
 0x733   :  { %v15370_v36 = vpop.f32.mrb[108].mxu0 }
 0x734   :  { %18844 = vst [vmem:[#allocation85_spill] sm:$0xff] %v15370_v36  ;;  %v5545_v21 = vadd.f32 %v5544_v1, %v5465_v7  ;;  %v5298_v40 = vmul.f32 %v15368_v28, %v15370_v36  ;;  %v11938_v34 = vpop.f32.mrb[109].mxu0  ;;  %v15386_v36 = vpop.permute.xlu1 %5126 }
 0x735   :  { %18849 = vst [vmem:[#allocation90_spill] sm:$0xff] %v15386_v36 }
 0x736   :  { %v5378_v55 = vadd.f32 %v5377_v20, %v5298_v40  ;;  %v5466_v49 = vmul.f32 %v5298_v40, %v5298_v40 }
 0x737   :  { %v15376_v60 = vpop.f32.mrb[110].mxu0 }
 0x738   :  { %18846 = vst [vmem:[#allocation87_spill] sm:$0xff] %v15376_v60  ;;  %v5546_v35 = vadd.f32 %v5545_v21, %v5466_v49  ;;  %v5299_v63 = vmul.f32 %v15374_v54, %v15376_v60  ;;  %v11941_v26 = vpop.f32.mrb[111].mxu0  ;;  %v15392_v60 = vpop.permute.xlu0 %5131 }
 0x739   :  { %18851 = vst [vmem:[#allocation92_spill] sm:$0xff] %v15392_v60 }
 0x73a   :  { %v5379_v23 = vadd.f32 %v5378_v55, %v5299_v63  ;;  %v5467_v5 = vmul.f32 %v5299_v63, %v5299_v63 }
 0x73b   :  { %v15382_v7 = vpop.f32.mrb[112].mxu0 }
 0x73c   :  { %18848 = vst [vmem:[#allocation89_spill] sm:$0xff] %v15382_v7  ;;  %v5547_v1 = vadd.f32 %v5546_v35, %v5467_v5  ;;  %v5300_v20 = vmul.f32 %v15380_v37, %v15382_v7  ;;  %v11944_v40 = vpop.f32.mrb[113].mxu0  ;;  %v15398_v7 = vpop.permute.xlu1 %5136 }
 0x73d   :  { %18853 = vst [vmem:[#allocation94_spill] sm:$0xff] %v15398_v7 }
 0x73e   :  { %v5380_v34 = vadd.f32 %v5379_v23, %v5300_v20  ;;  %v5468_v28 = vmul.f32 %v5300_v20, %v5300_v20 }
 0x73f   :  { %v15388_v49 = vpop.f32.mrb[114].mxu0 }
 0x740   :  { %18850 = vst [vmem:[#allocation91_spill] sm:$0xff] %v15388_v49  ;;  %v5548_v21 = vadd.f32 %v5547_v1, %v5468_v28  ;;  %v5301_v55 = vmul.f32 %v15386_v36, %v15388_v49  ;;  %v11947_v63 = vpop.f32.mrb[115].mxu0  ;;  %v15404_v49 = vpop.permute.xlu0 %5141 }
 0x741   :  { %18855 = vst [vmem:[#allocation96_spill] sm:$0xff] %v15404_v49 }
 0x742   :  { %v5381_v26 = vadd.f32 %v5380_v34, %v5301_v55  ;;  %v5469_v54 = vmul.f32 %v5301_v55, %v5301_v55 }
 0x743   :  { %v15394_v5 = vpop.f32.mrb[116].mxu0 }
 0x744   :  { %18852 = vst [vmem:[#allocation93_spill] sm:$0xff] %v15394_v5  ;;  %v5549_v35 = vadd.f32 %v5548_v21, %v5469_v54  ;;  %v5302_v23 = vmul.f32 %v15392_v60, %v15394_v5  ;;  %v11950_v20 = vpop.f32.mrb[117].mxu0  ;;  %v15410_v5 = vpop.permute.xlu1 %5146 }
 0x745   :  { %18857 = vst [vmem:[#allocation98_spill] sm:$0xff] %v15410_v5 }
 0x746   :  { %v5382_v40 = vadd.f32 %v5381_v26, %v5302_v23  ;;  %v5470_v37 = vmul.f32 %v5302_v23, %v5302_v23 }
 0x747   :  { %v15400_v28 = vpop.f32.mrb[118].mxu0 }
 0x748   :  { %18854 = vst [vmem:[#allocation95_spill] sm:$0xff] %v15400_v28  ;;  %v5550_v1 = vadd.f32 %v5549_v35, %v5470_v37  ;;  %v5303_v34 = vmul.f32 %v15398_v7, %v15400_v28  ;;  %v11953_v55 = vpop.f32.mrb[119].mxu0  ;;  %v15416_v28 = vpop.permute.xlu0 %5151 }
 0x749   :  { %18859 = vst [vmem:[#allocation100_spill] sm:$0xff] %v15416_v28 }
 0x74a   :  { %v5383_v63 = vadd.f32 %v5382_v40, %v5303_v34  ;;  %v5471_v36 = vmul.f32 %v5303_v34, %v5303_v34 }
 0x74b   :  { %v15406_v54 = vpop.f32.mrb[120].mxu0 }
 0x74c   :  { %18856 = vst [vmem:[#allocation97_spill] sm:$0xff] %v15406_v54  ;;  %v5551_v21 = vadd.f32 %v5550_v1, %v5471_v36  ;;  %v5304_v26 = vmul.f32 %v15404_v49, %v15406_v54  ;;  %v11956_v23 = vpop.f32.mrb[121].mxu0  ;;  %v15422_v54 = vpop.permute.xlu1 %5156 }
 0x74d   :  { %18861 = vst [vmem:[#allocation102_spill] sm:$0xff] %v15422_v54 }
 0x74e   :  { %v5384_v20 = vadd.f32 %v5383_v63, %v5304_v26  ;;  %v5472_v60 = vmul.f32 %v5304_v26, %v5304_v26 }
 0x74f   :  { %v15412_v37 = vpop.f32.mrb[122].mxu0 }
 0x750   :  { %18858 = vst [vmem:[#allocation99_spill] sm:$0xff] %v15412_v37  ;;  %v5552_v35 = vadd.f32 %v5551_v21, %v5472_v60  ;;  %v5305_v40 = vmul.f32 %v15410_v5, %v15412_v37  ;;  %v11959_v34 = vpop.f32.mrb[123].mxu0  ;;  %v15428_v37 = vpop.permute.xlu0 %5161 }
 0x751   :  { %18863 = vst [vmem:[#allocation104_spill] sm:$0xff] %v15428_v37 }
 0x752   :  { %v5385_v55 = vadd.f32 %v5384_v20, %v5305_v40  ;;  %v5473_v7 = vmul.f32 %v5305_v40, %v5305_v40 }
 0x753   :  { %v15418_v36 = vpop.f32.mrb[124].mxu0 }
 0x754   :  { %18860 = vst [vmem:[#allocation101_spill] sm:$0xff] %v15418_v36  ;;  %v5553_v1 = vadd.f32 %v5552_v35, %v5473_v7  ;;  %v5306_v63 = vmul.f32 %v15416_v28, %v15418_v36  ;;  %v11962_v26 = vpop.f32.mrb[125].mxu0  ;;  %v15434_v36 = vpop.permute.xlu1 %5166 }
 0x755   :  { %18865 = vst [vmem:[#allocation106_spill] sm:$0xff] %v15434_v36 }
 0x756   :  { %v5386_v23 = vadd.f32 %v5385_v55, %v5306_v63  ;;  %v5474_v49 = vmul.f32 %v5306_v63, %v5306_v63 }
 0x757   :  { %v15424_v60 = vpop.f32.mrb[126].mxu0 }
 0x758   :  { %18862 = vst [vmem:[#allocation103_spill] sm:$0xff] %v15424_v60  ;;  %v5554_v21 = vadd.f32 %v5553_v1, %v5474_v49  ;;  %v5307_v20 = vmul.f32 %v15422_v54, %v15424_v60  ;;  %v11965_v40 = vpop.f32.mrb[127].mxu0  ;;  %v8200_v54 = vld [vmem:[#allocation9 + $0x38] sm:$0xff] }
 0x759   :  { %v8199_v40 = vld [vmem:[#allocation9 + $0x30] sm:$0xff] }
 0x75a   :  { %v5387_v34 = vadd.f32 %v5386_v23, %v5307_v20  ;;  %v5475_v5 = vmul.f32 %v5307_v20, %v5307_v20 }
 0x75b   :  { %v15430_v7 = vpop.f32.mrb[128].mxu0 }
 0x75c   :  { %18864 = vst [vmem:[#allocation105_spill] sm:$0xff] %v15430_v7  ;;  %v5555_v35 = vadd.f32 %v5554_v21, %v5475_v5  ;;  %v5308_v55 = vmul.f32 %v15428_v37, %v15430_v7  ;;  %v11968_v63 = vpop.f32.mrb[129].mxu0  ;;  %v12518_v5 = vpack.c.bf16 %v8200_v54, %v8199_v40  ;;  %v15440_v21 = vpop.permute.xlu0 %5171  ;;  %v8203_v40 = vld [vmem:[#allocation9 + $0x50] sm:$0xff] }
 0x75d   :  { %18867 = vst [vmem:[#allocation108_spill] sm:$0xff] %v15440_v21 }
 0x75e   :  { %v5388_v26 = vadd.f32 %v5387_v34, %v5308_v55  ;;  %v5476_v28 = vmul.f32 %v5308_v55, %v5308_v55  ;;  %12519 = vmatpush1.bf16.msra.mxu1 %v12518_v5  ;;  %v8204_v5 = vld [vmem:[#allocation9 + $0x58] sm:$0xff] }
 0x75f   :  { %v15436_v49 = vpop.f32.mrb[130].mxu0  ;;  %12520 = vmatprep.subr.bf16.mxu1 %v18744_v57 }
 0x760   :  { %18866 = vst [vmem:[#allocation107_spill] sm:$0xff] %v15436_v49  ;;  %v5556_v1 = vadd.f32 %v5555_v35, %v5476_v28  ;;  %v5309_v23 = vmul.f32 %v15434_v36, %v15436_v49  ;;  %v11971_v20 = vpop.f32.mrb[131].mxu0  ;;  %v8201_v28 = vld [vmem:[#allocation9 + $0x40] sm:$0xff]  ;;  %v8202_v35 = vld [vmem:[#allocation9 + $0x48] sm:$0xff] }
 0x761   :  { %v12521_v49 = vpack.c.bf16 %v8202_v35, %v8201_v28  ;;  %v8206_v35 = vld [vmem:[#allocation9 + $0x68] sm:$0xff] }
 0x762   :  { %v5389_v60 = vadd.f32 %v5388_v26, %v5309_v23  ;;  %v5477_v42 = vmul.f32 %v5309_v23, %v5309_v23  ;;  %v15447_v26 = vpop.permute.xlu1 %5176 }
 0x763   :  { %v15442_v37 = vpop.f32.mrb[132].mxu0  ;;  %18869 = vst [vmem:[#allocation110_spill] sm:$0xff] %v15447_v26  ;;  %12522 = vmatpush1.bf16.msra.mxu1 %v12521_v49  ;;  %v8205_v49 = vld [vmem:[#allocation9 + $0x60] sm:$0xff] }
 0x764   :  { %18868 = vst [vmem:[#allocation109_spill] sm:$0xff] %v15442_v37  ;;  %v5557_v34 = vadd.f32 %v5556_v1, %v5477_v42  ;;  %v5310_v55 = vmul.f32 %v15440_v21, %v15442_v37  ;;  %v11974_v63 = vpop.f32.mrb[133].mxu0  ;;  %12523 = vmatprep.subr.bf16.mxu1 %v18744_v57  ;;  %v12524_v37 = vpack.c.bf16 %v8204_v5, %v8203_v40  ;;  %v8208_v5 = vld [vmem:[#allocation9 + $0x78] sm:$0xff] }
 0x766   :  { %v5390_v20 = vadd.f32 %v5389_v60, %v5310_v55  ;;  %v5478_v36 = vmul.f32 %v5310_v55, %v5310_v55  ;;  %v15454_v60 = vpop.permute.xlu0 %5181 }
 0x767   :  { %v15449_v54 = vpop.f32.mrb[134].mxu0  ;;  %18871 = vst [vmem:[#allocation112_spill] sm:$0xff] %v15454_v60  ;;  %12525 = vmatpush1.bf16.msra.mxu1 %v12524_v37  ;;  %v8207_v37 = vld [vmem:[#allocation9 + $0x70] sm:$0xff] }
 0x768   :  { %18870 = vst [vmem:[#allocation111_spill] sm:$0xff] %v15449_v54  ;;  %v5558_v23 = vadd.f32 %v5557_v34, %v5478_v36  ;;  %v5311_v42 = vmul.f32 %v15447_v26, %v15449_v54  ;;  %v11977_v1 = vpop.f32.mrb[135].mxu0  ;;  %12526 = vmatprep.subr.bf16.mxu1 %v18744_v57  ;;  %v12527_v54 = vpack.c.bf16 %v8206_v35, %v8205_v49  ;;  %v8210_v35 = vld [vmem:[#allocation9 + $0x88] sm:$0xff] }
 0x76a   :  { %v5391_v63 = vadd.f32 %v5390_v20, %v5311_v42  ;;  %v5479_v21 = vmul.f32 %v5311_v42, %v5311_v42  ;;  %v15461_v20 = vpop.permute.xlu1 %5186 }
 0x76b   :  { %v15456_v55 = vpop.f32.mrb[136].mxu0  ;;  %18873 = vst [vmem:[#allocation114_spill] sm:$0xff] %v15461_v20  ;;  %12528 = vmatpush1.bf16.msra.mxu1 %v12527_v54  ;;  %v8209_v54 = vld [vmem:[#allocation9 + $0x80] sm:$0xff] }
 0x76c   :  { %18872 = vst [vmem:[#allocation113_spill] sm:$0xff] %v15456_v55  ;;  %v5559_v28 = vadd.f32 %v5558_v23, %v5479_v21  ;;  %v5312_v36 = vmul.f32 %v15454_v60, %v15456_v55  ;;  %v11980_v34 = vpop.f32.mrb[137].mxu0  ;;  %12529 = vmatprep.subr.bf16.mxu1 %v18744_v57  ;;  %v12530_v55 = vpack.c.bf16 %v8208_v5, %v8207_v37  ;;  %v8212_v5 = vld [vmem:[#allocation9 + $0x98] sm:$0xff] }
 0x76e   :  { %v5392_v1 = vadd.f32 %v5391_v63, %v5312_v36  ;;  %v5480_v26 = vmul.f32 %v5312_v36, %v5312_v36  ;;  %v15468_v63 = vpop.permute.xlu0 %5191 }
 0x76f   :  { %v15463_v42 = vpop.f32.mrb[138].mxu0  ;;  %18875 = vst [vmem:[#allocation116_spill] sm:$0xff] %v15468_v63  ;;  %12531 = vmatpush1.bf16.msra.mxu1 %v12530_v55  ;;  %v8211_v55 = vld [vmem:[#allocation9 + $0x90] sm:$0xff] }
 0x770   :  { %18874 = vst [vmem:[#allocation115_spill] sm:$0xff] %v15463_v42  ;;  %v5560_v40 = vadd.f32 %v5559_v28, %v5480_v26  ;;  %v5313_v21 = vmul.f32 %v15461_v20, %v15463_v42  ;;  %v11983_v23 = vpop.f32.mrb[139].mxu0  ;;  %12532 = vmatprep.subr.bf16.mxu1 %v18744_v57  ;;  %v12533_v42 = vpack.c.bf16 %v8210_v35, %v8209_v54  ;;  %v8214_v35 = vld [vmem:[#allocation9 + $0xa8] sm:$0xff] }
 0x772   :  { %v5393_v34 = vadd.f32 %v5392_v1, %v5313_v21  ;;  %v5481_v60 = vmul.f32 %v5313_v21, %v5313_v21  ;;  %v15475_v1 = vpop.permute.xlu1 %5196 }
 0x773   :  { %v15470_v36 = vpop.f32.mrb[140].mxu0  ;;  %18877 = vst [vmem:[#allocation118_spill] sm:$0xff] %v15475_v1  ;;  %12534 = vmatpush1.bf16.msra.mxu1 %v12533_v42  ;;  %v8213_v42 = vld [vmem:[#allocation9 + $0xa0] sm:$0xff] }
 0x774   :  { %18876 = vst [vmem:[#allocation117_spill] sm:$0xff] %v15470_v36  ;;  %v5561_v49 = vadd.f32 %v5560_v40, %v5481_v60  ;;  %v5314_v26 = vmul.f32 %v15468_v63, %v15470_v36  ;;  %v11986_v28 = vpop.f32.mrb[141].mxu0  ;;  %12535 = vmatprep.subr.bf16.mxu1 %v18744_v57  ;;  %v12536_v36 = vpack.c.bf16 %v8212_v5, %v8211_v55  ;;  %v8216_v5 = vld [vmem:[#allocation9 + $0xb8] sm:$0xff] }
 0x776   :  { %v5394_v23 = vadd.f32 %v5393_v34, %v5314_v26  ;;  %v5482_v20 = vmul.f32 %v5314_v26, %v5314_v26  ;;  %v15482_v34 = vpop.permute.xlu0 %5201 }
 0x777   :  { %v15477_v21 = vpop.f32.mrb[142].mxu0  ;;  %18879 = vst [vmem:[#allocation120_spill] sm:$0xff] %v15482_v34  ;;  %12537 = vmatpush1.bf16.msra.mxu1 %v12536_v36  ;;  %v8215_v36 = vld [vmem:[#allocation9 + $0xb0] sm:$0xff] }
 0x778   :  { %18878 = vst [vmem:[#allocation119_spill] sm:$0xff] %v15477_v21  ;;  %v5562_v37 = vadd.f32 %v5561_v49, %v5482_v20  ;;  %v5315_v60 = vmul.f32 %v15475_v1, %v15477_v21  ;;  %v11989_v40 = vpop.f32.mrb[143].mxu0  ;;  %12538 = vmatprep.subr.bf16.mxu1 %v18744_v57  ;;  %v12539_v21 = vpack.c.bf16 %v8214_v35, %v8213_v42  ;;  %v8218_v35 = vld [vmem:[#allocation9 + $0xc8] sm:$0xff] }
 0x77a   :  { %v5395_v28 = vadd.f32 %v5394_v23, %v5315_v60  ;;  %v5483_v63 = vmul.f32 %v5315_v60, %v5315_v60  ;;  %v15489_v23 = vpop.permute.xlu1 %5206 }
 0x77b   :  { %v15484_v26 = vpop.f32.mrb[144].mxu0  ;;  %18881 = vst [vmem:[#allocation122_spill] sm:$0xff] %v15489_v23  ;;  %12540 = vmatpush1.bf16.msra.mxu1 %v12539_v21  ;;  %v8217_v21 = vld [vmem:[#allocation9 + $0xc0] sm:$0xff] }
 0x77c   :  { %18880 = vst [vmem:[#allocation121_spill] sm:$0xff] %v15484_v26  ;;  %v5563_v54 = vadd.f32 %v5562_v37, %v5483_v63  ;;  %v5316_v20 = vmul.f32 %v15482_v34, %v15484_v26  ;;  %v11992_v49 = vpop.f32.mrb[145].mxu0  ;;  %12541 = vmatprep.subr.bf16.mxu1 %v18744_v57  ;;  %v12542_v26 = vpack.c.bf16 %v8216_v5, %v8215_v36  ;;  %v8220_v5 = vld [vmem:[#allocation9 + $0xd8] sm:$0xff] }
 0x77e   :  { %v5396_v40 = vadd.f32 %v5395_v28, %v5316_v20  ;;  %v5484_v1 = vmul.f32 %v5316_v20, %v5316_v20  ;;  %v15496_v28 = vpop.permute.xlu0 %5211 }
 0x77f   :  { %v15491_v60 = vpop.f32.mrb[146].mxu0  ;;  %18883 = vst [vmem:[#allocation124_spill] sm:$0xff] %v15496_v28  ;;  %12543 = vmatpush1.bf16.msra.mxu1 %v12542_v26  ;;  %v8219_v26 = vld [vmem:[#allocation9 + $0xd0] sm:$0xff] }
 0x780   :  { %18882 = vst [vmem:[#allocation123_spill] sm:$0xff] %v15491_v60  ;;  %v5564_v55 = vadd.f32 %v5563_v54, %v5484_v1  ;;  %v5317_v63 = vmul.f32 %v15489_v23, %v15491_v60  ;;  %v11995_v37 = vpop.f32.mrb[147].mxu0  ;;  %12544 = vmatprep.subr.bf16.mxu1 %v18744_v57  ;;  %v12545_v60 = vpack.c.bf16 %v8218_v35, %v8217_v21  ;;  %v8222_v35 = vld [vmem:[#allocation9 + $0xe8] sm:$0xff] }
 0x782   :  { %v5397_v49 = vadd.f32 %v5396_v40, %v5317_v63  ;;  %v5485_v34 = vmul.f32 %v5317_v63, %v5317_v63  ;;  %v15503_v40 = vpop.permute.xlu1 %5216 }
 0x783   :  { %v15498_v20 = vpop.f32.mrb[148].mxu0  ;;  %18885 = vst [vmem:[#allocation126_spill] sm:$0xff] %v15503_v40  ;;  %12546 = vmatpush1.bf16.msra.mxu1 %v12545_v60  ;;  %v8221_v60 = vld [vmem:[#allocation9 + $0xe0] sm:$0xff] }
 0x784   :  { %18884 = vst [vmem:[#allocation125_spill] sm:$0xff] %v15498_v20  ;;  %v5565_v42 = vadd.f32 %v5564_v55, %v5485_v34  ;;  %v5318_v1 = vmul.f32 %v15496_v28, %v15498_v20  ;;  %v11998_v54 = vpop.f32.mrb[149].mxu0  ;;  %12547 = vmatprep.subr.bf16.mxu1 %v18744_v57  ;;  %v12548_v20 = vpack.c.bf16 %v8220_v5, %v8219_v26  ;;  %v8224_v5 = vld [vmem:[#allocation9 + $0xf8] sm:$0xff] }
 0x786   :  { %v5398_v37 = vadd.f32 %v5397_v49, %v5318_v1  ;;  %v5486_v23 = vmul.f32 %v5318_v1, %v5318_v1  ;;  %v15510_v49 = vpop.permute.xlu0 %5221 }
 0x787   :  { %v15505_v63 = vpop.f32.mrb[150].mxu0  ;;  %18887 = vst [vmem:[#allocation128_spill] sm:$0xff] %v15510_v49  ;;  %12549 = vmatpush1.bf16.msra.mxu1 %v12548_v20  ;;  %v8223_v20 = vld [vmem:[#allocation9 + $0xf0] sm:$0xff] }
 0x788   :  { %18886 = vst [vmem:[#allocation127_spill] sm:$0xff] %v15505_v63  ;;  %v5566_v36 = vadd.f32 %v5565_v42, %v5486_v23  ;;  %v5319_v34 = vmul.f32 %v15503_v40, %v15505_v63  ;;  %v12001_v55 = vpop.f32.mrb[151].mxu0  ;;  %12550 = vmatprep.subr.bf16.mxu1 %v18744_v57  ;;  %v12551_v63 = vpack.c.bf16 %v8222_v35, %v8221_v60  ;;  %v6168_v35 = vld [vmem:[#allocation3 + $0x6] sm:$0xff] }
 0x789   :  { %8401 = vmatprep.mubr.f32.mxu1 %v6168_v35 }
 0x78a   :  { %v5399_v54 = vadd.f32 %v5398_v37, %v5319_v34  ;;  %v5487_v28 = vmul.f32 %v5319_v34, %v5319_v34  ;;  %v15517_v37 = vpop.permute.xlu1 %5226 }
 0x78b   :  { %v15512_v1 = vpop.f32.mrb[152].mxu0  ;;  %18889 = vst [vmem:[#allocation130_spill] sm:$0xff] %v15517_v37  ;;  %12552 = vmatpush1.bf16.msra.mxu1 %v12551_v63 }
 0x78c   :  { %18888 = vst [vmem:[#allocation129_spill] sm:$0xff] %v15512_v1  ;;  %v5567_v21 = vadd.f32 %v5566_v36, %v5487_v28  ;;  %v5320_v23 = vmul.f32 %v15510_v49, %v15512_v1  ;;  %v12004_v42 = vpop.f32.mrb[153].mxu0  ;;  %12553 = vmatprep.subr.bf16.mxu1 %v18744_v57  ;;  %v12554_v1 = vpack.c.bf16 %v8224_v5, %v8223_v20 }
 0x78e   :  { %v5400_v55 = vadd.f32 %v5399_v54, %v5320_v23  ;;  %v5488_v40 = vmul.f32 %v5320_v23, %v5320_v23  ;;  %v15524_v54 = vpop.permute.xlu0 %5231  ;;  %v15531_v20 = vpop.permute.xlu1 %5236 }
 0x78f   :  { %v15519_v34 = vpop.f32.mrb[154].mxu0  ;;  %18891 = vst [vmem:[#allocation132_spill] sm:$0xff] %v15524_v54  ;;  %12555 = vmatpush1.bf16.msra.mxu1 %v12554_v1  ;;  %18893 = vst [vmem:[#allocation134_spill] sm:$0xff] %v15531_v20 }
 0x790   :  { %18890 = vst [vmem:[#allocation131_spill] sm:$0xff] %v15519_v34  ;;  %v5568_v26 = vadd.f32 %v5567_v21, %v5488_v40  ;;  %v5321_v28 = vmul.f32 %v15517_v37, %v15519_v34  ;;  %v12007_v36 = vpop.f32.mrb[155].mxu0  ;;  %12556 = vmatprep.subr.bf16.mxu1 %v18744_v57  ;;  %v6006_v37 = vld [vmem:[#allocation3 + $0x5] sm:$0xff] }
 0x792   :  { %v5401_v42 = vadd.f32 %v5400_v55, %v5321_v28  ;;  %v5489_v49 = vmul.f32 %v5321_v28, %v5321_v28  ;;  %v8225_v55 = vld [vmem:[#allocation9 + $0x100] sm:$0xff]  ;;  %v8226_v28 = vld [vmem:[#allocation9 + $0x108] sm:$0xff]  ;;  %8402 = vmatmul.mubr.f32.vlgmr.msra.gmra.mrb[0].mxu1 %v6006_v37  ;;  %v15538_v6 = vpop.permute.xlu0 %5241 }
 0x793   :  { %v15526_v23 = vpop.f32.mrb[156].mxu0  ;;  %18895 = vst [vmem:[#allocation136_spill] sm:$0xff] %v15538_v6 }
 0x794   :  { %18892 = vst [vmem:[#allocation133_spill] sm:$0xff] %v15526_v23  ;;  %v5569_v60 = vadd.f32 %v5568_v26, %v5489_v49  ;;  %v5322_v40 = vmul.f32 %v15524_v54, %v15526_v23  ;;  %v12010_v21 = vpop.f32.mrb[157].mxu0  ;;  %v12557_v49 = vpack.c.bf16 %v8226_v28, %v8225_v55  ;;  %v6169_v26 = vld [vmem:[#allocation3 + $0xe] sm:$0xff] }
 0x795   :  { %8406 = vmatprep.mubr.f32.mxu1 %v6169_v26  ;;  %v6007_v54 = vld [vmem:[#allocation3 + $0xd] sm:$0xff] }
 0x796   :  { %v5402_v63 = vadd.f32 %v5401_v42, %v5322_v40  ;;  %v5490_v36 = vmul.f32 %v5322_v40, %v5322_v40  ;;  %v8227_v42 = vld [vmem:[#allocation9 + $0x110] sm:$0xff]  ;;  %v8228_v40 = vld [vmem:[#allocation9 + $0x118] sm:$0xff]  ;;  %12558 = vmatpush1.bf16.msra.mxu1 %v12557_v49 }
 0x797   :  { %v15533_v5 = vpop.f32.mrb[158].mxu0  ;;  %v12560_v35 = vpack.c.bf16 %v8228_v40, %v8227_v42  ;;  %12559 = vmatprep.subr.bf16.mxu1 %v18744_v57  ;;  %8407 = vmatmul.mubr.f32.gmra.mrb[2].mxu1 %v6007_v54 }
 0x798   :  { %18894 = vst [vmem:[#allocation135_spill] sm:$0xff] %v15533_v5  ;;  %v5570_v34 = vadd.f32 %v5569_v60, %v5490_v36  ;;  %v5323_v1 = vmul.f32 %v15531_v20, %v15533_v5  ;;  %v12013_v21 = vpop.f32.mrb[159].mxu0 }
 0x79a   :  { %v5403_v23 = vadd.f32 %v5402_v63, %v5323_v1  ;;  %v5491_v7 = vmul.f32 %v5323_v1, %v5323_v1  ;;  %12561 = vmatpush1.bf16.msra.mxu1 %v12560_v35  ;;  %v8230_v35 = vld [vmem:[#allocation9 + $0x128] sm:$0xff] }
 0x79b   :  { %v4835_v37 = vpop.f32.mrb[160].mxu0  ;;  %12562 = vmatprep.subr.bf16.mxu1 %v18744_v57 }
 0x79c   :  { %v5571_v55 = vadd.f32 %v5570_v34, %v5491_v7  ;;  %v5324_v60 = vmul.f32 %v15538_v6, %v4835_v37  ;;  %v12016_v36 = vpop.f32.mrb[161].mxu0 }
 0x79d   :  { %v8229_v36 = vld [vmem:[#allocation9 + $0x120] sm:$0xff] }
 0x79e   :  { %v5404_v28 = vadd.f32 %v5403_v23, %v5324_v60  ;;  %v5492_v26 = vmul.f32 %v5324_v60, %v5324_v60  ;;  %v12563_v23 = vpack.c.bf16 %v8230_v35, %v8229_v36 }
 0x7a0   :  { %v5405_v21 = vrot.slane %v5404_v28, 4  ;;  %v5572_v49 = vadd.f32 %v5571_v55, %v5492_v26  ;;  %12564 = vmatpush1.bf16.msra.mxu1 %v12563_v23 }
 0x7a1   :  { %12565 = vmatprep.subr.bf16.mxu1 %v18744_v57 }
 0x7a2   :  { %v5406_v42 = vadd.f32 %v5405_v21, %v5404_v28  ;;  %v5573_v63 = vrot.slane %v5572_v49, 4  ;;  %v5590_v28 = vlaneseq  ;;  %v8231_v21 = vld [vmem:[#allocation9 + $0x130] sm:$0xff] }
 0x7a4   :  { %v5407_v1 = vrot.slane %v5406_v42, 2  ;;  %v5574_v40 = vadd.f32 %v5573_v63, %v5572_v49  ;;  %v5591_v26 = vshrl.u32 %v5590_v28, 7  ;;  %v18898_v28 = vld [vmem:[#allocation55_spill] sm:$0xff] }
 0x7a6   :  { %v5408_v20 = vadd.f32 %v5407_v1, %v5406_v42  ;;  %v5575_v5 = vrot.slane %v5574_v40, 2 }
 0x7a8   :  { %v5409_v30 = vrot.slane %v5408_v20, 1  ;;  %v5576_v59 = vadd.f32 %v5575_v5, %v5574_v40 }
 0x7aa   :  { %v5410_v54 = vadd.f32 %v5409_v30, %v5408_v20  ;;  %v5577_v7 = vrot.slane %v5576_v59, 1  ;;  %v5582_v30 = vld [vmem:[%s18365_s3] sm:$0x1]  ;;  %v15546_v20 = vsub.s32 0, %v5591_v26  ;;  %v18899_v26 = vld [vmem:[#allocation57_spill] sm:$0xff] }
 0x7ac   :  { %v5411_v34 = vmul.f32 0.001953125, %v5410_v54  ;;  %v5578_v24 = vadd.f32 %v5577_v7, %v5576_v59  ;;  %18896 = vst [vmem:[#allocation137_spill] sm:$0xff] %v15546_v20 }
 0x7ae   :  { %v5579_v60 = vmul.f32 0.001953125, %v5578_v24  ;;  %v5580_v38 = vmul.f32 %v5411_v34, %v5411_v34  ;;  %v5586_v24 = vld [vmem:[%s18366_s4] sm:$0x1] }
 0x7b0   :  { %v5581_v61 = vsub.f32 %v5579_v60, %v5580_v38  ;;  %v8232_v38 = vld [vmem:[#allocation9 + $0x138] sm:$0xff] }
 0x7b1   :  { %v12566_v42 = vpack.c.bf16 %v8232_v38, %v8231_v21  ;;  %v18903_v21 = vld [vmem:[#allocation65_spill] sm:$0xff] }
 0x7b2   :  { %v5583_v55 = vadd.f32 1e-05, %v5581_v61 }
 0x7b3   :  { %12567 = vmatpush1.bf16.msra.mxu1 %v12566_v42 }
 0x7b4   :  { %14032 = vrsqrt.f32 %v5583_v55  ;;  %12568 = vmatprep.subr.bf16.mxu1 %v18744_v57  ;;  %v18897_v55 = vld [vmem:[#allocation53_spill] sm:$0xff] }
 0x7b5   :  { %v18920_v57 = vld [vmem:[#allocation89_spill] sm:$0xff] }
 0x7be   :  { %v14033_v59 = vpop.eup %14032 }
 0x7bf   :  { %v5585_v5 = vmul.f32 %v14033_v59, %v5582_v30  ;;  %v18900_v30 = vld [vmem:[#allocation59_spill] sm:$0xff]  ;;  %v18901_v59 = vld [vmem:[#allocation61_spill] sm:$0xff] }
 0x7c1   :  { %v5587_v49 = vmul.f32 %v5585_v5, %v5411_v34  ;;  %v15552_v61 = vrot.slane %v5585_v5, %v15546_v20  ;;  %v18902_v5 = vld [vmem:[#allocation63_spill] sm:$0xff] }
 0x7c3   :  { %v5588_v63 = vsub.f32 %v5586_v24, %v5587_v49  ;;  %v5675_v1 = vmul.f32 %v15552_v61, %v4835_v37  ;;  %v15557_v40 = vmul.f32 %v15552_v61, %v14987_v50  ;;  %v15561_v54 = vmul.f32 %v15552_v61, %v14995_v58  ;;  %v18904_v49 = vld [vmem:[#allocation67_spill] sm:$0xff] }
 0x7c4   :  { %v15565_v7 = vmul.f32 %v15552_v61, %v15003_v8  ;;  %v15569_v34 = vmul.f32 %v15552_v61, %v15011_v0  ;;  %v15573_v37 = vmul.f32 %v15552_v61, %v15019_v46  ;;  %v15577_v50 = vmul.f32 %v15552_v61, %v15027_v9 }
 0x7c5   :  { %v15581_v58 = vrot.slane %v5588_v63, %v15546_v20  ;;  %v15585_v8 = vmul.f32 %v15552_v61, %v15035_v43  ;;  %v15589_v0 = vmul.f32 %v15552_v61, %v15043_v31  ;;  %v15593_v46 = vmul.f32 %v15552_v61, %v15051_v39  ;;  %v18905_v63 = vld [vmem:[#allocation69_spill] sm:$0xff] }
 0x7c6   :  { %v15597_v9 = vmul.f32 %v15552_v61, %v15061_v11  ;;  %v15601_v36 = vmul.f32 %v15552_v61, %v15069_v33  ;;  %v15605_v43 = vmul.f32 %v15552_v61, %v15077_v62  ;;  %v15609_v31 = vmul.f32 %v15552_v61, %v15085_v29  ;;  %v18916_v20 = vld [vmem:[#allocation85_spill] sm:$0xff] }
 0x7c7   :  { %v5762_v35 = vadd.f32 %v15581_v58, %v5675_v1  ;;  %v15614_v39 = vmul.f32 %v15552_v61, %v15093_v32  ;;  %v15618_v11 = vmul.f32 %v15552_v61, %v15101_v2  ;;  %v15622_v33 = vmul.f32 %v15552_v61, %v15109_v25 }
 0x7c8   :  { %v15626_v62 = vmul.f32 %v15552_v61, %v15117_v3  ;;  %v15630_v29 = vmul.f32 %v15552_v61, %v15125_v56  ;;  %v15634_v32 = vmul.f32 %v15552_v61, %v15133_v52  ;;  %v15638_v2 = vmul.f32 %v15552_v61, %v15141_v41 }
 0x7c9   :  { %v5843_v23 = vmax.f32 %v5762_v35, 0.0  ;;  %v15642_v25 = vmul.f32 %v15552_v61, %v15149_v27  ;;  %v15646_v3 = vmul.f32 %v15552_v61, %v15157_v14  ;;  %v15650_v56 = vmul.f32 %v15552_v61, %v15165_v44  ;;  %v18906_v35 = vld [vmem:[#allocation71_spill] sm:$0xff] }
 0x7ca   :  { %v15654_v52 = vmul.f32 %v15552_v61, %v15173_v16  ;;  %v15658_v41 = vmul.f32 %v15552_v61, %v15181_v15  ;;  %v15662_v27 = vmul.f32 %v15552_v61, %v15189_v10  ;;  %v15666_v14 = vmul.f32 %v15552_v61, %v15197_v13 }
 0x7cb   :  { %v5924_v60 = vmul.f32 %v5843_v23, %v15538_v6  ;;  %v15671_v44 = vmul.f32 %v15552_v61, %v15205_v48  ;;  %v15675_v16 = vmul.f32 %v15552_v61, %v15211_v4  ;;  %v15679_v15 = vmul.f32 %v15552_v61, %v15217_v18  ;;  %v18918_v6 = vld [vmem:[#allocation87_spill] sm:$0xff] }
 0x7cc   :  { %v15683_v10 = vmul.f32 %v15552_v61, %v15223_v17  ;;  %v15687_v13 = vmul.f32 %v15552_v61, %v15229_v47  ;;  %v15691_v48 = vmul.f32 %v15552_v61, %v15235_v45  ;;  %v15695_v4 = vmul.f32 %v15552_v61, %v15241_v51 }
 0x7cd   :  { %6005 = vst [vmem:[#allocation3 + $0x298] sm:$0xff] %v5924_v60  ;;  %v15699_v18 = vmul.f32 %v15552_v61, %v15247_v53  ;;  %v15703_v17 = vmul.f32 %v15552_v61, %v15253_v12  ;;  %v15707_v47 = vmul.f32 %v15552_v61, %v15259_v22  ;;  %v15711_v45 = vmul.f32 %v15552_v61, %v15265_v19  ;;  %v18907_v60 = vld [vmem:[#allocation73_spill] sm:$0xff] }
 0x7ce   :  { %v15715_v51 = vmul.f32 %v15552_v61, %v18897_v55  ;;  %v15719_v53 = vmul.f32 %v15552_v61, %v18898_v28  ;;  %v15723_v12 = vmul.f32 %v15552_v61, %v18899_v26  ;;  %v15727_v22 = vmul.f32 %v15552_v61, %v18900_v30  ;;  %v18908_v28 = vld [vmem:[#allocation75_spill] sm:$0xff]  ;;  %v18909_v30 = vld [vmem:[#allocation77_spill] sm:$0xff] }
 0x7cf   :  { %v15731_v19 = vmul.f32 %v15552_v61, %v18901_v59  ;;  %v15735_v24 = vmul.f32 %v15552_v61, %v18902_v5  ;;  %v15739_v38 = vmul.f32 %v15552_v61, %v18903_v21  ;;  %v15743_v42 = vmul.f32 %v15552_v61, %v18904_v49  ;;  %v18910_v5 = vld [vmem:[#allocation79_spill] sm:$0xff]  ;;  %v18912_v49 = vld [vmem:[#allocation81_spill] sm:$0xff] }
 0x7d0   :  { %v15747_v1 = vmul.f32 %v15552_v61, %v18905_v63  ;;  %v15751_v23 = vmul.f32 %v15552_v61, %v18906_v35  ;;  %v15755_v55 = vmul.f32 %v15552_v61, %v18907_v60  ;;  %v15759_v26 = vmul.f32 %v15552_v61, %v18908_v28  ;;  %v18914_v35 = vld [vmem:[#allocation83_spill] sm:$0xff] }
 0x7d1   :  { %v15763_v59 = vmul.f32 %v15552_v61, %v18909_v30  ;;  %v15767_v21 = vmul.f32 %v15552_v61, %v18910_v5  ;;  %v15771_v63 = vmul.f32 %v15552_v61, %v18912_v49  ;;  %v15775_v60 = vmul.f32 %v15552_v61, %v18914_v35 }
 0x7d2   :  { %v15779_v28 = vmul.f32 %v15552_v61, %v18916_v20  ;;  %v15783_v30 = vmul.f32 %v15552_v61, %v18918_v6  ;;  %v15787_v5 = vmul.f32 %v15552_v61, %v18920_v57 }
 0x7d3   :  { %18911 = vst [vmem:[#allocation53_spill] sm:$0xff] %v15767_v21  ;;  %18913 = vst [vmem:[#allocation55_spill] sm:$0xff] %v15771_v63  ;;  %v18922_v21 = vld [vmem:[#allocation91_spill] sm:$0xff]  ;;  %v18924_v63 = vld [vmem:[#allocation93_spill] sm:$0xff] }
 0x7d4   :  { %18915 = vst [vmem:[#allocation57_spill] sm:$0xff] %v15775_v60  ;;  %18917 = vst [vmem:[#allocation59_spill] sm:$0xff] %v15779_v28  ;;  %v15791_v49 = vmul.f32 %v15552_v61, %v18922_v21  ;;  %v15795_v35 = vmul.f32 %v15552_v61, %v18924_v63  ;;  %v18926_v60 = vld [vmem:[#allocation95_spill] sm:$0xff]  ;;  %v18928_v28 = vld [vmem:[#allocation97_spill] sm:$0xff] }
 0x7d5   :  { %18919 = vst [vmem:[#allocation61_spill] sm:$0xff] %v15783_v30  ;;  %18921 = vst [vmem:[#allocation63_spill] sm:$0xff] %v15787_v5  ;;  %v15799_v20 = vmul.f32 %v15552_v61, %v18926_v60  ;;  %v15803_v6 = vmul.f32 %v15552_v61, %v18928_v28  ;;  %v18930_v30 = vld [vmem:[#allocation99_spill] sm:$0xff]  ;;  %v18932_v5 = vld [vmem:[#allocation101_spill] sm:$0xff] }
 0x7d6   :  { %18923 = vst [vmem:[#allocation65_spill] sm:$0xff] %v15791_v49  ;;  %18925 = vst [vmem:[#allocation67_spill] sm:$0xff] %v15795_v35  ;;  %v15807_v57 = vmul.f32 %v15552_v61, %v18930_v30  ;;  %v15811_v21 = vmul.f32 %v15552_v61, %v18932_v5  ;;  %v18934_v49 = vld [vmem:[#allocation103_spill] sm:$0xff]  ;;  %v18936_v35 = vld [vmem:[#allocation105_spill] sm:$0xff] }
 0x7d7   :  { %18927 = vst [vmem:[#allocation69_spill] sm:$0xff] %v15799_v20  ;;  %18929 = vst [vmem:[#allocation71_spill] sm:$0xff] %v15803_v6  ;;  %v15815_v63 = vmul.f32 %v15552_v61, %v18934_v49  ;;  %v15819_v60 = vmul.f32 %v15552_v61, %v18936_v35  ;;  %v18938_v20 = vld [vmem:[#allocation107_spill] sm:$0xff]  ;;  %v18940_v6 = vld [vmem:[#allocation109_spill] sm:$0xff] }
 0x7d8   :  { %18931 = vst [vmem:[#allocation73_spill] sm:$0xff] %v15807_v57  ;;  %18933 = vst [vmem:[#allocation75_spill] sm:$0xff] %v15811_v21  ;;  %v15823_v28 = vmul.f32 %v15552_v61, %v18938_v20  ;;  %v15827_v30 = vmul.f32 %v15552_v61, %v18940_v6  ;;  %v18942_v57 = vld [vmem:[#allocation111_spill] sm:$0xff]  ;;  %v18944_v21 = vld [vmem:[#allocation113_spill] sm:$0xff] }
 0x7d9   :  { %18935 = vst [vmem:[#allocation77_spill] sm:$0xff] %v15815_v63  ;;  %18937 = vst [vmem:[#allocation79_spill] sm:$0xff] %v15819_v60  ;;  %v15831_v5 = vmul.f32 %v15552_v61, %v18942_v57  ;;  %v15835_v49 = vmul.f32 %v15552_v61, %v18944_v21  ;;  %v18946_v63 = vld [vmem:[#allocation115_spill] sm:$0xff]  ;;  %v18948_v60 = vld [vmem:[#allocation117_spill] sm:$0xff] }
 0x7da   :  { %18939 = vst [vmem:[#allocation81_spill] sm:$0xff] %v15823_v28  ;;  %18941 = vst [vmem:[#allocation83_spill] sm:$0xff] %v15827_v30  ;;  %v15839_v35 = vmul.f32 %v15552_v61, %v18946_v63  ;;  %v15843_v20 = vmul.f32 %v15552_v61, %v18948_v60  ;;  %v18950_v28 = vld [vmem:[#allocation119_spill] sm:$0xff]  ;;  %v18952_v30 = vld [vmem:[#allocation121_spill] sm:$0xff] }
 0x7db   :  { %18943 = vst [vmem:[#allocation85_spill] sm:$0xff] %v15831_v5  ;;  %18945 = vst [vmem:[#allocation87_spill] sm:$0xff] %v15835_v49  ;;  %v15847_v6 = vmul.f32 %v15552_v61, %v18950_v28  ;;  %v15851_v57 = vmul.f32 %v15552_v61, %v18952_v30  ;;  %v18954_v5 = vld [vmem:[#allocation123_spill] sm:$0xff]  ;;  %v18956_v49 = vld [vmem:[#allocation125_spill] sm:$0xff] }
 0x7dc   :  { %18947 = vst [vmem:[#allocation89_spill] sm:$0xff] %v15839_v35  ;;  %18949 = vst [vmem:[#allocation91_spill] sm:$0xff] %v15843_v20  ;;  %v15855_v21 = vmul.f32 %v15552_v61, %v18954_v5  ;;  %v15859_v63 = vmul.f32 %v15552_v61, %v18956_v49  ;;  %v18957_v35 = vld [vmem:[#allocation127_spill] sm:$0xff]  ;;  %v18958_v20 = vld [vmem:[#allocation129_spill] sm:$0xff] }
 0x7dd   :  { %18951 = vst [vmem:[#allocation93_spill] sm:$0xff] %v15847_v6  ;;  %18953 = vst [vmem:[#allocation95_spill] sm:$0xff] %v15851_v57  ;;  %v15863_v60 = vmul.f32 %v15552_v61, %v18957_v35  ;;  %v15867_v28 = vmul.f32 %v15552_v61, %v18958_v20  ;;  %v18959_v6 = vld [vmem:[#allocation131_spill] sm:$0xff]  ;;  %v18960_v57 = vld [vmem:[#allocation133_spill] sm:$0xff]  ;;  %v15883_v35 = vadd.f32 %v15581_v58, %v15557_v40 }
 0x7de   :  { %18955 = vst [vmem:[#allocation97_spill] sm:$0xff] %v15855_v21  ;;  %v15871_v30 = vmul.f32 %v15552_v61, %v18959_v6  ;;  %v15875_v5 = vmul.f32 %v15552_v61, %v18960_v57  ;;  %v18961_v21 = vld [vmem:[#allocation135_spill] sm:$0xff]  ;;  %v15887_v20 = vadd.f32 %v15581_v58, %v15561_v54  ;;  %v15891_v6 = vadd.f32 %v15581_v58, %v15565_v7 }
 0x7df   :  { %v15879_v49 = vmul.f32 %v15552_v61, %v18961_v21  ;;  %v15895_v57 = vadd.f32 %v15581_v58, %v15569_v34  ;;  %v15899_v61 = vadd.f32 %v15581_v58, %v15573_v37  ;;  %v15903_v40 = vadd.f32 %v15581_v58, %v15577_v50  ;;  %v18977_v21 = vld [vmem:[#allocation53_spill] sm:$0xff] }
 0x7e0   :  { %v15907_v54 = vadd.f32 %v15581_v58, %v15585_v8  ;;  %v15911_v7 = vadd.f32 %v15581_v58, %v15589_v0  ;;  %v15915_v34 = vadd.f32 %v15581_v58, %v15593_v46  ;;  %v15919_v37 = vadd.f32 %v15581_v58, %v15597_v9 }
 0x7e1   :  { %v15923_v50 = vadd.f32 %v15581_v58, %v15601_v36  ;;  %v15927_v8 = vadd.f32 %v15581_v58, %v15605_v43  ;;  %v15931_v0 = vadd.f32 %v15581_v58, %v15609_v31  ;;  %v15935_v46 = vadd.f32 %v15581_v58, %v15614_v39 }
 0x7e2   :  { %v15939_v9 = vadd.f32 %v15581_v58, %v15618_v11  ;;  %v15943_v36 = vadd.f32 %v15581_v58, %v15622_v33  ;;  %v15947_v43 = vadd.f32 %v15581_v58, %v15626_v62  ;;  %v15951_v31 = vadd.f32 %v15581_v58, %v15630_v29 }
 0x7e3   :  { %v15955_v39 = vadd.f32 %v15581_v58, %v15634_v32  ;;  %v15959_v11 = vadd.f32 %v15581_v58, %v15638_v2  ;;  %v15963_v33 = vadd.f32 %v15581_v58, %v15642_v25  ;;  %v15967_v62 = vadd.f32 %v15581_v58, %v15646_v3 }
 0x7e4   :  { %v15971_v29 = vadd.f32 %v15581_v58, %v15650_v56  ;;  %v15975_v32 = vadd.f32 %v15581_v58, %v15654_v52  ;;  %v15979_v2 = vadd.f32 %v15581_v58, %v15658_v41  ;;  %v15983_v25 = vadd.f32 %v15581_v58, %v15662_v27 }
 0x7e5   :  { %v15987_v3 = vadd.f32 %v15581_v58, %v15666_v14  ;;  %v15991_v56 = vadd.f32 %v15581_v58, %v15671_v44  ;;  %v15995_v52 = vadd.f32 %v15581_v58, %v15675_v16  ;;  %v15999_v41 = vadd.f32 %v15581_v58, %v15679_v15 }
 0x7e6   :  { %v16003_v27 = vadd.f32 %v15581_v58, %v15683_v10  ;;  %v16007_v14 = vadd.f32 %v15581_v58, %v15687_v13  ;;  %v16011_v44 = vadd.f32 %v15581_v58, %v15691_v48  ;;  %v16015_v16 = vadd.f32 %v15581_v58, %v15695_v4 }
 0x7e7   :  { %v16019_v15 = vadd.f32 %v15581_v58, %v15699_v18  ;;  %v16023_v10 = vadd.f32 %v15581_v58, %v15703_v17  ;;  %v16027_v13 = vadd.f32 %v15581_v58, %v15707_v47  ;;  %v16031_v48 = vadd.f32 %v15581_v58, %v15711_v45 }
 0x7e8   :  { %v16035_v4 = vadd.f32 %v15581_v58, %v15715_v51  ;;  %v16039_v18 = vadd.f32 %v15581_v58, %v15719_v53  ;;  %v16043_v17 = vadd.f32 %v15581_v58, %v15723_v12  ;;  %v16047_v47 = vadd.f32 %v15581_v58, %v15727_v22 }
 0x7e9   :  { %18962 = vst [vmem:[#allocation99_spill] sm:$0xff] %v16027_v13  ;;  %18963 = vst [vmem:[#allocation101_spill] sm:$0xff] %v16031_v48  ;;  %v16051_v45 = vadd.f32 %v15581_v58, %v15731_v19  ;;  %v16055_v51 = vadd.f32 %v15581_v58, %v15735_v24  ;;  %v16059_v53 = vadd.f32 %v15581_v58, %v15739_v38 }
 0x7ea   :  { %18964 = vst [vmem:[#allocation103_spill] sm:$0xff] %v16035_v4  ;;  %18965 = vst [vmem:[#allocation105_spill] sm:$0xff] %v16039_v18  ;;  %v16063_v12 = vadd.f32 %v15581_v58, %v15743_v42  ;;  %v16067_v22 = vadd.f32 %v15581_v58, %v15747_v1  ;;  %v16071_v19 = vadd.f32 %v15581_v58, %v15751_v23 }
 0x7eb   :  { %18966 = vst [vmem:[#allocation107_spill] sm:$0xff] %v16043_v17  ;;  %18967 = vst [vmem:[#allocation109_spill] sm:$0xff] %v16047_v47  ;;  %v16075_v24 = vadd.f32 %v15581_v58, %v15755_v55  ;;  %v16079_v38 = vadd.f32 %v15581_v58, %v15759_v26  ;;  %v16083_v42 = vadd.f32 %v15581_v58, %v15763_v59 }
 0x7ec   :  { %18968 = vst [vmem:[#allocation111_spill] sm:$0xff] %v16051_v45  ;;  %18969 = vst [vmem:[#allocation113_spill] sm:$0xff] %v16055_v51  ;;  %v16087_v1 = vadd.f32 %v15581_v58, %v18977_v21  ;;  %v19059_v45 = vld [vmem:[#allocation17_spill] sm:$0xff] }
 0x7ed   :  { %18970 = vst [vmem:[#allocation115_spill] sm:$0xff] %v16059_v53  ;;  %18971 = vst [vmem:[#allocation117_spill] sm:$0xff] %v16063_v12  ;;  %v19061_v53 = vld [vmem:[#allocation18_spill] sm:$0xff] }
 0x7ee   :  { %18972 = vst [vmem:[#allocation119_spill] sm:$0xff] %v16067_v22  ;;  %18973 = vst [vmem:[#allocation121_spill] sm:$0xff] %v16071_v19  ;;  %v18979_v22 = vld [vmem:[#allocation55_spill] sm:$0xff]  ;;  %v18981_v19 = vld [vmem:[#allocation57_spill] sm:$0xff] }
 0x7ef   :  { %18974 = vst [vmem:[#allocation123_spill] sm:$0xff] %v16075_v24  ;;  %18975 = vst [vmem:[#allocation125_spill] sm:$0xff] %v16079_v38  ;;  %v16091_v23 = vadd.f32 %v15581_v58, %v18979_v22  ;;  %v16095_v55 = vadd.f32 %v15581_v58, %v18981_v19  ;;  %v18983_v24 = vld [vmem:[#allocation59_spill] sm:$0xff]  ;;  %v18985_v38 = vld [vmem:[#allocation61_spill] sm:$0xff] }
 0x7f0   :  { %18976 = vst [vmem:[#allocation127_spill] sm:$0xff] %v16083_v42  ;;  %18978 = vst [vmem:[#allocation129_spill] sm:$0xff] %v16087_v1  ;;  %v16099_v26 = vadd.f32 %v15581_v58, %v18983_v24  ;;  %v16103_v59 = vadd.f32 %v15581_v58, %v18985_v38  ;;  %v18987_v42 = vld [vmem:[#allocation63_spill] sm:$0xff]  ;;  %v18989_v1 = vld [vmem:[#allocation65_spill] sm:$0xff] }
 0x7f1   :  { %18980 = vst [vmem:[#allocation131_spill] sm:$0xff] %v16091_v23  ;;  %18982 = vst [vmem:[#allocation133_spill] sm:$0xff] %v16095_v55  ;;  %v16107_v21 = vadd.f32 %v15581_v58, %v18987_v42  ;;  %v16111_v22 = vadd.f32 %v15581_v58, %v18989_v1  ;;  %v18991_v23 = vld [vmem:[#allocation67_spill] sm:$0xff]  ;;  %v18993_v55 = vld [vmem:[#allocation69_spill] sm:$0xff] }
 0x7f2   :  { %18984 = vst [vmem:[#allocation135_spill] sm:$0xff] %v16099_v26  ;;  %18986 = vst [vmem:[#allocation53_spill] sm:$0xff] %v16103_v59  ;;  %v16115_v19 = vadd.f32 %v15581_v58, %v18991_v23  ;;  %v16119_v24 = vadd.f32 %v15581_v58, %v18993_v55  ;;  %v18995_v26 = vld [vmem:[#allocation71_spill] sm:$0xff]  ;;  %v18997_v59 = vld [vmem:[#allocation73_spill] sm:$0xff] }
 0x7f3   :  { %18988 = vst [vmem:[#allocation55_spill] sm:$0xff] %v16107_v21  ;;  %18990 = vst [vmem:[#allocation57_spill] sm:$0xff] %v16111_v22  ;;  %v16123_v38 = vadd.f32 %v15581_v58, %v18995_v26  ;;  %v16127_v42 = vadd.f32 %v15581_v58, %v18997_v59  ;;  %v18999_v21 = vld [vmem:[#allocation75_spill] sm:$0xff]  ;;  %v19001_v22 = vld [vmem:[#allocation77_spill] sm:$0xff] }
 0x7f4   :  { %18992 = vst [vmem:[#allocation59_spill] sm:$0xff] %v16115_v19  ;;  %18994 = vst [vmem:[#allocation61_spill] sm:$0xff] %v16119_v24  ;;  %v16131_v1 = vadd.f32 %v15581_v58, %v18999_v21  ;;  %v16135_v23 = vadd.f32 %v15581_v58, %v19001_v22  ;;  %v19003_v19 = vld [vmem:[#allocation79_spill] sm:$0xff]  ;;  %v19005_v24 = vld [vmem:[#allocation81_spill] sm:$0xff] }
 0x7f5   :  { %18996 = vst [vmem:[#allocation63_spill] sm:$0xff] %v16123_v38  ;;  %18998 = vst [vmem:[#allocation65_spill] sm:$0xff] %v16127_v42  ;;  %v16139_v55 = vadd.f32 %v15581_v58, %v19003_v19  ;;  %v16143_v26 = vadd.f32 %v15581_v58, %v19005_v24  ;;  %v19007_v38 = vld [vmem:[#allocation83_spill] sm:$0xff]  ;;  %v19009_v42 = vld [vmem:[#allocation85_spill] sm:$0xff] }
 0x7f6   :  { %19000 = vst [vmem:[#allocation67_spill] sm:$0xff] %v16131_v1  ;;  %19002 = vst [vmem:[#allocation69_spill] sm:$0xff] %v16135_v23  ;;  %v16147_v59 = vadd.f32 %v15581_v58, %v19007_v38  ;;  %v16151_v21 = vadd.f32 %v15581_v58, %v19009_v42  ;;  %v19011_v1 = vld [vmem:[#allocation87_spill] sm:$0xff]  ;;  %v19012_v23 = vld [vmem:[#allocation89_spill] sm:$0xff] }
 0x7f7   :  { %19004 = vst [vmem:[#allocation71_spill] sm:$0xff] %v16139_v55  ;;  %19006 = vst [vmem:[#allocation73_spill] sm:$0xff] %v16143_v26  ;;  %v16155_v22 = vadd.f32 %v15581_v58, %v19011_v1  ;;  %v16159_v19 = vadd.f32 %v15581_v58, %v19012_v23  ;;  %v19014_v55 = vld [vmem:[#allocation91_spill] sm:$0xff]  ;;  %v19015_v26 = vld [vmem:[#allocation93_spill] sm:$0xff]  ;;  %v16179_v23 = vadd.f32 %v15581_v58, %v15859_v63 }
 0x7f8   :  { %19008 = vst [vmem:[#allocation75_spill] sm:$0xff] %v16147_v59  ;;  %19010 = vst [vmem:[#allocation77_spill] sm:$0xff] %v16151_v21  ;;  %v16163_v24 = vadd.f32 %v15581_v58, %v19014_v55  ;;  %v16167_v38 = vadd.f32 %v15581_v58, %v19015_v26  ;;  %v19017_v59 = vld [vmem:[#allocation95_spill] sm:$0xff]  ;;  %v19018_v21 = vld [vmem:[#allocation97_spill] sm:$0xff]  ;;  %v16183_v55 = vadd.f32 %v15581_v58, %v15863_v60 }
 0x7f9   :  { %19013 = vst [vmem:[#allocation79_spill] sm:$0xff] %v16159_v19  ;;  %v16171_v42 = vadd.f32 %v15581_v58, %v19017_v59  ;;  %v16175_v1 = vadd.f32 %v15581_v58, %v19018_v21  ;;  %19020 = vst [vmem:[#allocation85_spill] sm:$0xff] %v16179_v23  ;;  %v16187_v26 = vadd.f32 %v15581_v58, %v15867_v28  ;;  %v19053_v19 = vld [vmem:[#allocation14_spill] sm:$0xff] }
 0x7fa   :  { %19016 = vst [vmem:[#allocation81_spill] sm:$0xff] %v16167_v38  ;;  %19021 = vst [vmem:[#allocation87_spill] sm:$0xff] %v16183_v55  ;;  %v16191_v59 = vadd.f32 %v15581_v58, %v15871_v30  ;;  %v16195_v21 = vadd.f32 %v15581_v58, %v15875_v5  ;;  %v16199_v63 = vadd.f32 %v15581_v58, %v15879_v49  ;;  %v19037_v23 = vld [vmem:[#allocation57_spill] sm:$0xff]  ;;  %v19054_v49 = vmax.f32 %v15883_v35, 0.0  ;;  %v19055_v38 = vld [vmem:[#allocation15_spill] sm:$0xff] }
 0x7fb   :  { %19019 = vst [vmem:[#allocation83_spill] sm:$0xff] %v16175_v1  ;;  %19022 = vst [vmem:[#allocation89_spill] sm:$0xff] %v16187_v26  ;;  %v19038_v13 = vld [vmem:[#allocation59_spill] sm:$0xff]  ;;  %v19039_v48 = vld [vmem:[#allocation61_spill] sm:$0xff]  ;;  %v19050_v51 = vmov %v16187_v26  ;;  %v19056_v55 = vmax.f32 %v15887_v20, 0.0  ;;  %v19058_v26 = vmax.f32 %v15891_v6, 0.0 }
 0x7fc   :  { %19023 = vst [vmem:[#allocation91_spill] sm:$0xff] %v16191_v59  ;;  %19024 = vst [vmem:[#allocation93_spill] sm:$0xff] %v16195_v21  ;;  %v19040_v4 = vld [vmem:[#allocation63_spill] sm:$0xff]  ;;  %v19041_v18 = vld [vmem:[#allocation65_spill] sm:$0xff]  ;;  %v19052_v12 = vmov %v16195_v21  ;;  %v5844_v60 = vmul.f32 %v19054_v49, %v19053_v19  ;;  %v19060_v59 = vmax.f32 %v15895_v57, 0.0  ;;  %v19062_v21 = vmax.f32 %v15899_v61, 0.0 }
 0x7fd   :  { %19025 = vst [vmem:[#allocation95_spill] sm:$0xff] %v16199_v63  ;;  %v19042_v17 = vld [vmem:[#allocation67_spill] sm:$0xff]  ;;  %v5845_v28 = vmul.f32 %v19056_v55, %v19055_v38  ;;  %v19057_v1 = vld [vmem:[#allocation16_spill] sm:$0xff]  ;;  %v19064_v35 = vmax.f32 %v15903_v40, 0.0  ;;  %v19066_v20 = vmax.f32 %v15907_v54, 0.0  ;;  %v19067_v38 = vld [vmem:[#allocation21_spill] sm:$0xff] }
 0x7fe   :  { %v5846_v30 = vmul.f32 %v19058_v26, %v19057_v1  ;;  %v5847_v5 = vmul.f32 %v19060_v59, %v19059_v45  ;;  %v5848_v58 = vmul.f32 %v19062_v21, %v19061_v53  ;;  %v19063_v63 = vld [vmem:[#allocation19_spill] sm:$0xff]  ;;  %v19065_v19 = vld [vmem:[#allocation20_spill] sm:$0xff]  ;;  %v19068_v6 = vmax.f32 %v15911_v7, 0.0  ;;  %v19069_v1 = vld [vmem:[#allocation22_spill] sm:$0xff]  ;;  %5925 = vst [vmem:[#allocation3 + $0x18] sm:$0xff] %v5844_v60 }
 0x7ff   :  { %v5849_v49 = vmul.f32 %v19064_v35, %v19063_v63  ;;  %v5850_v55 = vmul.f32 %v19066_v20, %v19065_v19  ;;  %v19070_v57 = vmax.f32 %v15915_v34, 0.0  ;;  %v19071_v45 = vld [vmem:[#allocation23_spill] sm:$0xff]  ;;  %v19072_v61 = vmax.f32 %v15919_v37, 0.0  ;;  %5926 = vst [vmem:[#allocation3 + $0x20] sm:$0xff] %v5845_v28  ;;  %v19073_v40 = vld [vmem:[#allocation24_spill] sm:$0xff]  ;;  %v19075_v54 = vld [vmem:[#allocation25_spill] sm:$0xff] }
 0x800   :  { %v19048_v47 = vld [vmem:[#allocation85_spill] sm:$0xff]  ;;  %v5851_v26 = vmul.f32 %v19068_v6, %v19067_v38  ;;  %v19074_v35 = vmax.f32 %v15923_v50, 0.0  ;;  %v19076_v20 = vmax.f32 %v15927_v8, 0.0  ;;  %v19077_v7 = vld [vmem:[#allocation26_spill] sm:$0xff]  ;;  %v19078_v6 = vmax.f32 %v15931_v0, 0.0  ;;  %v19079_v34 = vld [vmem:[#allocation27_spill] sm:$0xff] }
 0x801   :  { %v5852_v59 = vmul.f32 %v19070_v57, %v19069_v1  ;;  %v5853_v21 = vmul.f32 %v19072_v61, %v19071_v45  ;;  %v19080_v57 = vmax.f32 %v15935_v46, 0.0  ;;  %5927 = vst [vmem:[#allocation3 + $0x28] sm:$0xff] %v5846_v30  ;;  %5928 = vst [vmem:[#allocation3 + $0x30] sm:$0xff] %v5847_v5  ;;  %v19081_v37 = vld [vmem:[#allocation28_spill] sm:$0xff]  ;;  %v19082_v50 = vmax.f32 %v15939_v9, 0.0  ;;  %v19083_v28 = vld [vmem:[#allocation29_spill] sm:$0xff] }
 0x802   :  { %v5854_v63 = vmul.f32 %v19074_v35, %v19073_v40  ;;  %v5855_v19 = vmul.f32 %v19076_v20, %v19075_v54  ;;  %v5856_v38 = vmul.f32 %v19078_v6, %v19077_v7  ;;  %5929 = vst [vmem:[#allocation3 + $0x38] sm:$0xff] %v5848_v58  ;;  %5930 = vst [vmem:[#allocation3 + $0x40] sm:$0xff] %v5849_v49  ;;  %v19084_v8 = vmax.f32 %v15943_v36, 0.0  ;;  %v19085_v35 = vld [vmem:[#allocation30_spill] sm:$0xff]  ;;  %v19087_v6 = vld [vmem:[#allocation31_spill] sm:$0xff] }
 0x803   :  { %v5857_v1 = vmul.f32 %v19080_v57, %v19079_v34  ;;  %v5858_v60 = vmul.f32 %v19082_v50, %v19081_v37  ;;  %v19086_v0 = vmax.f32 %v15947_v43, 0.0  ;;  %v19088_v46 = vmax.f32 %v15951_v31, 0.0  ;;  %5931 = vst [vmem:[#allocation3 + $0x48] sm:$0xff] %v5850_v55  ;;  %5932 = vst [vmem:[#allocation3 + $0x50] sm:$0xff] %v5851_v26  ;;  %v19089_v30 = vld [vmem:[#allocation32_spill] sm:$0xff]  ;;  %v19091_v58 = vld [vmem:[#allocation33_spill] sm:$0xff] }
 0x804   :  { %v5859_v61 = vmul.f32 %v19084_v8, %v19083_v28  ;;  %5933 = vst [vmem:[#allocation3 + $0x58] sm:$0xff] %v5852_v59  ;;  %5934 = vst [vmem:[#allocation3 + $0x60] sm:$0xff] %v5853_v21  ;;  %v19090_v9 = vmax.f32 %v15955_v39, 0.0  ;;  %v19092_v36 = vmax.f32 %v15959_v11, 0.0  ;;  %v19093_v50 = vld [vmem:[#allocation34_spill] sm:$0xff]  ;;  %v19094_v43 = vmax.f32 %v15963_v33, 0.0 }
 0x805   :  { %v5860_v20 = vmul.f32 %v19086_v0, %v19085_v35  ;;  %v5861_v57 = vmul.f32 %v19088_v46, %v19087_v6  ;;  %v19095_v0 = vld [vmem:[#allocation35_spill] sm:$0xff]  ;;  %v19096_v31 = vmax.f32 %v15967_v62, 0.0  ;;  %5935 = vst [vmem:[#allocation3 + $0x68] sm:$0xff] %v5854_v63  ;;  %5936 = vst [vmem:[#allocation3 + $0x70] sm:$0xff] %v5855_v19  ;;  %v19097_v55 = vld [vmem:[#allocation36_spill] sm:$0xff]  ;;  %v19098_v39 = vmax.f32 %v15971_v29, 0.0 }
 0x806   :  { %v5862_v5 = vmul.f32 %v19090_v9, %v19089_v30  ;;  %v5863_v49 = vmul.f32 %v19092_v36, %v19091_v58  ;;  %v5864_v8 = vmul.f32 %v19094_v43, %v19093_v50  ;;  %5937 = vst [vmem:[#allocation3 + $0x78] sm:$0xff] %v5856_v38  ;;  %5938 = vst [vmem:[#allocation3 + $0x80] sm:$0xff] %v5857_v1  ;;  %v19099_v59 = vld [vmem:[#allocation37_spill] sm:$0xff]  ;;  %v19100_v11 = vmax.f32 %v15975_v32, 0.0  ;;  %v19101_v9 = vld [vmem:[#allocation38_spill] sm:$0xff] }
 0x807   :  { %v5865_v46 = vmul.f32 %v19096_v31, %v19095_v0  ;;  %v5866_v26 = vmul.f32 %v19098_v39, %v19097_v55  ;;  %v19102_v33 = vmax.f32 %v15979_v2, 0.0  ;;  %v19103_v43 = vld [vmem:[#allocation39_spill] sm:$0xff]  ;;  %v19104_v62 = vmax.f32 %v15983_v25, 0.0  ;;  %5939 = vst [vmem:[#allocation3 + $0x88] sm:$0xff] %v5858_v60  ;;  %5940 = vst [vmem:[#allocation3 + $0x90] sm:$0xff] %v5859_v61  ;;  %v19105_v19 = vld [vmem:[#allocation40_spill] sm:$0xff] }
 0x808   :  { %v5867_v21 = vmul.f32 %v19100_v11, %v19099_v59  ;;  %5941 = vst [vmem:[#allocation3 + $0x98] sm:$0xff] %v5860_v20  ;;  %5942 = vst [vmem:[#allocation3 + $0xa0] sm:$0xff] %v5861_v57  ;;  %v19106_v29 = vmax.f32 %v15987_v3, 0.0  ;;  %v19107_v1 = vld [vmem:[#allocation41_spill] sm:$0xff]  ;;  %v19108_v32 = vmax.f32 %v15991_v56, 0.0  ;;  %v19109_v39 = vld [vmem:[#allocation42_spill] sm:$0xff] }
 0x809   :  { %v5868_v36 = vmul.f32 %v19102_v33, %v19101_v9  ;;  %v5869_v31 = vmul.f32 %v19104_v62, %v19103_v43  ;;  %v19110_v2 = vmax.f32 %v15995_v52, 0.0  ;;  %v19111_v33 = vld [vmem:[#allocation43_spill] sm:$0xff]  ;;  %v19112_v25 = vmax.f32 %v15999_v41, 0.0  ;;  %5943 = vst [vmem:[#allocation3 + $0xa8] sm:$0xff] %v5862_v5  ;;  %5944 = vst [vmem:[#allocation3 + $0xb0] sm:$0xff] %v5863_v49  ;;  %v19113_v60 = vld [vmem:[#allocation44_spill] sm:$0xff] }
 0x80a   :  { %v5870_v38 = vmul.f32 %v19106_v29, %v19105_v19  ;;  %v5871_v63 = vmul.f32 %v19108_v32, %v19107_v1  ;;  %5945 = vst [vmem:[#allocation3 + $0xb8] sm:$0xff] %v5864_v8  ;;  %5946 = vst [vmem:[#allocation3 + $0xc0] sm:$0xff] %v5865_v46  ;;  %v19114_v3 = vmax.f32 %v16003_v27, 0.0  ;;  %v19115_v20 = vld [vmem:[#allocation45_spill] sm:$0xff]  ;;  %v19116_v56 = vmax.f32 %v16007_v14, 0.0  ;;  %v19117_v29 = vld [vmem:[#allocation46_spill] sm:$0xff] }
 0x80b   :  { %v5872_v11 = vmul.f32 %v19110_v2, %v19109_v39  ;;  %v5873_v62 = vmul.f32 %v19112_v25, %v19111_v33  ;;  %v19118_v52 = vmax.f32 %v16011_v44, 0.0  ;;  %v19119_v2 = vld [vmem:[#allocation47_spill] sm:$0xff]  ;;  %v19120_v41 = vmax.f32 %v16015_v16, 0.0  ;;  %5947 = vst [vmem:[#allocation3 + $0xc8] sm:$0xff] %v5866_v26  ;;  %5948 = vst [vmem:[#allocation3 + $0xd0] sm:$0xff] %v5867_v21  ;;  %v19121_v5 = vld [vmem:[#allocation48_spill] sm:$0xff] }
 0x80c   :  { %v5874_v61 = vmul.f32 %v19114_v3, %v19113_v60  ;;  %v5875_v57 = vmul.f32 %v19116_v56, %v19115_v20  ;;  %5949 = vst [vmem:[#allocation3 + $0xd8] sm:$0xff] %v5868_v36  ;;  %5950 = vst [vmem:[#allocation3 + $0xe0] sm:$0xff] %v5869_v31  ;;  %v19122_v27 = vmax.f32 %v16019_v15, 0.0  ;;  %v19123_v8 = vld [vmem:[#allocation49_spill] sm:$0xff]  ;;  %v19124_v14 = vmax.f32 %v16023_v10, 0.0  ;;  %v19125_v3 = vld [vmem:[#allocation50_spill] sm:$0xff] }
 0x80d   :  { %v5876_v32 = vmul.f32 %v19118_v52, %v19117_v29  ;;  %v5877_v25 = vmul.f32 %v19120_v41, %v19119_v2  ;;  %v19126_v56 = vld [vmem:[#allocation99_spill] sm:$0xff]  ;;  %v19129_v20 = vld [vmem:[#allocation101_spill] sm:$0xff]  ;;  %5951 = vst [vmem:[#allocation3 + $0xe8] sm:$0xff] %v5870_v38  ;;  %5952 = vst [vmem:[#allocation3 + $0xf0] sm:$0xff] %v5871_v63 }
 0x80e   :  { %v5878_v49 = vmul.f32 %v19122_v27, %v19121_v5  ;;  %v5879_v46 = vmul.f32 %v19124_v14, %v19123_v8  ;;  %v19127_v44 = vmax.f32 %v19126_v56, 0.0  ;;  %v19128_v29 = vld [vmem:[#allocation51_spill] sm:$0xff]  ;;  %v19130_v16 = vmax.f32 %v19129_v20, 0.0  ;;  %5953 = vst [vmem:[#allocation3 + $0xf8] sm:$0xff] %v5872_v11  ;;  %5954 = vst [vmem:[#allocation3 + $0x100] sm:$0xff] %v5873_v62  ;;  %v6170_v26 = vld [vmem:[#allocation3 + $0x16] sm:$0xff] }
 0x80f   :  { %v6008_v21 = vld [vmem:[#allocation3 + $0x15] sm:$0xff]  ;;  %v19131_v15 = vld [vmem:[#allocation52_spill] sm:$0xff]  ;;  %v19132_v36 = vld [vmem:[#allocation103_spill] sm:$0xff]  ;;  %5955 = vst [vmem:[#allocation3 + $0x108] sm:$0xff] %v5874_v61  ;;  %8411 = vmatprep.mubr.f32.mxu1 %v6170_v26 }
 0x810   :  { %v5880_v52 = vmul.f32 %v19127_v44, %v19125_v3  ;;  %v5881_v41 = vmul.f32 %v19130_v16, %v19128_v29  ;;  %v19133_v31 = vmax.f32 %v19132_v36, 0.0  ;;  %v19134_v10 = vld [vmem:[#allocation54_spill] sm:$0xff]  ;;  %v19135_v14 = vld [vmem:[#allocation105_spill] sm:$0xff]  ;;  %v19137_v56 = vld [vmem:[#allocation56_spill] sm:$0xff]  ;;  %5956 = vst [vmem:[#allocation3 + $0x110] sm:$0xff] %v5875_v57  ;;  %8412 = vmatmul.mubr.f32.gmra.mrb[4].mxu1 %v6008_v21 }
 0x811   :  { %v19136_v8 = vmax.f32 %v19135_v14, 0.0  ;;  %v19138_v44 = vld [vmem:[#allocation107_spill] sm:$0xff]  ;;  %v19140_v20 = vld [vmem:[#allocation58_spill] sm:$0xff]  ;;  %v19141_v16 = vld [vmem:[#allocation109_spill] sm:$0xff]  ;;  %5957 = vst [vmem:[#allocation3 + $0x118] sm:$0xff] %v5876_v32 }
 0x812   :  { %v5882_v27 = vmul.f32 %v19133_v31, %v19131_v15  ;;  %v19139_v3 = vmax.f32 %v19138_v44, 0.0  ;;  %v19142_v38 = vmax.f32 %v19141_v16, 0.0  ;;  %5958 = vst [vmem:[#allocation3 + $0x120] sm:$0xff] %v5877_v25  ;;  %v19143_v11 = vld [vmem:[#allocation60_spill] sm:$0xff]  ;;  %v19144_v62 = vld [vmem:[#allocation111_spill] sm:$0xff]  ;;  %v19146_v15 = vld [vmem:[#allocation62_spill] sm:$0xff] }
 0x813   :  { %v5883_v5 = vmul.f32 %v19136_v8, %v19134_v10  ;;  %v19145_v36 = vmax.f32 %v19144_v62, 0.0  ;;  %v19147_v14 = vld [vmem:[#allocation113_spill] sm:$0xff]  ;;  %v19149_v29 = vld [vmem:[#allocation64_spill] sm:$0xff]  ;;  %v19150_v44 = vld [vmem:[#allocation115_spill] sm:$0xff]  ;;  %5959 = vst [vmem:[#allocation3 + $0x128] sm:$0xff] %v5878_v49 }
 0x814   :  { %v5884_v2 = vmul.f32 %v19139_v3, %v19137_v56  ;;  %v5885_v63 = vmul.f32 %v19142_v38, %v19140_v20  ;;  %v19148_v8 = vmax.f32 %v19147_v14, 0.0  ;;  %v19151_v3 = vmax.f32 %v19150_v44, 0.0  ;;  %v19152_v60 = vld [vmem:[#allocation66_spill] sm:$0xff]  ;;  %v19153_v16 = vld [vmem:[#allocation117_spill] sm:$0xff]  ;;  %5960 = vst [vmem:[#allocation3 + $0x130] sm:$0xff] %v5879_v46  ;;  %5961 = vst [vmem:[#allocation3 + $0x138] sm:$0xff] %v5880_v52 }
 0x815   :  { %v5886_v31 = vmul.f32 %v19145_v36, %v19143_v11  ;;  %v19154_v38 = vmax.f32 %v19153_v16, 0.0  ;;  %5962 = vst [vmem:[#allocation3 + $0x140] sm:$0xff] %v5881_v41  ;;  %v6171_v57 = vld [vmem:[#allocation3 + $0x1e] sm:$0xff]  ;;  %v19155_v32 = vld [vmem:[#allocation68_spill] sm:$0xff]  ;;  %v19159_v14 = vld [vmem:[#allocation121_spill] sm:$0xff] }
 0x816   :  { %v5887_v10 = vmul.f32 %v19148_v8, %v19146_v15  ;;  %v5888_v56 = vmul.f32 %v19151_v3, %v19149_v29  ;;  %v19156_v25 = vld [vmem:[#allocation119_spill] sm:$0xff]  ;;  %v19158_v36 = vld [vmem:[#allocation70_spill] sm:$0xff]  ;;  %v19160_v8 = vmax.f32 %v19159_v14, 0.0  ;;  %v19161_v44 = vld [vmem:[#allocation72_spill] sm:$0xff]  ;;  %5963 = vst [vmem:[#allocation3 + $0x148] sm:$0xff] %v5882_v27  ;;  %8416 = vmatprep.mubr.f32.mxu1 %v6171_v57 }
 0x817   :  { %v5889_v61 = vmul.f32 %v19154_v38, %v19152_v60  ;;  %v19157_v26 = vmax.f32 %v19156_v25, 0.0  ;;  %v19162_v3 = vld [vmem:[#allocation123_spill] sm:$0xff]  ;;  %v19164_v16 = vld [vmem:[#allocation74_spill] sm:$0xff]  ;;  %v19165_v38 = vld [vmem:[#allocation125_spill] sm:$0xff]  ;;  %5964 = vst [vmem:[#allocation3 + $0x150] sm:$0xff] %v5883_v5 }
 0x818   :  { %v5891_v15 = vmul.f32 %v19160_v8, %v19158_v36  ;;  %v19163_v29 = vmax.f32 %v19162_v3, 0.0  ;;  %v19166_v49 = vmax.f32 %v19165_v38, 0.0  ;;  %5965 = vst [vmem:[#allocation3 + $0x158] sm:$0xff] %v5884_v2  ;;  %5966 = vst [vmem:[#allocation3 + $0x160] sm:$0xff] %v5885_v63  ;;  %v19167_v52 = vld [vmem:[#allocation76_spill] sm:$0xff]  ;;  %v19168_v41 = vld [vmem:[#allocation127_spill] sm:$0xff] }
 0x819   :  { %v5890_v62 = vmul.f32 %v19157_v26, %v19155_v32  ;;  %v19169_v21 = vmax.f32 %v19168_v41, 0.0  ;;  %v19170_v26 = vld [vmem:[#allocation78_spill] sm:$0xff]  ;;  %v19171_v14 = vld [vmem:[#allocation129_spill] sm:$0xff]  ;;  %v19173_v32 = vld [vmem:[#allocation80_spill] sm:$0xff]  ;;  %5967 = vst [vmem:[#allocation3 + $0x168] sm:$0xff] %v5886_v31  ;;  %v19191_v31 = vmax.f32 %v19038_v13, 0.0 }
 0x81a   :  { %v5892_v11 = vmul.f32 %v19163_v29, %v19161_v44  ;;  %v5893_v46 = vmul.f32 %v19166_v49, %v19164_v16  ;;  %v19172_v8 = vmax.f32 %v19171_v14, 0.0  ;;  %v19174_v3 = vld [vmem:[#allocation131_spill] sm:$0xff]  ;;  %v19176_v60 = vld [vmem:[#allocation82_spill] sm:$0xff]  ;;  %v19177_v38 = vld [vmem:[#allocation133_spill] sm:$0xff]  ;;  %5968 = vst [vmem:[#allocation3 + $0x170] sm:$0xff] %v5887_v10 }
 0x81b   :  { %v5894_v25 = vmul.f32 %v19169_v21, %v19167_v52  ;;  %v19175_v29 = vmax.f32 %v19174_v3, 0.0  ;;  %v19178_v49 = vmax.f32 %v19177_v38, 0.0  ;;  %5969 = vst [vmem:[#allocation3 + $0x178] sm:$0xff] %v5888_v56  ;;  %5970 = vst [vmem:[#allocation3 + $0x180] sm:$0xff] %v5889_v61  ;;  %v19179_v2 = vld [vmem:[#allocation84_spill] sm:$0xff]  ;;  %v19180_v5 = vld [vmem:[#allocation135_spill] sm:$0xff] }
 0x81c   :  { %v5895_v36 = vmul.f32 %v19172_v8, %v19170_v26  ;;  %v19181_v63 = vmax.f32 %v19180_v5, 0.0  ;;  %v19182_v41 = vld [vmem:[#allocation86_spill] sm:$0xff]  ;;  %v19183_v21 = vld [vmem:[#allocation53_spill] sm:$0xff]  ;;  %v19185_v26 = vld [vmem:[#allocation88_spill] sm:$0xff]  ;;  %v19189_v38 = vmax.f32 %v19037_v23, 0.0  ;;  %5971 = vst [vmem:[#allocation3 + $0x188] sm:$0xff] %v5890_v62 }
 0x81d   :  { %v5896_v44 = vmul.f32 %v19175_v29, %v19173_v32  ;;  %v5897_v27 = vmul.f32 %v19178_v49, %v19176_v60  ;;  %v19184_v14 = vmax.f32 %v19183_v21, 0.0  ;;  %v19186_v52 = vld [vmem:[#allocation55_spill] sm:$0xff]  ;;  %v19188_v32 = vld [vmem:[#allocation90_spill] sm:$0xff]  ;;  %5972 = vst [vmem:[#allocation3 + $0x190] sm:$0xff] %v5891_v15  ;;  %5973 = vst [vmem:[#allocation3 + $0x198] sm:$0xff] %v5892_v11  ;;  %v19197_v23 = vmax.f32 %v19041_v18, 0.0 }
 0x81e   :  { %v5898_v57 = vmul.f32 %v19181_v63, %v19179_v2  ;;  %v19187_v3 = vmax.f32 %v19186_v52, 0.0  ;;  %v5901_v49 = vmul.f32 %v19189_v38, %v19188_v32  ;;  %5974 = vst [vmem:[#allocation3 + $0x1a0] sm:$0xff] %v5893_v46  ;;  %v6009_v10 = vld [vmem:[#allocation3 + $0x1d] sm:$0xff]  ;;  %v19190_v56 = vld [vmem:[#allocation92_spill] sm:$0xff]  ;;  %v19193_v63 = vmax.f32 %v19039_v48, 0.0  ;;  %5975 = vst [vmem:[#allocation3 + $0x1a8] sm:$0xff] %v5894_v25 }
 0x81f   :  { %v5899_v8 = vmul.f32 %v19184_v14, %v19182_v41  ;;  %v5902_v61 = vmul.f32 %v19191_v31, %v19190_v56  ;;  %v19192_v5 = vld [vmem:[#allocation94_spill] sm:$0xff]  ;;  %v19194_v14 = vld [vmem:[#allocation96_spill] sm:$0xff]  ;;  %v19195_v52 = vmax.f32 %v19040_v4, 0.0  ;;  %5976 = vst [vmem:[#allocation3 + $0x1b0] sm:$0xff] %v5895_v36  ;;  %5977 = vst [vmem:[#allocation3 + $0x1b8] sm:$0xff] %v5896_v44  ;;  %8417 = vmatmul.mubr.f32.gmra.mrb[6].mxu1 %v6009_v10  ;;  %v19199_v11 = vmax.f32 %v19042_v17, 0.0 }
 0x820   :  { %v5900_v29 = vmul.f32 %v19187_v3, %v19185_v26  ;;  %v5903_v21 = vmul.f32 %v19193_v63, %v19192_v5  ;;  %v19196_v26 = vld [vmem:[#allocation98_spill] sm:$0xff]  ;;  %5978 = vst [vmem:[#allocation3 + $0x1c0] sm:$0xff] %v5897_v27  ;;  %v6172_v15 = vld [vmem:[#allocation3 + $0x26] sm:$0xff]  ;;  %v19201_v38 = vld [vmem:[#allocation69_spill] sm:$0xff] }
 0x821   :  { %v5904_v3 = vmul.f32 %v19195_v52, %v19194_v14  ;;  %v5905_v62 = vmul.f32 %v19197_v23, %v19196_v26  ;;  %v19198_v13 = vld [vmem:[#allocation100_spill] sm:$0xff]  ;;  %v19200_v48 = vld [vmem:[#allocation102_spill] sm:$0xff]  ;;  %v19202_v31 = vmax.f32 %v19201_v38, 0.0  ;;  %v19204_v52 = vld [vmem:[#allocation71_spill] sm:$0xff]  ;;  %5979 = vst [vmem:[#allocation3 + $0x1c8] sm:$0xff] %v5898_v57  ;;  %8421 = vmatprep.mubr.f32.mxu1 %v6172_v15  ;;  %v19221_v15 = vmax.f32 %v16163_v24, 0.0 }
 0x822   :  { %v5906_v46 = vmul.f32 %v19199_v11, %v19198_v13  ;;  %v19203_v4 = vld [vmem:[#allocation104_spill] sm:$0xff]  ;;  %v19205_v14 = vmax.f32 %v19204_v52, 0.0  ;;  %v19206_v18 = vld [vmem:[#allocation106_spill] sm:$0xff]  ;;  %v19207_v23 = vld [vmem:[#allocation73_spill] sm:$0xff]  ;;  %5980 = vst [vmem:[#allocation3 + $0x1d0] sm:$0xff] %v5899_v8  ;;  %v19231_v24 = vmax.f32 %v19048_v47, 0.0 }
 0x823   :  { %v5907_v63 = vmul.f32 %v19202_v31, %v19200_v48  ;;  %v19208_v25 = vmax.f32 %v19207_v23, 0.0  ;;  %5981 = vst [vmem:[#allocation3 + $0x1d8] sm:$0xff] %v5900_v29  ;;  %5982 = vst [vmem:[#allocation3 + $0x1e0] sm:$0xff] %v5901_v49  ;;  %v19209_v44 = vld [vmem:[#allocation108_spill] sm:$0xff]  ;;  %v19210_v17 = vld [vmem:[#allocation75_spill] sm:$0xff] }
 0x824   :  { %v5908_v5 = vmul.f32 %v19205_v14, %v19203_v4  ;;  %v19211_v27 = vmax.f32 %v19210_v17, 0.0  ;;  %v19212_v11 = vld [vmem:[#allocation110_spill] sm:$0xff]  ;;  %v19213_v38 = vld [vmem:[#allocation77_spill] sm:$0xff]  ;;  %v19215_v13 = vld [vmem:[#allocation112_spill] sm:$0xff]  ;;  %v19216_v14 = vmax.f32 %v16155_v22, 0.0  ;;  %5983 = vst [vmem:[#allocation3 + $0x1e8] sm:$0xff] %v5902_v61 }
 0x825   :  { %v5909_v36 = vmul.f32 %v19208_v25, %v19206_v18  ;;  %v19214_v31 = vmax.f32 %v19213_v38, 0.0  ;;  %v19217_v4 = vld [vmem:[#allocation114_spill] sm:$0xff]  ;;  %v19218_v23 = vld [vmem:[#allocation79_spill] sm:$0xff]  ;;  %5984 = vst [vmem:[#allocation3 + $0x1f0] sm:$0xff] %v5903_v21  ;;  %5985 = vst [vmem:[#allocation3 + $0x1f8] sm:$0xff] %v5904_v3 }
 0x826   :  { %v5910_v10 = vmul.f32 %v19211_v27, %v19209_v44  ;;  %v5912_v52 = vmul.f32 %v19216_v14, %v19215_v13  ;;  %v19219_v25 = vmax.f32 %v19218_v23, 0.0  ;;  %5986 = vst [vmem:[#allocation3 + $0x200] sm:$0xff] %v5905_v62  ;;  %v8233_v8 = vld [vmem:[#allocation9 + $0x140] sm:$0xff]  ;;  %v8234_v29 = vld [vmem:[#allocation9 + $0x148] sm:$0xff]  ;;  %v19220_v49 = vld [vmem:[#allocation116_spill] sm:$0xff]  ;;  %v19226_v14 = vmax.f32 %v16171_v42, 0.0 }
 0x827   :  { %v5911_v48 = vmul.f32 %v19214_v31, %v19212_v11  ;;  %v5914_v17 = vmul.f32 %v19221_v15, %v19220_v49  ;;  %v19222_v27 = vld [vmem:[#allocation118_spill] sm:$0xff]  ;;  %v19223_v38 = vld [vmem:[#allocation81_spill] sm:$0xff]  ;;  %v19225_v22 = vld [vmem:[#allocation120_spill] sm:$0xff]  ;;  %5987 = vst [vmem:[#allocation3 + $0x208] sm:$0xff] %v5906_v46  ;;  %v19236_v42 = vmax.f32 %v19050_v51, 0.0 }
 0x828   :  { %v5913_v57 = vmul.f32 %v19219_v25, %v19217_v4  ;;  %v19224_v31 = vmax.f32 %v19223_v38, 0.0  ;;  %v5916_v13 = vmul.f32 %v19226_v14, %v19225_v22  ;;  %v19227_v23 = vld [vmem:[#allocation122_spill] sm:$0xff]  ;;  %v19228_v25 = vld [vmem:[#allocation83_spill] sm:$0xff]  ;;  %5988 = vst [vmem:[#allocation3 + $0x210] sm:$0xff] %v5907_v63  ;;  %5989 = vst [vmem:[#allocation3 + $0x218] sm:$0xff] %v5908_v5 }
 0x829   :  { %v19229_v61 = vmax.f32 %v19228_v25, 0.0  ;;  %5990 = vst [vmem:[#allocation3 + $0x220] sm:$0xff] %v5909_v36  ;;  %v6010_v3 = vld [vmem:[#allocation3 + $0x25] sm:$0xff]  ;;  %v19232_v49 = vld [vmem:[#allocation126_spill] sm:$0xff]  ;;  %5991 = vst [vmem:[#allocation3 + $0x228] sm:$0xff] %v5910_v10 }
 0x82a   :  { %v5915_v11 = vmul.f32 %v19224_v31, %v19222_v27  ;;  %v19230_v62 = vld [vmem:[#allocation124_spill] sm:$0xff]  ;;  %v19233_v38 = vld [vmem:[#allocation87_spill] sm:$0xff]  ;;  %v19237_v22 = vld [vmem:[#allocation130_spill] sm:$0xff]  ;;  %5992 = vst [vmem:[#allocation3 + $0x230] sm:$0xff] %v5911_v48  ;;  %8422 = vmatmul.mubr.f32.gmra.mrb[8].mxu1 %v6010_v3  ;;  %v12569_v48 = vpack.c.bf16 %v8234_v29, %v8233_v8 }
 0x82b   :  { %v5917_v21 = vmul.f32 %v19229_v61, %v19227_v23  ;;  %v5918_v15 = vmul.f32 %v19231_v24, %v19230_v62  ;;  %v19234_v31 = vmax.f32 %v19233_v38, 0.0  ;;  %v19235_v4 = vld [vmem:[#allocation128_spill] sm:$0xff]  ;;  %v19238_v25 = vld [vmem:[#allocation91_spill] sm:$0xff]  ;;  %5993 = vst [vmem:[#allocation3 + $0x238] sm:$0xff] %v5912_v52  ;;  %5994 = vst [vmem:[#allocation3 + $0x240] sm:$0xff] %v5913_v57  ;;  %v19241_v24 = vmax.f32 %v19052_v12, 0.0 }
 0x82c   :  { %v5920_v14 = vmul.f32 %v19236_v42, %v19235_v4  ;;  %v19239_v61 = vmax.f32 %v19238_v25, 0.0  ;;  %v6173_v5 = vld [vmem:[#allocation3 + $0x2e] sm:$0xff]  ;;  %v8235_v47 = vld [vmem:[#allocation9 + $0x150] sm:$0xff]  ;;  %5995 = vst [vmem:[#allocation3 + $0x248] sm:$0xff] %v5914_v17  ;;  %5996 = vst [vmem:[#allocation3 + $0x250] sm:$0xff] %v5915_v11  ;;  %12570 = vmatpush1.bf16.msra.mxu1 %v12569_v48  ;;  %v19245_v57 = vmov 0.0|0.0  }
 0x82d   :  { %v5919_v27 = vmul.f32 %v19234_v31, %v19232_v49  ;;  %v8236_v63 = vld [vmem:[#allocation9 + $0x158] sm:$0xff]  ;;  %v19242_v31 = vld [vmem:[#allocation134_spill] sm:$0xff]  ;;  %v19243_v49 = vld [vmem:[#allocation95_spill] sm:$0xff]  ;;  %5997 = vst [vmem:[#allocation3 + $0x258] sm:$0xff] %v5916_v13  ;;  %8426 = vmatprep.mubr.f32.mxu1 %v6173_v5  ;;  %12571 = vmatprep.subr.bf16.mxu1 %v19245_v57 }
 0x82e   :  { %v5921_v46 = vmul.f32 %v19239_v61, %v19237_v22  ;;  %v19240_v36 = vld [vmem:[#allocation132_spill] sm:$0xff]  ;;  %v19244_v51 = vmax.f32 %v19243_v49, 0.0  ;;  %5998 = vst [vmem:[#allocation3 + $0x260] sm:$0xff] %v5917_v21  ;;  %5999 = vst [vmem:[#allocation3 + $0x268] sm:$0xff] %v5918_v15  ;;  %v12572_v12 = vpack.c.bf16 %v8236_v63, %v8235_v47  ;;  %v6174_v52 = vld [vmem:[#allocation3 + $0x36] sm:$0xff] }
 0x82f   :  { %v5922_v38 = vmul.f32 %v19241_v24, %v19240_v36  ;;  %6000 = vst [vmem:[#allocation3 + $0x270] sm:$0xff] %v5919_v27  ;;  %6001 = vst [vmem:[#allocation3 + $0x278] sm:$0xff] %v5920_v14  ;;  %v6011_v10 = vld [vmem:[#allocation3 + $0x2d] sm:$0xff]  ;;  %v8238_v17 = vld [vmem:[#allocation9 + $0x168] sm:$0xff] }
 0x830   :  { %v5923_v42 = vmul.f32 %v19244_v51, %v19242_v31  ;;  %6002 = vst [vmem:[#allocation3 + $0x280] sm:$0xff] %v5921_v46  ;;  %8427 = vmatmul.mubr.f32.gmra.mrb[10].mxu1 %v6011_v10  ;;  %v8237_v49 = vld [vmem:[#allocation9 + $0x160] sm:$0xff]  ;;  %v6175_v8 = vld [vmem:[#allocation3 + $0x3e] sm:$0xff]  ;;  %v6176_v27 = vld [vmem:[#allocation3 + $0x46] sm:$0xff] }
 0x831   :  { %6003 = vst [vmem:[#allocation3 + $0x288] sm:$0xff] %v5922_v38  ;;  %8431 = vmatprep.mubr.f32.mxu1 %v6174_v52  ;;  %v6012_v13 = vld [vmem:[#allocation3 + $0x35] sm:$0xff]  ;;  %12573 = vmatpush1.bf16.msra.mxu1 %v12572_v12  ;;  %v12575_v11 = vpack.c.bf16 %v8238_v17, %v8237_v49  ;;  %v6013_v29 = vld [vmem:[#allocation3 + $0x3d] sm:$0xff]  ;;  %v8240_v3 = vld [vmem:[#allocation9 + $0x178] sm:$0xff] }
 0x832   :  { %6004 = vst [vmem:[#allocation3 + $0x290] sm:$0xff] %v5923_v42  ;;  %12574 = vmatprep.subr.bf16.mxu1 %v19245_v57  ;;  %v8239_v21 = vld [vmem:[#allocation9 + $0x170] sm:$0xff]  ;;  %v6177_v25 = vld [vmem:[#allocation3 + $0x4e] sm:$0xff]  ;;  %v8242_v46 = vld [vmem:[#allocation9 + $0x188] sm:$0xff] }
 0x833   :  { %v12578_v15 = vpack.c.bf16 %v8240_v3, %v8239_v21  ;;  %v6014_v14 = vld [vmem:[#allocation3 + $0x45] sm:$0xff]  ;;  %v8241_v61 = vld [vmem:[#allocation9 + $0x180] sm:$0xff]  ;;  %v6017_v51 = vld [vmem:[#allocation3 + $0x5d] sm:$0xff] }
 0x834   :  { %8432 = vmatmul.mubr.f32.gmra.mrb[12].mxu1 %v6012_v13  ;;  %v12581_v5 = vpack.c.bf16 %v8242_v46, %v8241_v61  ;;  %v6015_v47 = vld [vmem:[#allocation3 + $0x4d] sm:$0xff]  ;;  %v6178_v63 = vld [vmem:[#allocation3 + $0x56] sm:$0xff]  ;;  %v6179_v38 = vld [vmem:[#allocation3 + $0x5e] sm:$0xff] }
 0x835   :  { %8436 = vmatprep.mubr.f32.mxu1 %v6175_v8  ;;  %12576 = vmatpush1.bf16.msra.mxu1 %v12575_v11  ;;  %v6016_v24 = vld [vmem:[#allocation3 + $0x55] sm:$0xff]  ;;  %v6180_v42 = vld [vmem:[#allocation3 + $0x66] sm:$0xff]  ;;  %v6183_v17 = vld [vmem:[#allocation3 + $0x7e] sm:$0xff] }
 0x836   :  { %12577 = vmatprep.subr.bf16.mxu1 %v19245_v57  ;;  %v6018_v48 = vld [vmem:[#allocation3 + $0x65] sm:$0xff]  ;;  %v6181_v10 = vld [vmem:[#allocation3 + $0x6e] sm:$0xff]  ;;  %v6182_v52 = vld [vmem:[#allocation3 + $0x76] sm:$0xff] }
 0x837   :  { %v6019_v12 = vld [vmem:[#allocation3 + $0x6d] sm:$0xff]  ;;  %v6020_v49 = vld [vmem:[#allocation3 + $0x75] sm:$0xff]  ;;  %v8243_v13 = vld [vmem:[#allocation9 + $0x190] sm:$0xff] }
 0x838   :  { %8437 = vmatmul.mubr.f32.gmra.mrb[14].mxu1 %v6013_v29  ;;  %v8244_v11 = vld [vmem:[#allocation9 + $0x198] sm:$0xff]  ;;  %v6021_v29 = vld [vmem:[#allocation3 + $0x7d] sm:$0xff]  ;;  %v16623_v22 = vld [vmem:[#allocation3 + $0xd1] sm:$0xff] }
 0x839   :  { %8441 = vmatprep.mubr.f32.mxu1 %v6176_v27  ;;  %12579 = vmatpush1.bf16.msra.mxu1 %v12578_v15  ;;  %v12584_v8 = vpack.c.bf16 %v8244_v11, %v8243_v13  ;;  %v6184_v27 = vld [vmem:[#allocation3 + $0x86] sm:$0xff]  ;;  %v6185_v3 = vld [vmem:[#allocation3 + $0x8e] sm:$0xff]  ;;  %v6187_v61 = vld [vmem:[#allocation3 + $0x9e] sm:$0xff] }
 0x83a   :  { %12580 = vmatprep.subr.bf16.mxu1 %v19245_v57  ;;  %v6022_v21 = vld [vmem:[#allocation3 + $0x85] sm:$0xff]  ;;  %v6023_v15 = vld [vmem:[#allocation3 + $0x8d] sm:$0xff]  ;;  %v6025_v46 = vld [vmem:[#allocation3 + $0x9d] sm:$0xff] }
 0x83b   :  { %v6193_v13 = vld [vmem:[#allocation3 + $0xce] sm:$0xff]  ;;  %v8247_v11 = vld [vmem:[#allocation9 + $0x1b0] sm:$0xff]  ;;  %v8314_v26 = vld [vmem:[#allocation9 + $0x3c8] sm:$0xff] }
 0x83c   :  { %8442 = vmatmul.mubr.f32.gmra.mrb[16].mxu1 %v6014_v14  ;;  %v6186_v14 = vld [vmem:[#allocation3 + $0x96] sm:$0xff]  ;;  %v16616_v31 = vld [vmem:[#allocation3 + $0xc1] sm:$0xff]  ;;  %v16620_v36 = vld [vmem:[#allocation3 + $0xc9] sm:$0xff] }
 0x83d   :  { %8446 = vmatprep.mubr.f32.mxu1 %v6177_v25  ;;  %12582 = vmatpush1.bf16.msra.mxu1 %v12581_v5  ;;  %v6024_v25 = vld [vmem:[#allocation3 + $0x95] sm:$0xff]  ;;  %v6188_v5 = vld [vmem:[#allocation3 + $0xa6] sm:$0xff] }
 0x83e   :  { %12583 = vmatprep.subr.bf16.mxu1 %v19245_v57  ;;  %v8312_v4 = vld [vmem:[#allocation9 + $0x3b8] sm:$0xff]  ;;  %v16636_v44 = vld [vmem:[#allocation3 + $0xf1] sm:$0xff]  ;;  %v16639_v18 = vld [vmem:[#allocation3 + $0xf9] sm:$0xff] }
 0x83f   :  { %v16632_v23 = vld [vmem:[#allocation3 + $0xe9] sm:$0xff]  ;;  %v16648_v32 = vld [vmem:[#allocation3 + $0x111] sm:$0xff]  ;;  %v16652_v41 = vld [vmem:[#allocation3 + $0x119] sm:$0xff] }
 0x840   :  { %8447 = vmatmul.mubr.f32.gmra.mrb[18].mxu1 %v6015_v47  ;;  %v8245_v47 = vld [vmem:[#allocation9 + $0x1a0] sm:$0xff]  ;;  %v16655_v2 = vld [vmem:[#allocation3 + $0x121] sm:$0xff]  ;;  %v16664_v20 = vld [vmem:[#allocation3 + $0x139] sm:$0xff] }
 0x841   :  { %8451 = vmatprep.mubr.f32.mxu1 %v6178_v63  ;;  %12585 = vmatpush1.bf16.msra.mxu1 %v12584_v8  ;;  %v8246_v63 = vld [vmem:[#allocation9 + $0x1a8] sm:$0xff]  ;;  %v8248_v8 = vld [vmem:[#allocation9 + $0x1b8] sm:$0xff] }
 0x842   :  { %12586 = vmatprep.subr.bf16.mxu1 %v19245_v57  ;;  %v8316_v60 = vld [vmem:[#allocation9 + $0x3d8] sm:$0xff]  ;;  %v8318_v1 = vld [vmem:[#allocation9 + $0x3e8] sm:$0xff] }
 0x843   :  { %v16668_v33 = vld [vmem:[#allocation3 + $0x141] sm:$0xff]  ;;  %v16671_v39 = vld [vmem:[#allocation3 + $0x149] sm:$0xff]  ;;  %v16687_v59 = vld [vmem:[#allocation3 + $0x171] sm:$0xff] }
 0x844   :  { %8452 = vmatmul.mubr.f32.gmra.mrb[20].mxu1 %v6016_v24  ;;  %v12587_v24 = vpack.c.bf16 %v8246_v63, %v8245_v47  ;;  %v6198_v47 = vld [vmem:[#allocation3 + $0xf6] sm:$0xff]  ;;  %v16680_v43 = vld [vmem:[#allocation3 + $0x161] sm:$0xff]  ;;  %v16684_v9 = vld [vmem:[#allocation3 + $0x169] sm:$0xff] }
 0x845   :  { %8456 = vmatprep.mubr.f32.mxu1 %v6179_v38  ;;  %v6026_v38 = vld [vmem:[#allocation3 + $0xa5] sm:$0xff]  ;;  %v8249_v63 = vld [vmem:[#allocation9 + $0x1c0] sm:$0xff]  ;;  %v16703_v30 = vld [vmem:[#allocation3 + $0x199] sm:$0xff] }
 0x846   :  { %12588 = vmatpush1.bf16.msra.mxu1 %v12587_v24  ;;  %v8250_v24 = vld [vmem:[#allocation9 + $0x1c8] sm:$0xff]  ;;  %v8320_v55 = vld [vmem:[#allocation9 + $0x3f8] sm:$0xff] }
 0x847   :  { %12589 = vmatprep.subr.bf16.mxu1 %v19245_v57  ;;  %v16696_v50 = vld [vmem:[#allocation3 + $0x189] sm:$0xff]  ;;  %v16700_v58 = vld [vmem:[#allocation3 + $0x191] sm:$0xff]  ;;  %v16715_v35 = vld [vmem:[#allocation3 + $0x1b9] sm:$0xff] }
 0x848   :  { %8457 = vmatmul.mubr.f32.gmra.mrb[22].mxu1 %v6017_v51  ;;  %v6189_v51 = vld [vmem:[#allocation3 + $0xae] sm:$0xff]  ;;  %v16718_v28 = vld [vmem:[#allocation3 + $0x1c1] sm:$0xff]  ;;  %v16727_v7 = vld [vmem:[#allocation3 + $0x1d9] sm:$0xff] }
 0x849   :  { %8461 = vmatprep.mubr.f32.mxu1 %v6180_v42  ;;  %v6027_v42 = vld [vmem:[#allocation3 + $0xad] sm:$0xff]  ;;  %19246 = vst [vmem:[#allocation97_spill] sm:$0xff] %v16718_v28  ;;  %19249 = vst [vmem:[#allocation61_spill] sm:$0xff] %v16727_v7  ;;  %v16730_v54 = vld [vmem:[#allocation3 + $0x1e1] sm:$0xff] }
 0x84a   :  { %v16712_v6 = vld [vmem:[#allocation3 + $0x1b1] sm:$0xff]  ;;  %v16721_v37 = vld [vmem:[#allocation3 + $0x1c9] sm:$0xff]  ;;  %19250 = vst [vmem:[#allocation63_spill] sm:$0xff] %v16730_v54  ;;  %v16739_v53 = vld [vmem:[#allocation3 + $0x1f9] sm:$0xff] }
 0x84b   :  { %19247 = vst [vmem:[#allocation57_spill] sm:$0xff] %v16721_v37  ;;  %v16724_v34 = vld [vmem:[#allocation3 + $0x1d1] sm:$0xff]  ;;  %v16733_v40 = vld [vmem:[#allocation3 + $0x1e9] sm:$0xff]  ;;  %19253 = vst [vmem:[#allocation85_spill] sm:$0xff] %v16739_v53 }
 0x84c   :  { %8462 = vmatmul.mubr.f32.gmra.mrb[24].mxu1 %v6018_v48  ;;  %v6190_v48 = vld [vmem:[#allocation3 + $0xb6] sm:$0xff]  ;;  %19248 = vst [vmem:[#allocation59_spill] sm:$0xff] %v16724_v34  ;;  %19251 = vst [vmem:[#allocation65_spill] sm:$0xff] %v16733_v40 }
 0x84d   :  { %8466 = vmatprep.mubr.f32.mxu1 %v6181_v10  ;;  %v6028_v10 = vld [vmem:[#allocation3 + $0xb5] sm:$0xff] }
 0x84e   :  { %v16736_v45 = vld [vmem:[#allocation3 + $0x1f1] sm:$0xff] }
 0x84f   :  { %19252 = vst [vmem:[#allocation67_spill] sm:$0xff] %v16736_v45 }
 0x850   :  { %8467 = vmatmul.mubr.f32.gmra.mrb[26].mxu1 %v6019_v12  ;;  %v6191_v12 = vld [vmem:[#allocation3 + $0xbe] sm:$0xff] }
 0x851   :  { %8471 = vmatprep.mubr.f32.mxu1 %v6182_v52  ;;  %v6029_v52 = vld [vmem:[#allocation3 + $0xbd] sm:$0xff] }
 0x854   :  { %8472 = vmatmul.mubr.f32.gmra.mrb[28].mxu1 %v6020_v49  ;;  %v6192_v49 = vld [vmem:[#allocation3 + $0xc6] sm:$0xff] }
 0x855   :  { %8476 = vmatprep.mubr.f32.mxu1 %v6183_v17  ;;  %v6030_v17 = vld [vmem:[#allocation3 + $0xc5] sm:$0xff] }
 0x858   :  { %8477 = vmatmul.mubr.f32.gmra.mrb[30].mxu1 %v6021_v29  ;;  %v12590_v29 = vpack.c.bf16 %v8248_v8, %v8247_v11  ;;  %v6203_v11 = vld [vmem:[#allocation3 + $0x11e] sm:$0xff] }
 0x859   :  { %8481 = vmatprep.mubr.f32.mxu1 %v6184_v27  ;;  %v6031_v27 = vld [vmem:[#allocation3 + $0xcd] sm:$0xff]  ;;  %v8251_v8 = vld [vmem:[#allocation9 + $0x1d0] sm:$0xff] }
 0x85a   :  { %12591 = vmatpush1.bf16.msra.mxu1 %v12590_v29  ;;  %v8252_v29 = vld [vmem:[#allocation9 + $0x1d8] sm:$0xff] }
 0x85b   :  { %12592 = vmatprep.subr.bf16.mxu1 %v19245_v57 }
 0x85c   :  { %8482 = vmatmul.mubr.f32.gmra.mrb[32].mxu1 %v6022_v21  ;;  %v6194_v21 = vld [vmem:[#allocation3 + $0xd6] sm:$0xff] }
 0x85d   :  { %8486 = vmatprep.mubr.f32.mxu1 %v6185_v3  ;;  %v6032_v3 = vld [vmem:[#allocation3 + $0xd5] sm:$0xff] }
 0x860   :  { %8487 = vmatmul.mubr.f32.gmra.mrb[34].mxu1 %v6023_v15  ;;  %v6195_v15 = vld [vmem:[#allocation3 + $0xde] sm:$0xff] }
 0x861   :  { %8491 = vmatprep.mubr.f32.mxu1 %v6186_v14  ;;  %v6033_v14 = vld [vmem:[#allocation3 + $0xdd] sm:$0xff] }
 0x864   :  { %8492 = vmatmul.mubr.f32.gmra.mrb[36].mxu1 %v6024_v25  ;;  %v6196_v25 = vld [vmem:[#allocation3 + $0xe6] sm:$0xff] }
 0x865   :  { %8496 = vmatprep.mubr.f32.mxu1 %v6187_v61  ;;  %v6034_v61 = vld [vmem:[#allocation3 + $0xe5] sm:$0xff] }
 0x868   :  { %8497 = vmatmul.mubr.f32.gmra.mrb[38].mxu1 %v6025_v46  ;;  %v6197_v46 = vld [vmem:[#allocation3 + $0xee] sm:$0xff] }
 0x869   :  { %8501 = vmatprep.mubr.f32.mxu1 %v6188_v5  ;;  %v6035_v5 = vld [vmem:[#allocation3 + $0xed] sm:$0xff] }
 0x86c   :  { %8502 = vmatmul.mubr.f32.gmra.mrb[40].mxu1 %v6026_v38  ;;  %v12593_v38 = vpack.c.bf16 %v8250_v24, %v8249_v63  ;;  %v6208_v63 = vld [vmem:[#allocation3 + $0x146] sm:$0xff]  ;;  %v8253_v24 = vld [vmem:[#allocation9 + $0x1e0] sm:$0xff] }
 0x86d   :  { %8506 = vmatprep.mubr.f32.mxu1 %v6189_v51  ;;  %v6036_v51 = vld [vmem:[#allocation3 + $0xf5] sm:$0xff] }
 0x86e   :  { %12594 = vmatpush1.bf16.msra.mxu1 %v12593_v38  ;;  %v8254_v38 = vld [vmem:[#allocation9 + $0x1e8] sm:$0xff] }
 0x86f   :  { %12595 = vmatprep.subr.bf16.mxu1 %v19245_v57 }
 0x870   :  { %8507 = vmatmul.mubr.f32.gmra.mrb[42].mxu1 %v6027_v42  ;;  %v6199_v42 = vld [vmem:[#allocation3 + $0xfe] sm:$0xff] }
 0x871   :  { %8511 = vmatprep.mubr.f32.mxu1 %v6190_v48  ;;  %v6037_v48 = vld [vmem:[#allocation3 + $0xfd] sm:$0xff] }
 0x874   :  { %8512 = vmatmul.mubr.f32.gmra.mrb[44].mxu1 %v6028_v10  ;;  %v6200_v10 = vld [vmem:[#allocation3 + $0x106] sm:$0xff] }
 0x875   :  { %8516 = vmatprep.mubr.f32.mxu1 %v6191_v12  ;;  %v6038_v12 = vld [vmem:[#allocation3 + $0x105] sm:$0xff] }
 0x878   :  { %8517 = vmatmul.mubr.f32.gmra.mrb[46].mxu1 %v6029_v52  ;;  %v6201_v52 = vld [vmem:[#allocation3 + $0x10e] sm:$0xff] }
 0x879   :  { %8521 = vmatprep.mubr.f32.mxu1 %v6192_v49  ;;  %v6039_v49 = vld [vmem:[#allocation3 + $0x10d] sm:$0xff] }
 0x87c   :  { %8522 = vmatmul.mubr.f32.gmra.mrb[48].mxu1 %v6030_v17  ;;  %v6202_v17 = vld [vmem:[#allocation3 + $0x116] sm:$0xff] }
 0x87d   :  { %8526 = vmatprep.mubr.f32.mxu1 %v6193_v13  ;;  %v6040_v13 = vld [vmem:[#allocation3 + $0x115] sm:$0xff] }
 0x880   :  { %8527 = vmatmul.mubr.f32.gmra.mrb[50].mxu1 %v6031_v27  ;;  %v12596_v27 = vpack.c.bf16 %v8252_v29, %v8251_v8  ;;  %v6213_v8 = vld [vmem:[#allocation3 + $0x16e] sm:$0xff]  ;;  %v8255_v29 = vld [vmem:[#allocation9 + $0x1f0] sm:$0xff] }
 0x881   :  { %8531 = vmatprep.mubr.f32.mxu1 %v6194_v21  ;;  %v6041_v21 = vld [vmem:[#allocation3 + $0x11d] sm:$0xff] }
 0x882   :  { %12597 = vmatpush1.bf16.msra.mxu1 %v12596_v27  ;;  %v8256_v27 = vld [vmem:[#allocation9 + $0x1f8] sm:$0xff] }
 0x883   :  { %12598 = vmatprep.subr.bf16.mxu1 %v19245_v57 }
 0x884   :  { %8532 = vmatmul.mubr.f32.gmra.mrb[52].mxu1 %v6032_v3  ;;  %v6204_v3 = vld [vmem:[#allocation3 + $0x126] sm:$0xff] }
 0x885   :  { %8536 = vmatprep.mubr.f32.mxu1 %v6195_v15  ;;  %v6042_v15 = vld [vmem:[#allocation3 + $0x125] sm:$0xff] }
 0x888   :  { %8537 = vmatmul.mubr.f32.gmra.mrb[54].mxu1 %v6033_v14  ;;  %v6205_v14 = vld [vmem:[#allocation3 + $0x12e] sm:$0xff] }
 0x889   :  { %8541 = vmatprep.mubr.f32.mxu1 %v6196_v25  ;;  %v6043_v25 = vld [vmem:[#allocation3 + $0x12d] sm:$0xff] }
 0x88c   :  { %8542 = vmatmul.mubr.f32.gmra.mrb[56].mxu1 %v6034_v61  ;;  %v6206_v61 = vld [vmem:[#allocation3 + $0x136] sm:$0xff] }
 0x88d   :  { %8546 = vmatprep.mubr.f32.mxu1 %v6197_v46  ;;  %v6044_v46 = vld [vmem:[#allocation3 + $0x135] sm:$0xff] }
 0x890   :  { %8547 = vmatmul.mubr.f32.gmra.mrb[58].mxu1 %v6035_v5  ;;  %v6207_v5 = vld [vmem:[#allocation3 + $0x13e] sm:$0xff] }
 0x891   :  { %8551 = vmatprep.mubr.f32.mxu1 %v6198_v47  ;;  %v6045_v47 = vld [vmem:[#allocation3 + $0x13d] sm:$0xff] }
 0x894   :  { %8552 = vmatmul.mubr.f32.gmra.mrb[60].mxu1 %v6036_v51  ;;  %v12599_v51 = vpack.c.bf16 %v8254_v38, %v8253_v24  ;;  %v6218_v24 = vld [vmem:[#allocation3 + $0x196] sm:$0xff] }
 0x895   :  { %8556 = vmatprep.mubr.f32.mxu1 %v6199_v42  ;;  %v6046_v42 = vld [vmem:[#allocation3 + $0x145] sm:$0xff]  ;;  %v6056_v38 = vld [vmem:[#allocation3 + $0x195] sm:$0xff] }
 0x896   :  { %12600 = vmatpush1.bf16.msra.mxu1 %v12599_v51  ;;  %v6219_v51 = vld [vmem:[#allocation3 + $0x19e] sm:$0xff] }
 0x897   :  { %12601 = vmatprep.subr.bf16.mxu1 %v19245_v57 }
 0x898   :  { %8557 = vmatmul.mubr.f32.gmra.mrb[62].mxu1 %v6037_v48  ;;  %v6209_v48 = vld [vmem:[#allocation3 + $0x14e] sm:$0xff] }
 0x899   :  { %8561 = vmatprep.mubr.f32.mxu1 %v6200_v10  ;;  %v6047_v10 = vld [vmem:[#allocation3 + $0x14d] sm:$0xff] }
 0x89c   :  { %8562 = vmatmul.mubr.f32.gmra.mrb[64].mxu1 %v6038_v12  ;;  %v6210_v12 = vld [vmem:[#allocation3 + $0x156] sm:$0xff] }
 0x89d   :  { %8566 = vmatprep.mubr.f32.mxu1 %v6201_v52  ;;  %v6048_v52 = vld [vmem:[#allocation3 + $0x155] sm:$0xff] }
 0x8a0   :  { %8567 = vmatmul.mubr.f32.gmra.mrb[66].mxu1 %v6039_v49  ;;  %v6211_v49 = vld [vmem:[#allocation3 + $0x15e] sm:$0xff] }
 0x8a1   :  { %8571 = vmatprep.mubr.f32.mxu1 %v6202_v17  ;;  %v6049_v17 = vld [vmem:[#allocation3 + $0x15d] sm:$0xff] }
 0x8a4   :  { %8572 = vmatmul.mubr.f32.gmra.mrb[68].mxu1 %v6040_v13  ;;  %v6212_v13 = vld [vmem:[#allocation3 + $0x166] sm:$0xff] }
 0x8a5   :  { %8576 = vmatprep.mubr.f32.mxu1 %v6203_v11  ;;  %v6050_v11 = vld [vmem:[#allocation3 + $0x165] sm:$0xff] }
 0x8a8   :  { %8577 = vmatmul.mubr.f32.gmra.mrb[70].mxu1 %v6041_v21  ;;  %v12602_v21 = vpack.c.bf16 %v8256_v27, %v8255_v29  ;;  %v6062_v29 = vld [vmem:[#allocation3 + $0x1c5] sm:$0xff]  ;;  %v6225_v27 = vld [vmem:[#allocation3 + $0x1ce] sm:$0xff] }
 0x8a9   :  { %8581 = vmatprep.mubr.f32.mxu1 %v6204_v3  ;;  %v6051_v3 = vld [vmem:[#allocation3 + $0x16d] sm:$0xff] }
 0x8aa   :  { %12603 = vmatpush1.bf16.msra.mxu1 %v12602_v21  ;;  %v6063_v21 = vld [vmem:[#allocation3 + $0x1cd] sm:$0xff] }
 0x8ab   :  { %12604 = vmatprep.subr.bf16.mxu1 %v19245_v57 }
 0x8ac   :  { %8582 = vmatmul.mubr.f32.gmra.mrb[72].mxu1 %v6042_v15  ;;  %v6214_v15 = vld [vmem:[#allocation3 + $0x176] sm:$0xff] }
 0x8ad   :  { %8586 = vmatprep.mubr.f32.mxu1 %v6205_v14  ;;  %v6052_v14 = vld [vmem:[#allocation3 + $0x175] sm:$0xff] }
 0x8b0   :  { %8587 = vmatmul.mubr.f32.gmra.mrb[74].mxu1 %v6043_v25  ;;  %v6215_v25 = vld [vmem:[#allocation3 + $0x17e] sm:$0xff] }
 0x8b1   :  { %8591 = vmatprep.mubr.f32.mxu1 %v6206_v61  ;;  %v6053_v61 = vld [vmem:[#allocation3 + $0x17d] sm:$0xff] }
 0x8b4   :  { %8592 = vmatmul.mubr.f32.gmra.mrb[76].mxu1 %v6044_v46  ;;  %v6216_v46 = vld [vmem:[#allocation3 + $0x186] sm:$0xff] }
 0x8b5   :  { %8596 = vmatprep.mubr.f32.mxu1 %v6207_v5  ;;  %v6054_v5 = vld [vmem:[#allocation3 + $0x185] sm:$0xff] }
 0x8b8   :  { %8597 = vmatmul.mubr.f32.gmra.mrb[78].mxu1 %v6045_v47  ;;  %v6217_v47 = vld [vmem:[#allocation3 + $0x18e] sm:$0xff] }
 0x8b9   :  { %8601 = vmatprep.mubr.f32.mxu1 %v6208_v63  ;;  %v6055_v63 = vld [vmem:[#allocation3 + $0x18d] sm:$0xff] }
 0x8bc   :  { %8602 = vmatmul.mubr.f32.gmra.mrb[80].mxu1 %v6046_v42  ;;  %v6057_v42 = vld [vmem:[#allocation3 + $0x19d] sm:$0xff] }
 0x8bd   :  { %8606 = vmatprep.mubr.f32.mxu1 %v6209_v48  ;;  %v6220_v48 = vld [vmem:[#allocation3 + $0x1a6] sm:$0xff] }
 0x8c0   :  { %8607 = vmatmul.mubr.f32.gmra.mrb[82].mxu1 %v6047_v10  ;;  %v6058_v10 = vld [vmem:[#allocation3 + $0x1a5] sm:$0xff] }
 0x8c1   :  { %8611 = vmatprep.mubr.f32.mxu1 %v6210_v12  ;;  %v6221_v12 = vld [vmem:[#allocation3 + $0x1ae] sm:$0xff] }
 0x8c4   :  { %8612 = vmatmul.mubr.f32.gmra.mrb[84].mxu1 %v6048_v52  ;;  %v6059_v52 = vld [vmem:[#allocation3 + $0x1ad] sm:$0xff] }
 0x8c5   :  { %8616 = vmatprep.mubr.f32.mxu1 %v6211_v49  ;;  %v6222_v49 = vld [vmem:[#allocation3 + $0x1b6] sm:$0xff] }
 0x8c8   :  { %8617 = vmatmul.mubr.f32.gmra.mrb[86].mxu1 %v6049_v17  ;;  %v6060_v17 = vld [vmem:[#allocation3 + $0x1b5] sm:$0xff] }
 0x8c9   :  { %8621 = vmatprep.mubr.f32.mxu1 %v6212_v13  ;;  %v6223_v13 = vld [vmem:[#allocation3 + $0x1be] sm:$0xff] }
 0x8cc   :  { %8622 = vmatmul.mubr.f32.gmra.mrb[88].mxu1 %v6050_v11  ;;  %v6061_v11 = vld [vmem:[#allocation3 + $0x1bd] sm:$0xff] }
 0x8cd   :  { %8626 = vmatprep.mubr.f32.mxu1 %v6213_v8  ;;  %v6224_v8 = vld [vmem:[#allocation3 + $0x1c6] sm:$0xff] }
 0x8d0   :  { %8627 = vmatmul.mubr.f32.gmra.mrb[90].mxu1 %v6051_v3  ;;  %v6226_v3 = vld [vmem:[#allocation3 + $0x1d6] sm:$0xff] }
 0x8d1   :  { %8631 = vmatprep.mubr.f32.mxu1 %v6214_v15  ;;  %v6064_v15 = vld [vmem:[#allocation3 + $0x1d5] sm:$0xff] }
 0x8d4   :  { %8632 = vmatmul.mubr.f32.gmra.mrb[92].mxu1 %v6052_v14  ;;  %v6227_v14 = vld [vmem:[#allocation3 + $0x1de] sm:$0xff] }
 0x8d5   :  { %8636 = vmatprep.mubr.f32.mxu1 %v6215_v25  ;;  %v6065_v25 = vld [vmem:[#allocation3 + $0x1dd] sm:$0xff] }
 0x8d8   :  { %8637 = vmatmul.mubr.f32.gmra.mrb[94].mxu1 %v6053_v61  ;;  %v6228_v61 = vld [vmem:[#allocation3 + $0x1e6] sm:$0xff] }
 0x8d9   :  { %8641 = vmatprep.mubr.f32.mxu1 %v6216_v46  ;;  %v6066_v46 = vld [vmem:[#allocation3 + $0x1e5] sm:$0xff] }
 0x8dc   :  { %8642 = vmatmul.mubr.f32.gmra.mrb[96].mxu1 %v6054_v5  ;;  %v6229_v5 = vld [vmem:[#allocation3 + $0x1ee] sm:$0xff] }
 0x8dd   :  { %8646 = vmatprep.mubr.f32.mxu1 %v6217_v47  ;;  %v6067_v47 = vld [vmem:[#allocation3 + $0x1ed] sm:$0xff] }
 0x8e0   :  { %8647 = vmatmul.mubr.f32.gmra.mrb[98].mxu1 %v6055_v63  ;;  %v6230_v63 = vld [vmem:[#allocation3 + $0x1f6] sm:$0xff] }
 0x8e1   :  { %8651 = vmatprep.mubr.f32.mxu1 %v6218_v24  ;;  %v6068_v24 = vld [vmem:[#allocation3 + $0x1f5] sm:$0xff] }
 0x8e4   :  { %8652 = vmatmul.mubr.f32.gmra.mrb[100].mxu1 %v6056_v38  ;;  %v6231_v38 = vld [vmem:[#allocation3 + $0x1fe] sm:$0xff] }
 0x8e5   :  { %8656 = vmatprep.mubr.f32.mxu1 %v6219_v51  ;;  %v6069_v51 = vld [vmem:[#allocation3 + $0x1fd] sm:$0xff] }
 0x8e8   :  { %8657 = vmatmul.mubr.f32.gmra.mrb[102].mxu1 %v6057_v42  ;;  %v6232_v42 = vld [vmem:[#allocation3 + $0x206] sm:$0xff] }
 0x8e9   :  { %8661 = vmatprep.mubr.f32.mxu1 %v6220_v48  ;;  %v6070_v48 = vld [vmem:[#allocation3 + $0x205] sm:$0xff] }
 0x8ec   :  { %8662 = vmatmul.mubr.f32.gmra.mrb[104].mxu1 %v6058_v10  ;;  %v6233_v10 = vld [vmem:[#allocation3 + $0x20e] sm:$0xff] }
 0x8ed   :  { %8666 = vmatprep.mubr.f32.mxu1 %v6221_v12  ;;  %v6071_v12 = vld [vmem:[#allocation3 + $0x20d] sm:$0xff] }
 0x8f0   :  { %8667 = vmatmul.mubr.f32.gmra.mrb[106].mxu1 %v6059_v52  ;;  %v6234_v52 = vld [vmem:[#allocation3 + $0x216] sm:$0xff] }
 0x8f1   :  { %8671 = vmatprep.mubr.f32.mxu1 %v6222_v49  ;;  %v6072_v49 = vld [vmem:[#allocation3 + $0x215] sm:$0xff] }
 0x8f4   :  { %8672 = vmatmul.mubr.f32.gmra.mrb[108].mxu1 %v6060_v17  ;;  %v6235_v17 = vld [vmem:[#allocation3 + $0x21e] sm:$0xff] }
 0x8f5   :  { %8676 = vmatprep.mubr.f32.mxu1 %v6223_v13  ;;  %v6073_v13 = vld [vmem:[#allocation3 + $0x21d] sm:$0xff] }
 0x8f8   :  { %8677 = vmatmul.mubr.f32.gmra.mrb[110].mxu1 %v6061_v11  ;;  %v6236_v11 = vld [vmem:[#allocation3 + $0x226] sm:$0xff] }
 0x8f9   :  { %8681 = vmatprep.mubr.f32.mxu1 %v6224_v8  ;;  %v6074_v8 = vld [vmem:[#allocation3 + $0x225] sm:$0xff] }
 0x8fc   :  { %8682 = vmatmul.mubr.f32.gmra.mrb[112].mxu1 %v6062_v29  ;;  %v6237_v29 = vld [vmem:[#allocation3 + $0x22e] sm:$0xff] }
 0x8fd   :  { %8686 = vmatprep.mubr.f32.mxu1 %v6225_v27  ;;  %v6075_v27 = vld [vmem:[#allocation3 + $0x22d] sm:$0xff] }
 0x900   :  { %8687 = vmatmul.mubr.f32.gmra.mrb[114].mxu1 %v6063_v21  ;;  %v6238_v21 = vld [vmem:[#allocation3 + $0x236] sm:$0xff] }
 0x901   :  { %8691 = vmatprep.mubr.f32.mxu1 %v6226_v3  ;;  %v6076_v3 = vld [vmem:[#allocation3 + $0x235] sm:$0xff] }
 0x904   :  { %8692 = vmatmul.mubr.f32.gmra.mrb[116].mxu1 %v6064_v15  ;;  %v6239_v15 = vld [vmem:[#allocation3 + $0x23e] sm:$0xff] }
 0x905   :  { %8696 = vmatprep.mubr.f32.mxu1 %v6227_v14  ;;  %v6077_v14 = vld [vmem:[#allocation3 + $0x23d] sm:$0xff] }
 0x908   :  { %8697 = vmatmul.mubr.f32.gmra.mrb[118].mxu1 %v6065_v25  ;;  %v6240_v25 = vld [vmem:[#allocation3 + $0x246] sm:$0xff] }
 0x909   :  { %8701 = vmatprep.mubr.f32.mxu1 %v6228_v61  ;;  %v6078_v61 = vld [vmem:[#allocation3 + $0x245] sm:$0xff] }
 0x90c   :  { %8702 = vmatmul.mubr.f32.gmra.mrb[120].mxu1 %v6066_v46  ;;  %v6241_v46 = vld [vmem:[#allocation3 + $0x24e] sm:$0xff] }
 0x90d   :  { %8706 = vmatprep.mubr.f32.mxu1 %v6229_v5  ;;  %v6079_v5 = vld [vmem:[#allocation3 + $0x24d] sm:$0xff] }
 0x910   :  { %8707 = vmatmul.mubr.f32.gmra.mrb[122].mxu1 %v6067_v47  ;;  %v6242_v47 = vld [vmem:[#allocation3 + $0x256] sm:$0xff] }
 0x911   :  { %8711 = vmatprep.mubr.f32.mxu1 %v6230_v63  ;;  %v6080_v63 = vld [vmem:[#allocation3 + $0x255] sm:$0xff] }
 0x914   :  { %8712 = vmatmul.mubr.f32.gmra.mrb[124].mxu1 %v6068_v24  ;;  %v6243_v24 = vld [vmem:[#allocation3 + $0x25e] sm:$0xff] }
 0x915   :  { %8716 = vmatprep.mubr.f32.mxu1 %v6231_v38  ;;  %v6081_v38 = vld [vmem:[#allocation3 + $0x25d] sm:$0xff] }
 0x918   :  { %8717 = vmatmul.mubr.f32.gmra.mrb[126].mxu1 %v6069_v51  ;;  %v6244_v51 = vld [vmem:[#allocation3 + $0x266] sm:$0xff] }
 0x919   :  { %8721 = vmatprep.mubr.f32.mxu1 %v6232_v42  ;;  %v6082_v42 = vld [vmem:[#allocation3 + $0x265] sm:$0xff] }
 0x91c   :  { %8722 = vmatmul.mubr.f32.gmra.mrb[128].mxu1 %v6070_v48  ;;  %v6245_v48 = vld [vmem:[#allocation3 + $0x26e] sm:$0xff] }
 0x91d   :  { %8726 = vmatprep.mubr.f32.mxu1 %v6233_v10  ;;  %v6083_v10 = vld [vmem:[#allocation3 + $0x26d] sm:$0xff] }
 0x920   :  { %8727 = vmatmul.mubr.f32.gmra.mrb[130].mxu1 %v6071_v12  ;;  %v6246_v12 = vld [vmem:[#allocation3 + $0x276] sm:$0xff] }
 0x921   :  { %8731 = vmatprep.mubr.f32.mxu1 %v6234_v52  ;;  %v6084_v52 = vld [vmem:[#allocation3 + $0x275] sm:$0xff] }
 0x924   :  { %8732 = vmatmul.mubr.f32.gmra.mrb[132].mxu1 %v6072_v49  ;;  %v6247_v49 = vld [vmem:[#allocation3 + $0x27e] sm:$0xff] }
 0x925   :  { %8736 = vmatprep.mubr.f32.mxu1 %v6235_v17  ;;  %v6085_v17 = vld [vmem:[#allocation3 + $0x27d] sm:$0xff] }
 0x928   :  { %8737 = vmatmul.mubr.f32.gmra.mrb[134].mxu1 %v6073_v13  ;;  %v6248_v13 = vld [vmem:[#allocation3 + $0x286] sm:$0xff] }
 0x929   :  { %8741 = vmatprep.mubr.f32.mxu1 %v6236_v11  ;;  %v8257_v11 = vld [vmem:[#allocation9 + $0x200] sm:$0xff] }
 0x92c   :  { %8742 = vmatmul.mubr.f32.gmra.mrb[136].mxu1 %v6074_v8  ;;  %v8258_v8 = vld [vmem:[#allocation9 + $0x208] sm:$0xff] }
 0x92d   :  { %8746 = vmatprep.mubr.f32.mxu1 %v6237_v29  ;;  %v6086_v29 = vld [vmem:[#allocation3 + $0x285] sm:$0xff] }
 0x930   :  { %8747 = vmatmul.mubr.f32.gmra.mrb[138].mxu1 %v6075_v27  ;;  %v6492_v27 = vld [vmem:[#allocation3 + $0x17] sm:$0xff] }
 0x931   :  { %8751 = vmatprep.mubr.f32.mxu1 %v6238_v21  ;;  %v6330_v21 = vld [vmem:[#allocation3 + $0x7] sm:$0xff] }
 0x934   :  { %8752 = vmatmul.mubr.f32.gmra.mrb[140].mxu1 %v6076_v3  ;;  %v12605_v3 = vpack.c.bf16 %v8258_v8, %v8257_v11  ;;  %v6497_v11 = vld [vmem:[#allocation3 + $0x3f] sm:$0xff] }
 0x935   :  { %8756 = vmatprep.mubr.f32.mxu1 %v6239_v15  ;;  %v8259_v15 = vld [vmem:[#allocation9 + $0x210] sm:$0xff] }
 0x938   :  { %8757 = vmatmul.mubr.f32.gmra.mrb[142].mxu1 %v6077_v14  ;;  %v8260_v14 = vld [vmem:[#allocation9 + $0x218] sm:$0xff] }
 0x939   :  { %8761 = vmatprep.mubr.f32.mxu1 %v6240_v25  ;;  %v6493_v25 = vld [vmem:[#allocation3 + $0x1f] sm:$0xff] }
 0x93c   :  { %8762 = vmatmul.mubr.f32.gmra.mrb[144].mxu1 %v6078_v61  ;;  %v6331_v61 = vld [vmem:[#allocation3 + $0xf] sm:$0xff] }
 0x93d   :  { %8766 = vmatprep.mubr.f32.mxu1 %v6241_v46  ;;  %v12608_v46 = vpack.c.bf16 %v8260_v14, %v8259_v15  ;;  %v8271_v15 = vld [vmem:[#allocation9 + $0x270] sm:$0xff]  ;;  %v8272_v14 = vld [vmem:[#allocation9 + $0x278] sm:$0xff] }
 0x940   :  { %8767 = vmatmul.mubr.f32.gmra.mrb[146].mxu1 %v6079_v5  ;;  %v8261_v5 = vld [vmem:[#allocation9 + $0x220] sm:$0xff] }
 0x941   :  { %8771 = vmatprep.mubr.f32.mxu1 %v6242_v47  ;;  %v8262_v47 = vld [vmem:[#allocation9 + $0x228] sm:$0xff] }
 0x944   :  { %8772 = vmatmul.mubr.f32.gmra.mrb[148].mxu1 %v6080_v63  ;;  %v6494_v63 = vld [vmem:[#allocation3 + $0x27] sm:$0xff] }
 0x945   :  { %8776 = vmatprep.mubr.f32.mxu1 %v6243_v24  ;;  %v12611_v24 = vpack.c.bf16 %v8262_v47, %v8261_v5  ;;  %v6501_v5 = vld [vmem:[#allocation3 + $0x5f] sm:$0xff]  ;;  %v8273_v47 = vld [vmem:[#allocation9 + $0x280] sm:$0xff] }
 0x948   :  { %8777 = vmatmul.mubr.f32.gmra.mrb[150].mxu1 %v6081_v38  ;;  %v8263_v38 = vld [vmem:[#allocation9 + $0x230] sm:$0xff] }
 0x949   :  { %8781 = vmatprep.mubr.f32.mxu1 %v6244_v51  ;;  %v8264_v51 = vld [vmem:[#allocation9 + $0x238] sm:$0xff] }
 0x94c   :  { %8782 = vmatmul.mubr.f32.gmra.mrb[152].mxu1 %v6082_v42  ;;  %v6495_v42 = vld [vmem:[#allocation3 + $0x2f] sm:$0xff] }
 0x94d   :  { %8786 = vmatprep.mubr.f32.mxu1 %v6245_v48  ;;  %v12614_v48 = vpack.c.bf16 %v8264_v51, %v8263_v38  ;;  %v6502_v38 = vld [vmem:[#allocation3 + $0x67] sm:$0xff]  ;;  %v6503_v51 = vld [vmem:[#allocation3 + $0x6f] sm:$0xff] }
 0x950   :  { %8787 = vmatmul.mubr.f32.gmra.mrb[154].mxu1 %v6083_v10  ;;  %v8265_v10 = vld [vmem:[#allocation9 + $0x240] sm:$0xff] }
 0x951   :  { %8791 = vmatprep.mubr.f32.mxu1 %v6246_v12  ;;  %v8266_v12 = vld [vmem:[#allocation9 + $0x248] sm:$0xff] }
 0x954   :  { %8792 = vmatmul.mubr.f32.gmra.mrb[156].mxu1 %v6084_v52  ;;  %v6496_v52 = vld [vmem:[#allocation3 + $0x37] sm:$0xff] }
 0x955   :  { %8796 = vmatprep.mubr.f32.mxu1 %v6247_v49  ;;  %v12617_v49 = vpack.c.bf16 %v8266_v12, %v8265_v10  ;;  %v6506_v10 = vld [vmem:[#allocation3 + $0x87] sm:$0xff]  ;;  %v6507_v12 = vld [vmem:[#allocation3 + $0x8f] sm:$0xff] }
 0x958   :  { %8797 = vmatmul.mubr.f32.gmra.mrb[158].mxu1 %v6085_v17  ;;  %v8267_v17 = vld [vmem:[#allocation9 + $0x250] sm:$0xff] }
 0x959   :  { %8801 = vmatprep.mubr.f32.mxu1 %v6248_v13  ;;  %v8268_v13 = vld [vmem:[#allocation9 + $0x258] sm:$0xff] }
 0x95a   :  { %v12620_v8 = vpack.c.bf16 %v8268_v13, %v8267_v17  ;;  %v6508_v13 = vld [vmem:[#allocation3 + $0x97] sm:$0xff] }
 0x95c   :  { %8802 = vmatmul.mubr.f32.gmra.mrb[160].mxu1 %v6086_v29  ;;  %v8269_v29 = vld [vmem:[#allocation9 + $0x260] sm:$0xff] }
 0x95d   :  { %8871 = vmatprep.mubr.f32.mxu1 %v6492_v27 }
 0x960   :  { %8872 = vmatmul.mubr.f32.vlgmr.msra.gmra.mrb[0].mxu1 %v6330_v21  ;;  %v6498_v21 = vld [vmem:[#allocation3 + $0x47] sm:$0xff] }
 0x961   :  { %8876 = vmatprep.mubr.f32.mxu1 %v6493_v25  ;;  %12606 = vmatpush1.bf16.msra.mxu1 %v12605_v3 }
 0x962   :  { %12607 = vmatprep.subr.bf16.mxu1 %v19245_v57 }
 0x964   :  { %8877 = vmatmul.mubr.f32.gmra.mrb[2].mxu1 %v6331_v61  ;;  %v12626_v61 = vpack.c.bf16 %v8272_v14, %v8271_v15  ;;  %v6513_v14 = vld [vmem:[#allocation3 + $0xbf] sm:$0xff] }
 0x965   :  { %8881 = vmatprep.mubr.f32.mxu1 %v6494_v63  ;;  %12609 = vmatpush1.bf16.msra.mxu1 %v12608_v46  ;;  %v6500_v46 = vld [vmem:[#allocation3 + $0x57] sm:$0xff] }
 0x966   :  { %12610 = vmatprep.subr.bf16.mxu1 %v19245_v57 }
 0x968   :  { %8882 = vmatmul.mubr.f32.gmra.mrb[4].mxu1 %v6492_v27  ;;  %v8270_v27 = vld [vmem:[#allocation9 + $0x268] sm:$0xff] }
 0x969   :  { %8886 = vmatprep.mubr.f32.mxu1 %v6495_v42  ;;  %12612 = vmatpush1.bf16.msra.mxu1 %v12611_v24  ;;  %v12623_v3 = vpack.c.bf16 %v8270_v27, %v8269_v29  ;;  %v6511_v29 = vld [vmem:[#allocation3 + $0xaf] sm:$0xff]  ;;  %v6512_v27 = vld [vmem:[#allocation3 + $0xb7] sm:$0xff] }
 0x96a   :  { %12613 = vmatprep.subr.bf16.mxu1 %v19245_v57 }
 0x96c   :  { %8887 = vmatmul.mubr.f32.gmra.mrb[6].mxu1 %v6493_v25  ;;  %v6499_v25 = vld [vmem:[#allocation3 + $0x4f] sm:$0xff] }
 0x96d   :  { %8891 = vmatprep.mubr.f32.mxu1 %v6496_v52  ;;  %12615 = vmatpush1.bf16.msra.mxu1 %v12614_v48  ;;  %v6505_v48 = vld [vmem:[#allocation3 + $0x7f] sm:$0xff] }
 0x96e   :  { %12616 = vmatprep.subr.bf16.mxu1 %v19245_v57 }
 0x970   :  { %8892 = vmatmul.mubr.f32.gmra.mrb[8].mxu1 %v6494_v63  ;;  %v8274_v63 = vld [vmem:[#allocation9 + $0x288] sm:$0xff] }
 0x971   :  { %8896 = vmatprep.mubr.f32.mxu1 %v6497_v11  ;;  %12618 = vmatpush1.bf16.msra.mxu1 %v12617_v49  ;;  %v12629_v24 = vpack.c.bf16 %v8274_v63, %v8273_v47  ;;  %v8276_v49 = vld [vmem:[#allocation9 + $0x298] sm:$0xff]  ;;  %v8279_v47 = vld [vmem:[#allocation9 + $0x2b0] sm:$0xff] }
 0x972   :  { %12619 = vmatprep.subr.bf16.mxu1 %v19245_v57  ;;  %v8280_v63 = vld [vmem:[#allocation9 + $0x2b8] sm:$0xff] }
 0x974   :  { %8897 = vmatmul.mubr.f32.gmra.mrb[10].mxu1 %v6495_v42  ;;  %v6504_v42 = vld [vmem:[#allocation3 + $0x77] sm:$0xff] }
 0x975   :  { %8901 = vmatprep.mubr.f32.mxu1 %v6498_v21  ;;  %12621 = vmatpush1.bf16.msra.mxu1 %v12620_v8  ;;  %v6510_v8 = vld [vmem:[#allocation3 + $0xa7] sm:$0xff] }
 0x976   :  { %12622 = vmatprep.subr.bf16.mxu1 %v19245_v57 }
 0x978   :  { %8902 = vmatmul.mubr.f32.gmra.mrb[12].mxu1 %v6496_v52  ;;  %v8275_v52 = vld [vmem:[#allocation9 + $0x290] sm:$0xff] }
 0x979   :  { %8906 = vmatprep.mubr.f32.mxu1 %v6499_v25  ;;  %12624 = vmatpush1.bf16.msra.mxu1 %v12623_v3  ;;  %v12632_v17 = vpack.c.bf16 %v8276_v49, %v8275_v52  ;;  %v8278_v3 = vld [vmem:[#allocation9 + $0x2a8] sm:$0xff] }
 0x97a   :  { %12625 = vmatprep.subr.bf16.mxu1 %v19245_v57  ;;  %v8282_v52 = vld [vmem:[#allocation9 + $0x2c8] sm:$0xff] }
 0x97c   :  { %8907 = vmatmul.mubr.f32.gmra.mrb[14].mxu1 %v6497_v11  ;;  %v6509_v11 = vld [vmem:[#allocation3 + $0x9f] sm:$0xff] }
 0x97d   :  { %8911 = vmatprep.mubr.f32.mxu1 %v6500_v46  ;;  %12627 = vmatpush1.bf16.msra.mxu1 %v12626_v61  ;;  %v6515_v61 = vld [vmem:[#allocation3 + $0xcf] sm:$0xff] }
 0x97e   :  { %12628 = vmatprep.subr.bf16.mxu1 %v19245_v57 }
 0x980   :  { %8912 = vmatmul.mubr.f32.gmra.mrb[16].mxu1 %v6498_v21  ;;  %v8277_v21 = vld [vmem:[#allocation9 + $0x2a0] sm:$0xff] }
 0x981   :  { %8916 = vmatprep.mubr.f32.mxu1 %v6501_v5  ;;  %12630 = vmatpush1.bf16.msra.mxu1 %v12629_v24  ;;  %v12635_v15 = vpack.c.bf16 %v8278_v3, %v8277_v21  ;;  %v12638_v24 = vpack.c.bf16 %v8280_v63, %v8279_v47  ;;  %v8284_v21 = vld [vmem:[#allocation9 + $0x2d8] sm:$0xff]  ;;  %v8286_v47 = vld [vmem:[#allocation9 + $0x2e8] sm:$0xff] }
 0x982   :  { %12631 = vmatprep.subr.bf16.mxu1 %v19245_v57 }
 0x984   :  { %8917 = vmatmul.mubr.f32.gmra.mrb[18].mxu1 %v6499_v25  ;;  %v6514_v25 = vld [vmem:[#allocation3 + $0xc7] sm:$0xff] }
 0x985   :  { %8921 = vmatprep.mubr.f32.mxu1 %v6502_v38  ;;  %12633 = vmatpush1.bf16.msra.mxu1 %v12632_v17  ;;  %v6523_v17 = vld [vmem:[#allocation3 + $0x10f] sm:$0xff] }
 0x986   :  { %12634 = vmatprep.subr.bf16.mxu1 %v19245_v57 }
 0x988   :  { %8922 = vmatmul.mubr.f32.gmra.mrb[20].mxu1 %v6500_v46  ;;  %v6516_v46 = vld [vmem:[#allocation3 + $0xd7] sm:$0xff] }
 0x989   :  { %8926 = vmatprep.mubr.f32.mxu1 %v6503_v51  ;;  %12636 = vmatpush1.bf16.msra.mxu1 %v12635_v15  ;;  %v6528_v15 = vld [vmem:[#allocation3 + $0x137] sm:$0xff] }
 0x98a   :  { %12637 = vmatprep.subr.bf16.mxu1 %v19245_v57 }
 0x98c   :  { %8927 = vmatmul.mubr.f32.gmra.mrb[22].mxu1 %v6501_v5  ;;  %v6517_v5 = vld [vmem:[#allocation3 + $0xdf] sm:$0xff] }
 0x98d   :  { %8931 = vmatprep.mubr.f32.mxu1 %v6504_v42  ;;  %12639 = vmatpush1.bf16.msra.mxu1 %v12638_v24  ;;  %v6533_v24 = vld [vmem:[#allocation3 + $0x15f] sm:$0xff] }
 0x98e   :  { %12640 = vmatprep.subr.bf16.mxu1 %v19245_v57 }
 0x990   :  { %8932 = vmatmul.mubr.f32.gmra.mrb[24].mxu1 %v6502_v38  ;;  %v6518_v38 = vld [vmem:[#allocation3 + $0xe7] sm:$0xff] }
 0x991   :  { %8936 = vmatprep.mubr.f32.mxu1 %v6505_v48 }
 0x994   :  { %8937 = vmatmul.mubr.f32.gmra.mrb[26].mxu1 %v6503_v51  ;;  %v6519_v51 = vld [vmem:[#allocation3 + $0xef] sm:$0xff] }
 0x995   :  { %8941 = vmatprep.mubr.f32.mxu1 %v6506_v10 }
 0x998   :  { %8942 = vmatmul.mubr.f32.gmra.mrb[28].mxu1 %v6504_v42  ;;  %v6520_v42 = vld [vmem:[#allocation3 + $0xf7] sm:$0xff] }
 0x999   :  { %8946 = vmatprep.mubr.f32.mxu1 %v6507_v12 }
 0x99c   :  { %8947 = vmatmul.mubr.f32.gmra.mrb[30].mxu1 %v6505_v48  ;;  %v6521_v48 = vld [vmem:[#allocation3 + $0xff] sm:$0xff] }
 0x99d   :  { %8951 = vmatprep.mubr.f32.mxu1 %v6508_v13 }
 0x9a0   :  { %8952 = vmatmul.mubr.f32.gmra.mrb[32].mxu1 %v6506_v10  ;;  %v6522_v10 = vld [vmem:[#allocation3 + $0x107] sm:$0xff] }
 0x9a1   :  { %8956 = vmatprep.mubr.f32.mxu1 %v6509_v11 }
 0x9a4   :  { %8957 = vmatmul.mubr.f32.gmra.mrb[34].mxu1 %v6507_v12  ;;  %v8281_v12 = vld [vmem:[#allocation9 + $0x2c0] sm:$0xff] }
 0x9a5   :  { %8961 = vmatprep.mubr.f32.mxu1 %v6510_v8  ;;  %v12641_v49 = vpack.c.bf16 %v8282_v52, %v8281_v12  ;;  %v8288_v12 = vld [vmem:[#allocation9 + $0x2f8] sm:$0xff] }
 0x9a7   :  { %12642 = vmatpush1.bf16.msra.mxu1 %v12641_v49  ;;  %v6538_v49 = vld [vmem:[#allocation3 + $0x187] sm:$0xff] }
 0x9a8   :  { %8962 = vmatmul.mubr.f32.gmra.mrb[36].mxu1 %v6508_v13  ;;  %12643 = vmatprep.subr.bf16.mxu1 %v19245_v57  ;;  %v6524_v13 = vld [vmem:[#allocation3 + $0x117] sm:$0xff] }
 0x9a9   :  { %8966 = vmatprep.mubr.f32.mxu1 %v6511_v29 }
 0x9ac   :  { %8967 = vmatmul.mubr.f32.gmra.mrb[38].mxu1 %v6509_v11  ;;  %v6525_v11 = vld [vmem:[#allocation3 + $0x11f] sm:$0xff] }
 0x9ad   :  { %8971 = vmatprep.mubr.f32.mxu1 %v6512_v27 }
 0x9b0   :  { %8972 = vmatmul.mubr.f32.gmra.mrb[40].mxu1 %v6510_v8  ;;  %v6526_v8 = vld [vmem:[#allocation3 + $0x127] sm:$0xff] }
 0x9b1   :  { %8976 = vmatprep.mubr.f32.mxu1 %v6513_v14 }
 0x9b4   :  { %8977 = vmatmul.mubr.f32.gmra.mrb[42].mxu1 %v6511_v29  ;;  %v6527_v29 = vld [vmem:[#allocation3 + $0x12f] sm:$0xff] }
 0x9b5   :  { %8981 = vmatprep.mubr.f32.mxu1 %v6514_v25 }
 0x9b8   :  { %8982 = vmatmul.mubr.f32.gmra.mrb[44].mxu1 %v6512_v27  ;;  %v8283_v27 = vld [vmem:[#allocation9 + $0x2d0] sm:$0xff] }
 0x9b9   :  { %8986 = vmatprep.mubr.f32.mxu1 %v6515_v61  ;;  %v12644_v3 = vpack.c.bf16 %v8284_v21, %v8283_v27  ;;  %v6544_v27 = vld [vmem:[#allocation3 + $0x1b7] sm:$0xff]  ;;  %v6545_v21 = vld [vmem:[#allocation3 + $0x1bf] sm:$0xff] }
 0x9bb   :  { %12645 = vmatpush1.bf16.msra.mxu1 %v12644_v3  ;;  %v6546_v3 = vld [vmem:[#allocation3 + $0x1c7] sm:$0xff] }
 0x9bc   :  { %8987 = vmatmul.mubr.f32.gmra.mrb[46].mxu1 %v6513_v14  ;;  %12646 = vmatprep.subr.bf16.mxu1 %v19245_v57  ;;  %v6529_v14 = vld [vmem:[#allocation3 + $0x13f] sm:$0xff] }
 0x9bd   :  { %8991 = vmatprep.mubr.f32.mxu1 %v6516_v46 }
 0x9c0   :  { %8992 = vmatmul.mubr.f32.gmra.mrb[48].mxu1 %v6514_v25  ;;  %v6530_v25 = vld [vmem:[#allocation3 + $0x147] sm:$0xff] }
 0x9c1   :  { %8996 = vmatprep.mubr.f32.mxu1 %v6517_v5 }
 0x9c4   :  { %8997 = vmatmul.mubr.f32.gmra.mrb[50].mxu1 %v6515_v61  ;;  %v6531_v61 = vld [vmem:[#allocation3 + $0x14f] sm:$0xff] }
 0x9c5   :  { %9001 = vmatprep.mubr.f32.mxu1 %v6518_v38 }
 0x9c8   :  { %9002 = vmatmul.mubr.f32.gmra.mrb[52].mxu1 %v6516_v46  ;;  %v6532_v46 = vld [vmem:[#allocation3 + $0x157] sm:$0xff] }
 0x9c9   :  { %9006 = vmatprep.mubr.f32.mxu1 %v6519_v51 }
 0x9cc   :  { %9007 = vmatmul.mubr.f32.gmra.mrb[54].mxu1 %v6517_v5  ;;  %v8285_v5 = vld [vmem:[#allocation9 + $0x2e0] sm:$0xff] }
 0x9cd   :  { %9011 = vmatprep.mubr.f32.mxu1 %v6520_v42  ;;  %v12647_v63 = vpack.c.bf16 %v8286_v47, %v8285_v5  ;;  %v6552_v5 = vld [vmem:[#allocation3 + $0x1f7] sm:$0xff]  ;;  %v6553_v47 = vld [vmem:[#allocation3 + $0x1ff] sm:$0xff] }
 0x9cf   :  { %12648 = vmatpush1.bf16.msra.mxu1 %v12647_v63  ;;  %v6554_v63 = vld [vmem:[#allocation3 + $0x207] sm:$0xff] }
 0x9d0   :  { %9012 = vmatmul.mubr.f32.gmra.mrb[56].mxu1 %v6518_v38  ;;  %12649 = vmatprep.subr.bf16.mxu1 %v19245_v57  ;;  %v6534_v38 = vld [vmem:[#allocation3 + $0x167] sm:$0xff] }
 0x9d1   :  { %9016 = vmatprep.mubr.f32.mxu1 %v6521_v48 }
 0x9d4   :  { %9017 = vmatmul.mubr.f32.gmra.mrb[58].mxu1 %v6519_v51  ;;  %v6535_v51 = vld [vmem:[#allocation3 + $0x16f] sm:$0xff] }
 0x9d5   :  { %9021 = vmatprep.mubr.f32.mxu1 %v6522_v10 }
 0x9d8   :  { %9022 = vmatmul.mubr.f32.gmra.mrb[60].mxu1 %v6520_v42  ;;  %v6536_v42 = vld [vmem:[#allocation3 + $0x177] sm:$0xff] }
 0x9d9   :  { %9026 = vmatprep.mubr.f32.mxu1 %v6523_v17 }
 0x9dc   :  { %9027 = vmatmul.mubr.f32.gmra.mrb[62].mxu1 %v6521_v48  ;;  %v6537_v48 = vld [vmem:[#allocation3 + $0x17f] sm:$0xff] }
 0x9dd   :  { %9031 = vmatprep.mubr.f32.mxu1 %v6524_v13 }
 0x9e0   :  { %9032 = vmatmul.mubr.f32.gmra.mrb[64].mxu1 %v6522_v10  ;;  %v8287_v10 = vld [vmem:[#allocation9 + $0x2f0] sm:$0xff] }
 0x9e1   :  { %9036 = vmatprep.mubr.f32.mxu1 %v6525_v11  ;;  %v12650_v52 = vpack.c.bf16 %v8288_v12, %v8287_v10  ;;  %v6560_v10 = vld [vmem:[#allocation3 + $0x237] sm:$0xff]  ;;  %v6561_v12 = vld [vmem:[#allocation3 + $0x23f] sm:$0xff] }
 0x9e3   :  { %12651 = vmatpush1.bf16.msra.mxu1 %v12650_v52  ;;  %v6562_v52 = vld [vmem:[#allocation3 + $0x247] sm:$0xff] }
 0x9e4   :  { %9037 = vmatmul.mubr.f32.gmra.mrb[66].mxu1 %v6523_v17  ;;  %12652 = vmatprep.subr.bf16.mxu1 %v19245_v57  ;;  %v6539_v17 = vld [vmem:[#allocation3 + $0x18f] sm:$0xff] }
 0x9e5   :  { %9041 = vmatprep.mubr.f32.mxu1 %v6526_v8 }
 0x9e8   :  { %9042 = vmatmul.mubr.f32.gmra.mrb[68].mxu1 %v6524_v13  ;;  %v6540_v13 = vld [vmem:[#allocation3 + $0x197] sm:$0xff] }
 0x9e9   :  { %9046 = vmatprep.mubr.f32.mxu1 %v6527_v29 }
 0x9ec   :  { %9047 = vmatmul.mubr.f32.gmra.mrb[70].mxu1 %v6525_v11  ;;  %v6541_v11 = vld [vmem:[#allocation3 + $0x19f] sm:$0xff] }
 0x9ed   :  { %9051 = vmatprep.mubr.f32.mxu1 %v6528_v15 }
 0x9f0   :  { %9052 = vmatmul.mubr.f32.gmra.mrb[72].mxu1 %v6526_v8  ;;  %v6542_v8 = vld [vmem:[#allocation3 + $0x1a7] sm:$0xff] }
 0x9f1   :  { %9056 = vmatprep.mubr.f32.mxu1 %v6529_v14 }
 0x9f4   :  { %9057 = vmatmul.mubr.f32.gmra.mrb[74].mxu1 %v6527_v29  ;;  %v6543_v29 = vld [vmem:[#allocation3 + $0x1af] sm:$0xff] }
 0x9f5   :  { %9061 = vmatprep.mubr.f32.mxu1 %v6530_v25 }
 0x9f8   :  { %9062 = vmatmul.mubr.f32.gmra.mrb[76].mxu1 %v6528_v15  ;;  %v6547_v15 = vld [vmem:[#allocation3 + $0x1cf] sm:$0xff] }
 0x9f9   :  { %9066 = vmatprep.mubr.f32.mxu1 %v6531_v61 }
 0x9fc   :  { %9067 = vmatmul.mubr.f32.gmra.mrb[78].mxu1 %v6529_v14  ;;  %v6548_v14 = vld [vmem:[#allocation3 + $0x1d7] sm:$0xff] }
 0x9fd   :  { %9071 = vmatprep.mubr.f32.mxu1 %v6532_v46 }
 0xa00   :  { %9072 = vmatmul.mubr.f32.gmra.mrb[80].mxu1 %v6530_v25  ;;  %v6549_v25 = vld [vmem:[#allocation3 + $0x1df] sm:$0xff] }
 0xa01   :  { %9076 = vmatprep.mubr.f32.mxu1 %v6533_v24 }
 0xa04   :  { %9077 = vmatmul.mubr.f32.gmra.mrb[82].mxu1 %v6531_v61  ;;  %v6550_v61 = vld [vmem:[#allocation3 + $0x1e7] sm:$0xff] }
 0xa05   :  { %9081 = vmatprep.mubr.f32.mxu1 %v6534_v38 }
 0xa08   :  { %9082 = vmatmul.mubr.f32.gmra.mrb[84].mxu1 %v6532_v46  ;;  %v6551_v46 = vld [vmem:[#allocation3 + $0x1ef] sm:$0xff] }
 0xa09   :  { %9086 = vmatprep.mubr.f32.mxu1 %v6535_v51 }
 0xa0c   :  { %9087 = vmatmul.mubr.f32.gmra.mrb[86].mxu1 %v6533_v24  ;;  %v6555_v24 = vld [vmem:[#allocation3 + $0x20f] sm:$0xff] }
 0xa0d   :  { %9091 = vmatprep.mubr.f32.mxu1 %v6536_v42 }
 0xa10   :  { %9092 = vmatmul.mubr.f32.gmra.mrb[88].mxu1 %v6534_v38  ;;  %v6556_v38 = vld [vmem:[#allocation3 + $0x217] sm:$0xff] }
 0xa11   :  { %9096 = vmatprep.mubr.f32.mxu1 %v6537_v48 }
 0xa14   :  { %9097 = vmatmul.mubr.f32.gmra.mrb[90].mxu1 %v6535_v51  ;;  %v6557_v51 = vld [vmem:[#allocation3 + $0x21f] sm:$0xff] }
 0xa15   :  { %9101 = vmatprep.mubr.f32.mxu1 %v6538_v49 }
 0xa18   :  { %9102 = vmatmul.mubr.f32.gmra.mrb[92].mxu1 %v6536_v42  ;;  %v6558_v42 = vld [vmem:[#allocation3 + $0x227] sm:$0xff] }
 0xa19   :  { %9106 = vmatprep.mubr.f32.mxu1 %v6539_v17 }
 0xa1c   :  { %9107 = vmatmul.mubr.f32.gmra.mrb[94].mxu1 %v6537_v48  ;;  %v6559_v48 = vld [vmem:[#allocation3 + $0x22f] sm:$0xff] }
 0xa1d   :  { %9111 = vmatprep.mubr.f32.mxu1 %v6540_v13 }
 0xa20   :  { %9112 = vmatmul.mubr.f32.gmra.mrb[96].mxu1 %v6538_v49  ;;  %v6563_v49 = vld [vmem:[#allocation3 + $0x24f] sm:$0xff] }
 0xa21   :  { %9116 = vmatprep.mubr.f32.mxu1 %v6541_v11 }
 0xa24   :  { %9117 = vmatmul.mubr.f32.gmra.mrb[98].mxu1 %v6539_v17  ;;  %v6564_v17 = vld [vmem:[#allocation3 + $0x257] sm:$0xff] }
 0xa25   :  { %9121 = vmatprep.mubr.f32.mxu1 %v6542_v8 }
 0xa28   :  { %9122 = vmatmul.mubr.f32.gmra.mrb[100].mxu1 %v6540_v13  ;;  %v6565_v13 = vld [vmem:[#allocation3 + $0x25f] sm:$0xff] }
 0xa29   :  { %9126 = vmatprep.mubr.f32.mxu1 %v6543_v29 }
 0xa2c   :  { %9127 = vmatmul.mubr.f32.gmra.mrb[102].mxu1 %v6541_v11  ;;  %v6566_v11 = vld [vmem:[#allocation3 + $0x267] sm:$0xff] }
 0xa2d   :  { %9131 = vmatprep.mubr.f32.mxu1 %v6544_v27 }
 0xa30   :  { %9132 = vmatmul.mubr.f32.gmra.mrb[104].mxu1 %v6542_v8  ;;  %v6567_v8 = vld [vmem:[#allocation3 + $0x26f] sm:$0xff] }
 0xa31   :  { %9136 = vmatprep.mubr.f32.mxu1 %v6545_v21 }
 0xa34   :  { %9137 = vmatmul.mubr.f32.gmra.mrb[106].mxu1 %v6543_v29  ;;  %v6568_v29 = vld [vmem:[#allocation3 + $0x277] sm:$0xff] }
 0xa35   :  { %9141 = vmatprep.mubr.f32.mxu1 %v6546_v3 }
 0xa38   :  { %9142 = vmatmul.mubr.f32.gmra.mrb[108].mxu1 %v6544_v27  ;;  %v6569_v27 = vld [vmem:[#allocation3 + $0x27f] sm:$0xff] }
 0xa39   :  { %9146 = vmatprep.mubr.f32.mxu1 %v6547_v15 }
 0xa3c   :  { %9147 = vmatmul.mubr.f32.gmra.mrb[110].mxu1 %v6545_v21  ;;  %v6570_v21 = vld [vmem:[#allocation3 + $0x287] sm:$0xff] }
 0xa3d   :  { %9151 = vmatprep.mubr.f32.mxu1 %v6548_v14 }
 0xa40   :  { %9152 = vmatmul.mubr.f32.gmra.mrb[112].mxu1 %v6546_v3  ;;  %v6571_v3 = vld [vmem:[#allocation3 + $0x28f] sm:$0xff] }
 0xa41   :  { %9156 = vmatprep.mubr.f32.mxu1 %v6549_v25 }
 0xa44   :  { %9157 = vmatmul.mubr.f32.gmra.mrb[114].mxu1 %v6547_v15  ;;  %v6572_v15 = vld [vmem:[#allocation3 + $0x297] sm:$0xff] }
 0xa45   :  { %9161 = vmatprep.mubr.f32.mxu1 %v6550_v61 }
 0xa48   :  { %9162 = vmatmul.mubr.f32.gmra.mrb[116].mxu1 %v6548_v14  ;;  %v8289_v14 = vld [vmem:[#allocation9 + $0x300] sm:$0xff] }
 0xa49   :  { %9166 = vmatprep.mubr.f32.mxu1 %v6551_v46 }
 0xa4c   :  { %9167 = vmatmul.mubr.f32.gmra.mrb[118].mxu1 %v6549_v25  ;;  %v8290_v25 = vld [vmem:[#allocation9 + $0x308] sm:$0xff] }
 0xa4d   :  { %9171 = vmatprep.mubr.f32.mxu1 %v6552_v5 }
 0xa50   :  { %9172 = vmatmul.mubr.f32.gmra.mrb[120].mxu1 %v6550_v61  ;;  %v6816_v61 = vld [vmem:[#allocation3 + $0x19] sm:$0xff] }
 0xa51   :  { %9176 = vmatprep.mubr.f32.mxu1 %v6553_v47 }
 0xa54   :  { %9177 = vmatmul.mubr.f32.gmra.mrb[122].mxu1 %v6551_v46  ;;  %v12653_v46 = vpack.c.bf16 %v8290_v25, %v8289_v14  ;;  %v8300_v14 = vld [vmem:[#allocation9 + $0x358] sm:$0xff]  ;;  %v6658_v25 = vld [vmem:[#allocation3 + $0x38] sm:$0xff] }
 0xa55   :  { %9181 = vmatprep.mubr.f32.mxu1 %v6554_v63 }
 0xa58   :  { %9182 = vmatmul.mubr.f32.gmra.mrb[124].mxu1 %v6552_v5  ;;  %v8291_v5 = vld [vmem:[#allocation9 + $0x310] sm:$0xff] }
 0xa59   :  { %9186 = vmatprep.mubr.f32.mxu1 %v6555_v24 }
 0xa5c   :  { %9187 = vmatmul.mubr.f32.gmra.mrb[126].mxu1 %v6553_v47  ;;  %v8292_v47 = vld [vmem:[#allocation9 + $0x318] sm:$0xff] }
 0xa5d   :  { %9191 = vmatprep.mubr.f32.mxu1 %v6556_v38 }
 0xa60   :  { %9192 = vmatmul.mubr.f32.gmra.mrb[128].mxu1 %v6554_v63  ;;  %v6654_v63 = vld [vmem:[#allocation3 + $0x18] sm:$0xff] }
 0xa61   :  { %9196 = vmatprep.mubr.f32.mxu1 %v6557_v51 }
 0xa64   :  { %9197 = vmatmul.mubr.f32.gmra.mrb[130].mxu1 %v6555_v24  ;;  %v6817_v24 = vld [vmem:[#allocation3 + $0x21] sm:$0xff] }
 0xa65   :  { %9201 = vmatprep.mubr.f32.mxu1 %v6558_v42 }
 0xa68   :  { %9202 = vmatmul.mubr.f32.gmra.mrb[132].mxu1 %v6556_v38  ;;  %v12656_v38 = vpack.c.bf16 %v8292_v47, %v8291_v5  ;;  %v8301_v5 = vld [vmem:[#allocation9 + $0x360] sm:$0xff]  ;;  %v8302_v47 = vld [vmem:[#allocation9 + $0x368] sm:$0xff] }
 0xa69   :  { %9206 = vmatprep.mubr.f32.mxu1 %v6559_v48 }
 0xa6c   :  { %9207 = vmatmul.mubr.f32.gmra.mrb[134].mxu1 %v6557_v51  ;;  %v8293_v51 = vld [vmem:[#allocation9 + $0x320] sm:$0xff] }
 0xa6d   :  { %9211 = vmatprep.mubr.f32.mxu1 %v6560_v10 }
 0xa70   :  { %9212 = vmatmul.mubr.f32.gmra.mrb[136].mxu1 %v6558_v42  ;;  %v8294_v42 = vld [vmem:[#allocation9 + $0x328] sm:$0xff] }
 0xa71   :  { %9216 = vmatprep.mubr.f32.mxu1 %v6561_v12 }
 0xa74   :  { %9217 = vmatmul.mubr.f32.gmra.mrb[138].mxu1 %v6559_v48  ;;  %v6655_v48 = vld [vmem:[#allocation3 + $0x20] sm:$0xff] }
 0xa75   :  { %9221 = vmatprep.mubr.f32.mxu1 %v6562_v52 }
 0xa78   :  { %9222 = vmatmul.mubr.f32.gmra.mrb[140].mxu1 %v6560_v10  ;;  %v16550_v10 = vld [vmem:[#allocation3 + $0x29] sm:$0xff] }
 0xa79   :  { %9226 = vmatprep.mubr.f32.mxu1 %v6563_v49 }
 0xa7c   :  { %9227 = vmatmul.mubr.f32.gmra.mrb[142].mxu1 %v6561_v12  ;;  %v12659_v12 = vpack.c.bf16 %v8294_v42, %v8293_v51  ;;  %v8303_v51 = vld [vmem:[#allocation9 + $0x370] sm:$0xff]  ;;  %v8304_v42 = vld [vmem:[#allocation9 + $0x378] sm:$0xff] }
 0xa7d   :  { %9231 = vmatprep.mubr.f32.mxu1 %v6564_v17 }
 0xa80   :  { %9232 = vmatmul.mubr.f32.gmra.mrb[144].mxu1 %v6562_v52  ;;  %v8295_v52 = vld [vmem:[#allocation9 + $0x330] sm:$0xff] }
 0xa81   :  { %9236 = vmatprep.mubr.f32.mxu1 %v6565_v13 }
 0xa84   :  { %9237 = vmatmul.mubr.f32.gmra.mrb[146].mxu1 %v6563_v49  ;;  %v8296_v49 = vld [vmem:[#allocation9 + $0x338] sm:$0xff] }
 0xa85   :  { %9241 = vmatprep.mubr.f32.mxu1 %v6566_v11 }
 0xa88   :  { %9242 = vmatmul.mubr.f32.gmra.mrb[148].mxu1 %v6564_v17  ;;  %v6656_v17 = vld [vmem:[#allocation3 + $0x28] sm:$0xff] }
 0xa89   :  { %9246 = vmatprep.mubr.f32.mxu1 %v6567_v8 }
 0xa8c   :  { %9247 = vmatmul.mubr.f32.gmra.mrb[150].mxu1 %v6565_v13  ;;  %v16554_v13 = vld [vmem:[#allocation3 + $0x31] sm:$0xff] }
 0xa8d   :  { %9251 = vmatprep.mubr.f32.mxu1 %v6568_v29 }
 0xa90   :  { %9252 = vmatmul.mubr.f32.gmra.mrb[152].mxu1 %v6566_v11  ;;  %v12662_v11 = vpack.c.bf16 %v8296_v49, %v8295_v52  ;;  %v12674_v52 = vpack.c.bf16 %v8304_v42, %v8303_v51  ;;  %v6661_v49 = vld [vmem:[#allocation3 + $0x50] sm:$0xff]  ;;  %v6667_v51 = vld [vmem:[#allocation3 + $0x80] sm:$0xff] }
 0xa91   :  { %9256 = vmatprep.mubr.f32.mxu1 %v6569_v27  ;;  %v16594_v42 = vld [vmem:[#allocation3 + $0x89] sm:$0xff] }
 0xa94   :  { %9257 = vmatmul.mubr.f32.gmra.mrb[154].mxu1 %v6567_v8  ;;  %v8297_v8 = vld [vmem:[#allocation9 + $0x340] sm:$0xff] }
 0xa95   :  { %9261 = vmatprep.mubr.f32.mxu1 %v6570_v21 }
 0xa98   :  { %9262 = vmatmul.mubr.f32.gmra.mrb[156].mxu1 %v6568_v29  ;;  %v8298_v29 = vld [vmem:[#allocation9 + $0x348] sm:$0xff] }
 0xa99   :  { %9266 = vmatprep.mubr.f32.mxu1 %v6571_v3  ;;  %v12665_v3 = vpack.c.bf16 %v8298_v29, %v8297_v8  ;;  %v16578_v8 = vld [vmem:[#allocation3 + $0x61] sm:$0xff]  ;;  %v8305_v29 = vld [vmem:[#allocation9 + $0x380] sm:$0xff] }
 0xa9c   :  { %9267 = vmatmul.mubr.f32.gmra.mrb[158].mxu1 %v6569_v27  ;;  %v6657_v27 = vld [vmem:[#allocation3 + $0x30] sm:$0xff] }
 0xa9d   :  { %9271 = vmatprep.mubr.f32.mxu1 %v6572_v15  ;;  %v8299_v15 = vld [vmem:[#allocation9 + $0x350] sm:$0xff] }
 0xaa0   :  { %9272 = vmatmul.mubr.f32.gmra.mrb[160].mxu1 %v6570_v21  ;;  %v16558_v21 = vld [vmem:[#allocation3 + $0x39] sm:$0xff] }
 0xaa1   :  { %9341 = vmatprep.mubr.f32.mxu1 %v6816_v61  ;;  %v16562_v61 = vld [vmem:[#allocation3 + $0x41] sm:$0xff] }
 0xaa4   :  { %9342 = vmatmul.mubr.f32.vlgmr.msra.gmra.mrb[0].mxu1 %v6654_v63  ;;  %v6659_v63 = vld [vmem:[#allocation3 + $0x40] sm:$0xff] }
 0xaa5   :  { %9346 = vmatprep.mubr.f32.mxu1 %v6817_v24  ;;  %12654 = vmatpush1.bf16.msra.mxu1 %v12653_v46  ;;  %v12668_v46 = vpack.c.bf16 %v8300_v14, %v8299_v15  ;;  %v16566_v24 = vld [vmem:[#allocation3 + $0x49] sm:$0xff]  ;;  %v6663_v15 = vld [vmem:[#allocation3 + $0x60] sm:$0xff] }
 0xaa6   :  { %12655 = vmatprep.subr.bf16.mxu1 %v19245_v57  ;;  %v16581_v14 = vld [vmem:[#allocation3 + $0x69] sm:$0xff] }
 0xaa8   :  { %9347 = vmatmul.mubr.f32.gmra.mrb[2].mxu1 %v6655_v48  ;;  %v6660_v48 = vld [vmem:[#allocation3 + $0x48] sm:$0xff] }
 0xaa9   :  { %9351 = vmatprep.mubr.f32.mxu1 %v16550_v10  ;;  %12657 = vmatpush1.bf16.msra.mxu1 %v12656_v38  ;;  %v12671_v38 = vpack.c.bf16 %v8302_v47, %v8301_v5  ;;  %v6665_v5 = vld [vmem:[#allocation3 + $0x70] sm:$0xff]  ;;  %v16588_v47 = vld [vmem:[#allocation3 + $0x79] sm:$0xff] }
 0xaaa   :  { %12658 = vmatprep.subr.bf16.mxu1 %v19245_v57 }
 0xaac   :  { %9352 = vmatmul.mubr.f32.gmra.mrb[4].mxu1 %v6656_v17  ;;  %v16574_v17 = vld [vmem:[#allocation3 + $0x59] sm:$0xff] }
 0xaad   :  { %9356 = vmatprep.mubr.f32.mxu1 %v16554_v13  ;;  %12660 = vmatpush1.bf16.msra.mxu1 %v12659_v12  ;;  %v16570_v12 = vld [vmem:[#allocation3 + $0x51] sm:$0xff] }
 0xaae   :  { %12661 = vmatprep.subr.bf16.mxu1 %v19245_v57 }
 0xab0   :  { %9357 = vmatmul.mubr.f32.gmra.mrb[6].mxu1 %v6657_v27  ;;  %v8306_v27 = vld [vmem:[#allocation9 + $0x388] sm:$0xff] }
 0xab1   :  { %9361 = vmatprep.mubr.f32.mxu1 %v16558_v21  ;;  %12663 = vmatpush1.bf16.msra.mxu1 %v12662_v11  ;;  %v6662_v11 = vld [vmem:[#allocation3 + $0x58] sm:$0xff] }
 0xab2   :  { %12664 = vmatprep.subr.bf16.mxu1 %v19245_v57 }
 0xab4   :  { %9362 = vmatmul.mubr.f32.gmra.mrb[8].mxu1 %v6658_v25  ;;  %v6664_v25 = vld [vmem:[#allocation3 + $0x68] sm:$0xff] }
 0xab5   :  { %9366 = vmatprep.mubr.f32.mxu1 %v16562_v61  ;;  %12666 = vmatpush1.bf16.msra.mxu1 %v12665_v3  ;;  %v12677_v3 = vpack.c.bf16 %v8306_v27, %v8305_v29  ;;  %v6669_v27 = vld [vmem:[#allocation3 + $0x90] sm:$0xff] }
 0xab6   :  { %12667 = vmatprep.subr.bf16.mxu1 %v19245_v57 }
 0xab8   :  { %9367 = vmatmul.mubr.f32.gmra.mrb[10].mxu1 %v6659_v63  ;;  %v6666_v63 = vld [vmem:[#allocation3 + $0x78] sm:$0xff] }
 0xab9   :  { %9371 = vmatprep.mubr.f32.mxu1 %v16566_v24  ;;  %12669 = vmatpush1.bf16.msra.mxu1 %v12668_v46  ;;  %v16585_v46 = vld [vmem:[#allocation3 + $0x71] sm:$0xff] }
 0xaba   :  { %12670 = vmatprep.subr.bf16.mxu1 %v19245_v57 }
 0xabc   :  { %9372 = vmatmul.mubr.f32.gmra.mrb[12].mxu1 %v6660_v48  ;;  %v6668_v48 = vld [vmem:[#allocation3 + $0x88] sm:$0xff] }
 0xabd   :  { %9376 = vmatprep.mubr.f32.mxu1 %v16570_v12  ;;  %12672 = vmatpush1.bf16.msra.mxu1 %v12671_v38  ;;  %v16591_v38 = vld [vmem:[#allocation3 + $0x81] sm:$0xff] }
 0xabe   :  { %12673 = vmatprep.subr.bf16.mxu1 %v19245_v57 }
 0xac0   :  { %9377 = vmatmul.mubr.f32.gmra.mrb[14].mxu1 %v6661_v49  ;;  %v8307_v49 = vld [vmem:[#allocation9 + $0x390] sm:$0xff] }
 0xac1   :  { %9381 = vmatprep.mubr.f32.mxu1 %v16574_v17  ;;  %12675 = vmatpush1.bf16.msra.mxu1 %v12674_v52  ;;  %v16597_v52 = vld [vmem:[#allocation3 + $0x91] sm:$0xff] }
 0xac2   :  { %12676 = vmatprep.subr.bf16.mxu1 %v19245_v57 }
 0xac4   :  { %9382 = vmatmul.mubr.f32.gmra.mrb[16].mxu1 %v6662_v11  ;;  %v8308_v11 = vld [vmem:[#allocation9 + $0x398] sm:$0xff] }
 0xac5   :  { %9386 = vmatprep.mubr.f32.mxu1 %v16578_v8  ;;  %12678 = vmatpush1.bf16.msra.mxu1 %v12677_v3  ;;  %v12680_v29 = vpack.c.bf16 %v8308_v11, %v8307_v49  ;;  %v16600_v3 = vld [vmem:[#allocation3 + $0x99] sm:$0xff]  ;;  %v6673_v49 = vld [vmem:[#allocation3 + $0xb0] sm:$0xff] }
 0xac6   :  { %12679 = vmatprep.subr.bf16.mxu1 %v19245_v57  ;;  %v16613_v11 = vld [vmem:[#allocation3 + $0xb9] sm:$0xff] }
 0xac8   :  { %9387 = vmatmul.mubr.f32.gmra.mrb[18].mxu1 %v6663_v15  ;;  %v6670_v15 = vld [vmem:[#allocation3 + $0x98] sm:$0xff] }
 0xac9   :  { %9391 = vmatprep.mubr.f32.mxu1 %v16581_v14  ;;  %12681 = vmatpush1.bf16.msra.mxu1 %v12680_v29  ;;  %v8309_v29 = vld [vmem:[#allocation9 + $0x3a0] sm:$0xff] }
 0xaca   :  { %12682 = vmatprep.subr.bf16.mxu1 %v19245_v57 }
 0xacc   :  { %9392 = vmatmul.mubr.f32.gmra.mrb[20].mxu1 %v6664_v25  ;;  %v16604_v25 = vld [vmem:[#allocation3 + $0xa1] sm:$0xff] }
 0xacd   :  { %9396 = vmatprep.mubr.f32.mxu1 %v16585_v46 }
 0xad0   :  { %9397 = vmatmul.mubr.f32.gmra.mrb[22].mxu1 %v6665_v5  ;;  %v6671_v5 = vld [vmem:[#allocation3 + $0xa0] sm:$0xff] }
 0xad1   :  { %9401 = vmatprep.mubr.f32.mxu1 %v16588_v47 }
 0xad4   :  { %9402 = vmatmul.mubr.f32.gmra.mrb[24].mxu1 %v6666_v63  ;;  %v16607_v63 = vld [vmem:[#allocation3 + $0xa9] sm:$0xff] }
 0xad5   :  { %9406 = vmatprep.mubr.f32.mxu1 %v16591_v38 }
 0xad8   :  { %9407 = vmatmul.mubr.f32.gmra.mrb[26].mxu1 %v6667_v51  ;;  %v6672_v51 = vld [vmem:[#allocation3 + $0xa8] sm:$0xff] }
 0xad9   :  { %9411 = vmatprep.mubr.f32.mxu1 %v16594_v42 }
 0xadc   :  { %9412 = vmatmul.mubr.f32.gmra.mrb[28].mxu1 %v6668_v48  ;;  %v16610_v48 = vld [vmem:[#allocation3 + $0xb1] sm:$0xff] }
 0xadd   :  { %9416 = vmatprep.mubr.f32.mxu1 %v16597_v52 }
 0xae0   :  { %9417 = vmatmul.mubr.f32.gmra.mrb[30].mxu1 %v6669_v27  ;;  %v8310_v27 = vld [vmem:[#allocation9 + $0x3a8] sm:$0xff] }
 0xae1   :  { %9421 = vmatprep.mubr.f32.mxu1 %v16600_v3 }
 0xae4   :  { %9422 = vmatmul.mubr.f32.gmra.mrb[32].mxu1 %v6670_v15  ;;  %v12683_v15 = vpack.c.bf16 %v8310_v27, %v8309_v29  ;;  %v6677_v29 = vld [vmem:[#allocation3 + $0xd0] sm:$0xff]  ;;  %v16626_v27 = vld [vmem:[#allocation3 + $0xd9] sm:$0xff] }
 0xae5   :  { %9426 = vmatprep.mubr.f32.mxu1 %v16604_v25 }
 0xae6   :  { %12684 = vmatpush1.bf16.msra.mxu1 %v12683_v15  ;;  %v6678_v15 = vld [vmem:[#allocation3 + $0xd8] sm:$0xff] }
 0xae7   :  { %12685 = vmatprep.subr.bf16.mxu1 %v19245_v57 }
 0xae8   :  { %9427 = vmatmul.mubr.f32.gmra.mrb[34].mxu1 %v6671_v5  ;;  %v6674_v5 = vld [vmem:[#allocation3 + $0xb8] sm:$0xff] }
 0xae9   :  { %9431 = vmatprep.mubr.f32.mxu1 %v16607_v63 }
 0xaec   :  { %9432 = vmatmul.mubr.f32.gmra.mrb[36].mxu1 %v6672_v51  ;;  %v6675_v51 = vld [vmem:[#allocation3 + $0xc0] sm:$0xff] }
 0xaed   :  { %9436 = vmatprep.mubr.f32.mxu1 %v16610_v48 }
 0xaf0   :  { %9437 = vmatmul.mubr.f32.gmra.mrb[38].mxu1 %v6673_v49  ;;  %v6676_v49 = vld [vmem:[#allocation3 + $0xc8] sm:$0xff] }
 0xaf1   :  { %9441 = vmatprep.mubr.f32.mxu1 %v16613_v11 }
 0xaf4   :  { %9442 = vmatmul.mubr.f32.gmra.mrb[40].mxu1 %v6674_v5  ;;  %v16629_v5 = vld [vmem:[#allocation3 + $0xe1] sm:$0xff] }
 0xaf5   :  { %9446 = vmatprep.mubr.f32.mxu1 %v16616_v31 }
 0xaf8   :  { %9447 = vmatmul.mubr.f32.gmra.mrb[42].mxu1 %v6675_v51  ;;  %v8311_v51 = vld [vmem:[#allocation9 + $0x3b0] sm:$0xff] }
 0xaf9   :  { %9451 = vmatprep.mubr.f32.mxu1 %v16620_v36  ;;  %v12686_v62 = vpack.c.bf16 %v8312_v4, %v8311_v51  ;;  %v6682_v4 = vld [vmem:[#allocation3 + $0xf8] sm:$0xff]  ;;  %v6683_v51 = vld [vmem:[#allocation3 + $0x100] sm:$0xff] }
 0xafb   :  { %12687 = vmatpush1.bf16.msra.mxu1 %v12686_v62  ;;  %v16642_v62 = vld [vmem:[#allocation3 + $0x101] sm:$0xff] }
 0xafc   :  { %9452 = vmatmul.mubr.f32.gmra.mrb[44].mxu1 %v6676_v49  ;;  %v6679_v49 = vld [vmem:[#allocation3 + $0xe0] sm:$0xff]  ;;  %12688 = vmatprep.subr.bf16.mxu1 %v19245_v57 }
 0xafd   :  { %9456 = vmatprep.mubr.f32.mxu1 %v16623_v22 }
 0xb00   :  { %9457 = vmatmul.mubr.f32.gmra.mrb[46].mxu1 %v6677_v29  ;;  %v6680_v29 = vld [vmem:[#allocation3 + $0xe8] sm:$0xff] }
 0xb01   :  { %9461 = vmatprep.mubr.f32.mxu1 %v16626_v27 }
 0xb04   :  { %9462 = vmatmul.mubr.f32.gmra.mrb[48].mxu1 %v6678_v15  ;;  %v6681_v15 = vld [vmem:[#allocation3 + $0xf0] sm:$0xff] }
 0xb05   :  { %9466 = vmatprep.mubr.f32.mxu1 %v16629_v5 }
 0xb08   :  { %9467 = vmatmul.mubr.f32.gmra.mrb[50].mxu1 %v6679_v49  ;;  %v16645_v49 = vld [vmem:[#allocation3 + $0x109] sm:$0xff] }
 0xb09   :  { %9471 = vmatprep.mubr.f32.mxu1 %v16632_v23 }
 0xb0c   :  { %9472 = vmatmul.mubr.f32.gmra.mrb[52].mxu1 %v6680_v29  ;;  %v8313_v29 = vld [vmem:[#allocation9 + $0x3c0] sm:$0xff] }
 0xb0d   :  { %9476 = vmatprep.mubr.f32.mxu1 %v16636_v44  ;;  %v12689_v56 = vpack.c.bf16 %v8314_v26, %v8313_v29  ;;  %v6687_v26 = vld [vmem:[#allocation3 + $0x120] sm:$0xff]  ;;  %v6688_v29 = vld [vmem:[#allocation3 + $0x128] sm:$0xff] }
 0xb0f   :  { %12690 = vmatpush1.bf16.msra.mxu1 %v12689_v56  ;;  %v16658_v56 = vld [vmem:[#allocation3 + $0x129] sm:$0xff] }
 0xb10   :  { %9477 = vmatmul.mubr.f32.gmra.mrb[54].mxu1 %v6681_v15  ;;  %v6684_v15 = vld [vmem:[#allocation3 + $0x108] sm:$0xff]  ;;  %12691 = vmatprep.subr.bf16.mxu1 %v19245_v57 }
 0xb11   :  { %9481 = vmatprep.mubr.f32.mxu1 %v16639_v18 }
 0xb14   :  { %9482 = vmatmul.mubr.f32.gmra.mrb[56].mxu1 %v6682_v4  ;;  %v6685_v4 = vld [vmem:[#allocation3 + $0x110] sm:$0xff] }
 0xb15   :  { %9486 = vmatprep.mubr.f32.mxu1 %v16642_v62 }
 0xb18   :  { %9487 = vmatmul.mubr.f32.gmra.mrb[58].mxu1 %v6683_v51  ;;  %v6686_v51 = vld [vmem:[#allocation3 + $0x118] sm:$0xff] }
 0xb19   :  { %9491 = vmatprep.mubr.f32.mxu1 %v16645_v49 }
 0xb1c   :  { %9492 = vmatmul.mubr.f32.gmra.mrb[60].mxu1 %v6684_v15  ;;  %v16661_v15 = vld [vmem:[#allocation3 + $0x131] sm:$0xff] }
 0xb1d   :  { %9496 = vmatprep.mubr.f32.mxu1 %v16648_v32 }
 0xb20   :  { %9497 = vmatmul.mubr.f32.gmra.mrb[62].mxu1 %v6685_v4  ;;  %v8315_v4 = vld [vmem:[#allocation9 + $0x3d0] sm:$0xff] }
 0xb21   :  { %9501 = vmatprep.mubr.f32.mxu1 %v16652_v41  ;;  %v12692_v16 = vpack.c.bf16 %v8316_v60, %v8315_v4  ;;  %v6692_v60 = vld [vmem:[#allocation3 + $0x148] sm:$0xff]  ;;  %v16674_v4 = vld [vmem:[#allocation3 + $0x151] sm:$0xff] }
 0xb23   :  { %12693 = vmatpush1.bf16.msra.mxu1 %v12692_v16  ;;  %v6693_v16 = vld [vmem:[#allocation3 + $0x150] sm:$0xff] }
 0xb24   :  { %9502 = vmatmul.mubr.f32.gmra.mrb[64].mxu1 %v6686_v51  ;;  %v6689_v51 = vld [vmem:[#allocation3 + $0x130] sm:$0xff]  ;;  %12694 = vmatprep.subr.bf16.mxu1 %v19245_v57 }
 0xb25   :  { %9506 = vmatprep.mubr.f32.mxu1 %v16655_v2 }
 0xb28   :  { %9507 = vmatmul.mubr.f32.gmra.mrb[66].mxu1 %v6687_v26  ;;  %v6690_v26 = vld [vmem:[#allocation3 + $0x138] sm:$0xff] }
 0xb29   :  { %9511 = vmatprep.mubr.f32.mxu1 %v16658_v56 }
 0xb2c   :  { %9512 = vmatmul.mubr.f32.gmra.mrb[68].mxu1 %v6688_v29  ;;  %v6691_v29 = vld [vmem:[#allocation3 + $0x140] sm:$0xff] }
 0xb2d   :  { %9516 = vmatprep.mubr.f32.mxu1 %v16661_v15 }
 0xb30   :  { %9517 = vmatmul.mubr.f32.gmra.mrb[70].mxu1 %v6689_v51  ;;  %v16677_v51 = vld [vmem:[#allocation3 + $0x159] sm:$0xff] }
 0xb31   :  { %9521 = vmatprep.mubr.f32.mxu1 %v16664_v20 }
 0xb34   :  { %9522 = vmatmul.mubr.f32.gmra.mrb[72].mxu1 %v6690_v26  ;;  %v8317_v26 = vld [vmem:[#allocation9 + $0x3e0] sm:$0xff] }
 0xb35   :  { %9526 = vmatprep.mubr.f32.mxu1 %v16668_v33  ;;  %v12695_v19 = vpack.c.bf16 %v8318_v1, %v8317_v26  ;;  %v6697_v1 = vld [vmem:[#allocation3 + $0x170] sm:$0xff]  ;;  %v16690_v26 = vld [vmem:[#allocation3 + $0x179] sm:$0xff] }
 0xb37   :  { %12696 = vmatpush1.bf16.msra.mxu1 %v12695_v19  ;;  %v6698_v19 = vld [vmem:[#allocation3 + $0x178] sm:$0xff] }
 0xb38   :  { %9527 = vmatmul.mubr.f32.gmra.mrb[74].mxu1 %v6691_v29  ;;  %v6694_v29 = vld [vmem:[#allocation3 + $0x158] sm:$0xff]  ;;  %12697 = vmatprep.subr.bf16.mxu1 %v19245_v57 }
 0xb39   :  { %9531 = vmatprep.mubr.f32.mxu1 %v16671_v39 }
 0xb3c   :  { %9532 = vmatmul.mubr.f32.gmra.mrb[76].mxu1 %v6692_v60  ;;  %v6695_v60 = vld [vmem:[#allocation3 + $0x160] sm:$0xff] }
 0xb3d   :  { %9536 = vmatprep.mubr.f32.mxu1 %v16674_v4 }
 0xb40   :  { %9537 = vmatmul.mubr.f32.gmra.mrb[78].mxu1 %v6693_v16  ;;  %v6696_v16 = vld [vmem:[#allocation3 + $0x168] sm:$0xff] }
 0xb41   :  { %9541 = vmatprep.mubr.f32.mxu1 %v16677_v51 }
 0xb44   :  { %9542 = vmatmul.mubr.f32.gmra.mrb[80].mxu1 %v6694_v29  ;;  %v16693_v29 = vld [vmem:[#allocation3 + $0x181] sm:$0xff] }
 0xb45   :  { %9546 = vmatprep.mubr.f32.mxu1 %v16680_v43 }
 0xb48   :  { %9547 = vmatmul.mubr.f32.gmra.mrb[82].mxu1 %v6695_v60  ;;  %v8319_v60 = vld [vmem:[#allocation9 + $0x3f0] sm:$0xff] }
 0xb49   :  { %9551 = vmatprep.mubr.f32.mxu1 %v16684_v9  ;;  %v12698_v0 = vpack.c.bf16 %v8320_v55, %v8319_v60  ;;  %v6702_v55 = vld [vmem:[#allocation3 + $0x198] sm:$0xff]  ;;  %v16706_v60 = vld [vmem:[#allocation3 + $0x1a1] sm:$0xff] }
 0xb4b   :  { %12699 = vmatpush1.bf16.msra.mxu1 %v12698_v0  ;;  %v6703_v0 = vld [vmem:[#allocation3 + $0x1a0] sm:$0xff] }
 0xb4c   :  { %9552 = vmatmul.mubr.f32.gmra.mrb[84].mxu1 %v6696_v16  ;;  %v6699_v16 = vld [vmem:[#allocation3 + $0x180] sm:$0xff]  ;;  %12700 = vmatprep.subr.bf16.mxu1 %v19245_v57 }
 0xb4d   :  { %9556 = vmatprep.mubr.f32.mxu1 %v16687_v59 }
 0xb50   :  { %9557 = vmatmul.mubr.f32.gmra.mrb[86].mxu1 %v6697_v1  ;;  %v6700_v1 = vld [vmem:[#allocation3 + $0x188] sm:$0xff] }
 0xb51   :  { %9561 = vmatprep.mubr.f32.mxu1 %v16690_v26 }
 0xb54   :  { %9562 = vmatmul.mubr.f32.gmra.mrb[88].mxu1 %v6698_v19  ;;  %v6701_v19 = vld [vmem:[#allocation3 + $0x190] sm:$0xff] }
 0xb55   :  { %9566 = vmatprep.mubr.f32.mxu1 %v16693_v29 }
 0xb58   :  { %9567 = vmatmul.mubr.f32.gmra.mrb[90].mxu1 %v6699_v16  ;;  %v16709_v16 = vld [vmem:[#allocation3 + $0x1a9] sm:$0xff] }
 0xb59   :  { %9571 = vmatprep.mubr.f32.mxu1 %v16696_v50 }
 0xb5c   :  { %9572 = vmatmul.mubr.f32.gmra.mrb[92].mxu1 %v6700_v1  ;;  %v6704_v1 = vld [vmem:[#allocation3 + $0x1a8] sm:$0xff] }
 0xb5d   :  { %9576 = vmatprep.mubr.f32.mxu1 %v16700_v58 }
 0xb60   :  { %9577 = vmatmul.mubr.f32.gmra.mrb[94].mxu1 %v6701_v19  ;;  %v6705_v19 = vld [vmem:[#allocation3 + $0x1b0] sm:$0xff] }
 0xb61   :  { %9581 = vmatprep.mubr.f32.mxu1 %v16703_v30 }
 0xb64   :  { %9582 = vmatmul.mubr.f32.gmra.mrb[96].mxu1 %v6702_v55  ;;  %v6706_v55 = vld [vmem:[#allocation3 + $0x1b8] sm:$0xff] }
 0xb65   :  { %9586 = vmatprep.mubr.f32.mxu1 %v16706_v60 }
 0xb68   :  { %9587 = vmatmul.mubr.f32.gmra.mrb[98].mxu1 %v6703_v0  ;;  %v6707_v0 = vld [vmem:[#allocation3 + $0x1c0] sm:$0xff] }
 0xb69   :  { %9591 = vmatprep.mubr.f32.mxu1 %v16709_v16 }
 0xb6c   :  { %9592 = vmatmul.mubr.f32.gmra.mrb[100].mxu1 %v6704_v1  ;;  %v6708_v1 = vld [vmem:[#allocation3 + $0x1c8] sm:$0xff] }
 0xb6d   :  { %9596 = vmatprep.mubr.f32.mxu1 %v16712_v6 }
 0xb70   :  { %9597 = vmatmul.mubr.f32.gmra.mrb[102].mxu1 %v6705_v19  ;;  %v6709_v19 = vld [vmem:[#allocation3 + $0x1d0] sm:$0xff] }
 0xb71   :  { %9601 = vmatprep.mubr.f32.mxu1 %v16715_v35 }
 0xb74   :  { %9602 = vmatmul.mubr.f32.gmra.mrb[104].mxu1 %v6706_v55  ;;  %v6710_v55 = vld [vmem:[#allocation3 + $0x1d8] sm:$0xff] }
 0xb75   :  { %9606 = vmatprep.mubr.f32.mxu1 %v16718_v28  ;;  %v8326_v28 = vld [vmem:[#allocation9 + $0x428] sm:$0xff] }
 0xb78   :  { %9607 = vmatmul.mubr.f32.gmra.mrb[106].mxu1 %v6707_v0  ;;  %v6711_v0 = vld [vmem:[#allocation3 + $0x1e0] sm:$0xff] }
 0xb79   :  { %9611 = vmatprep.mubr.f32.mxu1 %v16721_v37  ;;  %v8324_v37 = vld [vmem:[#allocation9 + $0x418] sm:$0xff] }
 0xb7c   :  { %9612 = vmatmul.mubr.f32.gmra.mrb[108].mxu1 %v6708_v1  ;;  %v6712_v1 = vld [vmem:[#allocation3 + $0x1e8] sm:$0xff] }
 0xb7d   :  { %9616 = vmatprep.mubr.f32.mxu1 %v16724_v34 }
 0xb80   :  { %9617 = vmatmul.mubr.f32.gmra.mrb[110].mxu1 %v6709_v19  ;;  %v6713_v19 = vld [vmem:[#allocation3 + $0x1f0] sm:$0xff] }
 0xb81   :  { %9621 = vmatprep.mubr.f32.mxu1 %v16727_v7  ;;  %v6734_v7 = vld [vmem:[#allocation3 + $0x298] sm:$0xff] }
 0xb84   :  { %9622 = vmatmul.mubr.f32.gmra.mrb[112].mxu1 %v6710_v55  ;;  %v6714_v55 = vld [vmem:[#allocation3 + $0x1f8] sm:$0xff] }
 0xb85   :  { %9626 = vmatprep.mubr.f32.mxu1 %v16730_v54  ;;  %v16742_v54 = vld [vmem:[#allocation3 + $0x201] sm:$0xff] }
 0xb86   :  { %19254 = vst [vmem:[#allocation89_spill] sm:$0xff] %v16742_v54 }
 0xb88   :  { %9627 = vmatmul.mubr.f32.gmra.mrb[114].mxu1 %v6711_v0  ;;  %v6715_v0 = vld [vmem:[#allocation3 + $0x200] sm:$0xff] }
 0xb89   :  { %9631 = vmatprep.mubr.f32.mxu1 %v16733_v40  ;;  %v16745_v40 = vld [vmem:[#allocation3 + $0x209] sm:$0xff] }
 0xb8a   :  { %19255 = vst [vmem:[#allocation93_spill] sm:$0xff] %v16745_v40 }
 0xb8c   :  { %9632 = vmatmul.mubr.f32.gmra.mrb[116].mxu1 %v6712_v1  ;;  %v6716_v1 = vld [vmem:[#allocation3 + $0x208] sm:$0xff] }
 0xb8d   :  { %9636 = vmatprep.mubr.f32.mxu1 %v16736_v45  ;;  %v16748_v45 = vld [vmem:[#allocation3 + $0x211] sm:$0xff] }
 0xb8e   :  { %19256 = vst [vmem:[#allocation99_spill] sm:$0xff] %v16748_v45 }
 0xb90   :  { %9637 = vmatmul.mubr.f32.gmra.mrb[118].mxu1 %v6713_v19  ;;  %v6717_v19 = vld [vmem:[#allocation3 + $0x210] sm:$0xff] }
 0xb91   :  { %9641 = vmatprep.mubr.f32.mxu1 %v16739_v53  ;;  %v16751_v53 = vld [vmem:[#allocation3 + $0x219] sm:$0xff] }
 0xb92   :  { %19257 = vst [vmem:[#allocation101_spill] sm:$0xff] %v16751_v53 }
 0xb94   :  { %9642 = vmatmul.mubr.f32.gmra.mrb[120].mxu1 %v6714_v55  ;;  %v6718_v55 = vld [vmem:[#allocation3 + $0x218] sm:$0xff] }
 0xb95   :  { %9646 = vmatprep.mubr.f32.mxu1 %v16742_v54  ;;  %v16754_v54 = vld [vmem:[#allocation3 + $0x221] sm:$0xff] }
 0xb96   :  { %19258 = vst [vmem:[#allocation103_spill] sm:$0xff] %v16754_v54 }
 0xb98   :  { %9647 = vmatmul.mubr.f32.gmra.mrb[122].mxu1 %v6715_v0  ;;  %v6719_v0 = vld [vmem:[#allocation3 + $0x220] sm:$0xff] }
 0xb99   :  { %9651 = vmatprep.mubr.f32.mxu1 %v16745_v40  ;;  %v16757_v40 = vld [vmem:[#allocation3 + $0x229] sm:$0xff] }
 0xb9a   :  { %19259 = vst [vmem:[#allocation105_spill] sm:$0xff] %v16757_v40 }
 0xb9c   :  { %9652 = vmatmul.mubr.f32.gmra.mrb[124].mxu1 %v6716_v1  ;;  %v6720_v1 = vld [vmem:[#allocation3 + $0x228] sm:$0xff] }
 0xb9d   :  { %9656 = vmatprep.mubr.f32.mxu1 %v16748_v45  ;;  %v16760_v45 = vld [vmem:[#allocation3 + $0x231] sm:$0xff] }
 0xb9e   :  { %19260 = vst [vmem:[#allocation107_spill] sm:$0xff] %v16760_v45 }
 0xba0   :  { %9657 = vmatmul.mubr.f32.gmra.mrb[126].mxu1 %v6717_v19  ;;  %v6721_v19 = vld [vmem:[#allocation3 + $0x230] sm:$0xff] }
 0xba1   :  { %9661 = vmatprep.mubr.f32.mxu1 %v16751_v53  ;;  %v16763_v53 = vld [vmem:[#allocation3 + $0x239] sm:$0xff] }
 0xba2   :  { %19261 = vst [vmem:[#allocation109_spill] sm:$0xff] %v16763_v53 }
 0xba4   :  { %9662 = vmatmul.mubr.f32.gmra.mrb[128].mxu1 %v6718_v55  ;;  %v6722_v55 = vld [vmem:[#allocation3 + $0x238] sm:$0xff] }
 0xba5   :  { %9666 = vmatprep.mubr.f32.mxu1 %v16754_v54  ;;  %v16766_v54 = vld [vmem:[#allocation3 + $0x241] sm:$0xff] }
 0xba6   :  { %19262 = vst [vmem:[#allocation111_spill] sm:$0xff] %v16766_v54 }
 0xba8   :  { %9667 = vmatmul.mubr.f32.gmra.mrb[130].mxu1 %v6719_v0  ;;  %v6723_v0 = vld [vmem:[#allocation3 + $0x240] sm:$0xff] }
 0xba9   :  { %9671 = vmatprep.mubr.f32.mxu1 %v16757_v40  ;;  %v16769_v40 = vld [vmem:[#allocation3 + $0x249] sm:$0xff] }
 0xbaa   :  { %19263 = vst [vmem:[#allocation113_spill] sm:$0xff] %v16769_v40 }
 0xbac   :  { %9672 = vmatmul.mubr.f32.gmra.mrb[132].mxu1 %v6720_v1  ;;  %v6724_v1 = vld [vmem:[#allocation3 + $0x248] sm:$0xff] }
 0xbad   :  { %9676 = vmatprep.mubr.f32.mxu1 %v16760_v45  ;;  %v16772_v45 = vld [vmem:[#allocation3 + $0x251] sm:$0xff] }
 0xbae   :  { %19264 = vst [vmem:[#allocation115_spill] sm:$0xff] %v16772_v45 }
 0xbb0   :  { %9677 = vmatmul.mubr.f32.gmra.mrb[134].mxu1 %v6721_v19  ;;  %v6725_v19 = vld [vmem:[#allocation3 + $0x250] sm:$0xff] }
 0xbb1   :  { %9681 = vmatprep.mubr.f32.mxu1 %v16763_v53  ;;  %v16775_v53 = vld [vmem:[#allocation3 + $0x259] sm:$0xff] }
 0xbb2   :  { %19265 = vst [vmem:[#allocation117_spill] sm:$0xff] %v16775_v53 }
 0xbb4   :  { %9682 = vmatmul.mubr.f32.gmra.mrb[136].mxu1 %v6722_v55  ;;  %v6726_v55 = vld [vmem:[#allocation3 + $0x258] sm:$0xff] }
 0xbb5   :  { %9686 = vmatprep.mubr.f32.mxu1 %v16766_v54  ;;  %v16778_v54 = vld [vmem:[#allocation3 + $0x261] sm:$0xff] }
 0xbb6   :  { %19266 = vst [vmem:[#allocation119_spill] sm:$0xff] %v16778_v54 }
 0xbb8   :  { %9687 = vmatmul.mubr.f32.gmra.mrb[138].mxu1 %v6723_v0  ;;  %v6727_v0 = vld [vmem:[#allocation3 + $0x260] sm:$0xff] }
 0xbb9   :  { %9691 = vmatprep.mubr.f32.mxu1 %v16769_v40  ;;  %v16781_v40 = vld [vmem:[#allocation3 + $0x269] sm:$0xff] }
 0xbba   :  { %19267 = vst [vmem:[#allocation121_spill] sm:$0xff] %v16781_v40 }
 0xbbc   :  { %9692 = vmatmul.mubr.f32.gmra.mrb[140].mxu1 %v6724_v1  ;;  %v6728_v1 = vld [vmem:[#allocation3 + $0x268] sm:$0xff] }
 0xbbd   :  { %9696 = vmatprep.mubr.f32.mxu1 %v16772_v45  ;;  %v16784_v45 = vld [vmem:[#allocation3 + $0x271] sm:$0xff] }
 0xbbe   :  { %19268 = vst [vmem:[#allocation123_spill] sm:$0xff] %v16784_v45 }
 0xbc0   :  { %9697 = vmatmul.mubr.f32.gmra.mrb[142].mxu1 %v6725_v19  ;;  %v6729_v19 = vld [vmem:[#allocation3 + $0x270] sm:$0xff] }
 0xbc1   :  { %9701 = vmatprep.mubr.f32.mxu1 %v16775_v53  ;;  %v16787_v53 = vld [vmem:[#allocation3 + $0x279] sm:$0xff] }
 0xbc2   :  { %19269 = vst [vmem:[#allocation125_spill] sm:$0xff] %v16787_v53 }
 0xbc4   :  { %9702 = vmatmul.mubr.f32.gmra.mrb[144].mxu1 %v6726_v55  ;;  %v6730_v55 = vld [vmem:[#allocation3 + $0x278] sm:$0xff] }
 0xbc5   :  { %9706 = vmatprep.mubr.f32.mxu1 %v16778_v54  ;;  %v16790_v54 = vld [vmem:[#allocation3 + $0x281] sm:$0xff] }
 0xbc6   :  { %19270 = vst [vmem:[#allocation127_spill] sm:$0xff] %v16790_v54 }
 0xbc8   :  { %9707 = vmatmul.mubr.f32.gmra.mrb[146].mxu1 %v6727_v0  ;;  %v6731_v0 = vld [vmem:[#allocation3 + $0x280] sm:$0xff] }
 0xbc9   :  { %9711 = vmatprep.mubr.f32.mxu1 %v16781_v40  ;;  %v16793_v40 = vld [vmem:[#allocation3 + $0x289] sm:$0xff] }
 0xbca   :  { %19271 = vst [vmem:[#allocation129_spill] sm:$0xff] %v16793_v40 }
 0xbcc   :  { %9712 = vmatmul.mubr.f32.gmra.mrb[148].mxu1 %v6728_v1  ;;  %v6732_v1 = vld [vmem:[#allocation3 + $0x288] sm:$0xff] }
 0xbcd   :  { %9716 = vmatprep.mubr.f32.mxu1 %v16784_v45  ;;  %v16796_v45 = vld [vmem:[#allocation3 + $0x291] sm:$0xff] }
 0xbce   :  { %19272 = vst [vmem:[#allocation131_spill] sm:$0xff] %v16796_v45 }
 0xbd0   :  { %9717 = vmatmul.mubr.f32.gmra.mrb[150].mxu1 %v6729_v19  ;;  %v6733_v19 = vld [vmem:[#allocation3 + $0x290] sm:$0xff] }
 0xbd1   :  { %9721 = vmatprep.mubr.f32.mxu1 %v16787_v53  ;;  %v16799_v53 = vld [vmem:[#allocation3 + $0x299] sm:$0xff] }
 0xbd2   :  { %19273 = vst [vmem:[#allocation133_spill] sm:$0xff] %v16799_v53 }
 0xbd4   :  { %9722 = vmatmul.mubr.f32.gmra.mrb[152].mxu1 %v6730_v55  ;;  %v8321_v55 = vld [vmem:[#allocation9 + $0x400] sm:$0xff] }
 0xbd5   :  { %9726 = vmatprep.mubr.f32.mxu1 %v16790_v54  ;;  %v8322_v54 = vld [vmem:[#allocation9 + $0x408] sm:$0xff] }
 0xbd6   :  { %v12701_v34 = vpack.c.bf16 %v8322_v54, %v8321_v55  ;;  %v8327_v54 = vld [vmem:[#allocation9 + $0x430] sm:$0xff]  ;;  %v8328_v55 = vld [vmem:[#allocation9 + $0x438] sm:$0xff] }
 0xbd8   :  { %9727 = vmatmul.mubr.f32.gmra.mrb[154].mxu1 %v6731_v0  ;;  %v7140_v0 = vld [vmem:[#allocation3 + $0x2a] sm:$0xff] }
 0xbd9   :  { %9731 = vmatprep.mubr.f32.mxu1 %v16793_v40  ;;  %v8323_v40 = vld [vmem:[#allocation9 + $0x410] sm:$0xff] }
 0xbdc   :  { %9732 = vmatmul.mubr.f32.gmra.mrb[156].mxu1 %v6732_v1  ;;  %v7141_v1 = vld [vmem:[#allocation3 + $0x32] sm:$0xff] }
 0xbdd   :  { %9736 = vmatprep.mubr.f32.mxu1 %v16796_v45  ;;  %v12704_v45 = vpack.c.bf16 %v8324_v37, %v8323_v40  ;;  %v12710_v40 = vpack.c.bf16 %v8328_v55, %v8327_v54  ;;  %v7147_v37 = vld [vmem:[#allocation3 + $0x62] sm:$0xff]  ;;  %v8333_v54 = vld [vmem:[#allocation9 + $0x460] sm:$0xff]  ;;  %v8334_v55 = vld [vmem:[#allocation9 + $0x468] sm:$0xff] }
 0xbe0   :  { %9737 = vmatmul.mubr.f32.gmra.mrb[158].mxu1 %v6733_v19  ;;  %v8325_v19 = vld [vmem:[#allocation9 + $0x420] sm:$0xff] }
 0xbe1   :  { %9741 = vmatprep.mubr.f32.mxu1 %v16799_v53  ;;  %v7142_v53 = vld [vmem:[#allocation3 + $0x3a] sm:$0xff] }
 0xbe4   :  { %9742 = vmatmul.mubr.f32.gmra.mrb[160].mxu1 %v6734_v7  ;;  %v12707_v7 = vpack.c.bf16 %v8326_v28, %v8325_v19  ;;  %v7148_v28 = vld [vmem:[#allocation3 + $0x6a] sm:$0xff] }
 0xbe5   :  { %9811 = vmatprep.mubr.f32.mxu1 %v7140_v0  ;;  %v7155_v0 = vld [vmem:[#allocation3 + $0xa2] sm:$0xff] }
 0xbe6   :  { %v8332_v19 = vld [vmem:[#allocation9 + $0x458] sm:$0xff] }
 0xbe8   :  { %9812 = vmatmul.mubr.f32.vlgmr.msra.gmra.mrb[0].mxu1 %v16550_v10  ;;  %v7143_v10 = vld [vmem:[#allocation3 + $0x42] sm:$0xff] }
 0xbe9   :  { %9816 = vmatprep.mubr.f32.mxu1 %v7141_v1  ;;  %12702 = vmatpush3.bf16.msra.mxu1 %v12701_v34  ;;  %v7144_v34 = vld [vmem:[#allocation3 + $0x4a] sm:$0xff]  ;;  %v8331_v1 = vld [vmem:[#allocation9 + $0x450] sm:$0xff] }
 0xbea   :  { %12703 = vmatprep.subr.bf16.mxu1 %v19245_v57 }
 0xbec   :  { %9817 = vmatmul.mubr.f32.gmra.mrb[2].mxu1 %v16554_v13  ;;  %v7149_v13 = vld [vmem:[#allocation3 + $0x72] sm:$0xff] }
 0xbed   :  { %9821 = vmatprep.mubr.f32.mxu1 %v7142_v53  ;;  %12705 = vmatpush3.bf16.msra.mxu1 %v12704_v45  ;;  %v7145_v45 = vld [vmem:[#allocation3 + $0x52] sm:$0xff]  ;;  %v7146_v53 = vld [vmem:[#allocation3 + $0x5a] sm:$0xff] }
 0xbee   :  { %12706 = vmatprep.subr.bf16.mxu1 %v19245_v57 }
 0xbf0   :  { %9822 = vmatmul.mubr.f32.gmra.mrb[4].mxu1 %v16558_v21  ;;  %v8329_v21 = vld [vmem:[#allocation9 + $0x440] sm:$0xff] }
 0xbf1   :  { %9826 = vmatprep.mubr.f32.mxu1 %v7143_v10  ;;  %12708 = vmatpush3.bf16.msra.mxu1 %v12707_v7  ;;  %v7165_v7 = vld [vmem:[#allocation3 + $0xf2] sm:$0xff]  ;;  %v7175_v10 = vld [vmem:[#allocation3 + $0x142] sm:$0xff] }
 0xbf2   :  { %12709 = vmatprep.subr.bf16.mxu1 %v19245_v57 }
 0xbf4   :  { %9827 = vmatmul.mubr.f32.gmra.mrb[6].mxu1 %v16562_v61  ;;  %v8330_v61 = vld [vmem:[#allocation9 + $0x448] sm:$0xff] }
 0xbf5   :  { %9831 = vmatprep.mubr.f32.mxu1 %v7144_v34  ;;  %12711 = vmatpush3.bf16.msra.mxu1 %v12710_v40  ;;  %v7185_v34 = vld [vmem:[#allocation3 + $0x192] sm:$0xff] }
 0xbf6   :  { %12712 = vmatprep.subr.bf16.mxu1 %v19245_v57 }
 0xbf8   :  { %9832 = vmatmul.mubr.f32.gmra.mrb[8].mxu1 %v16566_v24  ;;  %v12713_v24 = vpack.c.bf16 %v8330_v61, %v8329_v21  ;;  %v19279_v21 = vld [vmem:[#allocation65_spill] sm:$0xff] }
 0xbf9   :  { %9836 = vmatprep.mubr.f32.mxu1 %v7145_v45  ;;  %v19274_v45 = vld [vmem:[#allocation97_spill] sm:$0xff] }
 0xbfa   :  { %12714 = vmatpush3.bf16.msra.mxu1 %v12713_v24  ;;  %v7197_v61 = vld [vmem:[#allocation3 + $0x1f2] sm:$0xff]  ;;  %v19280_v24 = vld [vmem:[#allocation67_spill] sm:$0xff] }
 0xbfb   :  { %12715 = vmatprep.subr.bf16.mxu1 %v19245_v57 }
 0xbfc   :  { %9837 = vmatmul.mubr.f32.gmra.mrb[10].mxu1 %v16570_v12  ;;  %v7150_v12 = vld [vmem:[#allocation3 + $0x7a] sm:$0xff] }
 0xbfd   :  { %9841 = vmatprep.mubr.f32.mxu1 %v7146_v53  ;;  %v19275_v53 = vld [vmem:[#allocation57_spill] sm:$0xff] }
 0xc00   :  { %9842 = vmatmul.mubr.f32.gmra.mrb[12].mxu1 %v16574_v17  ;;  %v7151_v17 = vld [vmem:[#allocation3 + $0x82] sm:$0xff] }
 0xc01   :  { %9846 = vmatprep.mubr.f32.mxu1 %v7147_v37  ;;  %v19276_v37 = vld [vmem:[#allocation59_spill] sm:$0xff] }
 0xc04   :  { %9847 = vmatmul.mubr.f32.gmra.mrb[14].mxu1 %v16578_v8  ;;  %v7152_v8 = vld [vmem:[#allocation3 + $0x8a] sm:$0xff] }
 0xc05   :  { %9851 = vmatprep.mubr.f32.mxu1 %v7148_v28  ;;  %v19277_v28 = vld [vmem:[#allocation61_spill] sm:$0xff] }
 0xc08   :  { %9852 = vmatmul.mubr.f32.gmra.mrb[16].mxu1 %v16581_v14  ;;  %v7153_v14 = vld [vmem:[#allocation3 + $0x92] sm:$0xff] }
 0xc09   :  { %9856 = vmatprep.mubr.f32.mxu1 %v7149_v13  ;;  %v19278_v13 = vld [vmem:[#allocation63_spill] sm:$0xff] }
 0xc0c   :  { %9857 = vmatmul.mubr.f32.gmra.mrb[18].mxu1 %v16585_v46  ;;  %v7154_v46 = vld [vmem:[#allocation3 + $0x9a] sm:$0xff] }
 0xc0d   :  { %9861 = vmatprep.mubr.f32.mxu1 %v7150_v12  ;;  %v7198_v12 = vld [vmem:[#allocation3 + $0x1fa] sm:$0xff] }
 0xc10   :  { %9862 = vmatmul.mubr.f32.gmra.mrb[20].mxu1 %v16588_v47  ;;  %v7156_v47 = vld [vmem:[#allocation3 + $0xaa] sm:$0xff] }
 0xc11   :  { %9866 = vmatprep.mubr.f32.mxu1 %v7151_v17  ;;  %v19281_v17 = vld [vmem:[#allocation85_spill] sm:$0xff] }
 0xc14   :  { %9867 = vmatmul.mubr.f32.gmra.mrb[22].mxu1 %v16591_v38  ;;  %v7157_v38 = vld [vmem:[#allocation3 + $0xb2] sm:$0xff] }
 0xc15   :  { %9871 = vmatprep.mubr.f32.mxu1 %v7152_v8  ;;  %v7199_v8 = vld [vmem:[#allocation3 + $0x202] sm:$0xff] }
 0xc18   :  { %9872 = vmatmul.mubr.f32.gmra.mrb[24].mxu1 %v16594_v42  ;;  %v7158_v42 = vld [vmem:[#allocation3 + $0xba] sm:$0xff] }
 0xc19   :  { %9876 = vmatprep.mubr.f32.mxu1 %v7153_v14  ;;  %v19282_v14 = vld [vmem:[#allocation89_spill] sm:$0xff] }
 0xc1c   :  { %9877 = vmatmul.mubr.f32.gmra.mrb[26].mxu1 %v16597_v52  ;;  %v7159_v52 = vld [vmem:[#allocation3 + $0xc2] sm:$0xff] }
 0xc1d   :  { %9881 = vmatprep.mubr.f32.mxu1 %v7154_v46  ;;  %v7200_v46 = vld [vmem:[#allocation3 + $0x20a] sm:$0xff] }
 0xc20   :  { %9882 = vmatmul.mubr.f32.gmra.mrb[28].mxu1 %v16600_v3  ;;  %v7160_v3 = vld [vmem:[#allocation3 + $0xca] sm:$0xff] }
 0xc21   :  { %9886 = vmatprep.mubr.f32.mxu1 %v7155_v0  ;;  %v19283_v0 = vld [vmem:[#allocation93_spill] sm:$0xff] }
 0xc24   :  { %9887 = vmatmul.mubr.f32.gmra.mrb[30].mxu1 %v16604_v25  ;;  %v12716_v25 = vpack.c.bf16 %v8332_v19, %v8331_v1  ;;  %v19286_v1 = vld [vmem:[#allocation103_spill] sm:$0xff]  ;;  %v7204_v19 = vld [vmem:[#allocation3 + $0x22a] sm:$0xff] }
 0xc25   :  { %9891 = vmatprep.mubr.f32.mxu1 %v7156_v47  ;;  %v7201_v47 = vld [vmem:[#allocation3 + $0x212] sm:$0xff] }
 0xc26   :  { %12717 = vmatpush3.bf16.msra.mxu1 %v12716_v25  ;;  %v19287_v25 = vld [vmem:[#allocation105_spill] sm:$0xff] }
 0xc27   :  { %12718 = vmatprep.subr.bf16.mxu1 %v19245_v57 }
 0xc28   :  { %9892 = vmatmul.mubr.f32.gmra.mrb[32].mxu1 %v16607_v63  ;;  %v7161_v63 = vld [vmem:[#allocation3 + $0xd2] sm:$0xff] }
 0xc29   :  { %9896 = vmatprep.mubr.f32.mxu1 %v7157_v38  ;;  %v19284_v38 = vld [vmem:[#allocation99_spill] sm:$0xff] }
 0xc2c   :  { %9897 = vmatmul.mubr.f32.gmra.mrb[34].mxu1 %v16610_v48  ;;  %v7162_v48 = vld [vmem:[#allocation3 + $0xda] sm:$0xff] }
 0xc2d   :  { %9901 = vmatprep.mubr.f32.mxu1 %v7158_v42  ;;  %v7202_v42 = vld [vmem:[#allocation3 + $0x21a] sm:$0xff] }
 0xc30   :  { %9902 = vmatmul.mubr.f32.gmra.mrb[36].mxu1 %v16613_v11  ;;  %v7163_v11 = vld [vmem:[#allocation3 + $0xe2] sm:$0xff] }
 0xc31   :  { %9906 = vmatprep.mubr.f32.mxu1 %v7159_v52  ;;  %v19285_v52 = vld [vmem:[#allocation101_spill] sm:$0xff] }
 0xc34   :  { %9907 = vmatmul.mubr.f32.gmra.mrb[38].mxu1 %v16616_v31  ;;  %v7164_v31 = vld [vmem:[#allocation3 + $0xea] sm:$0xff] }
 0xc35   :  { %9911 = vmatprep.mubr.f32.mxu1 %v7160_v3  ;;  %v7203_v3 = vld [vmem:[#allocation3 + $0x222] sm:$0xff] }
 0xc38   :  { %9912 = vmatmul.mubr.f32.gmra.mrb[40].mxu1 %v16620_v36  ;;  %v7166_v36 = vld [vmem:[#allocation3 + $0xfa] sm:$0xff] }
 0xc39   :  { %9916 = vmatprep.mubr.f32.mxu1 %v7161_v63  ;;  %v7205_v63 = vld [vmem:[#allocation3 + $0x232] sm:$0xff] }
 0xc3c   :  { %9917 = vmatmul.mubr.f32.gmra.mrb[42].mxu1 %v16623_v22  ;;  %v7167_v22 = vld [vmem:[#allocation3 + $0x102] sm:$0xff] }
 0xc3d   :  { %9921 = vmatprep.mubr.f32.mxu1 %v7162_v48  ;;  %v19288_v48 = vld [vmem:[#allocation107_spill] sm:$0xff] }
 0xc40   :  { %9922 = vmatmul.mubr.f32.gmra.mrb[44].mxu1 %v16626_v27  ;;  %v7168_v27 = vld [vmem:[#allocation3 + $0x10a] sm:$0xff] }
 0xc41   :  { %9926 = vmatprep.mubr.f32.mxu1 %v7163_v11  ;;  %v7206_v11 = vld [vmem:[#allocation3 + $0x23a] sm:$0xff] }
 0xc44   :  { %9927 = vmatmul.mubr.f32.gmra.mrb[46].mxu1 %v16629_v5  ;;  %v7169_v5 = vld [vmem:[#allocation3 + $0x112] sm:$0xff] }
 0xc45   :  { %9931 = vmatprep.mubr.f32.mxu1 %v7164_v31  ;;  %v19289_v31 = vld [vmem:[#allocation109_spill] sm:$0xff] }
 0xc48   :  { %9932 = vmatmul.mubr.f32.gmra.mrb[48].mxu1 %v16632_v23  ;;  %v7170_v23 = vld [vmem:[#allocation3 + $0x11a] sm:$0xff] }
 0xc49   :  { %9936 = vmatprep.mubr.f32.mxu1 %v7165_v7  ;;  %v7207_v7 = vld [vmem:[#allocation3 + $0x242] sm:$0xff] }
 0xc4c   :  { %9937 = vmatmul.mubr.f32.gmra.mrb[50].mxu1 %v16636_v44  ;;  %v12719_v44 = vpack.c.bf16 %v8334_v55, %v8333_v54  ;;  %v7210_v54 = vld [vmem:[#allocation3 + $0x25a] sm:$0xff]  ;;  %v19293_v55 = vld [vmem:[#allocation117_spill] sm:$0xff] }
 0xc4d   :  { %9941 = vmatprep.mubr.f32.mxu1 %v7166_v36  ;;  %v19290_v36 = vld [vmem:[#allocation111_spill] sm:$0xff] }
 0xc4e   :  { %12720 = vmatpush3.bf16.msra.mxu1 %v12719_v44  ;;  %v7211_v44 = vld [vmem:[#allocation3 + $0x262] sm:$0xff] }
 0xc4f   :  { %12721 = vmatprep.subr.bf16.mxu1 %v19245_v57  ;;  %v7178_v57 = vld [vmem:[#allocation3 + $0x15a] sm:$0xff] }
 0xc50   :  { %9942 = vmatmul.mubr.f32.gmra.mrb[52].mxu1 %v16639_v18  ;;  %v7171_v18 = vld [vmem:[#allocation3 + $0x122] sm:$0xff] }
 0xc51   :  { %9946 = vmatprep.mubr.f32.mxu1 %v7167_v22  ;;  %v7208_v22 = vld [vmem:[#allocation3 + $0x24a] sm:$0xff] }
 0xc54   :  { %9947 = vmatmul.mubr.f32.gmra.mrb[54].mxu1 %v16642_v62  ;;  %v7172_v62 = vld [vmem:[#allocation3 + $0x12a] sm:$0xff] }
 0xc55   :  { %9951 = vmatprep.mubr.f32.mxu1 %v7168_v27  ;;  %v19291_v27 = vld [vmem:[#allocation113_spill] sm:$0xff] }
 0xc58   :  { %9952 = vmatmul.mubr.f32.gmra.mrb[56].mxu1 %v16645_v49  ;;  %v7173_v49 = vld [vmem:[#allocation3 + $0x132] sm:$0xff] }
 0xc59   :  { %9956 = vmatprep.mubr.f32.mxu1 %v7169_v5  ;;  %v7209_v5 = vld [vmem:[#allocation3 + $0x252] sm:$0xff] }
 0xc5c   :  { %9957 = vmatmul.mubr.f32.gmra.mrb[58].mxu1 %v16648_v32  ;;  %v7174_v32 = vld [vmem:[#allocation3 + $0x13a] sm:$0xff] }
 0xc5d   :  { %9961 = vmatprep.mubr.f32.mxu1 %v7170_v23  ;;  %v19292_v23 = vld [vmem:[#allocation115_spill] sm:$0xff] }
 0xc60   :  { %9962 = vmatmul.mubr.f32.gmra.mrb[60].mxu1 %v16652_v41  ;;  %v7176_v41 = vld [vmem:[#allocation3 + $0x14a] sm:$0xff] }
 0xc61   :  { %9966 = vmatprep.mubr.f32.mxu1 %v7171_v18  ;;  %v19294_v18 = vld [vmem:[#allocation119_spill] sm:$0xff] }
 0xc64   :  { %9967 = vmatmul.mubr.f32.gmra.mrb[62].mxu1 %v16655_v2  ;;  %v7177_v2 = vld [vmem:[#allocation3 + $0x152] sm:$0xff] }
 0xc65   :  { %9971 = vmatprep.mubr.f32.mxu1 %v7172_v62  ;;  %v7212_v62 = vld [vmem:[#allocation3 + $0x26a] sm:$0xff] }
 0xc68   :  { %9972 = vmatmul.mubr.f32.gmra.mrb[64].mxu1 %v16658_v56  ;;  %v7179_v56 = vld [vmem:[#allocation3 + $0x162] sm:$0xff] }
 0xc69   :  { %9976 = vmatprep.mubr.f32.mxu1 %v7173_v49  ;;  %v19295_v49 = vld [vmem:[#allocation121_spill] sm:$0xff] }
 0xc6c   :  { %9977 = vmatmul.mubr.f32.gmra.mrb[66].mxu1 %v16661_v15  ;;  %v8335_v15 = vld [vmem:[#allocation9 + $0x470] sm:$0xff] }
 0xc6d   :  { %9981 = vmatprep.mubr.f32.mxu1 %v7174_v32  ;;  %v7213_v32 = vld [vmem:[#allocation3 + $0x272] sm:$0xff] }
 0xc70   :  { %9982 = vmatmul.mubr.f32.gmra.mrb[68].mxu1 %v16664_v20  ;;  %v7180_v20 = vld [vmem:[#allocation3 + $0x16a] sm:$0xff] }
 0xc71   :  { %9986 = vmatprep.mubr.f32.mxu1 %v7175_v10  ;;  %v19296_v10 = vld [vmem:[#allocation123_spill] sm:$0xff] }
 0xc74   :  { %9987 = vmatmul.mubr.f32.gmra.mrb[70].mxu1 %v16668_v33  ;;  %v8336_v33 = vld [vmem:[#allocation9 + $0x478] sm:$0xff] }
 0xc75   :  { %9991 = vmatprep.mubr.f32.mxu1 %v7176_v41  ;;  %v12722_v40 = vpack.c.bf16 %v8336_v33, %v8335_v15  ;;  %v7214_v41 = vld [vmem:[#allocation3 + $0x27a] sm:$0xff]  ;;  %v19299_v15 = vld [vmem:[#allocation129_spill] sm:$0xff] }
 0xc76   :  { %v7217_v33 = vld [vmem:[#allocation3 + $0x292] sm:$0xff] }
 0xc77   :  { %12723 = vmatpush3.bf16.msra.mxu1 %v12722_v40  ;;  %v19300_v40 = vld [vmem:[#allocation131_spill] sm:$0xff] }
 0xc78   :  { %9992 = vmatmul.mubr.f32.gmra.mrb[72].mxu1 %v16671_v39  ;;  %v7181_v39 = vld [vmem:[#allocation3 + $0x172] sm:$0xff] }
 0xc79   :  { %9996 = vmatprep.mubr.f32.mxu1 %v7177_v2  ;;  %v19297_v2 = vld [vmem:[#allocation125_spill] sm:$0xff] }
 0xc7c   :  { %9997 = vmatmul.mubr.f32.gmra.mrb[74].mxu1 %v16674_v4  ;;  %v7182_v4 = vld [vmem:[#allocation3 + $0x17a] sm:$0xff] }
 0xc7d   :  { %10001 = vmatprep.mubr.f32.mxu1 %v7178_v57  ;;  %v7215_v57 = vld [vmem:[#allocation3 + $0x282] sm:$0xff] }
 0xc80   :  { %10002 = vmatmul.mubr.f32.gmra.mrb[76].mxu1 %v16677_v51  ;;  %v7183_v51 = vld [vmem:[#allocation3 + $0x182] sm:$0xff] }
 0xc81   :  { %10006 = vmatprep.mubr.f32.mxu1 %v7179_v56  ;;  %v19298_v56 = vld [vmem:[#allocation127_spill] sm:$0xff] }
 0xc84   :  { %10007 = vmatmul.mubr.f32.gmra.mrb[78].mxu1 %v16680_v43  ;;  %v7184_v43 = vld [vmem:[#allocation3 + $0x18a] sm:$0xff] }
 0xc85   :  { %10011 = vmatprep.mubr.f32.mxu1 %v7180_v20  ;;  %v7216_v20 = vld [vmem:[#allocation3 + $0x28a] sm:$0xff] }
 0xc88   :  { %10012 = vmatmul.mubr.f32.gmra.mrb[80].mxu1 %v16684_v9  ;;  %v7186_v9 = vld [vmem:[#allocation3 + $0x19a] sm:$0xff] }
 0xc89   :  { %10016 = vmatprep.mubr.f32.mxu1 %v7181_v39  ;;  %v7218_v39 = vld [vmem:[#allocation3 + $0x29a] sm:$0xff] }
 0xc8c   :  { %10017 = vmatmul.mubr.f32.gmra.mrb[82].mxu1 %v16687_v59  ;;  %v7187_v59 = vld [vmem:[#allocation3 + $0x1a2] sm:$0xff] }
 0xc8d   :  { %10021 = vmatprep.mubr.f32.mxu1 %v7182_v4  ;;  %v7219_v4 = vld [vmem:[#allocation3 + $0x2a2] sm:$0xff] }
 0xc90   :  { %10022 = vmatmul.mubr.f32.gmra.mrb[84].mxu1 %v16690_v26  ;;  %v7188_v26 = vld [vmem:[#allocation3 + $0x1aa] sm:$0xff] }
 0xc91   :  { %10026 = vmatprep.mubr.f32.mxu1 %v7183_v51  ;;  %v19301_v51 = vld [vmem:[#allocation133_spill] sm:$0xff] }
 0xc94   :  { %10027 = vmatmul.mubr.f32.gmra.mrb[86].mxu1 %v16693_v29  ;;  %v7189_v29 = vld [vmem:[#allocation3 + $0x1b2] sm:$0xff] }
 0xc95   :  { %10031 = vmatprep.mubr.f32.mxu1 %v7184_v43  ;;  %v7057_v43 = vld [vmem:[#allocation3 + $0x2a1] sm:$0xff] }
 0xc98   :  { %10032 = vmatmul.mubr.f32.gmra.mrb[88].mxu1 %v16696_v50  ;;  %v7190_v50 = vld [vmem:[#allocation3 + $0x1ba] sm:$0xff] }
 0xc99   :  { %10036 = vmatprep.mubr.f32.mxu1 %v7185_v34  ;;  %v7220_v34 = vld [vmem:[#allocation3 + $0x2aa] sm:$0xff] }
 0xc9c   :  { %10037 = vmatmul.mubr.f32.gmra.mrb[90].mxu1 %v16700_v58  ;;  %v7191_v58 = vld [vmem:[#allocation3 + $0x1c2] sm:$0xff] }
 0xc9d   :  { %10041 = vmatprep.mubr.f32.mxu1 %v7186_v9  ;;  %v7058_v9 = vld [vmem:[#allocation3 + $0x2a9] sm:$0xff] }
 0xca0   :  { %10042 = vmatmul.mubr.f32.gmra.mrb[92].mxu1 %v16703_v30  ;;  %v7192_v30 = vld [vmem:[#allocation3 + $0x1ca] sm:$0xff] }
 0xca1   :  { %10046 = vmatprep.mubr.f32.mxu1 %v7187_v59  ;;  %v16888_v59 = vld [vmem:[#allocation3] sm:$0xff] }
 0xca4   :  { %10047 = vmatmul.mubr.f32.gmra.mrb[94].mxu1 %v16706_v60  ;;  %v7193_v60 = vld [vmem:[#allocation3 + $0x1d2] sm:$0xff] }
 0xca5   :  { %10051 = vmatprep.mubr.f32.mxu1 %v7188_v26  ;;  %v7302_v26 = vld [vmem:[#allocation3 + $0x2b] sm:$0xff] }
 0xca8   :  { %10052 = vmatmul.mubr.f32.gmra.mrb[96].mxu1 %v16709_v16  ;;  %v7194_v16 = vld [vmem:[#allocation3 + $0x1da] sm:$0xff] }
 0xca9   :  { %10056 = vmatprep.mubr.f32.mxu1 %v7189_v29  ;;  %v7303_v29 = vld [vmem:[#allocation3 + $0x33] sm:$0xff] }
 0xcac   :  { %10057 = vmatmul.mubr.f32.gmra.mrb[98].mxu1 %v16712_v6  ;;  %v7195_v6 = vld [vmem:[#allocation3 + $0x1e2] sm:$0xff] }
 0xcad   :  { %10061 = vmatprep.mubr.f32.mxu1 %v7190_v50  ;;  %v7304_v50 = vld [vmem:[#allocation3 + $0x3b] sm:$0xff] }
 0xcb0   :  { %10062 = vmatmul.mubr.f32.gmra.mrb[100].mxu1 %v16715_v35  ;;  %v7196_v35 = vld [vmem:[#allocation3 + $0x1ea] sm:$0xff] }
 0xcb1   :  { %10066 = vmatprep.mubr.f32.mxu1 %v7191_v58  ;;  %v7305_v58 = vld [vmem:[#allocation3 + $0x43] sm:$0xff] }
 0xcb4   :  { %10067 = vmatmul.mubr.f32.gmra.mrb[102].mxu1 %v19274_v45  ;;  %v7306_v45 = vld [vmem:[#allocation3 + $0x4b] sm:$0xff] }
 0xcb5   :  { %10071 = vmatprep.mubr.f32.mxu1 %v7192_v30  ;;  %v7307_v30 = vld [vmem:[#allocation3 + $0x53] sm:$0xff] }
 0xcb8   :  { %10072 = vmatmul.mubr.f32.gmra.mrb[104].mxu1 %v19275_v53  ;;  %v7308_v53 = vld [vmem:[#allocation3 + $0x5b] sm:$0xff] }
 0xcb9   :  { %10076 = vmatprep.mubr.f32.mxu1 %v7193_v60  ;;  %v7309_v60 = vld [vmem:[#allocation3 + $0x63] sm:$0xff] }
 0xcbc   :  { %10077 = vmatmul.mubr.f32.gmra.mrb[106].mxu1 %v19276_v37  ;;  %v7310_v37 = vld [vmem:[#allocation3 + $0x6b] sm:$0xff] }
 0xcbd   :  { %10081 = vmatprep.mubr.f32.mxu1 %v7194_v16  ;;  %v7311_v16 = vld [vmem:[#allocation3 + $0x73] sm:$0xff] }
 0xcc0   :  { %10082 = vmatmul.mubr.f32.gmra.mrb[108].mxu1 %v19277_v28  ;;  %v7312_v28 = vld [vmem:[#allocation3 + $0x7b] sm:$0xff] }
 0xcc1   :  { %10086 = vmatprep.mubr.f32.mxu1 %v7195_v6  ;;  %v7313_v6 = vld [vmem:[#allocation3 + $0x83] sm:$0xff] }
 0xcc4   :  { %10087 = vmatmul.mubr.f32.gmra.mrb[110].mxu1 %v19278_v13  ;;  %v7314_v13 = vld [vmem:[#allocation3 + $0x8b] sm:$0xff] }
 0xcc5   :  { %10091 = vmatprep.mubr.f32.mxu1 %v7196_v35  ;;  %v7315_v35 = vld [vmem:[#allocation3 + $0x93] sm:$0xff] }
 0xcc8   :  { %10092 = vmatmul.mubr.f32.gmra.mrb[112].mxu1 %v19279_v21  ;;  %v7316_v21 = vld [vmem:[#allocation3 + $0x9b] sm:$0xff] }
 0xcc9   :  { %10096 = vmatprep.mubr.f32.mxu1 %v7197_v61  ;;  %v7317_v61 = vld [vmem:[#allocation3 + $0xa3] sm:$0xff] }
 0xccc   :  { %10097 = vmatmul.mubr.f32.gmra.mrb[114].mxu1 %v19280_v24  ;;  %v7318_v24 = vld [vmem:[#allocation3 + $0xab] sm:$0xff] }
 0xccd   :  { %10101 = vmatprep.mubr.f32.mxu1 %v7198_v12  ;;  %v7319_v12 = vld [vmem:[#allocation3 + $0xb3] sm:$0xff] }
 0xcd0   :  { %10102 = vmatmul.mubr.f32.gmra.mrb[116].mxu1 %v19281_v17  ;;  %v7320_v17 = vld [vmem:[#allocation3 + $0xbb] sm:$0xff] }
 0xcd1   :  { %10106 = vmatprep.mubr.f32.mxu1 %v7199_v8  ;;  %v7321_v8 = vld [vmem:[#allocation3 + $0xc3] sm:$0xff] }
 0xcd4   :  { %10107 = vmatmul.mubr.f32.gmra.mrb[118].mxu1 %v19282_v14  ;;  %v7322_v14 = vld [vmem:[#allocation3 + $0xcb] sm:$0xff] }
 0xcd5   :  { %10111 = vmatprep.mubr.f32.mxu1 %v7200_v46  ;;  %v7323_v46 = vld [vmem:[#allocation3 + $0xd3] sm:$0xff] }
 0xcd8   :  { %10112 = vmatmul.mubr.f32.gmra.mrb[120].mxu1 %v19283_v0  ;;  %v7324_v0 = vld [vmem:[#allocation3 + $0xdb] sm:$0xff] }
 0xcd9   :  { %10116 = vmatprep.mubr.f32.mxu1 %v7201_v47  ;;  %v7325_v47 = vld [vmem:[#allocation3 + $0xe3] sm:$0xff] }
 0xcdc   :  { %10117 = vmatmul.mubr.f32.gmra.mrb[122].mxu1 %v19284_v38  ;;  %v7326_v38 = vld [vmem:[#allocation3 + $0xeb] sm:$0xff] }
 0xcdd   :  { %10121 = vmatprep.mubr.f32.mxu1 %v7202_v42  ;;  %v7327_v42 = vld [vmem:[#allocation3 + $0xf3] sm:$0xff] }
 0xce0   :  { %10122 = vmatmul.mubr.f32.gmra.mrb[124].mxu1 %v19285_v52  ;;  %v7328_v52 = vld [vmem:[#allocation3 + $0xfb] sm:$0xff] }
 0xce1   :  { %10126 = vmatprep.mubr.f32.mxu1 %v7203_v3  ;;  %v7329_v3 = vld [vmem:[#allocation3 + $0x103] sm:$0xff] }
 0xce4   :  { %10127 = vmatmul.mubr.f32.gmra.mrb[126].mxu1 %v19286_v1  ;;  %v7330_v1 = vld [vmem:[#allocation3 + $0x10b] sm:$0xff] }
 0xce5   :  { %10131 = vmatprep.mubr.f32.mxu1 %v7204_v19  ;;  %v7331_v19 = vld [vmem:[#allocation3 + $0x113] sm:$0xff] }
 0xce8   :  { %10132 = vmatmul.mubr.f32.gmra.mrb[128].mxu1 %v19287_v25  ;;  %v7332_v25 = vld [vmem:[#allocation3 + $0x11b] sm:$0xff] }
 0xce9   :  { %10136 = vmatprep.mubr.f32.mxu1 %v7205_v63  ;;  %v7333_v63 = vld [vmem:[#allocation3 + $0x123] sm:$0xff] }
 0xcec   :  { %10137 = vmatmul.mubr.f32.gmra.mrb[130].mxu1 %v19288_v48  ;;  %v7334_v48 = vld [vmem:[#allocation3 + $0x12b] sm:$0xff] }
 0xced   :  { %10141 = vmatprep.mubr.f32.mxu1 %v7206_v11  ;;  %v7335_v11 = vld [vmem:[#allocation3 + $0x133] sm:$0xff] }
 0xcf0   :  { %10142 = vmatmul.mubr.f32.gmra.mrb[132].mxu1 %v19289_v31  ;;  %v7336_v31 = vld [vmem:[#allocation3 + $0x13b] sm:$0xff] }
 0xcf1   :  { %10146 = vmatprep.mubr.f32.mxu1 %v7207_v7  ;;  %v7337_v7 = vld [vmem:[#allocation3 + $0x143] sm:$0xff] }
 0xcf4   :  { %10147 = vmatmul.mubr.f32.gmra.mrb[134].mxu1 %v19290_v36  ;;  %v7338_v36 = vld [vmem:[#allocation3 + $0x14b] sm:$0xff] }
 0xcf5   :  { %10151 = vmatprep.mubr.f32.mxu1 %v7208_v22  ;;  %v7339_v22 = vld [vmem:[#allocation3 + $0x153] sm:$0xff] }
 0xcf8   :  { %10152 = vmatmul.mubr.f32.gmra.mrb[136].mxu1 %v19291_v27  ;;  %v7340_v27 = vld [vmem:[#allocation3 + $0x15b] sm:$0xff] }
 0xcf9   :  { %10156 = vmatprep.mubr.f32.mxu1 %v7209_v5  ;;  %v7341_v5 = vld [vmem:[#allocation3 + $0x163] sm:$0xff] }
 0xcfc   :  { %10157 = vmatmul.mubr.f32.gmra.mrb[138].mxu1 %v19292_v23  ;;  %v7342_v23 = vld [vmem:[#allocation3 + $0x16b] sm:$0xff] }
 0xcfd   :  { %10161 = vmatprep.mubr.f32.mxu1 %v7210_v54  ;;  %v7343_v54 = vld [vmem:[#allocation3 + $0x173] sm:$0xff] }
 0xd00   :  { %10162 = vmatmul.mubr.f32.gmra.mrb[140].mxu1 %v19293_v55  ;;  %v7344_v55 = vld [vmem:[#allocation3 + $0x17b] sm:$0xff] }
 0xd01   :  { %10166 = vmatprep.mubr.f32.mxu1 %v7211_v44  ;;  %v7345_v44 = vld [vmem:[#allocation3 + $0x183] sm:$0xff] }
 0xd04   :  { %10167 = vmatmul.mubr.f32.gmra.mrb[142].mxu1 %v19294_v18  ;;  %v7346_v18 = vld [vmem:[#allocation3 + $0x18b] sm:$0xff] }
 0xd05   :  { %10171 = vmatprep.mubr.f32.mxu1 %v7212_v62  ;;  %v7347_v62 = vld [vmem:[#allocation3 + $0x193] sm:$0xff] }
 0xd08   :  { %10172 = vmatmul.mubr.f32.gmra.mrb[144].mxu1 %v19295_v49  ;;  %v7348_v49 = vld [vmem:[#allocation3 + $0x19b] sm:$0xff] }
 0xd09   :  { %10176 = vmatprep.mubr.f32.mxu1 %v7213_v32  ;;  %v7349_v32 = vld [vmem:[#allocation3 + $0x1a3] sm:$0xff] }
 0xd0c   :  { %10177 = vmatmul.mubr.f32.gmra.mrb[146].mxu1 %v19296_v10  ;;  %v7350_v10 = vld [vmem:[#allocation3 + $0x1ab] sm:$0xff] }
 0xd0d   :  { %10181 = vmatprep.mubr.f32.mxu1 %v7214_v41  ;;  %v7351_v41 = vld [vmem:[#allocation3 + $0x1b3] sm:$0xff] }
 0xd10   :  { %10182 = vmatmul.mubr.f32.gmra.mrb[148].mxu1 %v19297_v2  ;;  %v7352_v2 = vld [vmem:[#allocation3 + $0x1bb] sm:$0xff] }
 0xd11   :  { %10186 = vmatprep.mubr.f32.mxu1 %v7215_v57  ;;  %v7353_v57 = vld [vmem:[#allocation3 + $0x1c3] sm:$0xff] }
 0xd14   :  { %10187 = vmatmul.mubr.f32.gmra.mrb[150].mxu1 %v19298_v56  ;;  %v7354_v56 = vld [vmem:[#allocation3 + $0x1cb] sm:$0xff] }
 0xd15   :  { %10191 = vmatprep.mubr.f32.mxu1 %v7216_v20 }
 0xd18   :  { %10192 = vmatmul.mubr.f32.gmra.mrb[152].mxu1 %v19299_v15  ;;  %v7355_v15 = vld [vmem:[#allocation3 + $0x1d3] sm:$0xff] }
 0xd19   :  { %10196 = vmatprep.mubr.f32.mxu1 %v7217_v33 }
 0xd1c   :  { %10197 = vmatmul.mubr.f32.gmra.mrb[154].mxu1 %v19300_v40  ;;  %v19302_v40 = vld [vmem:[#allocation14_spill] sm:$0xff] }
 0xd1d   :  { %10201 = vmatprep.mubr.f32.mxu1 %v7218_v39 }
 0xd20   :  { %10202 = vmatmul.mubr.f32.gmra.mrb[156].mxu1 %v19301_v51  ;;  %v7356_v51 = vld [vmem:[#allocation3 + $0x1db] sm:$0xff] }
 0xd21   :  { %10206 = vmatprep.mubr.f32.mxu1 %v7219_v4 }
 0xd24   :  { %10207 = vmatmul.mubr.f32.gmra.mrb[158].mxu1 %v7057_v43  ;;  %v19303_v43 = vld [vmem:[#allocation15_spill] sm:$0xff] }
 0xd25   :  { %10211 = vmatprep.mubr.f32.mxu1 %v7220_v34 }
 0xd28   :  { %10212 = vmatmul.mubr.f32.gmra.mrb[160].mxu1 %v7058_v9 }
 0xd29   :  { %12049 = vmatprep.mubr.msk.f32.mxu1 %vm14140_vm0, %v16888_v59 }
 0xd2c   :  { %12050 = vmatmul.mubr.f32.vlgmr.msra.gmra.mrb[0].mxu1 %v7302_v26 }
 0xd2d   :  { %12052 = vmatprep.mubr.msk.f32.mxu1 %vm14140_vm0, %v16888_v59 }
 0xd30   :  { %12053 = vmatmul.mubr.f32.gmra.mrb[2].mxu1 %v7303_v29 }
 0xd31   :  { %12055 = vmatprep.mubr.msk.f32.mxu1 %vm14140_vm0, %v16888_v59 }
 0xd34   :  { %12056 = vmatmul.mubr.f32.gmra.mrb[4].mxu1 %v7304_v50 }
 0xd35   :  { %12058 = vmatprep.mubr.msk.f32.mxu1 %vm14140_vm0, %v16888_v59 }
 0xd38   :  { %12059 = vmatmul.mubr.f32.gmra.mrb[6].mxu1 %v7305_v58 }
 0xd39   :  { %12061 = vmatprep.mubr.msk.f32.mxu1 %vm14140_vm0, %v16888_v59 }
 0xd3c   :  { %12062 = vmatmul.mubr.f32.gmra.mrb[8].mxu1 %v7306_v45  ;;  %v7357_v45 = vld [vmem:[#allocation3 + $0x1e3] sm:$0xff] }
 0xd3d   :  { %12064 = vmatprep.mubr.msk.f32.mxu1 %vm14140_vm0, %v16888_v59 }
 0xd40   :  { %12065 = vmatmul.mubr.f32.gmra.mrb[10].mxu1 %v7307_v30 }
 0xd41   :  { %12067 = vmatprep.mubr.msk.f32.mxu1 %vm14140_vm0, %v16888_v59 }
 0xd44   :  { %12068 = vmatmul.mubr.f32.gmra.mrb[12].mxu1 %v7308_v53  ;;  %v19304_v53 = vld [vmem:[#allocation16_spill] sm:$0xff] }
 0xd45   :  { %12070 = vmatprep.mubr.msk.f32.mxu1 %vm14140_vm0, %v16888_v59 }
 0xd48   :  { %12071 = vmatmul.mubr.f32.gmra.mrb[14].mxu1 %v7309_v60 }
 0xd49   :  { %12073 = vmatprep.mubr.msk.f32.mxu1 %vm14140_vm0, %v16888_v59 }
 0xd4c   :  { %12074 = vmatmul.mubr.f32.gmra.mrb[16].mxu1 %v7310_v37 }
 0xd4d   :  { %12076 = vmatprep.mubr.msk.f32.mxu1 %vm14140_vm0, %v16888_v59 }
 0xd50   :  { %12077 = vmatmul.mubr.f32.gmra.mrb[18].mxu1 %v7311_v16 }
 0xd51   :  { %12079 = vmatprep.mubr.msk.f32.mxu1 %vm14140_vm0, %v16888_v59 }
 0xd54   :  { %12080 = vmatmul.mubr.f32.gmra.mrb[20].mxu1 %v7312_v28 }
 0xd55   :  { %12082 = vmatprep.mubr.msk.f32.mxu1 %vm14140_vm0, %v16888_v59 }
 0xd58   :  { %12083 = vmatmul.mubr.f32.gmra.mrb[22].mxu1 %v7313_v6 }
 0xd59   :  { %12085 = vmatprep.mubr.msk.f32.mxu1 %vm14140_vm0, %v16888_v59 }
 0xd5c   :  { %12086 = vmatmul.mubr.f32.gmra.mrb[24].mxu1 %v7314_v13  ;;  %v7358_v13 = vld [vmem:[#allocation3 + $0x1eb] sm:$0xff] }
 0xd5d   :  { %12088 = vmatprep.mubr.msk.f32.mxu1 %vm14140_vm0, %v16888_v59 }
 0xd60   :  { %12089 = vmatmul.mubr.f32.gmra.mrb[26].mxu1 %v7315_v35 }
 0xd61   :  { %12091 = vmatprep.mubr.msk.f32.mxu1 %vm14140_vm0, %v16888_v59 }
 0xd64   :  { %12092 = vmatmul.mubr.f32.gmra.mrb[28].mxu1 %v7316_v21  ;;  %v19305_v21 = vld [vmem:[#allocation17_spill] sm:$0xff] }
 0xd65   :  { %12094 = vmatprep.mubr.msk.f32.mxu1 %vm14140_vm0, %v16888_v59 }
 0xd68   :  { %12095 = vmatmul.mubr.f32.gmra.mrb[30].mxu1 %v7317_v61 }
 0xd69   :  { %12097 = vmatprep.mubr.msk.f32.mxu1 %vm14140_vm0, %v16888_v59 }
 0xd6c   :  { %12098 = vmatmul.mubr.f32.gmra.mrb[32].mxu1 %v7318_v24 }
 0xd6d   :  { %12100 = vmatprep.mubr.msk.f32.mxu1 %vm14140_vm0, %v16888_v59 }
 0xd70   :  { %12101 = vmatmul.mubr.f32.gmra.mrb[34].mxu1 %v7319_v12 }
 0xd71   :  { %12103 = vmatprep.mubr.msk.f32.mxu1 %vm14140_vm0, %v16888_v59 }
 0xd74   :  { %12104 = vmatmul.mubr.f32.gmra.mrb[36].mxu1 %v7320_v17 }
 0xd75   :  { %12106 = vmatprep.mubr.msk.f32.mxu1 %vm14140_vm0, %v16888_v59 }
 0xd78   :  { %12107 = vmatmul.mubr.f32.gmra.mrb[38].mxu1 %v7321_v8 }
 0xd79   :  { %12109 = vmatprep.mubr.msk.f32.mxu1 %vm14140_vm0, %v16888_v59 }
 0xd7c   :  { %12110 = vmatmul.mubr.f32.gmra.mrb[40].mxu1 %v7322_v14  ;;  %v7359_v14 = vld [vmem:[#allocation3 + $0x1f3] sm:$0xff] }
 0xd7d   :  { %12112 = vmatprep.mubr.msk.f32.mxu1 %vm14140_vm0, %v16888_v59 }
 0xd80   :  { %12113 = vmatmul.mubr.f32.gmra.mrb[42].mxu1 %v7323_v46 }
 0xd81   :  { %12115 = vmatprep.mubr.msk.f32.mxu1 %vm14140_vm0, %v16888_v59 }
 0xd84   :  { %12116 = vmatmul.mubr.f32.gmra.mrb[44].mxu1 %v7324_v0  ;;  %v19306_v0 = vld [vmem:[#allocation18_spill] sm:$0xff] }
 0xd85   :  { %12118 = vmatprep.mubr.msk.f32.mxu1 %vm14140_vm0, %v16888_v59 }
 0xd88   :  { %12119 = vmatmul.mubr.f32.gmra.mrb[46].mxu1 %v7325_v47 }
 0xd89   :  { %12121 = vmatprep.mubr.msk.f32.mxu1 %vm14140_vm0, %v16888_v59 }
 0xd8c   :  { %12122 = vmatmul.mubr.f32.gmra.mrb[48].mxu1 %v7326_v38 }
 0xd8d   :  { %12124 = vmatprep.mubr.msk.f32.mxu1 %vm14140_vm0, %v16888_v59 }
 0xd90   :  { %12125 = vmatmul.mubr.f32.gmra.mrb[50].mxu1 %v7327_v42 }
 0xd91   :  { %12127 = vmatprep.mubr.msk.f32.mxu1 %vm14140_vm0, %v16888_v59 }
 0xd94   :  { %12128 = vmatmul.mubr.f32.gmra.mrb[52].mxu1 %v7328_v52 }
 0xd95   :  { %12130 = vmatprep.mubr.msk.f32.mxu1 %vm14140_vm0, %v16888_v59 }
 0xd98   :  { %12131 = vmatmul.mubr.f32.gmra.mrb[54].mxu1 %v7329_v3 }
 0xd99   :  { %12133 = vmatprep.mubr.msk.f32.mxu1 %vm14140_vm0, %v16888_v59 }
 0xd9c   :  { %12134 = vmatmul.mubr.f32.gmra.mrb[56].mxu1 %v7330_v1  ;;  %v7360_v1 = vld [vmem:[#allocation3 + $0x1fb] sm:$0xff] }
 0xd9d   :  { %12136 = vmatprep.mubr.msk.f32.mxu1 %vm14140_vm0, %v16888_v59 }
 0xda0   :  { %12137 = vmatmul.mubr.f32.gmra.mrb[58].mxu1 %v7331_v19 }
 0xda1   :  { %12139 = vmatprep.mubr.msk.f32.mxu1 %vm14140_vm0, %v16888_v59 }
 0xda4   :  { %12140 = vmatmul.mubr.f32.gmra.mrb[60].mxu1 %v7332_v25  ;;  %v19307_v25 = vld [vmem:[#allocation19_spill] sm:$0xff] }
 0xda5   :  { %12142 = vmatprep.mubr.msk.f32.mxu1 %vm14140_vm0, %v16888_v59 }
 0xda8   :  { %12143 = vmatmul.mubr.f32.gmra.mrb[62].mxu1 %v7333_v63 }
 0xda9   :  { %12145 = vmatprep.mubr.msk.f32.mxu1 %vm14140_vm0, %v16888_v59 }
 0xdac   :  { %12146 = vmatmul.mubr.f32.gmra.mrb[64].mxu1 %v7334_v48 }
 0xdad   :  { %12148 = vmatprep.mubr.msk.f32.mxu1 %vm14140_vm0, %v16888_v59 }
 0xdb0   :  { %12149 = vmatmul.mubr.f32.gmra.mrb[66].mxu1 %v7335_v11 }
 0xdb1   :  { %12151 = vmatprep.mubr.msk.f32.mxu1 %vm14140_vm0, %v16888_v59 }
 0xdb4   :  { %12152 = vmatmul.mubr.f32.gmra.mrb[68].mxu1 %v7336_v31 }
 0xdb5   :  { %12154 = vmatprep.mubr.msk.f32.mxu1 %vm14140_vm0, %v16888_v59 }
 0xdb8   :  { %12155 = vmatmul.mubr.f32.gmra.mrb[70].mxu1 %v7337_v7 }
 0xdb9   :  { %12157 = vmatprep.mubr.msk.f32.mxu1 %vm14140_vm0, %v16888_v59 }
 0xdbc   :  { %12158 = vmatmul.mubr.f32.gmra.mrb[72].mxu1 %v7338_v36  ;;  %v7361_v36 = vld [vmem:[#allocation3 + $0x203] sm:$0xff] }
 0xdbd   :  { %12160 = vmatprep.mubr.msk.f32.mxu1 %vm14140_vm0, %v16888_v59 }
 0xdc0   :  { %12161 = vmatmul.mubr.f32.gmra.mrb[74].mxu1 %v7339_v22 }
 0xdc1   :  { %12163 = vmatprep.mubr.msk.f32.mxu1 %vm14140_vm0, %v16888_v59 }
 0xdc4   :  { %12164 = vmatmul.mubr.f32.gmra.mrb[76].mxu1 %v7340_v27  ;;  %v19308_v27 = vld [vmem:[#allocation20_spill] sm:$0xff] }
 0xdc5   :  { %12166 = vmatprep.mubr.msk.f32.mxu1 %vm14140_vm0, %v16888_v59 }
 0xdc8   :  { %12167 = vmatmul.mubr.f32.gmra.mrb[78].mxu1 %v7341_v5 }
 0xdc9   :  { %12169 = vmatprep.mubr.msk.f32.mxu1 %vm14140_vm0, %v16888_v59 }
 0xdcc   :  { %12170 = vmatmul.mubr.f32.gmra.mrb[80].mxu1 %v7342_v23 }
 0xdcd   :  { %12172 = vmatprep.mubr.msk.f32.mxu1 %vm14140_vm0, %v16888_v59 }
 0xdd0   :  { %12173 = vmatmul.mubr.f32.gmra.mrb[82].mxu1 %v7343_v54 }
 0xdd1   :  { %12175 = vmatprep.mubr.msk.f32.mxu1 %vm14140_vm0, %v16888_v59 }
 0xdd4   :  { %12176 = vmatmul.mubr.f32.gmra.mrb[84].mxu1 %v7344_v55 }
 0xdd5   :  { %12178 = vmatprep.mubr.msk.f32.mxu1 %vm14140_vm0, %v16888_v59 }
 0xdd8   :  { %12179 = vmatmul.mubr.f32.gmra.mrb[86].mxu1 %v7345_v44 }
 0xdd9   :  { %12181 = vmatprep.mubr.msk.f32.mxu1 %vm14140_vm0, %v16888_v59 }
 0xddc   :  { %12182 = vmatmul.mubr.f32.gmra.mrb[88].mxu1 %v7346_v18  ;;  %v7362_v18 = vld [vmem:[#allocation3 + $0x20b] sm:$0xff] }
 0xddd   :  { %12184 = vmatprep.mubr.msk.f32.mxu1 %vm14140_vm0, %v16888_v59 }
 0xde0   :  { %12185 = vmatmul.mubr.f32.gmra.mrb[90].mxu1 %v7347_v62 }
 0xde1   :  { %12187 = vmatprep.mubr.msk.f32.mxu1 %vm14140_vm0, %v16888_v59 }
 0xde4   :  { %12188 = vmatmul.mubr.f32.gmra.mrb[92].mxu1 %v7348_v49  ;;  %v19309_v49 = vld [vmem:[#allocation21_spill] sm:$0xff] }
 0xde5   :  { %12190 = vmatprep.mubr.msk.f32.mxu1 %vm14140_vm0, %v16888_v59 }
 0xde8   :  { %12191 = vmatmul.mubr.f32.gmra.mrb[94].mxu1 %v7349_v32 }
 0xde9   :  { %12193 = vmatprep.mubr.msk.f32.mxu1 %vm14140_vm0, %v16888_v59 }
 0xdec   :  { %12194 = vmatmul.mubr.f32.gmra.mrb[96].mxu1 %v7350_v10 }
 0xded   :  { %12196 = vmatprep.mubr.msk.f32.mxu1 %vm14140_vm0, %v16888_v59 }
 0xdf0   :  { %12197 = vmatmul.mubr.f32.gmra.mrb[98].mxu1 %v7351_v41 }
 0xdf1   :  { %12199 = vmatprep.mubr.msk.f32.mxu1 %vm14140_vm0, %v16888_v59 }
 0xdf4   :  { %12200 = vmatmul.mubr.f32.gmra.mrb[100].mxu1 %v7352_v2 }
 0xdf5   :  { %12202 = vmatprep.mubr.msk.f32.mxu1 %vm14140_vm0, %v16888_v59 }
 0xdf8   :  { %12203 = vmatmul.mubr.f32.gmra.mrb[102].mxu1 %v7353_v57 }
 0xdf9   :  { %12205 = vmatprep.mubr.msk.f32.mxu1 %vm14140_vm0, %v16888_v59 }
 0xdfc   :  { %12206 = vmatmul.mubr.f32.gmra.mrb[104].mxu1 %v7354_v56  ;;  %v7363_v56 = vld [vmem:[#allocation3 + $0x213] sm:$0xff] }
 0xdfd   :  { %12208 = vmatprep.mubr.msk.f32.mxu1 %vm14140_vm0, %v16888_v59 }
 0xdff   :  { %v16998_v20 = vpop.f32.mrb[0].mxu1 }
 0xe00   :  { %v12051_v33 = vpop.f32.mrb[1].mxu1  ;;  %12209 = vmatmul.mubr.f32.gmra.mrb[106].mxu1 %v7355_v15  ;;  %v10687_v39 = vmul.f32 %v16998_v20, %v19302_v40 }
 0xe01   :  { %12211 = vmatprep.mubr.msk.f32.mxu1 %vm14140_vm0, %v16888_v59  ;;  %v19310_v33 = vld [vmem:[#allocation22_spill] sm:$0xff] }
 0xe02   :  { %v10855_v26 = vmul.f32 %v10687_v39, %v10687_v39 }
 0xe03   :  { %v17004_v4 = vpop.f32.mrb[2].mxu1 }
 0xe04   :  { %v10688_v34 = vmul.f32 %v17004_v4, %v19303_v43  ;;  %v12054_v9 = vpop.f32.mrb[3].mxu1  ;;  %12212 = vmatmul.mubr.f32.gmra.mrb[108].mxu1 %v7356_v51 }
 0xe05   :  { %12214 = vmatprep.mubr.msk.f32.mxu1 %vm14140_vm0, %v16888_v59  ;;  %v7364_v9 = vld [vmem:[#allocation3 + $0x21b] sm:$0xff] }
 0xe06   :  { %v10768_v29 = vadd.f32 %v10688_v34, %v10687_v39  ;;  %v10856_v50 = vmul.f32 %v10688_v34, %v10688_v34 }
 0xe07   :  { %v17010_v58 = vpop.f32.mrb[4].mxu1 }
 0xe08   :  { %v10936_v30 = vadd.f32 %v10856_v50, %v10855_v26  ;;  %v10689_v60 = vmul.f32 %v17010_v58, %v19304_v53  ;;  %v12057_v37 = vpop.f32.mrb[5].mxu1  ;;  %12215 = vmatmul.mubr.f32.gmra.mrb[110].mxu1 %v7357_v45 }
 0xe09   :  { %12217 = vmatprep.mubr.msk.f32.mxu1 %vm14140_vm0, %v16888_v59  ;;  %v7365_v37 = vld [vmem:[#allocation3 + $0x223] sm:$0xff] }
 0xe0a   :  { %v10769_v16 = vadd.f32 %v10768_v29, %v10689_v60  ;;  %v10857_v28 = vmul.f32 %v10689_v60, %v10689_v60  ;;  %v19311_v29 = vld [vmem:[#allocation23_spill] sm:$0xff] }
 0xe0b   :  { %v17016_v6 = vpop.f32.mrb[6].mxu1 }
 0xe0c   :  { %v10937_v35 = vadd.f32 %v10936_v30, %v10857_v28  ;;  %v10690_v61 = vmul.f32 %v17016_v6, %v19305_v21  ;;  %v12060_v24 = vpop.f32.mrb[7].mxu1  ;;  %12218 = vmatmul.mubr.f32.gmra.mrb[112].mxu1 %v7358_v13  ;;  %v19312_v28 = vld [vmem:[#allocation24_spill] sm:$0xff] }
 0xe0d   :  { %12220 = vmatprep.mubr.msk.f32.mxu1 %vm14140_vm0, %v16888_v59 }
 0xe0e   :  { %v10770_v12 = vadd.f32 %v10769_v16, %v10690_v61  ;;  %v10858_v17 = vmul.f32 %v10690_v61, %v10690_v61 }
 0xe0f   :  { %v17022_v8 = vpop.f32.mrb[8].mxu1 }
 0xe10   :  { %v10938_v46 = vadd.f32 %v10937_v35, %v10858_v17  ;;  %v10691_v47 = vmul.f32 %v17022_v8, %v19306_v0  ;;  %v12063_v38 = vpop.f32.mrb[9].mxu1  ;;  %12221 = vmatmul.mubr.f32.gmra.mrb[114].mxu1 %v7359_v14  ;;  %v19313_v14 = vld [vmem:[#allocation25_spill] sm:$0xff] }
 0xe11   :  { %12223 = vmatprep.mubr.msk.f32.mxu1 %vm14140_vm0, %v16888_v59 }
 0xe12   :  { %v10771_v42 = vadd.f32 %v10770_v12, %v10691_v47  ;;  %v10859_v52 = vmul.f32 %v10691_v47, %v10691_v47  ;;  %v7366_v12 = vld [vmem:[#allocation3 + $0x22b] sm:$0xff] }
 0xe13   :  { %v17028_v3 = vpop.f32.mrb[10].mxu1 }
 0xe14   :  { %v10939_v19 = vadd.f32 %v10938_v46, %v10859_v52  ;;  %v10692_v63 = vmul.f32 %v17028_v3, %v19307_v25  ;;  %v12066_v48 = vpop.f32.mrb[11].mxu1  ;;  %12224 = vmatmul.mubr.f32.gmra.mrb[116].mxu1 %v7360_v1  ;;  %v7367_v52 = vld [vmem:[#allocation3 + $0x233] sm:$0xff] }
 0xe15   :  { %12226 = vmatprep.mubr.msk.f32.mxu1 %vm14140_vm0, %v16888_v59 }
 0xe16   :  { %v10772_v11 = vadd.f32 %v10771_v42, %v10692_v63  ;;  %v10860_v31 = vmul.f32 %v10692_v63, %v10692_v63 }
 0xe17   :  { %v17034_v7 = vpop.f32.mrb[12].mxu1 }
 0xe18   :  { %v10940_v22 = vadd.f32 %v10939_v19, %v10860_v31  ;;  %v10693_v5 = vmul.f32 %v17034_v7, %v19308_v27  ;;  %v12069_v23 = vpop.f32.mrb[13].mxu1  ;;  %12227 = vmatmul.mubr.f32.gmra.mrb[118].mxu1 %v7361_v36  ;;  %v19314_v19 = vld [vmem:[#allocation26_spill] sm:$0xff]  ;;  %v19315_v27 = vld [vmem:[#allocation27_spill] sm:$0xff] }
 0xe19   :  { %12229 = vmatprep.mubr.msk.f32.mxu1 %vm14140_vm0, %v16888_v59  ;;  %v7368_v36 = vld [vmem:[#allocation3 + $0x23b] sm:$0xff] }
 0xe1a   :  { %v10773_v54 = vadd.f32 %v10772_v11, %v10693_v5  ;;  %v10861_v55 = vmul.f32 %v10693_v5, %v10693_v5 }
 0xe1b   :  { %v17040_v44 = vpop.f32.mrb[14].mxu1 }
 0xe1c   :  { %v10941_v62 = vadd.f32 %v10940_v22, %v10861_v55  ;;  %v10694_v32 = vmul.f32 %v17040_v44, %v19309_v49  ;;  %v12072_v10 = vpop.f32.mrb[15].mxu1  ;;  %12230 = vmatmul.mubr.f32.gmra.mrb[120].mxu1 %v7362_v18 }
 0xe1d   :  { %12232 = vmatprep.mubr.msk.f32.mxu1 %vm14140_vm0, %v16888_v59 }
 0xe1e   :  { %v10774_v41 = vadd.f32 %v10773_v54, %v10694_v32  ;;  %v10862_v2 = vmul.f32 %v10694_v32, %v10694_v32  ;;  %v19316_v32 = vld [vmem:[#allocation28_spill] sm:$0xff] }
 0xe1f   :  { %v17046_v57 = vpop.f32.mrb[16].mxu1 }
 0xe20   :  { %v10942_v15 = vadd.f32 %v10941_v62, %v10862_v2  ;;  %v10695_v40 = vmul.f32 %v17046_v57, %v19310_v33  ;;  %v12075_v39 = vpop.f32.mrb[17].mxu1  ;;  %12233 = vmatmul.mubr.f32.gmra.mrb[122].mxu1 %v7363_v56  ;;  %v7369_v62 = vld [vmem:[#allocation3 + $0x243] sm:$0xff]  ;;  %v7370_v33 = vld [vmem:[#allocation3 + $0x24b] sm:$0xff] }
 0xe21   :  { %12235 = vmatprep.mubr.msk.f32.mxu1 %vm14140_vm0, %v16888_v59  ;;  %v19317_v39 = vld [vmem:[#allocation29_spill] sm:$0xff] }
 0xe22   :  { %v10775_v51 = vadd.f32 %v10774_v41, %v10695_v40  ;;  %v10863_v43 = vmul.f32 %v10695_v40, %v10695_v40 }
 0xe23   :  { %v17052_v34 = vpop.f32.mrb[18].mxu1 }
 0xe24   :  { %v10943_v26 = vadd.f32 %v10942_v15, %v10863_v43  ;;  %v10696_v50 = vmul.f32 %v17052_v34, %v19311_v29  ;;  %v12078_v45 = vpop.f32.mrb[19].mxu1  ;;  %12236 = vmatmul.mubr.f32.gmra.mrb[124].mxu1 %v7364_v9 }
 0xe25   :  { %12238 = vmatprep.mubr.msk.f32.mxu1 %vm14140_vm0, %v16888_v59 }
 0xe26   :  { %v10776_v30 = vadd.f32 %v10775_v51, %v10696_v50  ;;  %v10864_v53 = vmul.f32 %v10696_v50, %v10696_v50  ;;  %v7371_v50 = vld [vmem:[#allocation3 + $0x253] sm:$0xff] }
 0xe27   :  { %v17058_v60 = vpop.f32.mrb[20].mxu1 }
 0xe28   :  { %v10944_v16 = vadd.f32 %v10943_v26, %v10864_v53  ;;  %v10697_v13 = vmul.f32 %v17058_v60, %v19312_v28  ;;  %v12081_v35 = vpop.f32.mrb[21].mxu1  ;;  %12239 = vmatmul.mubr.f32.gmra.mrb[126].mxu1 %v7365_v37 }
 0xe29   :  { %12241 = vmatprep.mubr.msk.f32.mxu1 %vm14140_vm0, %v16888_v59  ;;  %v7372_v35 = vld [vmem:[#allocation3 + $0x25b] sm:$0xff] }
 0xe2a   :  { %v10777_v21 = vadd.f32 %v10776_v30, %v10697_v13  ;;  %v10865_v61 = vmul.f32 %v10697_v13, %v10697_v13  ;;  %v19318_v30 = vld [vmem:[#allocation30_spill] sm:$0xff] }
 0xe2b   :  { %v17064_v24 = vpop.f32.mrb[22].mxu1 }
 0xe2c   :  { %v10945_v17 = vadd.f32 %v10944_v16, %v10865_v61  ;;  %v10698_v46 = vmul.f32 %v17064_v24, %v19313_v14  ;;  %v12084_v0 = vpop.f32.mrb[23].mxu1  ;;  %12242 = vmatmul.mubr.f32.gmra.mrb[128].mxu1 %v7366_v12  ;;  %v19319_v61 = vld [vmem:[#allocation31_spill] sm:$0xff] }
 0xe2d   :  { %12244 = vmatprep.mubr.msk.f32.mxu1 %vm14140_vm0, %v16888_v59 }
 0xe2e   :  { %v10778_v47 = vadd.f32 %v10777_v21, %v10698_v46  ;;  %v10866_v38 = vmul.f32 %v10698_v46, %v10698_v46 }
 0xe2f   :  { %v17070_v42 = vpop.f32.mrb[24].mxu1 }
 0xe30   :  { %v10946_v1 = vadd.f32 %v10945_v17, %v10866_v38  ;;  %v10699_v25 = vmul.f32 %v17070_v42, %v19314_v19  ;;  %v12087_v63 = vpop.f32.mrb[25].mxu1  ;;  %12245 = vmatmul.mubr.f32.gmra.mrb[130].mxu1 %v7367_v52  ;;  %v19320_v52 = vld [vmem:[#allocation32_spill] sm:$0xff] }
 0xe31   :  { %12247 = vmatprep.mubr.msk.f32.mxu1 %vm14140_vm0, %v16888_v59 }
 0xe32   :  { %v10779_v48 = vadd.f32 %v10778_v47, %v10699_v25  ;;  %v10867_v11 = vmul.f32 %v10699_v25, %v10699_v25  ;;  %v7373_v47 = vld [vmem:[#allocation3 + $0x263] sm:$0xff] }
 0xe33   :  { %v17076_v31 = vpop.f32.mrb[26].mxu1 }
 0xe34   :  { %v10947_v22 = vadd.f32 %v10946_v1, %v10867_v11  ;;  %v10700_v5 = vmul.f32 %v17076_v31, %v19315_v27  ;;  %v12090_v23 = vpop.f32.mrb[27].mxu1  ;;  %12248 = vmatmul.mubr.f32.gmra.mrb[132].mxu1 %v7368_v36  ;;  %v7374_v11 = vld [vmem:[#allocation3 + $0x26b] sm:$0xff] }
 0xe35   :  { %12250 = vmatprep.mubr.msk.f32.mxu1 %vm14140_vm0, %v16888_v59 }
 0xe36   :  { %v10780_v54 = vadd.f32 %v10779_v48, %v10700_v5  ;;  %v10868_v55 = vmul.f32 %v10700_v5, %v10700_v5 }
 0xe37   :  { %v17082_v18 = vpop.f32.mrb[28].mxu1 }
 0xe38   :  { %v10948_v49 = vadd.f32 %v10947_v22, %v10868_v55  ;;  %v10701_v10 = vmul.f32 %v17082_v18, %v19316_v32  ;;  %v12093_v41 = vpop.f32.mrb[29].mxu1  ;;  %12251 = vmatmul.mubr.f32.gmra.mrb[134].mxu1 %v7369_v62  ;;  %v19321_v22 = vld [vmem:[#allocation33_spill] sm:$0xff]  ;;  %v19322_v32 = vld [vmem:[#allocation34_spill] sm:$0xff] }
 0xe39   :  { %12253 = vmatprep.mubr.msk.f32.mxu1 %vm14140_vm0, %v16888_v59  ;;  %v7375_v62 = vld [vmem:[#allocation3 + $0x273] sm:$0xff] }
 0xe3a   :  { %v10781_v2 = vadd.f32 %v10780_v54, %v10701_v10  ;;  %v10869_v56 = vmul.f32 %v10701_v10, %v10701_v10 }
 0xe3b   :  { %v17088_v15 = vpop.f32.mrb[30].mxu1 }
 0xe3c   :  { %v10949_v40 = vadd.f32 %v10948_v49, %v10869_v56  ;;  %v10702_v51 = vmul.f32 %v17088_v15, %v19317_v39  ;;  %v12096_v43 = vpop.f32.mrb[31].mxu1  ;;  %12254 = vmatmul.mubr.f32.gmra.mrb[136].mxu1 %v7370_v33 }
 0xe3d   :  { %12256 = vmatprep.mubr.msk.f32.mxu1 %vm14140_vm0, %v16888_v59 }
 0xe3e   :  { %v10782_v9 = vadd.f32 %v10781_v2, %v10702_v51  ;;  %v10870_v26 = vmul.f32 %v10702_v51, %v10702_v51  ;;  %v19323_v51 = vld [vmem:[#allocation35_spill] sm:$0xff] }
 0xe3f   :  { %v17094_v29 = vpop.f32.mrb[32].mxu1 }
 0xe40   :  { %v10950_v45 = vadd.f32 %v10949_v40, %v10870_v26  ;;  %v10703_v53 = vmul.f32 %v17094_v29, %v19318_v30  ;;  %v12099_v37 = vpop.f32.mrb[33].mxu1  ;;  %12257 = vmatmul.mubr.f32.gmra.mrb[138].mxu1 %v7371_v50  ;;  %v7376_v40 = vld [vmem:[#allocation3 + $0x27b] sm:$0xff]  ;;  %v7377_v30 = vld [vmem:[#allocation3 + $0x283] sm:$0xff] }
 0xe41   :  { %12259 = vmatprep.mubr.msk.f32.mxu1 %vm14140_vm0, %v16888_v59  ;;  %v19324_v37 = vld [vmem:[#allocation36_spill] sm:$0xff] }
 0xe42   :  { %v10783_v16 = vadd.f32 %v10782_v9, %v10703_v53  ;;  %v10871_v28 = vmul.f32 %v10703_v53, %v10703_v53 }
 0xe43   :  { %v17100_v13 = vpop.f32.mrb[34].mxu1 }
 0xe44   :  { %v10951_v21 = vadd.f32 %v10950_v45, %v10871_v28  ;;  %v10704_v12 = vmul.f32 %v17100_v13, %v19319_v61  ;;  %v12102_v17 = vpop.f32.mrb[35].mxu1  ;;  %12260 = vmatmul.mubr.f32.gmra.mrb[140].mxu1 %v7372_v35 }
 0xe45   :  { %12262 = vmatprep.mubr.msk.f32.mxu1 %vm14140_vm0, %v16888_v59 }
 0xe46   :  { %v10784_v14 = vadd.f32 %v10783_v16, %v10704_v12  ;;  %v10872_v46 = vmul.f32 %v10704_v12, %v10704_v12  ;;  %v7378_v12 = vld [vmem:[#allocation3 + $0x28b] sm:$0xff] }
 0xe47   :  { %v17106_v0 = vpop.f32.mrb[36].mxu1 }
 0xe48   :  { %v10952_v38 = vadd.f32 %v10951_v21, %v10872_v46  ;;  %v10705_v1 = vmul.f32 %v17106_v0, %v19320_v52  ;;  %v12105_v19 = vpop.f32.mrb[37].mxu1  ;;  %12263 = vmatmul.mubr.f32.gmra.mrb[142].mxu1 %v7373_v47 }
 0xe49   :  { %12265 = vmatprep.mubr.msk.f32.mxu1 %vm14140_vm0, %v16888_v59  ;;  %v7379_v19 = vld [vmem:[#allocation3 + $0x293] sm:$0xff] }
 0xe4a   :  { %v10785_v25 = vadd.f32 %v10784_v14, %v10705_v1  ;;  %v10873_v63 = vmul.f32 %v10705_v1, %v10705_v1  ;;  %v19325_v14 = vld [vmem:[#allocation37_spill] sm:$0xff] }
 0xe4b   :  { %v17112_v48 = vpop.f32.mrb[38].mxu1 }
 0xe4c   :  { %v10953_v36 = vadd.f32 %v10952_v38, %v10873_v63  ;;  %v10706_v27 = vmul.f32 %v17112_v48, %v19321_v22  ;;  %v12108_v5 = vpop.f32.mrb[39].mxu1  ;;  %12266 = vmatmul.mubr.f32.gmra.mrb[144].mxu1 %v7374_v11  ;;  %v19326_v63 = vld [vmem:[#allocation38_spill] sm:$0xff] }
 0xe4d   :  { %12268 = vmatprep.mubr.msk.f32.mxu1 %vm14140_vm0, %v16888_v59 }
 0xe4e   :  { %v10786_v23 = vadd.f32 %v10785_v25, %v10706_v27  ;;  %v10874_v54 = vmul.f32 %v10706_v27, %v10706_v27 }
 0xe4f   :  { %v17118_v55 = vpop.f32.mrb[40].mxu1 }
 0xe50   :  { %v10954_v49 = vadd.f32 %v10953_v36, %v10874_v54  ;;  %v10707_v10 = vmul.f32 %v17118_v55, %v19322_v32  ;;  %v12111_v41 = vpop.f32.mrb[41].mxu1  ;;  %12269 = vmatmul.mubr.f32.gmra.mrb[146].mxu1 %v7375_v62  ;;  %v19327_v62 = vld [vmem:[#allocation39_spill] sm:$0xff] }
 0xe51   :  { %12271 = vmatprep.mubr.msk.f32.mxu1 %vm14140_vm0, %v16888_v59 }
 0xe52   :  { %v10787_v2 = vadd.f32 %v10786_v23, %v10707_v10  ;;  %v10875_v56 = vmul.f32 %v10707_v10, %v10707_v10  ;;  %v7380_v23 = vld [vmem:[#allocation3 + $0x29b] sm:$0xff]  ;;  %v7381_v10 = vld [vmem:[#allocation3 + $0x2a3] sm:$0xff] }
 0xe53   :  { %v17124_v33 = vpop.f32.mrb[42].mxu1 }
 0xe54   :  { %v10955_v39 = vadd.f32 %v10954_v49, %v10875_v56  ;;  %v10708_v43 = vmul.f32 %v17124_v33, %v19323_v51  ;;  %v12114_v9 = vpop.f32.mrb[43].mxu1  ;;  %12272 = vmatmul.mubr.f32.gmra.mrb[148].mxu1 %v7376_v40 }
 0xe55   :  { %12274 = vmatprep.mubr.msk.f32.mxu1 %vm14140_vm0, %v16888_v59  ;;  %v7382_v9 = vld [vmem:[#allocation3 + $0x2ab] sm:$0xff] }
 0xe56   :  { %v10788_v26 = vadd.f32 %v10787_v2, %v10708_v43  ;;  %v10876_v50 = vmul.f32 %v10708_v43, %v10708_v43 }
 0xe57   :  { %v17130_v45 = vpop.f32.mrb[44].mxu1 }
 0xe58   :  { %v10956_v53 = vadd.f32 %v10955_v39, %v10876_v50  ;;  %v10709_v16 = vmul.f32 %v17130_v45, %v19324_v37  ;;  %v12117_v28 = vpop.f32.mrb[45].mxu1  ;;  %12275 = vmatmul.mubr.f32.gmra.mrb[150].mxu1 %v7377_v30  ;;  %v19328_v39 = vld [vmem:[#allocation40_spill] sm:$0xff]  ;;  %v19329_v37 = vld [vmem:[#allocation41_spill] sm:$0xff] }
 0xe59   :  { %12277 = vmatprep.mubr.msk.f32.mxu1 %vm14140_vm0, %v16888_v59 }
 0xe5a   :  { %v10789_v35 = vadd.f32 %v10788_v26, %v10709_v16  ;;  %v10877_v21 = vmul.f32 %v10709_v16, %v10709_v16 }
 0xe5b   :  { %v17136_v61 = vpop.f32.mrb[46].mxu1 }
 0xe5c   :  { %v10957_v17 = vadd.f32 %v10956_v53, %v10877_v21  ;;  %v10710_v46 = vmul.f32 %v17136_v61, %v19325_v14  ;;  %v12120_v47 = vpop.f32.mrb[47].mxu1  ;;  %12278 = vmatmul.mubr.f32.gmra.mrb[152].mxu1 %v7378_v12  ;;  %v19330_v14 = vld [vmem:[#allocation42_spill] sm:$0xff] }
 0xe5d   :  { %12280 = vmatprep.mubr.msk.f32.mxu1 %vm14140_vm0, %v16888_v59 }
 0xe5e   :  { %v10790_v38 = vadd.f32 %v10789_v35, %v10710_v46  ;;  %v10878_v52 = vmul.f32 %v10710_v46, %v10710_v46 }
 0xe5f   :  { %v17142_v1 = vpop.f32.mrb[48].mxu1 }
 0xe60   :  { %v10958_v25 = vadd.f32 %v10957_v17, %v10878_v52  ;;  %v10711_v11 = vmul.f32 %v17142_v1, %v19326_v63  ;;  %v12123_v36 = vpop.f32.mrb[49].mxu1  ;;  %12281 = vmatmul.mubr.f32.gmra.mrb[154].mxu1 %v7379_v19 }
 0xe61   :  { %12283 = vmatprep.mubr.msk.f32.mxu1 %vm14140_vm0, %v16888_v59 }
 0xe62   :  { %v10791_v22 = vadd.f32 %v10790_v38, %v10711_v11  ;;  %v10879_v27 = vmul.f32 %v10711_v11, %v10711_v11 }
 0xe63   :  { %v17148_v5 = vpop.f32.mrb[50].mxu1 }
 0xe64   :  { %v10959_v54 = vadd.f32 %v10958_v25, %v10879_v27  ;;  %v10712_v49 = vmul.f32 %v17148_v5, %v19327_v62  ;;  %v12126_v32 = vpop.f32.mrb[51].mxu1  ;;  %12284 = vmatmul.mubr.f32.gmra.mrb[156].mxu1 %v7380_v23  ;;  %v19331_v25 = vld [vmem:[#allocation43_spill] sm:$0xff] }
 0xe65   :  { %12286 = vmatprep.mubr.msk.f32.mxu1 %vm14140_vm0, %v16888_v59 }
 0xe66   :  { %v10792_v41 = vadd.f32 %v10791_v22, %v10712_v49  ;;  %v10880_v2 = vmul.f32 %v10712_v49, %v10712_v49 }
 0xe67   :  { %v17154_v56 = vpop.f32.mrb[52].mxu1 }
 0xe68   :  { %v10960_v40 = vadd.f32 %v10959_v54, %v10880_v2  ;;  %v10713_v51 = vmul.f32 %v17154_v56, %v19328_v39  ;;  %v12129_v43 = vpop.f32.mrb[53].mxu1  ;;  %12287 = vmatmul.mubr.f32.gmra.mrb[158].mxu1 %v7381_v10  ;;  %v19332_v54 = vld [vmem:[#allocation44_spill] sm:$0xff] }
 0xe69   :  { %12289 = vmatprep.mubr.msk.f32.mxu1 %vm14140_vm0, %v16888_v59 }
 0xe6a   :  { %v10793_v26 = vadd.f32 %v10792_v41, %v10713_v51  ;;  %v10881_v50 = vmul.f32 %v10713_v51, %v10713_v51 }
 0xe6b   :  { %v17160_v30 = vpop.f32.mrb[54].mxu1 }
 0xe6c   :  { %v10961_v53 = vadd.f32 %v10960_v40, %v10881_v50  ;;  %v10714_v16 = vmul.f32 %v17160_v30, %v19329_v37  ;;  %v12132_v28 = vpop.f32.mrb[55].mxu1  ;;  %12290 = vmatmul.mubr.f32.gmra.mrb[160].mxu1 %v7382_v9  ;;  %v19333_v40 = vld [vmem:[#allocation45_spill] sm:$0xff] }
 0xe6e   :  { %v10794_v35 = vadd.f32 %v10793_v26, %v10714_v16  ;;  %v10882_v21 = vmul.f32 %v10714_v16, %v10714_v16 }
 0xe6f   :  { %v17164_v12 = vpop.f32.mrb[56].mxu1 }
 0xe70   :  { %v10962_v17 = vadd.f32 %v10961_v53, %v10882_v21  ;;  %v10715_v46 = vmul.f32 %v17164_v12, %v19330_v14  ;;  %v12135_v59 = vpop.f32.mrb[57].mxu1  ;;  %v19334_v53 = vld [vmem:[#allocation46_spill] sm:$0xff]  ;;  %v19335_v14 = vld [vmem:[#allocation47_spill] sm:$0xff] }
 0xe72   :  { %v10795_v47 = vadd.f32 %v10794_v35, %v10715_v46  ;;  %v10883_v38 = vmul.f32 %v10715_v46, %v10715_v46 }
 0xe73   :  { %v17168_v52 = vpop.f32.mrb[58].mxu1 }
 0xe74   :  { %v10963_v19 = vadd.f32 %v10962_v17, %v10883_v38  ;;  %v10716_v63 = vmul.f32 %v17168_v52, %v19331_v25  ;;  %v12138_v11 = vpop.f32.mrb[59].mxu1 }
 0xe76   :  { %v10796_v36 = vadd.f32 %v10795_v47, %v10716_v63  ;;  %v10884_v22 = vmul.f32 %v10716_v63, %v10716_v63  ;;  %v19336_v63 = vld [vmem:[#allocation48_spill] sm:$0xff] }
 0xe77   :  { %v17172_v27 = vpop.f32.mrb[60].mxu1 }
 0xe78   :  { %v10964_v23 = vadd.f32 %v10963_v19, %v10884_v22  ;;  %v10717_v62 = vmul.f32 %v17172_v27, %v19332_v54  ;;  %v12141_v49 = vpop.f32.mrb[61].mxu1 }
 0xe79   :  { %v19337_v49 = vld [vmem:[#allocation49_spill] sm:$0xff] }
 0xe7a   :  { %v10797_v32 = vadd.f32 %v10796_v36, %v10717_v62  ;;  %v10885_v10 = vmul.f32 %v10717_v62, %v10717_v62 }
 0xe7b   :  { %v17176_v41 = vpop.f32.mrb[62].mxu1 }
 0xe7c   :  { %v10965_v2 = vadd.f32 %v10964_v23, %v10885_v10  ;;  %v10718_v39 = vmul.f32 %v17176_v41, %v19333_v40  ;;  %v12144_v51 = vpop.f32.mrb[63].mxu1 }
 0xe7e   :  { %v10798_v43 = vadd.f32 %v10797_v32, %v10718_v39  ;;  %v10886_v9 = vmul.f32 %v10718_v39, %v10718_v39 }
 0xe7f   :  { %v17180_v26 = vpop.f32.mrb[64].mxu1 }
 0xe80   :  { %v10966_v50 = vadd.f32 %v10965_v2, %v10886_v9  ;;  %v10719_v37 = vmul.f32 %v17180_v26, %v19334_v53  ;;  %v12147_v16 = vpop.f32.mrb[65].mxu1 }
 0xe82   :  { %v10799_v28 = vadd.f32 %v10798_v43, %v10719_v37  ;;  %v10887_v35 = vmul.f32 %v10719_v37, %v10719_v37  ;;  %v19338_v43 = vld [vmem:[#allocation50_spill] sm:$0xff] }
 0xe83   :  { %v17184_v21 = vpop.f32.mrb[66].mxu1 }
 0xe84   :  { %v10967_v17 = vadd.f32 %v10966_v50, %v10887_v35  ;;  %v10720_v46 = vmul.f32 %v17184_v21, %v19335_v14  ;;  %v12150_v59 = vpop.f32.mrb[67].mxu1  ;;  %v19339_v35 = vld [vmem:[#allocation51_spill] sm:$0xff] }
 0xe86   :  { %v10800_v47 = vadd.f32 %v10799_v28, %v10720_v46  ;;  %v10888_v38 = vmul.f32 %v10720_v46, %v10720_v46 }
 0xe87   :  { %v17188_v19 = vpop.f32.mrb[68].mxu1 }
 0xe88   :  { %v10968_v25 = vadd.f32 %v10967_v17, %v10888_v38  ;;  %v10721_v11 = vmul.f32 %v17188_v19, %v19336_v63  ;;  %v12153_v36 = vpop.f32.mrb[69].mxu1 }
 0xe8a   :  { %v10801_v22 = vadd.f32 %v10800_v47, %v10721_v11  ;;  %v10889_v23 = vmul.f32 %v10721_v11, %v10721_v11 }
 0xe8b   :  { %v17192_v54 = vpop.f32.mrb[70].mxu1 }
 0xe8c   :  { %v10969_v62 = vadd.f32 %v10968_v25, %v10889_v23  ;;  %v10722_v32 = vmul.f32 %v17192_v54, %v19337_v49  ;;  %v12156_v10 = vpop.f32.mrb[71].mxu1  ;;  %v19340_v25 = vld [vmem:[#allocation52_spill] sm:$0xff]  ;;  %v19341_v49 = vld [vmem:[#allocation54_spill] sm:$0xff] }
 0xe8e   :  { %v10802_v2 = vadd.f32 %v10801_v22, %v10722_v32  ;;  %v10890_v40 = vmul.f32 %v10722_v32, %v10722_v32 }
 0xe8f   :  { %v17196_v39 = vpop.f32.mrb[72].mxu1 }
 0xe90   :  { %v10970_v51 = vadd.f32 %v10969_v62, %v10890_v40  ;;  %v10723_v9 = vmul.f32 %v17196_v39, %v19338_v43  ;;  %v12159_v50 = vpop.f32.mrb[73].mxu1 }
 0xe92   :  { %v10803_v53 = vadd.f32 %v10802_v2, %v10723_v9  ;;  %v10891_v37 = vmul.f32 %v10723_v9, %v10723_v9  ;;  %v19343_v9 = vld [vmem:[#allocation56_spill] sm:$0xff] }
 0xe93   :  { %v17200_v16 = vpop.f32.mrb[74].mxu1 }
 0xe94   :  { %v10971_v28 = vadd.f32 %v10970_v51, %v10891_v37  ;;  %v10724_v17 = vmul.f32 %v17200_v16, %v19339_v35  ;;  %v12162_v14 = vpop.f32.mrb[75].mxu1 }
 0xe95   :  { %v19345_v14 = vld [vmem:[#allocation58_spill] sm:$0xff] }
 0xe96   :  { %v10804_v46 = vadd.f32 %v10803_v53, %v10724_v17  ;;  %v10892_v59 = vmul.f32 %v10724_v17, %v10724_v17 }
 0xe97   :  { %v17204_v47 = vpop.f32.mrb[76].mxu1 }
 0xe98   :  { %v10972_v38 = vadd.f32 %v10971_v28, %v10892_v59  ;;  %v10725_v63 = vmul.f32 %v17204_v47, %v19340_v25  ;;  %v12165_v11 = vpop.f32.mrb[77].mxu1 }
 0xe9a   :  { %v10805_v36 = vadd.f32 %v10804_v46, %v10725_v63  ;;  %v10893_v22 = vmul.f32 %v10725_v63, %v10725_v63 }
 0xe9b   :  { %v17208_v23 = vpop.f32.mrb[78].mxu1 }
 0xe9c   :  { %v10973_v62 = vadd.f32 %v10972_v38, %v10893_v22  ;;  %v10726_v32 = vmul.f32 %v17208_v23, %v19341_v49  ;;  %v12168_v10 = vpop.f32.mrb[79].mxu1 }
 0xe9e   :  { %v10806_v2 = vadd.f32 %v10805_v36, %v10726_v32  ;;  %v10894_v40 = vmul.f32 %v10726_v32, %v10726_v32  ;;  %v19347_v36 = vld [vmem:[#allocation60_spill] sm:$0xff] }
 0xe9f   :  { %v17212_v51 = vpop.f32.mrb[80].mxu1 }
 0xea0   :  { %19342 = vst [vmem:[#allocation135_spill] sm:$0xff] %v17212_v51  ;;  %v10974_v43 = vadd.f32 %v10973_v62, %v10894_v40  ;;  %v10727_v50 = vmul.f32 %v17212_v51, %v19343_v9  ;;  %v12171_v53 = vpop.f32.mrb[81].mxu1  ;;  %v19349_v40 = vld [vmem:[#allocation62_spill] sm:$0xff] }
 0xea2   :  { %v10807_v37 = vadd.f32 %v10806_v2, %v10727_v50  ;;  %v10895_v28 = vmul.f32 %v10727_v50, %v10727_v50 }
 0xea3   :  { %v17216_v35 = vpop.f32.mrb[82].mxu1 }
 0xea4   :  { %19344 = vst [vmem:[#allocation53_spill] sm:$0xff] %v17216_v35  ;;  %v10975_v17 = vadd.f32 %v10974_v43, %v10895_v28  ;;  %v10728_v46 = vmul.f32 %v17216_v35, %v19345_v14  ;;  %v12174_v59 = vpop.f32.mrb[83].mxu1  ;;  %v19351_v14 = vld [vmem:[#allocation64_spill] sm:$0xff] }
 0xea6   :  { %v10808_v38 = vadd.f32 %v10807_v37, %v10728_v46  ;;  %v10896_v25 = vmul.f32 %v10728_v46, %v10728_v46 }
 0xea7   :  { %v17220_v63 = vpop.f32.mrb[84].mxu1 }
 0xea8   :  { %19346 = vst [vmem:[#allocation55_spill] sm:$0xff] %v17220_v63  ;;  %v10976_v11 = vadd.f32 %v10975_v17, %v10896_v25  ;;  %v10729_v22 = vmul.f32 %v17220_v63, %v19347_v36  ;;  %v12177_v62 = vpop.f32.mrb[85].mxu1 }
 0xeaa   :  { %v10809_v49 = vadd.f32 %v10808_v38, %v10729_v22  ;;  %v10897_v32 = vmul.f32 %v10729_v22, %v10729_v22  ;;  %v19353_v22 = vld [vmem:[#allocation66_spill] sm:$0xff] }
 0xeab   :  { %v17224_v10 = vpop.f32.mrb[86].mxu1 }
 0xeac   :  { %19348 = vst [vmem:[#allocation69_spill] sm:$0xff] %v17224_v10  ;;  %v10977_v2 = vadd.f32 %v10976_v11, %v10897_v32  ;;  %v10730_v43 = vmul.f32 %v17224_v10, %v19349_v40  ;;  %v12180_v9 = vpop.f32.mrb[87].mxu1 }
 0xead   :  { %v19355_v9 = vld [vmem:[#allocation68_spill] sm:$0xff] }
 0xeae   :  { %v10810_v50 = vadd.f32 %v10809_v49, %v10730_v43  ;;  %v10898_v53 = vmul.f32 %v10730_v43, %v10730_v43 }
 0xeaf   :  { %v17228_v37 = vpop.f32.mrb[88].mxu1 }
 0xeb0   :  { %19350 = vst [vmem:[#allocation71_spill] sm:$0xff] %v17228_v37  ;;  %v10978_v28 = vadd.f32 %v10977_v2, %v10898_v53  ;;  %v10731_v17 = vmul.f32 %v17228_v37, %v19351_v14  ;;  %v12183_v46 = vpop.f32.mrb[89].mxu1  ;;  %v19357_v37 = vld [vmem:[#allocation70_spill] sm:$0xff] }
 0xeb2   :  { %v10811_v59 = vadd.f32 %v10810_v50, %v10731_v17  ;;  %v10899_v25 = vmul.f32 %v10731_v17, %v10731_v17 }
 0xeb3   :  { %v17232_v38 = vpop.f32.mrb[90].mxu1 }
 0xeb4   :  { %19352 = vst [vmem:[#allocation73_spill] sm:$0xff] %v17232_v38  ;;  %v10979_v36 = vadd.f32 %v10978_v28, %v10899_v25  ;;  %v10732_v11 = vmul.f32 %v17232_v38, %v19353_v22  ;;  %v12186_v62 = vpop.f32.mrb[91].mxu1  ;;  %v19359_v38 = vld [vmem:[#allocation72_spill] sm:$0xff] }
 0xeb6   :  { %v10812_v32 = vadd.f32 %v10811_v59, %v10732_v11  ;;  %v10900_v40 = vmul.f32 %v10732_v11, %v10732_v11 }
 0xeb7   :  { %v17236_v49 = vpop.f32.mrb[92].mxu1 }
 0xeb8   :  { %19354 = vst [vmem:[#allocation75_spill] sm:$0xff] %v17236_v49  ;;  %v10980_v43 = vadd.f32 %v10979_v36, %v10900_v40  ;;  %v10733_v2 = vmul.f32 %v17236_v49, %v19355_v9  ;;  %v12189_v53 = vpop.f32.mrb[93].mxu1  ;;  %v19361_v49 = vld [vmem:[#allocation74_spill] sm:$0xff] }
 0xeba   :  { %v10813_v14 = vadd.f32 %v10812_v32, %v10733_v2  ;;  %v10901_v46 = vmul.f32 %v10733_v2, %v10733_v2 }
 0xebb   :  { %v17240_v50 = vpop.f32.mrb[94].mxu1 }
 0xebc   :  { %19356 = vst [vmem:[#allocation77_spill] sm:$0xff] %v17240_v50  ;;  %v10981_v17 = vadd.f32 %v10980_v43, %v10901_v46  ;;  %v10734_v28 = vmul.f32 %v17240_v50, %v19357_v37  ;;  %v12192_v25 = vpop.f32.mrb[95].mxu1  ;;  %v19363_v50 = vld [vmem:[#allocation76_spill] sm:$0xff] }
 0xebe   :  { %v10814_v22 = vadd.f32 %v10813_v14, %v10734_v28  ;;  %v10902_v62 = vmul.f32 %v10734_v28, %v10734_v28 }
 0xebf   :  { %v17244_v59 = vpop.f32.mrb[96].mxu1 }
 0xec0   :  { %19358 = vst [vmem:[#allocation79_spill] sm:$0xff] %v17244_v59  ;;  %v10982_v11 = vadd.f32 %v10981_v17, %v10902_v62  ;;  %v10735_v36 = vmul.f32 %v17244_v59, %v19359_v38  ;;  %v12195_v40 = vpop.f32.mrb[97].mxu1  ;;  %v19365_v59 = vld [vmem:[#allocation78_spill] sm:$0xff] }
 0xec2   :  { %v10815_v9 = vadd.f32 %v10814_v22, %v10735_v36  ;;  %v10903_v53 = vmul.f32 %v10735_v36, %v10735_v36 }
 0xec3   :  { %v17248_v32 = vpop.f32.mrb[98].mxu1 }
 0xec4   :  { %19360 = vst [vmem:[#allocation81_spill] sm:$0xff] %v17248_v32  ;;  %v10983_v2 = vadd.f32 %v10982_v11, %v10903_v53  ;;  %v10736_v43 = vmul.f32 %v17248_v32, %v19361_v49  ;;  %v12198_v46 = vpop.f32.mrb[99].mxu1  ;;  %v19367_v32 = vld [vmem:[#allocation80_spill] sm:$0xff] }
 0xec6   :  { %v10816_v37 = vadd.f32 %v10815_v9, %v10736_v43  ;;  %v10904_v25 = vmul.f32 %v10736_v43, %v10736_v43 }
 0xec7   :  { %v17252_v14 = vpop.f32.mrb[100].mxu1 }
 0xec8   :  { %19362 = vst [vmem:[#allocation83_spill] sm:$0xff] %v17252_v14  ;;  %v10984_v28 = vadd.f32 %v10983_v2, %v10904_v25  ;;  %v10737_v17 = vmul.f32 %v17252_v14, %v19363_v50  ;;  %v12201_v62 = vpop.f32.mrb[101].mxu1  ;;  %v19369_v14 = vld [vmem:[#allocation82_spill] sm:$0xff] }
 0xeca   :  { %v10817_v38 = vadd.f32 %v10816_v37, %v10737_v17  ;;  %v10905_v40 = vmul.f32 %v10737_v17, %v10737_v17 }
 0xecb   :  { %v17256_v22 = vpop.f32.mrb[102].mxu1 }
 0xecc   :  { %19364 = vst [vmem:[#allocation87_spill] sm:$0xff] %v17256_v22  ;;  %v10985_v36 = vadd.f32 %v10984_v28, %v10905_v40  ;;  %v10738_v11 = vmul.f32 %v17256_v22, %v19365_v59  ;;  %v12204_v53 = vpop.f32.mrb[103].mxu1  ;;  %v19371_v22 = vld [vmem:[#allocation84_spill] sm:$0xff] }
 0xece   :  { %v10818_v49 = vadd.f32 %v10817_v38, %v10738_v11  ;;  %v10906_v46 = vmul.f32 %v10738_v11, %v10738_v11 }
 0xecf   :  { %v17260_v9 = vpop.f32.mrb[104].mxu1 }
 0xed0   :  { %19366 = vst [vmem:[#allocation91_spill] sm:$0xff] %v17260_v9  ;;  %v10986_v43 = vadd.f32 %v10985_v36, %v10906_v46  ;;  %v10739_v2 = vmul.f32 %v17260_v9, %v19367_v32  ;;  %v12207_v25 = vpop.f32.mrb[105].mxu1  ;;  %v19373_v9 = vld [vmem:[#allocation86_spill] sm:$0xff] }
 0xed2   :  { %v10819_v50 = vadd.f32 %v10818_v49, %v10739_v2  ;;  %v10907_v62 = vmul.f32 %v10739_v2, %v10739_v2 }
 0xed3   :  { %v17264_v37 = vpop.f32.mrb[106].mxu1 }
 0xed4   :  { %19368 = vst [vmem:[#allocation95_spill] sm:$0xff] %v17264_v37  ;;  %v10987_v17 = vadd.f32 %v10986_v43, %v10907_v62  ;;  %v10740_v28 = vmul.f32 %v17264_v37, %v19369_v14  ;;  %v12210_v40 = vpop.f32.mrb[107].mxu1  ;;  %v19375_v37 = vld [vmem:[#allocation88_spill] sm:$0xff] }
 0xed6   :  { %v10820_v59 = vadd.f32 %v10819_v50, %v10740_v28  ;;  %v10908_v53 = vmul.f32 %v10740_v28, %v10740_v28 }
 0xed7   :  { %v17268_v38 = vpop.f32.mrb[108].mxu1 }
 0xed8   :  { %19370 = vst [vmem:[#allocation97_spill] sm:$0xff] %v17268_v38  ;;  %v10988_v11 = vadd.f32 %v10987_v17, %v10908_v53  ;;  %v10741_v36 = vmul.f32 %v17268_v38, %v19371_v22  ;;  %v12213_v46 = vpop.f32.mrb[109].mxu1  ;;  %v19377_v38 = vld [vmem:[#allocation90_spill] sm:$0xff] }
 0xeda   :  { %v10821_v32 = vadd.f32 %v10820_v59, %v10741_v36  ;;  %v10909_v25 = vmul.f32 %v10741_v36, %v10741_v36 }
 0xedb   :  { %v17272_v49 = vpop.f32.mrb[110].mxu1 }
 0xedc   :  { %19372 = vst [vmem:[#allocation57_spill] sm:$0xff] %v17272_v49  ;;  %v10989_v2 = vadd.f32 %v10988_v11, %v10909_v25  ;;  %v10742_v43 = vmul.f32 %v17272_v49, %v19373_v9  ;;  %v12216_v62 = vpop.f32.mrb[111].mxu1  ;;  %v19379_v49 = vld [vmem:[#allocation92_spill] sm:$0xff] }
 0xede   :  { %v10822_v14 = vadd.f32 %v10821_v32, %v10742_v43  ;;  %v10910_v40 = vmul.f32 %v10742_v43, %v10742_v43 }
 0xedf   :  { %v17276_v50 = vpop.f32.mrb[112].mxu1 }
 0xee0   :  { %19374 = vst [vmem:[#allocation59_spill] sm:$0xff] %v17276_v50  ;;  %v10990_v28 = vadd.f32 %v10989_v2, %v10910_v40  ;;  %v10743_v17 = vmul.f32 %v17276_v50, %v19375_v37  ;;  %v12219_v53 = vpop.f32.mrb[113].mxu1  ;;  %v19381_v50 = vld [vmem:[#allocation94_spill] sm:$0xff] }
 0xee2   :  { %v10823_v22 = vadd.f32 %v10822_v14, %v10743_v17  ;;  %v10911_v46 = vmul.f32 %v10743_v17, %v10743_v17 }
 0xee3   :  { %v17280_v59 = vpop.f32.mrb[114].mxu1 }
 0xee4   :  { %19376 = vst [vmem:[#allocation61_spill] sm:$0xff] %v17280_v59  ;;  %v10991_v36 = vadd.f32 %v10990_v28, %v10911_v46  ;;  %v10744_v11 = vmul.f32 %v17280_v59, %v19377_v38  ;;  %v12222_v25 = vpop.f32.mrb[115].mxu1  ;;  %v19383_v59 = vld [vmem:[#allocation96_spill] sm:$0xff] }
 0xee6   :  { %v10824_v9 = vadd.f32 %v10823_v22, %v10744_v11  ;;  %v10912_v62 = vmul.f32 %v10744_v11, %v10744_v11 }
 0xee7   :  { %v17284_v32 = vpop.f32.mrb[116].mxu1 }
 0xee8   :  { %19378 = vst [vmem:[#allocation63_spill] sm:$0xff] %v17284_v32  ;;  %v10992_v43 = vadd.f32 %v10991_v36, %v10912_v62  ;;  %v10745_v2 = vmul.f32 %v17284_v32, %v19379_v49  ;;  %v12225_v40 = vpop.f32.mrb[117].mxu1  ;;  %v19385_v32 = vld [vmem:[#allocation98_spill] sm:$0xff] }
 0xeea   :  { %v10825_v37 = vadd.f32 %v10824_v9, %v10745_v2  ;;  %v10913_v53 = vmul.f32 %v10745_v2, %v10745_v2 }
 0xeeb   :  { %v17288_v14 = vpop.f32.mrb[118].mxu1 }
 0xeec   :  { %19380 = vst [vmem:[#allocation65_spill] sm:$0xff] %v17288_v14  ;;  %v10993_v17 = vadd.f32 %v10992_v43, %v10913_v53  ;;  %v10746_v28 = vmul.f32 %v17288_v14, %v19381_v50  ;;  %v12228_v46 = vpop.f32.mrb[119].mxu1  ;;  %v19387_v14 = vld [vmem:[#allocation100_spill] sm:$0xff] }
 0xeee   :  { %v10826_v38 = vadd.f32 %v10825_v37, %v10746_v28  ;;  %v10914_v25 = vmul.f32 %v10746_v28, %v10746_v28 }
 0xeef   :  { %v17292_v22 = vpop.f32.mrb[120].mxu1 }
 0xef0   :  { %19382 = vst [vmem:[#allocation67_spill] sm:$0xff] %v17292_v22  ;;  %v10994_v11 = vadd.f32 %v10993_v17, %v10914_v25  ;;  %v10747_v36 = vmul.f32 %v17292_v22, %v19383_v59  ;;  %v12231_v62 = vpop.f32.mrb[121].mxu1  ;;  %v19389_v22 = vld [vmem:[#allocation102_spill] sm:$0xff] }
 0xef2   :  { %v10827_v49 = vadd.f32 %v10826_v38, %v10747_v36  ;;  %v10915_v40 = vmul.f32 %v10747_v36, %v10747_v36 }
 0xef3   :  { %v17296_v9 = vpop.f32.mrb[122].mxu1 }
 0xef4   :  { %19384 = vst [vmem:[#allocation85_spill] sm:$0xff] %v17296_v9  ;;  %v10995_v2 = vadd.f32 %v10994_v11, %v10915_v40  ;;  %v10748_v43 = vmul.f32 %v17296_v9, %v19385_v32  ;;  %v12234_v53 = vpop.f32.mrb[123].mxu1  ;;  %v19391_v9 = vld [vmem:[#allocation104_spill] sm:$0xff] }
 0xef6   :  { %v10828_v50 = vadd.f32 %v10827_v49, %v10748_v43  ;;  %v10916_v46 = vmul.f32 %v10748_v43, %v10748_v43 }
 0xef7   :  { %v17300_v37 = vpop.f32.mrb[124].mxu1 }
 0xef8   :  { %19386 = vst [vmem:[#allocation89_spill] sm:$0xff] %v17300_v37  ;;  %v10996_v28 = vadd.f32 %v10995_v2, %v10916_v46  ;;  %v10749_v17 = vmul.f32 %v17300_v37, %v19387_v14  ;;  %v12237_v25 = vpop.f32.mrb[125].mxu1  ;;  %v19393_v37 = vld [vmem:[#allocation106_spill] sm:$0xff] }
 0xefa   :  { %v10829_v59 = vadd.f32 %v10828_v50, %v10749_v17  ;;  %v10917_v62 = vmul.f32 %v10749_v17, %v10749_v17 }
 0xefb   :  { %v17304_v38 = vpop.f32.mrb[126].mxu1 }
 0xefc   :  { %19388 = vst [vmem:[#allocation93_spill] sm:$0xff] %v17304_v38  ;;  %v10997_v36 = vadd.f32 %v10996_v28, %v10917_v62  ;;  %v10750_v11 = vmul.f32 %v17304_v38, %v19389_v22  ;;  %v12240_v40 = vpop.f32.mrb[127].mxu1  ;;  %v19395_v38 = vld [vmem:[#allocation108_spill] sm:$0xff] }
 0xefe   :  { %v10830_v32 = vadd.f32 %v10829_v59, %v10750_v11  ;;  %v10918_v53 = vmul.f32 %v10750_v11, %v10750_v11 }
 0xeff   :  { %v17308_v49 = vpop.f32.mrb[128].mxu1 }
 0xf00   :  { %19390 = vst [vmem:[#allocation99_spill] sm:$0xff] %v17308_v49  ;;  %v10998_v43 = vadd.f32 %v10997_v36, %v10918_v53  ;;  %v10751_v2 = vmul.f32 %v17308_v49, %v19391_v9  ;;  %v12243_v46 = vpop.f32.mrb[129].mxu1  ;;  %v19397_v49 = vld [vmem:[#allocation110_spill] sm:$0xff] }
 0xf02   :  { %v10831_v14 = vadd.f32 %v10830_v32, %v10751_v2  ;;  %v10919_v25 = vmul.f32 %v10751_v2, %v10751_v2 }
 0xf03   :  { %v17312_v50 = vpop.f32.mrb[130].mxu1 }
 0xf04   :  { %19392 = vst [vmem:[#allocation101_spill] sm:$0xff] %v17312_v50  ;;  %v10999_v17 = vadd.f32 %v10998_v43, %v10919_v25  ;;  %v10752_v28 = vmul.f32 %v17312_v50, %v19393_v37  ;;  %v12246_v62 = vpop.f32.mrb[131].mxu1  ;;  %v19399_v50 = vld [vmem:[#allocation112_spill] sm:$0xff] }
 0xf06   :  { %v10832_v22 = vadd.f32 %v10831_v14, %v10752_v28  ;;  %v10920_v40 = vmul.f32 %v10752_v28, %v10752_v28 }
 0xf07   :  { %v17316_v59 = vpop.f32.mrb[132].mxu1 }
 0xf08   :  { %19394 = vst [vmem:[#allocation103_spill] sm:$0xff] %v17316_v59  ;;  %v11000_v11 = vadd.f32 %v10999_v17, %v10920_v40  ;;  %v10753_v36 = vmul.f32 %v17316_v59, %v19395_v38  ;;  %v12249_v53 = vpop.f32.mrb[133].mxu1  ;;  %v19401_v59 = vld [vmem:[#allocation114_spill] sm:$0xff] }
 0xf0a   :  { %v10833_v9 = vadd.f32 %v10832_v22, %v10753_v36  ;;  %v10921_v46 = vmul.f32 %v10753_v36, %v10753_v36 }
 0xf0b   :  { %v17320_v32 = vpop.f32.mrb[134].mxu1 }
 0xf0c   :  { %19396 = vst [vmem:[#allocation105_spill] sm:$0xff] %v17320_v32  ;;  %v11001_v2 = vadd.f32 %v11000_v11, %v10921_v46  ;;  %v10754_v43 = vmul.f32 %v17320_v32, %v19397_v49  ;;  %v12252_v25 = vpop.f32.mrb[135].mxu1  ;;  %v19403_v32 = vld [vmem:[#allocation116_spill] sm:$0xff] }
 0xf0e   :  { %v10834_v37 = vadd.f32 %v10833_v9, %v10754_v43  ;;  %v10922_v62 = vmul.f32 %v10754_v43, %v10754_v43 }
 0xf0f   :  { %v17324_v14 = vpop.f32.mrb[136].mxu1 }
 0xf10   :  { %19398 = vst [vmem:[#allocation107_spill] sm:$0xff] %v17324_v14  ;;  %v11002_v28 = vadd.f32 %v11001_v2, %v10922_v62  ;;  %v10755_v17 = vmul.f32 %v17324_v14, %v19399_v50  ;;  %v12255_v40 = vpop.f32.mrb[137].mxu1  ;;  %v19405_v14 = vld [vmem:[#allocation118_spill] sm:$0xff] }
 0xf12   :  { %v10835_v38 = vadd.f32 %v10834_v37, %v10755_v17  ;;  %v10923_v53 = vmul.f32 %v10755_v17, %v10755_v17 }
 0xf13   :  { %v17328_v22 = vpop.f32.mrb[138].mxu1 }
 0xf14   :  { %19400 = vst [vmem:[#allocation109_spill] sm:$0xff] %v17328_v22  ;;  %v11003_v36 = vadd.f32 %v11002_v28, %v10923_v53  ;;  %v10756_v11 = vmul.f32 %v17328_v22, %v19401_v59  ;;  %v12258_v46 = vpop.f32.mrb[139].mxu1  ;;  %v19407_v22 = vld [vmem:[#allocation120_spill] sm:$0xff] }
 0xf16   :  { %v10836_v49 = vadd.f32 %v10835_v38, %v10756_v11  ;;  %v10924_v25 = vmul.f32 %v10756_v11, %v10756_v11 }
 0xf17   :  { %v17332_v9 = vpop.f32.mrb[140].mxu1 }
 0xf18   :  { %19402 = vst [vmem:[#allocation111_spill] sm:$0xff] %v17332_v9  ;;  %v11004_v43 = vadd.f32 %v11003_v36, %v10924_v25  ;;  %v10757_v2 = vmul.f32 %v17332_v9, %v19403_v32  ;;  %v12261_v62 = vpop.f32.mrb[141].mxu1  ;;  %v19409_v9 = vld [vmem:[#allocation122_spill] sm:$0xff] }
 0xf1a   :  { %v10837_v50 = vadd.f32 %v10836_v49, %v10757_v2  ;;  %v10925_v40 = vmul.f32 %v10757_v2, %v10757_v2 }
 0xf1b   :  { %v17336_v37 = vpop.f32.mrb[142].mxu1 }
 0xf1c   :  { %19404 = vst [vmem:[#allocation113_spill] sm:$0xff] %v17336_v37  ;;  %v11005_v17 = vadd.f32 %v11004_v43, %v10925_v40  ;;  %v10758_v28 = vmul.f32 %v17336_v37, %v19405_v14  ;;  %v12264_v53 = vpop.f32.mrb[143].mxu1  ;;  %v19411_v37 = vld [vmem:[#allocation124_spill] sm:$0xff] }
 0xf1e   :  { %v10838_v59 = vadd.f32 %v10837_v50, %v10758_v28  ;;  %v10926_v46 = vmul.f32 %v10758_v28, %v10758_v28 }
 0xf1f   :  { %v17340_v38 = vpop.f32.mrb[144].mxu1 }
 0xf20   :  { %19406 = vst [vmem:[#allocation115_spill] sm:$0xff] %v17340_v38  ;;  %v11006_v11 = vadd.f32 %v11005_v17, %v10926_v46  ;;  %v10759_v36 = vmul.f32 %v17340_v38, %v19407_v22  ;;  %v12267_v25 = vpop.f32.mrb[145].mxu1  ;;  %v19413_v38 = vld [vmem:[#allocation126_spill] sm:$0xff] }
 0xf22   :  { %v10839_v32 = vadd.f32 %v10838_v59, %v10759_v36  ;;  %v10927_v62 = vmul.f32 %v10759_v36, %v10759_v36 }
 0xf23   :  { %v17344_v49 = vpop.f32.mrb[146].mxu1 }
 0xf24   :  { %19408 = vst [vmem:[#allocation117_spill] sm:$0xff] %v17344_v49  ;;  %v11007_v2 = vadd.f32 %v11006_v11, %v10927_v62  ;;  %v10760_v43 = vmul.f32 %v17344_v49, %v19409_v9  ;;  %v12270_v40 = vpop.f32.mrb[147].mxu1  ;;  %v19415_v49 = vld [vmem:[#allocation128_spill] sm:$0xff] }
 0xf26   :  { %v10840_v14 = vadd.f32 %v10839_v32, %v10760_v43  ;;  %v10928_v53 = vmul.f32 %v10760_v43, %v10760_v43 }
 0xf27   :  { %v17348_v50 = vpop.f32.mrb[148].mxu1 }
 0xf28   :  { %19410 = vst [vmem:[#allocation119_spill] sm:$0xff] %v17348_v50  ;;  %v11008_v28 = vadd.f32 %v11007_v2, %v10928_v53  ;;  %v10761_v17 = vmul.f32 %v17348_v50, %v19411_v37  ;;  %v12273_v46 = vpop.f32.mrb[149].mxu1  ;;  %v19417_v50 = vld [vmem:[#allocation130_spill] sm:$0xff] }
 0xf2a   :  { %v10841_v22 = vadd.f32 %v10840_v14, %v10761_v17  ;;  %v10929_v25 = vmul.f32 %v10761_v17, %v10761_v17 }
 0xf2b   :  { %v17352_v59 = vpop.f32.mrb[150].mxu1 }
 0xf2c   :  { %19412 = vst [vmem:[#allocation121_spill] sm:$0xff] %v17352_v59  ;;  %v11009_v36 = vadd.f32 %v11008_v28, %v10929_v25  ;;  %v10762_v11 = vmul.f32 %v17352_v59, %v19413_v38  ;;  %v12276_v62 = vpop.f32.mrb[151].mxu1  ;;  %v19419_v59 = vld [vmem:[#allocation132_spill] sm:$0xff] }
 0xf2e   :  { %v10842_v9 = vadd.f32 %v10841_v22, %v10762_v11  ;;  %v10930_v40 = vmul.f32 %v10762_v11, %v10762_v11 }
 0xf2f   :  { %v17356_v32 = vpop.f32.mrb[152].mxu1 }
 0xf30   :  { %19414 = vst [vmem:[#allocation123_spill] sm:$0xff] %v17356_v32  ;;  %v11010_v43 = vadd.f32 %v11009_v36, %v10930_v40  ;;  %v10763_v2 = vmul.f32 %v17356_v32, %v19415_v49  ;;  %v12279_v53 = vpop.f32.mrb[153].mxu1  ;;  %v19421_v32 = vld [vmem:[#allocation134_spill] sm:$0xff] }
 0xf32   :  { %v10843_v37 = vadd.f32 %v10842_v9, %v10763_v2  ;;  %v10931_v46 = vmul.f32 %v10763_v2, %v10763_v2 }
 0xf33   :  { %v17360_v14 = vpop.f32.mrb[154].mxu1 }
 0xf34   :  { %19416 = vst [vmem:[#allocation125_spill] sm:$0xff] %v17360_v14  ;;  %v11011_v17 = vadd.f32 %v11010_v43, %v10931_v46  ;;  %v10764_v28 = vmul.f32 %v17360_v14, %v19417_v50  ;;  %v12282_v25 = vpop.f32.mrb[155].mxu1  ;;  %v19422_v14 = vld [vmem:[#allocation136_spill] sm:$0xff] }
 0xf36   :  { %v10844_v38 = vadd.f32 %v10843_v37, %v10764_v28  ;;  %v10932_v62 = vmul.f32 %v10764_v28, %v10764_v28 }
 0xf37   :  { %v17364_v22 = vpop.f32.mrb[156].mxu1 }
 0xf38   :  { %19418 = vst [vmem:[#allocation127_spill] sm:$0xff] %v17364_v22  ;;  %v11012_v11 = vadd.f32 %v11011_v17, %v10932_v62  ;;  %v10765_v36 = vmul.f32 %v17364_v22, %v19419_v59  ;;  %v12285_v40 = vpop.f32.mrb[157].mxu1 }
 0xf3a   :  { %v10845_v49 = vadd.f32 %v10844_v38, %v10765_v36  ;;  %v10933_v53 = vmul.f32 %v10765_v36, %v10765_v36 }
 0xf3b   :  { %v17368_v9 = vpop.f32.mrb[158].mxu1 }
 0xf3c   :  { %19420 = vst [vmem:[#allocation129_spill] sm:$0xff] %v17368_v9  ;;  %v11013_v2 = vadd.f32 %v11012_v11, %v10933_v53  ;;  %v10766_v43 = vmul.f32 %v17368_v9, %v19421_v32  ;;  %v12288_v46 = vpop.f32.mrb[159].mxu1 }
 0xf3e   :  { %v10846_v50 = vadd.f32 %v10845_v49, %v10766_v43  ;;  %v10934_v25 = vmul.f32 %v10766_v43, %v10766_v43 }
 0xf3f   :  { %v10683_v37 = vpop.f32.mrb[160].mxu1 }
 0xf40   :  { %v11014_v28 = vadd.f32 %v11013_v2, %v10934_v25  ;;  %v10767_v10 = vmul.f32 %v10683_v37, %v19422_v14  ;;  %v12291_v17 = vpop.f32.mrb[161].mxu1 }
 0xf42   :  { %v10847_v62 = vadd.f32 %v10846_v50, %v10767_v10  ;;  %v10935_v63 = vmul.f32 %v10767_v10, %v10767_v10 }
 0xf44   :  { %v10848_v59 = vrot.slane %v10847_v62, 4  ;;  %v11015_v40 = vadd.f32 %v11014_v28, %v10935_v63  ;;  %v11025_v63 = vld [vmem:[%s18368_s6] sm:$0x1]  ;;  %s14141_s6 = smov [#allocation10]  }
 0xf46   :  { %v10849_v38 = vadd.f32 %v10848_v59, %v10847_v62  ;;  %v11016_v36 = vrot.slane %v11015_v40, 4 }
 0xf48   :  { %v10850_v22 = vrot.slane %v10849_v38, 2  ;;  %v11017_v35 = vadd.f32 %v11016_v36, %v11015_v40 }
 0xf4a   :  { %v10851_v11 = vadd.f32 %v10850_v22, %v10849_v38  ;;  %v11018_v53 = vrot.slane %v11017_v35, 2  ;;  %v11029_v22 = vld [vmem:[%s18369_s7] sm:$0x1]  ;;  %s11535_s7 = sshll.u32 %s14141_s6, 4  ;;  %s11536_s7 = int_to_ptr.vmem [resolvable:$true] %s11535_s7 }
 0xf4b   :  { %s14104_s26 = scalar_lea.vmem %s11536_s7, 10368  ;;  %p14109_p11 = scmp.lt.s32.totalorder %s11536_s7, %s11536_s7 }
 0xf4c   :  { %v10852_v51 = vrot.slane %v10851_v11, 1  ;;  %v11019_v32 = vadd.f32 %v11018_v53, %v11017_v35  ;;  %p14105_p10 = scmp.ne.s32.totalorder %s11536_s7, %s14104_s26  ;;  %p14110_p12 = scmp.lt.s32.totalorder %s14104_s26, %s14104_s26 }
 0xf4e   :  { %v10853_v46 = vadd.f32 %v10852_v51, %v10851_v11  ;;  %v11020_v49 = vrot.slane %v11019_v32, 1  ;;  %v19423_v51 = vld [vmem:[#allocation137_spill] sm:$0xff]  ;;  %p14111_p13 = por %p14110_p12, %p14109_p11 }
 0xf50   :  { %v10854_v43 = vmul.f32 0.001953125, %v10853_v46  ;;  %v11021_v9 = vadd.f32 %v11020_v49, %v11019_v32  ;;  %p14112_p0 = pnand %p14111_p13, %p14105_p10 }
 0xf52   :  { %v11022_v2 = vmul.f32 0.001953125, %v11021_v9  ;;  %v11023_v25 = vmul.f32 %v10854_v43, %v10854_v43 }
 0xf54   :  { %v11024_v14 = vsub.f32 %v11022_v2, %v11023_v25  ;;  %v19425_v2 = vld [vmem:[#allocation53_spill] sm:$0xff]  ;;  %v19426_v25 = vld [vmem:[#allocation55_spill] sm:$0xff] }
 0xf56   :  { %v11026_v17 = vadd.f32 1e-05, %v11024_v14  ;;  %v19427_v14 = vld [vmem:[#allocation69_spill] sm:$0xff] }
 0xf58   :  { %14034 = vrsqrt.f32 %v11026_v17  ;;  %v19428_v17 = vld [vmem:[#allocation71_spill] sm:$0xff] }
 0xf62   :  { %v14035_v10 = vpop.eup %14034 }
 0xf63   :  { %v11028_v50 = vmul.f32 %v14035_v10, %v11025_v63  ;;  %v19429_v63 = vld [vmem:[#allocation73_spill] sm:$0xff] }
 0xf65   :  { %v11030_v35 = vmul.f32 %v11028_v50, %v10854_v43  ;;  %v17380_v28 = vrot.slane %v11028_v50, %v19423_v51  ;;  %v19424_v43 = vld [vmem:[#allocation135_spill] sm:$0xff] }
 0xf66   :  { %v19430_v50 = vld [vmem:[#allocation75_spill] sm:$0xff] }
 0xf67   :  { %v11031_v62 = vsub.f32 %v11029_v22, %v11030_v35  ;;  %v11118_v9 = vmul.f32 %v17380_v28, %v10683_v37  ;;  %v17385_v59 = vmul.f32 %v17380_v28, %v16998_v20  ;;  %v17389_v40 = vmul.f32 %v17380_v28, %v17004_v4  ;;  %v19431_v35 = vld [vmem:[#allocation77_spill] sm:$0xff] }
 0xf68   :  { %v17393_v38 = vmul.f32 %v17380_v28, %v17010_v58  ;;  %v17397_v36 = vmul.f32 %v17380_v28, %v17016_v6  ;;  %v17401_v11 = vmul.f32 %v17380_v28, %v17022_v8  ;;  %v17405_v20 = vmul.f32 %v17380_v28, %v17028_v3  ;;  %v11286_v8 = vld [vmem:[#allocation4 + $0x298] sm:$0xff] }
 0xf69   :  { %v17408_v37 = vrot.slane %v11031_v62, %v19423_v51  ;;  %v17412_v4 = vmul.f32 %v17380_v28, %v17034_v7  ;;  %v17416_v58 = vmul.f32 %v17380_v28, %v17040_v44  ;;  %v17420_v6 = vmul.f32 %v17380_v28, %v17046_v57  ;;  %v19432_v62 = vld [vmem:[#allocation79_spill] sm:$0xff] }
 0xf6a   :  { %v17424_v3 = vmul.f32 %v17380_v28, %v17052_v34  ;;  %v17428_v53 = vmul.f32 %v17380_v28, %v17058_v60  ;;  %v17432_v7 = vmul.f32 %v17380_v28, %v17064_v24  ;;  %v17436_v44 = vmul.f32 %v17380_v28, %v17070_v42 }
 0xf6b   :  { %v11205_v57 = vadd.f32 %v17408_v37, %v11118_v9  ;;  %v17441_v32 = vmul.f32 %v17380_v28, %v17076_v31  ;;  %v17445_v34 = vmul.f32 %v17380_v28, %v17082_v18  ;;  %v17449_v60 = vmul.f32 %v17380_v28, %v17088_v15 }
 0xf6c   :  { %v17453_v24 = vmul.f32 %v17380_v28, %v17094_v29  ;;  %v17457_v42 = vmul.f32 %v17380_v28, %v17100_v13  ;;  %v17461_v31 = vmul.f32 %v17380_v28, %v17106_v0  ;;  %v17465_v18 = vmul.f32 %v17380_v28, %v17112_v48 }
 0xf6d   :  { %v11367_v46 = vadd.f32 %v11286_v8, %v11205_v57  ;;  %v17469_v15 = vmul.f32 %v17380_v28, %v17118_v55  ;;  %v17473_v29 = vmul.f32 %v17380_v28, %v17124_v33  ;;  %v17477_v13 = vmul.f32 %v17380_v28, %v17130_v45  ;;  %v19433_v8 = vld [vmem:[#allocation81_spill] sm:$0xff] }
 0xf6e   :  { %v17481_v0 = vmul.f32 %v17380_v28, %v17136_v61  ;;  %v17485_v48 = vmul.f32 %v17380_v28, %v17142_v1  ;;  %v17489_v55 = vmul.f32 %v17380_v28, %v17148_v5  ;;  %v17493_v33 = vmul.f32 %v17380_v28, %v17154_v56 }
 0xf6f   :  { %v11448_v49 = vmax.f32 %v11367_v46, 0.0  ;;  %v17497_v45 = vmul.f32 %v17380_v28, %v17160_v30  ;;  %v17501_v61 = vmul.f32 %v17380_v28, %v17164_v12  ;;  %v17505_v1 = vmul.f32 %v17380_v28, %v17168_v52  ;;  %v19434_v46 = vld [vmem:[#allocation83_spill] sm:$0xff] }
 0xf70   :  { %v17509_v5 = vmul.f32 %v17380_v28, %v17172_v27  ;;  %v17513_v56 = vmul.f32 %v17380_v28, %v17176_v41  ;;  %v17517_v30 = vmul.f32 %v17380_v28, %v17180_v26  ;;  %v17521_v12 = vmul.f32 %v17380_v28, %v17184_v21 }
 0xf71   :  { %11529 = vst [vmem:[#allocation10 + $0x280] sm:$0xff] %v11448_v49  ;;  %v17525_v52 = vmul.f32 %v17380_v28, %v17188_v19  ;;  %v17529_v27 = vmul.f32 %v17380_v28, %v17192_v54  ;;  %v17533_v41 = vmul.f32 %v17380_v28, %v17196_v39  ;;  %v17537_v26 = vmul.f32 %v17380_v28, %v17200_v16 }
 0xf72   :  { %v17541_v21 = vmul.f32 %v17380_v28, %v17204_v47  ;;  %v17545_v19 = vmul.f32 %v17380_v28, %v17208_v23  ;;  %v17549_v54 = vmul.f32 %v17380_v28, %v19424_v43  ;;  %v17553_v39 = vmul.f32 %v17380_v28, %v19425_v2  ;;  %v19435_v43 = vld [vmem:[#allocation87_spill] sm:$0xff] }
 0xf73   :  { %v17557_v16 = vmul.f32 %v17380_v28, %v19426_v25  ;;  %v17561_v47 = vmul.f32 %v17380_v28, %v19427_v14  ;;  %v17565_v23 = vmul.f32 %v17380_v28, %v19428_v17  ;;  %v17569_v10 = vmul.f32 %v17380_v28, %v19429_v63  ;;  %v19437_v25 = vld [vmem:[#allocation91_spill] sm:$0xff] }
 0xf74   :  { %v17573_v22 = vmul.f32 %v17380_v28, %v19430_v50  ;;  %v17577_v51 = vmul.f32 %v17380_v28, %v19431_v35  ;;  %v17581_v9 = vmul.f32 %v17380_v28, %v19432_v62  ;;  %v17585_v57 = vmul.f32 %v17380_v28, %v19433_v8  ;;  %v19439_v17 = vld [vmem:[#allocation95_spill] sm:$0xff]  ;;  %v19441_v50 = vld [vmem:[#allocation97_spill] sm:$0xff] }
 0xf75   :  { %v17589_v49 = vmul.f32 %v17380_v28, %v19434_v46  ;;  %v17593_v2 = vmul.f32 %v17380_v28, %v19435_v43  ;;  %v17597_v14 = vmul.f32 %v17380_v28, %v19437_v25  ;;  %v17601_v63 = vmul.f32 %v17380_v28, %v19439_v17  ;;  %v19443_v62 = vld [vmem:[#allocation57_spill] sm:$0xff]  ;;  %v19445_v46 = vld [vmem:[#allocation59_spill] sm:$0xff] }
 0xf76   :  { %v17605_v35 = vmul.f32 %v17380_v28, %v19441_v50  ;;  %v17609_v8 = vmul.f32 %v17380_v28, %v19443_v62  ;;  %v17613_v43 = vmul.f32 %v17380_v28, %v19445_v46 }
 0xf77   :  { %19436 = vst [vmem:[#allocation131_spill] sm:$0xff] %v17593_v2  ;;  %19438 = vst [vmem:[#allocation133_spill] sm:$0xff] %v17597_v14  ;;  %v19447_v2 = vld [vmem:[#allocation61_spill] sm:$0xff]  ;;  %v19449_v14 = vld [vmem:[#allocation63_spill] sm:$0xff] }
 0xf78   :  { %19440 = vst [vmem:[#allocation14_spill] sm:$0xff] %v17601_v63  ;;  %19442 = vst [vmem:[#allocation15_spill] sm:$0xff] %v17605_v35  ;;  %v17617_v25 = vmul.f32 %v17380_v28, %v19447_v2  ;;  %v17621_v17 = vmul.f32 %v17380_v28, %v19449_v14  ;;  %v19451_v63 = vld [vmem:[#allocation65_spill] sm:$0xff]  ;;  %v19453_v35 = vld [vmem:[#allocation67_spill] sm:$0xff] }
 0xf79   :  { %19444 = vst [vmem:[#allocation16_spill] sm:$0xff] %v17609_v8  ;;  %19446 = vst [vmem:[#allocation17_spill] sm:$0xff] %v17613_v43  ;;  %v17625_v50 = vmul.f32 %v17380_v28, %v19451_v63  ;;  %v17629_v62 = vmul.f32 %v17380_v28, %v19453_v35  ;;  %v19455_v8 = vld [vmem:[#allocation85_spill] sm:$0xff] }
 0xf7a   :  { %19448 = vst [vmem:[#allocation18_spill] sm:$0xff] %v17617_v25  ;;  %19450 = vst [vmem:[#allocation19_spill] sm:$0xff] %v17621_v17  ;;  %v17633_v46 = vmul.f32 %v17380_v28, %v19455_v8  ;;  %v19457_v43 = vld [vmem:[#allocation89_spill] sm:$0xff]  ;;  %v19461_v17 = vld [vmem:[#allocation99_spill] sm:$0xff] }
 0xf7b   :  { %19452 = vst [vmem:[#allocation20_spill] sm:$0xff] %v17625_v50  ;;  %19454 = vst [vmem:[#allocation21_spill] sm:$0xff] %v17629_v62  ;;  %v17637_v2 = vmul.f32 %v17380_v28, %v19457_v43  ;;  %v19459_v25 = vld [vmem:[#allocation93_spill] sm:$0xff]  ;;  %v17645_v63 = vmul.f32 %v17380_v28, %v19461_v17  ;;  %v19465_v62 = vld [vmem:[#allocation103_spill] sm:$0xff] }
 0xf7c   :  { %19456 = vst [vmem:[#allocation22_spill] sm:$0xff] %v17633_v46  ;;  %v17641_v14 = vmul.f32 %v17380_v28, %v19459_v25  ;;  %v19463_v50 = vld [vmem:[#allocation101_spill] sm:$0xff]  ;;  %v17653_v8 = vmul.f32 %v17380_v28, %v19465_v62 }
 0xf7d   :  { %19458 = vst [vmem:[#allocation23_spill] sm:$0xff] %v17637_v2  ;;  %19462 = vst [vmem:[#allocation25_spill] sm:$0xff] %v17645_v63  ;;  %v17649_v35 = vmul.f32 %v17380_v28, %v19463_v50  ;;  %v19467_v46 = vld [vmem:[#allocation105_spill] sm:$0xff]  ;;  %v19469_v2 = vld [vmem:[#allocation107_spill] sm:$0xff] }
 0xf7e   :  { %19460 = vst [vmem:[#allocation24_spill] sm:$0xff] %v17641_v14  ;;  %19466 = vst [vmem:[#allocation27_spill] sm:$0xff] %v17653_v8  ;;  %v17657_v43 = vmul.f32 %v17380_v28, %v19467_v46  ;;  %v17661_v25 = vmul.f32 %v17380_v28, %v19469_v2  ;;  %v19471_v14 = vld [vmem:[#allocation109_spill] sm:$0xff]  ;;  %v19473_v63 = vld [vmem:[#allocation111_spill] sm:$0xff] }
 0xf7f   :  { %19464 = vst [vmem:[#allocation26_spill] sm:$0xff] %v17649_v35  ;;  %v17665_v17 = vmul.f32 %v17380_v28, %v19471_v14  ;;  %v17669_v50 = vmul.f32 %v17380_v28, %v19473_v63  ;;  %v19475_v35 = vld [vmem:[#allocation113_spill] sm:$0xff]  ;;  %v19477_v8 = vld [vmem:[#allocation115_spill] sm:$0xff] }
 0xf80   :  { %19468 = vst [vmem:[#allocation28_spill] sm:$0xff] %v17657_v43  ;;  %19470 = vst [vmem:[#allocation29_spill] sm:$0xff] %v17661_v25  ;;  %v17673_v62 = vmul.f32 %v17380_v28, %v19475_v35  ;;  %v17677_v46 = vmul.f32 %v17380_v28, %v19477_v8  ;;  %v19479_v43 = vld [vmem:[#allocation117_spill] sm:$0xff]  ;;  %v19481_v25 = vld [vmem:[#allocation119_spill] sm:$0xff] }
 0xf81   :  { %19472 = vst [vmem:[#allocation30_spill] sm:$0xff] %v17665_v17  ;;  %19474 = vst [vmem:[#allocation31_spill] sm:$0xff] %v17669_v50  ;;  %v17681_v2 = vmul.f32 %v17380_v28, %v19479_v43  ;;  %v17685_v14 = vmul.f32 %v17380_v28, %v19481_v25  ;;  %v19482_v17 = vld [vmem:[#allocation121_spill] sm:$0xff]  ;;  %v19483_v50 = vld [vmem:[#allocation123_spill] sm:$0xff] }
 0xf82   :  { %19476 = vst [vmem:[#allocation32_spill] sm:$0xff] %v17673_v62  ;;  %19478 = vst [vmem:[#allocation33_spill] sm:$0xff] %v17677_v46  ;;  %v17689_v63 = vmul.f32 %v17380_v28, %v19482_v17  ;;  %v17693_v35 = vmul.f32 %v17380_v28, %v19483_v50  ;;  %v19484_v62 = vld [vmem:[#allocation125_spill] sm:$0xff]  ;;  %v19485_v46 = vld [vmem:[#allocation127_spill] sm:$0xff]  ;;  %v17709_v17 = vadd.f32 %v17408_v37, %v17385_v59 }
 0xf83   :  { %19480 = vst [vmem:[#allocation34_spill] sm:$0xff] %v17681_v2  ;;  %v17697_v8 = vmul.f32 %v17380_v28, %v19484_v62  ;;  %v17701_v43 = vmul.f32 %v17380_v28, %v19485_v46  ;;  %v19486_v2 = vld [vmem:[#allocation129_spill] sm:$0xff]  ;;  %v17713_v50 = vadd.f32 %v17408_v37, %v17389_v40  ;;  %v17717_v62 = vadd.f32 %v17408_v37, %v17393_v38 }
 0xf84   :  { %v17705_v25 = vmul.f32 %v17380_v28, %v19486_v2  ;;  %v17721_v46 = vadd.f32 %v17408_v37, %v17397_v36  ;;  %v17725_v28 = vadd.f32 %v17408_v37, %v17401_v11  ;;  %v17729_v59 = vadd.f32 %v17408_v37, %v17405_v20  ;;  %v19508_v2 = vld [vmem:[#allocation131_spill] sm:$0xff] }
 0xf85   :  { %v17733_v40 = vadd.f32 %v17408_v37, %v17412_v4  ;;  %v17737_v38 = vadd.f32 %v17408_v37, %v17416_v58  ;;  %v17741_v36 = vadd.f32 %v17408_v37, %v17420_v6  ;;  %v17745_v11 = vadd.f32 %v17408_v37, %v17424_v3 }
 0xf86   :  { %v17749_v20 = vadd.f32 %v17408_v37, %v17428_v53  ;;  %v17753_v4 = vadd.f32 %v17408_v37, %v17432_v7  ;;  %v17757_v58 = vadd.f32 %v17408_v37, %v17436_v44  ;;  %v17761_v6 = vadd.f32 %v17408_v37, %v17441_v32 }
 0xf87   :  { %v17765_v3 = vadd.f32 %v17408_v37, %v17445_v34  ;;  %v17769_v53 = vadd.f32 %v17408_v37, %v17449_v60  ;;  %v17773_v7 = vadd.f32 %v17408_v37, %v17453_v24  ;;  %v17777_v44 = vadd.f32 %v17408_v37, %v17457_v42 }
 0xf88   :  { %v17781_v32 = vadd.f32 %v17408_v37, %v17461_v31  ;;  %v17785_v34 = vadd.f32 %v17408_v37, %v17465_v18  ;;  %v17789_v60 = vadd.f32 %v17408_v37, %v17469_v15  ;;  %v17793_v24 = vadd.f32 %v17408_v37, %v17473_v29 }
 0xf89   :  { %v17797_v42 = vadd.f32 %v17408_v37, %v17477_v13  ;;  %v17801_v31 = vadd.f32 %v17408_v37, %v17481_v0  ;;  %v17805_v18 = vadd.f32 %v17408_v37, %v17485_v48  ;;  %v17809_v15 = vadd.f32 %v17408_v37, %v17489_v55 }
 0xf8a   :  { %v17813_v29 = vadd.f32 %v17408_v37, %v17493_v33  ;;  %v17817_v13 = vadd.f32 %v17408_v37, %v17497_v45  ;;  %v17821_v0 = vadd.f32 %v17408_v37, %v17501_v61  ;;  %v17825_v48 = vadd.f32 %v17408_v37, %v17505_v1 }
 0xf8b   :  { %v17829_v55 = vadd.f32 %v17408_v37, %v17509_v5  ;;  %v17833_v33 = vadd.f32 %v17408_v37, %v17513_v56  ;;  %v17837_v45 = vadd.f32 %v17408_v37, %v17517_v30  ;;  %v17841_v61 = vadd.f32 %v17408_v37, %v17521_v12 }
 0xf8c   :  { %v17845_v1 = vadd.f32 %v17408_v37, %v17525_v52  ;;  %v17849_v5 = vadd.f32 %v17408_v37, %v17529_v27  ;;  %v17853_v56 = vadd.f32 %v17408_v37, %v17533_v41  ;;  %v17857_v30 = vadd.f32 %v17408_v37, %v17537_v26 }
 0xf8d   :  { %19487 = vst [vmem:[#allocation35_spill] sm:$0xff] %v17829_v55  ;;  %19488 = vst [vmem:[#allocation36_spill] sm:$0xff] %v17833_v33  ;;  %v17861_v12 = vadd.f32 %v17408_v37, %v17541_v21  ;;  %v17865_v52 = vadd.f32 %v17408_v37, %v17545_v19  ;;  %v17869_v27 = vadd.f32 %v17408_v37, %v17549_v54  ;;  %v11223_v33 = vld [vmem:[#allocation4 + $0xa0] sm:$0xff] }
 0xf8e   :  { %19489 = vst [vmem:[#allocation37_spill] sm:$0xff] %v17837_v45  ;;  %19490 = vst [vmem:[#allocation38_spill] sm:$0xff] %v17841_v61  ;;  %v17873_v41 = vadd.f32 %v17408_v37, %v17553_v39  ;;  %v17877_v26 = vadd.f32 %v17408_v37, %v17557_v16  ;;  %v17881_v21 = vadd.f32 %v17408_v37, %v17561_v47  ;;  %v11221_v61 = vld [vmem:[#allocation4 + $0x90] sm:$0xff]  ;;  %v11222_v45 = vld [vmem:[#allocation4 + $0x98] sm:$0xff] }
 0xf8f   :  { %19491 = vst [vmem:[#allocation39_spill] sm:$0xff] %v17845_v1  ;;  %19492 = vst [vmem:[#allocation40_spill] sm:$0xff] %v17849_v5  ;;  %v17885_v19 = vadd.f32 %v17408_v37, %v17565_v23  ;;  %v17889_v54 = vadd.f32 %v17408_v37, %v17569_v10  ;;  %v17893_v39 = vadd.f32 %v17408_v37, %v17573_v22  ;;  %v11219_v5 = vld [vmem:[#allocation4 + $0x80] sm:$0xff]  ;;  %v19546_v1 = vld [vmem:[#allocation31_spill] sm:$0xff] }
 0xf90   :  { %19493 = vst [vmem:[#allocation41_spill] sm:$0xff] %v17853_v56  ;;  %19494 = vst [vmem:[#allocation42_spill] sm:$0xff] %v17857_v30  ;;  %v17897_v16 = vadd.f32 %v17408_v37, %v17577_v51  ;;  %v17901_v47 = vadd.f32 %v17408_v37, %v17581_v9  ;;  %v17905_v23 = vadd.f32 %v17408_v37, %v17585_v57  ;;  %v11217_v30 = vld [vmem:[#allocation4 + $0x70] sm:$0xff]  ;;  %v11218_v56 = vld [vmem:[#allocation4 + $0x78] sm:$0xff] }
 0xf91   :  { %19495 = vst [vmem:[#allocation43_spill] sm:$0xff] %v17861_v12  ;;  %19496 = vst [vmem:[#allocation44_spill] sm:$0xff] %v17865_v52  ;;  %v17909_v10 = vadd.f32 %v17408_v37, %v17589_v49  ;;  %v17913_v22 = vadd.f32 %v17408_v37, %v19508_v2  ;;  %v11215_v52 = vld [vmem:[#allocation4 + $0x60] sm:$0xff]  ;;  %v19538_v12 = vld [vmem:[#allocation27_spill] sm:$0xff] }
 0xf92   :  { %19497 = vst [vmem:[#allocation45_spill] sm:$0xff] %v17869_v27  ;;  %19498 = vst [vmem:[#allocation46_spill] sm:$0xff] %v17873_v41  ;;  %v11213_v41 = vld [vmem:[#allocation4 + $0x50] sm:$0xff]  ;;  %v11214_v27 = vld [vmem:[#allocation4 + $0x58] sm:$0xff] }
 0xf93   :  { %19499 = vst [vmem:[#allocation47_spill] sm:$0xff] %v17877_v26  ;;  %19500 = vst [vmem:[#allocation48_spill] sm:$0xff] %v17881_v21  ;;  %v11211_v21 = vld [vmem:[#allocation4 + $0x40] sm:$0xff]  ;;  %v19530_v26 = vld [vmem:[#allocation23_spill] sm:$0xff] }
 0xf94   :  { %19501 = vst [vmem:[#allocation49_spill] sm:$0xff] %v17885_v19  ;;  %19502 = vst [vmem:[#allocation50_spill] sm:$0xff] %v17889_v54  ;;  %v11207_v54 = vld [vmem:[#allocation4 + $0x20] sm:$0xff]  ;;  %v11210_v19 = vld [vmem:[#allocation4 + $0x38] sm:$0xff] }
 0xf95   :  { %19503 = vst [vmem:[#allocation51_spill] sm:$0xff] %v17893_v39  ;;  %19504 = vst [vmem:[#allocation52_spill] sm:$0xff] %v17897_v16  ;;  %v19510_v39 = vld [vmem:[#allocation133_spill] sm:$0xff]  ;;  %v19512_v16 = vld [vmem:[#allocation14_spill] sm:$0xff] }
 0xf96   :  { %19505 = vst [vmem:[#allocation54_spill] sm:$0xff] %v17901_v47  ;;  %19506 = vst [vmem:[#allocation56_spill] sm:$0xff] %v17905_v23  ;;  %v17917_v51 = vadd.f32 %v17408_v37, %v19510_v39  ;;  %v17921_v9 = vadd.f32 %v17408_v37, %v19512_v16  ;;  %v19514_v47 = vld [vmem:[#allocation15_spill] sm:$0xff]  ;;  %v19516_v23 = vld [vmem:[#allocation16_spill] sm:$0xff] }
 0xf97   :  { %19507 = vst [vmem:[#allocation58_spill] sm:$0xff] %v17909_v10  ;;  %19509 = vst [vmem:[#allocation60_spill] sm:$0xff] %v17913_v22  ;;  %v17925_v57 = vadd.f32 %v17408_v37, %v19514_v47  ;;  %v17929_v49 = vadd.f32 %v17408_v37, %v19516_v23  ;;  %v19518_v10 = vld [vmem:[#allocation17_spill] sm:$0xff]  ;;  %v19520_v22 = vld [vmem:[#allocation18_spill] sm:$0xff] }
 0xf98   :  { %19511 = vst [vmem:[#allocation62_spill] sm:$0xff] %v17917_v51  ;;  %19513 = vst [vmem:[#allocation64_spill] sm:$0xff] %v17921_v9  ;;  %v17933_v2 = vadd.f32 %v17408_v37, %v19518_v10  ;;  %v17937_v39 = vadd.f32 %v17408_v37, %v19520_v22  ;;  %v11206_v51 = vld [vmem:[#allocation4 + $0x18] sm:$0xff]  ;;  %v19522_v16 = vld [vmem:[#allocation19_spill] sm:$0xff] }
 0xf99   :  { %19515 = vst [vmem:[#allocation66_spill] sm:$0xff] %v17925_v57  ;;  %19517 = vst [vmem:[#allocation68_spill] sm:$0xff] %v17929_v49  ;;  %v17941_v9 = vadd.f32 %v17408_v37, %v19522_v16  ;;  %v19524_v47 = vld [vmem:[#allocation20_spill] sm:$0xff]  ;;  %v19526_v23 = vld [vmem:[#allocation21_spill] sm:$0xff]  ;;  %v17957_v16 = vadd.f32 %v17408_v37, %v19530_v26  ;;  %v17973_v26 = vadd.f32 %v17408_v37, %v19538_v12 }
 0xf9a   :  { %19519 = vst [vmem:[#allocation70_spill] sm:$0xff] %v17933_v2  ;;  %19521 = vst [vmem:[#allocation72_spill] sm:$0xff] %v17937_v39  ;;  %v17945_v57 = vadd.f32 %v17408_v37, %v19524_v47  ;;  %v17949_v49 = vadd.f32 %v17408_v37, %v19526_v23  ;;  %v19528_v10 = vld [vmem:[#allocation22_spill] sm:$0xff]  ;;  %v11208_v22 = vld [vmem:[#allocation4 + $0x28] sm:$0xff]  ;;  %v17989_v12 = vadd.f32 %v17408_v37, %v19546_v1 }
 0xf9b   :  { %19523 = vst [vmem:[#allocation74_spill] sm:$0xff] %v17941_v9  ;;  %v17953_v2 = vadd.f32 %v17408_v37, %v19528_v10  ;;  %v11209_v39 = vld [vmem:[#allocation4 + $0x30] sm:$0xff]  ;;  %19531 = vst [vmem:[#allocation82_spill] sm:$0xff] %v17957_v16  ;;  %v18005_v1 = vadd.f32 %v17408_v37, %v17685_v14  ;;  %v18021_v14 = vadd.f32 %v17408_v37, %v17701_v43 }
 0xf9c   :  { %19525 = vst [vmem:[#allocation76_spill] sm:$0xff] %v17945_v57  ;;  %19527 = vst [vmem:[#allocation78_spill] sm:$0xff] %v17949_v49  ;;  %v19532_v9 = vld [vmem:[#allocation24_spill] sm:$0xff]  ;;  %v19534_v57 = vld [vmem:[#allocation25_spill] sm:$0xff]  ;;  %v18034_v55 = vadd.f32 %v11208_v22, %v17717_v62  ;;  %v18037_v43 = vadd.f32 %v11209_v39, %v17721_v46  ;;  %v18052_v62 = vadd.f32 %v11214_v27, %v17741_v36 }
 0xf9d   :  { %19529 = vst [vmem:[#allocation80_spill] sm:$0xff] %v17953_v2  ;;  %v17961_v47 = vadd.f32 %v17408_v37, %v19532_v9  ;;  %v17965_v23 = vadd.f32 %v17408_v37, %v19534_v57  ;;  %v19536_v49 = vld [vmem:[#allocation26_spill] sm:$0xff]  ;;  %v11212_v2 = vld [vmem:[#allocation4 + $0x48] sm:$0xff]  ;;  %19539 = vst [vmem:[#allocation90_spill] sm:$0xff] %v17973_v26  ;;  %v18055_v46 = vadd.f32 %v11215_v52, %v17745_v11 }
 0xf9e   :  { %v17969_v10 = vadd.f32 %v17408_v37, %v19536_v49  ;;  %v19540_v16 = vld [vmem:[#allocation28_spill] sm:$0xff]  ;;  %19547 = vst [vmem:[#allocation98_spill] sm:$0xff] %v17989_v12  ;;  %19554 = vst [vmem:[#allocation106_spill] sm:$0xff] %v18005_v1  ;;  %v11227_v12 = vld [vmem:[#allocation4 + $0xc0] sm:$0xff]  ;;  %v18061_v22 = vadd.f32 %v11217_v30, %v17753_v4  ;;  %v18079_v4 = vadd.f32 %v11223_v33, %v17777_v44 }
 0xf9f   :  { %19533 = vst [vmem:[#allocation84_spill] sm:$0xff] %v17961_v47  ;;  %19535 = vst [vmem:[#allocation86_spill] sm:$0xff] %v17965_v23  ;;  %v17977_v9 = vadd.f32 %v17408_v37, %v19540_v16  ;;  %v19542_v47 = vld [vmem:[#allocation29_spill] sm:$0xff]  ;;  %v19544_v23 = vld [vmem:[#allocation30_spill] sm:$0xff] }
 0xfa0   :  { %19537 = vst [vmem:[#allocation88_spill] sm:$0xff] %v17969_v10  ;;  %v17981_v57 = vadd.f32 %v17408_v37, %v19542_v47  ;;  %v17985_v49 = vadd.f32 %v17408_v37, %v19544_v23  ;;  %v11216_v10 = vld [vmem:[#allocation4 + $0x68] sm:$0xff]  ;;  %v19548_v26 = vld [vmem:[#allocation32_spill] sm:$0xff]  ;;  %19558 = vst [vmem:[#allocation114_spill] sm:$0xff] %v18021_v14  ;;  %v18040_v14 = vadd.f32 %v11210_v19, %v17725_v28 }
 0xfa1   :  { %19541 = vst [vmem:[#allocation92_spill] sm:$0xff] %v17977_v9  ;;  %v17993_v16 = vadd.f32 %v17408_v37, %v19548_v26  ;;  %v19550_v9 = vld [vmem:[#allocation33_spill] sm:$0xff]  ;;  %v18009_v26 = vadd.f32 %v17408_v37, %v17689_v63  ;;  %v18025_v63 = vadd.f32 %v17408_v37, %v17705_v25  ;;  %v11231_v1 = vld [vmem:[#allocation4 + $0xe0] sm:$0xff]  ;;  %v11232_v25 = vld [vmem:[#allocation4 + $0xe8] sm:$0xff]  ;;  %v18058_v39 = vadd.f32 %v11216_v10, %v17749_v20 }
 0xfa2   :  { %19543 = vst [vmem:[#allocation94_spill] sm:$0xff] %v17981_v57  ;;  %19545 = vst [vmem:[#allocation96_spill] sm:$0xff] %v17985_v49  ;;  %v17997_v47 = vadd.f32 %v17408_v37, %v19550_v9  ;;  %v19552_v57 = vld [vmem:[#allocation34_spill] sm:$0xff]  ;;  %v11220_v49 = vld [vmem:[#allocation4 + $0x88] sm:$0xff]  ;;  %v18013_v9 = vadd.f32 %v17408_v37, %v17693_v35  ;;  %v18031_v35 = vadd.f32 %v11207_v54, %v17713_v50 }
 0xfa3   :  { %19549 = vst [vmem:[#allocation100_spill] sm:$0xff] %v17993_v16  ;;  %v18001_v23 = vadd.f32 %v17408_v37, %v19552_v57  ;;  %19555 = vst [vmem:[#allocation108_spill] sm:$0xff] %v18009_v26  ;;  %v18017_v57 = vadd.f32 %v17408_v37, %v17697_v8  ;;  %v11226_v16 = vld [vmem:[#allocation4 + $0xb8] sm:$0xff]  ;;  %v18028_v26 = vadd.f32 %v11206_v51, %v17709_v17  ;;  %v11228_v8 = vld [vmem:[#allocation4 + $0xc8] sm:$0xff] }
 0xfa4   :  { %19551 = vst [vmem:[#allocation102_spill] sm:$0xff] %v17997_v47  ;;  %19556 = vst [vmem:[#allocation110_spill] sm:$0xff] %v18013_v9  ;;  %v11225_v47 = vld [vmem:[#allocation4 + $0xb0] sm:$0xff]  ;;  %v11230_v9 = vld [vmem:[#allocation4 + $0xd8] sm:$0xff]  ;;  %v18043_v37 = vadd.f32 %v11211_v21, %v17729_v59  ;;  %v18046_v51 = vadd.f32 %v11212_v2, %v17733_v40  ;;  %v18064_v40 = vadd.f32 %v11218_v56, %v17757_v58 }
 0xfa5   :  { %19553 = vst [vmem:[#allocation104_spill] sm:$0xff] %v18001_v23  ;;  %19557 = vst [vmem:[#allocation112_spill] sm:$0xff] %v18017_v57  ;;  %v11224_v23 = vld [vmem:[#allocation4 + $0xa8] sm:$0xff]  ;;  %v11229_v57 = vld [vmem:[#allocation4 + $0xd0] sm:$0xff]  ;;  %v18073_v2 = vadd.f32 %v11221_v61, %v17769_v53  ;;  %v18076_v20 = vadd.f32 %v11222_v45, %v17773_v7  ;;  %v18085_v10 = vadd.f32 %v11225_v47, %v17785_v34 }
 0xfa6   :  { %19559 = vst [vmem:[#allocation116_spill] sm:$0xff] %v18031_v35  ;;  %v11233_v17 = vld [vmem:[#allocation4 + $0xf0] sm:$0xff]  ;;  %v11234_v50 = vld [vmem:[#allocation4 + $0xf8] sm:$0xff]  ;;  %v11235_v54 = vld [vmem:[#allocation4 + $0x100] sm:$0xff]  ;;  %v18049_v35 = vadd.f32 %v11213_v41, %v17737_v38  ;;  %v18067_v38 = vadd.f32 %v11219_v5, %v17761_v6  ;;  %v18070_v41 = vadd.f32 %v11220_v49, %v17765_v3  ;;  %v18082_v30 = vadd.f32 %v11224_v23, %v17781_v32 }
 0xfa7   :  { %v11236_v28 = vld [vmem:[#allocation4 + $0x108] sm:$0xff]  ;;  %v11237_v19 = vld [vmem:[#allocation4 + $0x110] sm:$0xff]  ;;  %v11238_v59 = vld [vmem:[#allocation4 + $0x118] sm:$0xff]  ;;  %v18088_v3 = vadd.f32 %v11226_v16, %v17789_v60  ;;  %v18091_v53 = vadd.f32 %v11227_v12, %v17793_v24  ;;  %v18094_v61 = vadd.f32 %v11228_v8, %v17797_v42  ;;  %v18097_v49 = vadd.f32 %v11229_v57, %v17801_v31 }
 0xfa8   :  { %v11239_v21 = vld [vmem:[#allocation4 + $0x120] sm:$0xff]  ;;  %v11240_v36 = vld [vmem:[#allocation4 + $0x128] sm:$0xff]  ;;  %v11241_v27 = vld [vmem:[#allocation4 + $0x130] sm:$0xff]  ;;  %v18100_v32 = vadd.f32 %v11230_v9, %v17805_v18  ;;  %v18103_v34 = vadd.f32 %v11231_v1, %v17809_v15  ;;  %v18106_v47 = vadd.f32 %v11232_v25, %v17813_v29  ;;  %v18109_v23 = vadd.f32 %v11233_v17, %v17817_v13 }
 0xfa9   :  { %v11242_v11 = vld [vmem:[#allocation4 + $0x138] sm:$0xff]  ;;  %v11243_v52 = vld [vmem:[#allocation4 + $0x140] sm:$0xff]  ;;  %v11244_v58 = vld [vmem:[#allocation4 + $0x148] sm:$0xff]  ;;  %v18112_v42 = vadd.f32 %v11234_v50, %v17821_v0  ;;  %v18115_v31 = vadd.f32 %v11235_v54, %v17825_v48 }
 0xfaa   :  { %v11245_v56 = vld [vmem:[#allocation4 + $0x150] sm:$0xff]  ;;  %v11246_v6 = vld [vmem:[#allocation4 + $0x158] sm:$0xff]  ;;  %v11247_v5 = vld [vmem:[#allocation4 + $0x160] sm:$0xff]  ;;  %19560 = vst [vmem:[#allocation118_spill] sm:$0xff] %v18100_v32 }
 0xfab   :  { %v11248_v7 = vld [vmem:[#allocation4 + $0x168] sm:$0xff]  ;;  %v11249_v45 = vld [vmem:[#allocation4 + $0x170] sm:$0xff]  ;;  %v11250_v44 = vld [vmem:[#allocation4 + $0x178] sm:$0xff]  ;;  %19561 = vst [vmem:[#allocation120_spill] sm:$0xff] %v18103_v34 }
 0xfac   :  { %v11251_v33 = vld [vmem:[#allocation4 + $0x180] sm:$0xff]  ;;  %v11252_v60 = vld [vmem:[#allocation4 + $0x188] sm:$0xff]  ;;  %v11253_v16 = vld [vmem:[#allocation4 + $0x190] sm:$0xff]  ;;  %19562 = vst [vmem:[#allocation122_spill] sm:$0xff] %v18109_v23 }
 0xfad   :  { %v11254_v24 = vld [vmem:[#allocation4 + $0x198] sm:$0xff]  ;;  %v11255_v12 = vld [vmem:[#allocation4 + $0x1a0] sm:$0xff]  ;;  %19563 = vst [vmem:[#allocation124_spill] sm:$0xff] %v18112_v42  ;;  %19564 = vst [vmem:[#allocation126_spill] sm:$0xff] %v18115_v31 }
 0xfae   :  { %v11256_v18 = vld [vmem:[#allocation4 + $0x1a8] sm:$0xff]  ;;  %v11257_v9 = vld [vmem:[#allocation4 + $0x1b0] sm:$0xff]  ;;  %v11258_v15 = vld [vmem:[#allocation4 + $0x1b8] sm:$0xff] }
 0xfaf   :  { %v11259_v1 = vld [vmem:[#allocation4 + $0x1c0] sm:$0xff]  ;;  %v19565_v57 = vld [vmem:[#allocation35_spill] sm:$0xff]  ;;  %v19566_v34 = vld [vmem:[#allocation36_spill] sm:$0xff] }
 0xfb0   :  { %v18118_v8 = vadd.f32 %v11236_v28, %v19565_v57  ;;  %v18121_v32 = vadd.f32 %v11237_v19, %v19566_v34  ;;  %v19568_v29 = vld [vmem:[#allocation37_spill] sm:$0xff]  ;;  %v19570_v13 = vld [vmem:[#allocation38_spill] sm:$0xff]  ;;  %v11260_v0 = vld [vmem:[#allocation4 + $0x1c8] sm:$0xff] }
 0xfb1   :  { %v18124_v25 = vadd.f32 %v11238_v59, %v19568_v29  ;;  %v18127_v17 = vadd.f32 %v11239_v21, %v19570_v13  ;;  %v11261_v50 = vld [vmem:[#allocation4 + $0x1d0] sm:$0xff]  ;;  %v11262_v48 = vld [vmem:[#allocation4 + $0x1d8] sm:$0xff]  ;;  %v19572_v54 = vld [vmem:[#allocation39_spill] sm:$0xff] }
 0xfb2   :  { %19567 = vst [vmem:[#allocation128_spill] sm:$0xff] %v18121_v32  ;;  %v18130_v31 = vadd.f32 %v11240_v36, %v19572_v54  ;;  %v19573_v42 = vld [vmem:[#allocation40_spill] sm:$0xff]  ;;  %v19575_v28 = vld [vmem:[#allocation41_spill] sm:$0xff]  ;;  %v19577_v19 = vld [vmem:[#allocation42_spill] sm:$0xff] }
 0xfb3   :  { %19569 = vst [vmem:[#allocation130_spill] sm:$0xff] %v18124_v25  ;;  %19571 = vst [vmem:[#allocation132_spill] sm:$0xff] %v18127_v17  ;;  %v18133_v23 = vadd.f32 %v11241_v27, %v19573_v42  ;;  %v18136_v57 = vadd.f32 %v11242_v11, %v19575_v28  ;;  %v18139_v34 = vadd.f32 %v11243_v52, %v19577_v19  ;;  %v11263_v59 = vld [vmem:[#allocation4 + $0x1e0] sm:$0xff]  ;;  %v11264_v29 = vld [vmem:[#allocation4 + $0x1e8] sm:$0xff] }
 0xfb4   :  { %v11265_v25 = vld [vmem:[#allocation4 + $0x1f0] sm:$0xff]  ;;  %v19579_v21 = vld [vmem:[#allocation43_spill] sm:$0xff]  ;;  %v19582_v36 = vld [vmem:[#allocation45_spill] sm:$0xff] }
 0xfb5   :  { %19574 = vst [vmem:[#allocation134_spill] sm:$0xff] %v18133_v23  ;;  %19576 = vst [vmem:[#allocation136_spill] sm:$0xff] %v18136_v57  ;;  %v18142_v13 = vadd.f32 %v11244_v58, %v19579_v21  ;;  %v19580_v17 = vld [vmem:[#allocation44_spill] sm:$0xff]  ;;  %v18148_v54 = vadd.f32 %v11246_v6, %v19582_v36  ;;  %v19584_v27 = vld [vmem:[#allocation46_spill] sm:$0xff] }
 0xfb6   :  { %19578 = vst [vmem:[#allocation137_spill] sm:$0xff] %v18139_v34  ;;  %v18145_v32 = vadd.f32 %v11245_v56, %v19580_v17  ;;  %v18151_v42 = vadd.f32 %v11247_v5, %v19584_v27  ;;  %v11266_v11 = vld [vmem:[#allocation4 + $0x1f8] sm:$0xff]  ;;  %v11267_v28 = vld [vmem:[#allocation4 + $0x200] sm:$0xff]  ;;  %v11268_v57 = vld [vmem:[#allocation4 + $0x208] sm:$0xff] }
 0xfb7   :  { %19583 = vst [vmem:[#allocation53_spill] sm:$0xff] %v18148_v54  ;;  %v19586_v52 = vld [vmem:[#allocation47_spill] sm:$0xff]  ;;  %v19587_v34 = vld [vmem:[#allocation48_spill] sm:$0xff]  ;;  %v19589_v58 = vld [vmem:[#allocation49_spill] sm:$0xff] }
 0xfb8   :  { %19581 = vst [vmem:[#allocation135_spill] sm:$0xff] %v18145_v32  ;;  %19585 = vst [vmem:[#allocation55_spill] sm:$0xff] %v18151_v42  ;;  %v18154_v19 = vadd.f32 %v11248_v7, %v19586_v52  ;;  %v18157_v23 = vadd.f32 %v11249_v45, %v19587_v34  ;;  %v18160_v21 = vadd.f32 %v11250_v44, %v19589_v58  ;;  %v19591_v56 = vld [vmem:[#allocation50_spill] sm:$0xff]  ;;  %v11269_v6 = vld [vmem:[#allocation4 + $0x210] sm:$0xff] }
 0xfb9   :  { %v18163_v17 = vadd.f32 %v11251_v33, %v19591_v56  ;;  %v11270_v36 = vld [vmem:[#allocation4 + $0x218] sm:$0xff]  ;;  %v11271_v54 = vld [vmem:[#allocation4 + $0x220] sm:$0xff]  ;;  %v19593_v5 = vld [vmem:[#allocation51_spill] sm:$0xff] }
 0xfba   :  { %19588 = vst [vmem:[#allocation69_spill] sm:$0xff] %v18157_v23  ;;  %19590 = vst [vmem:[#allocation71_spill] sm:$0xff] %v18160_v21  ;;  %v18166_v27 = vadd.f32 %v11252_v60, %v19593_v5  ;;  %v19594_v42 = vld [vmem:[#allocation52_spill] sm:$0xff]  ;;  %v19596_v7 = vld [vmem:[#allocation54_spill] sm:$0xff] }
 0xfbb   :  { %19592 = vst [vmem:[#allocation73_spill] sm:$0xff] %v18163_v17  ;;  %v18169_v32 = vadd.f32 %v11253_v16, %v19594_v42  ;;  %v18172_v52 = vadd.f32 %v11254_v24, %v19596_v7  ;;  %v19598_v45 = vld [vmem:[#allocation56_spill] sm:$0xff]  ;;  %v11272_v44 = vld [vmem:[#allocation4 + $0x228] sm:$0xff]  ;;  %v11274_v21 = vld [vmem:[#allocation4 + $0x238] sm:$0xff] }
 0xfbc   :  { %v18175_v34 = vadd.f32 %v11255_v12, %v19598_v45  ;;  %v11273_v58 = vld [vmem:[#allocation4 + $0x230] sm:$0xff]  ;;  %v19600_v33 = vld [vmem:[#allocation58_spill] sm:$0xff]  ;;  %v11276_v7 = vld [vmem:[#allocation4 + $0x248] sm:$0xff] }
 0xfbd   :  { %19595 = vst [vmem:[#allocation75_spill] sm:$0xff] %v18169_v32  ;;  %19597 = vst [vmem:[#allocation77_spill] sm:$0xff] %v18172_v52  ;;  %v18178_v56 = vadd.f32 %v11256_v18, %v19600_v33  ;;  %v19601_v17 = vld [vmem:[#allocation60_spill] sm:$0xff]  ;;  %v19603_v60 = vld [vmem:[#allocation62_spill] sm:$0xff] }
 0xfbe   :  { %19599 = vst [vmem:[#allocation79_spill] sm:$0xff] %v18175_v34  ;;  %v18181_v23 = vadd.f32 %v11257_v9, %v19601_v17  ;;  %v18184_v5 = vadd.f32 %v11258_v15, %v19603_v60  ;;  %v19605_v16 = vld [vmem:[#allocation64_spill] sm:$0xff]  ;;  %v11275_v24 = vld [vmem:[#allocation4 + $0x240] sm:$0xff]  ;;  %v11278_v15 = vld [vmem:[#allocation4 + $0x258] sm:$0xff] }
 0xfbf   :  { %v18187_v42 = vadd.f32 %v11259_v1, %v19605_v16  ;;  %v11277_v52 = vld [vmem:[#allocation4 + $0x250] sm:$0xff]  ;;  %v19607_v12 = vld [vmem:[#allocation66_spill] sm:$0xff] }
 0xfc0   :  { %19602 = vst [vmem:[#allocation81_spill] sm:$0xff] %v18181_v23  ;;  %19604 = vst [vmem:[#allocation83_spill] sm:$0xff] %v18184_v5  ;;  %v18190_v45 = vadd.f32 %v11260_v0, %v19607_v12  ;;  %v19608_v34 = vld [vmem:[#allocation68_spill] sm:$0xff]  ;;  %v19610_v18 = vld [vmem:[#allocation70_spill] sm:$0xff] }
 0xfc1   :  { %19606 = vst [vmem:[#allocation87_spill] sm:$0xff] %v18187_v42  ;;  %v18193_v32 = vadd.f32 %v11261_v50, %v19608_v34  ;;  %v18196_v33 = vadd.f32 %v11262_v48, %v19610_v18  ;;  %v19612_v9 = vld [vmem:[#allocation72_spill] sm:$0xff]  ;;  %v11279_v60 = vld [vmem:[#allocation4 + $0x260] sm:$0xff]  ;;  %v11280_v5 = vld [vmem:[#allocation4 + $0x268] sm:$0xff] }
 0xfc2   :  { %v18199_v17 = vadd.f32 %v11263_v59, %v19612_v9  ;;  %v19614_v1 = vld [vmem:[#allocation74_spill] sm:$0xff]  ;;  %v19615_v42 = vld [vmem:[#allocation76_spill] sm:$0xff]  ;;  %v11282_v18 = vld [vmem:[#allocation4 + $0x278] sm:$0xff] }
 0xfc3   :  { %19609 = vst [vmem:[#allocation91_spill] sm:$0xff] %v18193_v32  ;;  %19611 = vst [vmem:[#allocation95_spill] sm:$0xff] %v18196_v33  ;;  %v18202_v16 = vadd.f32 %v11264_v29, %v19614_v1  ;;  %v18205_v23 = vadd.f32 %v11265_v25, %v19615_v42  ;;  %v19617_v0 = vld [vmem:[#allocation78_spill] sm:$0xff]  ;;  %v19619_v50 = vld [vmem:[#allocation80_spill] sm:$0xff] }
 0xfc4   :  { %19613 = vst [vmem:[#allocation97_spill] sm:$0xff] %v18199_v17  ;;  %v18208_v12 = vadd.f32 %v11266_v11, %v19617_v0  ;;  %v18211_v34 = vadd.f32 %v11267_v28, %v19619_v50  ;;  %v11281_v48 = vld [vmem:[#allocation4 + $0x270] sm:$0xff]  ;;  %v11283_v33 = vld [vmem:[#allocation4 + $0x280] sm:$0xff]  ;;  %v11284_v11 = vld [vmem:[#allocation4 + $0x288] sm:$0xff] }
 0xfc5   :  { %19616 = vst [vmem:[#allocation57_spill] sm:$0xff] %v18205_v23  ;;  %v19621_v59 = vld [vmem:[#allocation82_spill] sm:$0xff]  ;;  %v19622_v17 = vld [vmem:[#allocation84_spill] sm:$0xff] }
 0xfc6   :  { %19618 = vst [vmem:[#allocation59_spill] sm:$0xff] %v18208_v12  ;;  %19620 = vst [vmem:[#allocation61_spill] sm:$0xff] %v18211_v34  ;;  %v18214_v9 = vadd.f32 %v11268_v57, %v19621_v59  ;;  %v18217_v32 = vadd.f32 %v11269_v6, %v19622_v17  ;;  %v19623_v29 = vld [vmem:[#allocation86_spill] sm:$0xff]  ;;  %v19624_v25 = vld [vmem:[#allocation88_spill] sm:$0xff] }
 0xfc7   :  { %v18220_v1 = vadd.f32 %v11270_v36, %v19623_v29  ;;  %v18223_v42 = vadd.f32 %v11271_v54, %v19624_v25  ;;  %v11285_v0 = vld [vmem:[#allocation4 + $0x290] sm:$0xff]  ;;  %v19626_v12 = vld [vmem:[#allocation90_spill] sm:$0xff] }
 0xfc8   :  { %v18226_v28 = vadd.f32 %v11272_v44, %v19626_v12  ;;  %v19627_v50 = vld [vmem:[#allocation92_spill] sm:$0xff]  ;;  %v19628_v23 = vld [vmem:[#allocation94_spill] sm:$0xff] }
 0xfc9   :  { %19625 = vst [vmem:[#allocation63_spill] sm:$0xff] %v18223_v42  ;;  %v18229_v34 = vadd.f32 %v11273_v58, %v19627_v50  ;;  %v18232_v57 = vadd.f32 %v11274_v21, %v19628_v23  ;;  %v19629_v59 = vld [vmem:[#allocation96_spill] sm:$0xff]  ;;  %v19630_v17 = vld [vmem:[#allocation98_spill] sm:$0xff] }
 0xfca   :  { %v18235_v6 = vadd.f32 %v11275_v24, %v19629_v59  ;;  %v18238_v36 = vadd.f32 %v11276_v7, %v19630_v17  ;;  %v19631_v29 = vld [vmem:[#allocation100_spill] sm:$0xff]  ;;  %v19632_v25 = vld [vmem:[#allocation102_spill] sm:$0xff] }
 0xfcb   :  { %v18241_v54 = vadd.f32 %v11277_v52, %v19631_v29  ;;  %v18244_v42 = vadd.f32 %v11278_v15, %v19632_v25  ;;  %v19633_v44 = vld [vmem:[#allocation104_spill] sm:$0xff]  ;;  %v19634_v58 = vld [vmem:[#allocation106_spill] sm:$0xff]  ;;  %v18265_v15 = vadd.f32 %v11285_v0, %v18025_v63  ;;  %v11377_v63 = vmax.f32 %v18055_v46, 0.0 }
 0xfcc   :  { %v18247_v12 = vadd.f32 %v11279_v60, %v19633_v44  ;;  %v18250_v50 = vadd.f32 %v11280_v5, %v19634_v58  ;;  %v19635_v23 = vld [vmem:[#allocation108_spill] sm:$0xff]  ;;  %v19636_v24 = vld [vmem:[#allocation110_spill] sm:$0xff]  ;;  %v11368_v60 = vmax.f32 %v18028_v26, 0.0  ;;  %v11370_v44 = vmax.f32 %v18034_v55, 0.0 }
 0xfcd   :  { %v18253_v21 = vadd.f32 %v11281_v48, %v19635_v23  ;;  %v18256_v59 = vadd.f32 %v11282_v18, %v19636_v24  ;;  %v19637_v7 = vld [vmem:[#allocation112_spill] sm:$0xff]  ;;  %v19638_v52 = vld [vmem:[#allocation114_spill] sm:$0xff]  ;;  %v11371_v48 = vmax.f32 %v18037_v43, 0.0  ;;  %v11372_v18 = vmax.f32 %v18040_v14, 0.0  ;;  %11458 = vst [vmem:[#allocation10 + $0x48] sm:$0xff] %v11377_v63 }
 0xfce   :  { %v18259_v17 = vadd.f32 %v11283_v33, %v19637_v7  ;;  %v18262_v29 = vadd.f32 %v11284_v11, %v19638_v52  ;;  %v19639_v25 = vld [vmem:[#allocation116_spill] sm:$0xff]  ;;  %v11373_v58 = vmax.f32 %v18043_v37, 0.0  ;;  %v11374_v33 = vmax.f32 %v18046_v51, 0.0  ;;  %11449 = vst [vmem:[#allocation10] sm:$0xff] %v11368_v60  ;;  %11451 = vst [vmem:[#allocation10 + $0x10] sm:$0xff] %v11370_v44  ;;  %v19644_v7 = vld [vmem:[#allocation126_spill] sm:$0xff] }
 0xfcf   :  { %v11369_v5 = vmax.f32 %v19639_v25, 0.0  ;;  %v11375_v11 = vmax.f32 %v18049_v35, 0.0  ;;  %v11376_v23 = vmax.f32 %v18052_v62, 0.0  ;;  %v11378_v26 = vmax.f32 %v18058_v39, 0.0  ;;  %11452 = vst [vmem:[#allocation10 + $0x18] sm:$0xff] %v11371_v48  ;;  %11453 = vst [vmem:[#allocation10 + $0x20] sm:$0xff] %v11372_v18 }
 0xfd0   :  { %v11379_v55 = vmax.f32 %v18061_v22, 0.0  ;;  %v11380_v43 = vmax.f32 %v18064_v40, 0.0  ;;  %v11381_v14 = vmax.f32 %v18067_v38, 0.0  ;;  %11454 = vst [vmem:[#allocation10 + $0x28] sm:$0xff] %v11373_v58  ;;  %v11382_v35 = vmax.f32 %v18070_v41, 0.0  ;;  %11455 = vst [vmem:[#allocation10 + $0x30] sm:$0xff] %v11374_v33 }
 0xfd1   :  { %11450 = vst [vmem:[#allocation10 + $0x8] sm:$0xff] %v11369_v5  ;;  %v11383_v37 = vmax.f32 %v18073_v2, 0.0  ;;  %v11384_v51 = vmax.f32 %v18076_v20, 0.0  ;;  %v11385_v62 = vmax.f32 %v18079_v4, 0.0  ;;  %11456 = vst [vmem:[#allocation10 + $0x38] sm:$0xff] %v11375_v11  ;;  %v11386_v46 = vmax.f32 %v18082_v30, 0.0 }
 0xfd2   :  { %11457 = vst [vmem:[#allocation10 + $0x40] sm:$0xff] %v11376_v23  ;;  %v11387_v39 = vmax.f32 %v18085_v10, 0.0  ;;  %v11388_v22 = vmax.f32 %v18088_v3, 0.0  ;;  %v11389_v40 = vmax.f32 %v18091_v53, 0.0  ;;  %11459 = vst [vmem:[#allocation10 + $0x50] sm:$0xff] %v11378_v26  ;;  %v11390_v38 = vmax.f32 %v18094_v61, 0.0 }
 0xfd3   :  { %11460 = vst [vmem:[#allocation10 + $0x58] sm:$0xff] %v11379_v55  ;;  %11461 = vst [vmem:[#allocation10 + $0x60] sm:$0xff] %v11380_v43  ;;  %v11391_v41 = vmax.f32 %v18097_v49, 0.0  ;;  %v19640_v2 = vld [vmem:[#allocation118_spill] sm:$0xff]  ;;  %v19641_v4 = vld [vmem:[#allocation120_spill] sm:$0xff]  ;;  %v11394_v30 = vmax.f32 %v18106_v47, 0.0 }
 0xfd4   :  { %11462 = vst [vmem:[#allocation10 + $0x68] sm:$0xff] %v11381_v14  ;;  %v11392_v20 = vmax.f32 %v19640_v2, 0.0  ;;  %v11393_v0 = vmax.f32 %v19641_v4, 0.0  ;;  %11463 = vst [vmem:[#allocation10 + $0x70] sm:$0xff] %v11382_v35  ;;  %v19642_v10 = vld [vmem:[#allocation122_spill] sm:$0xff]  ;;  %v19643_v53 = vld [vmem:[#allocation124_spill] sm:$0xff] }
 0xfd5   :  { %11464 = vst [vmem:[#allocation10 + $0x78] sm:$0xff] %v11383_v37  ;;  %11465 = vst [vmem:[#allocation10 + $0x80] sm:$0xff] %v11384_v51  ;;  %v11395_v3 = vmax.f32 %v19642_v10, 0.0  ;;  %v11396_v24 = vmax.f32 %v19643_v53, 0.0  ;;  %v11397_v52 = vmax.f32 %v19644_v7, 0.0  ;;  %v11398_v61 = vmax.f32 %v18118_v8, 0.0 }
 0xfd6   :  { %11466 = vst [vmem:[#allocation10 + $0x88] sm:$0xff] %v11385_v62  ;;  %11467 = vst [vmem:[#allocation10 + $0x90] sm:$0xff] %v11386_v46  ;;  %v19645_v49 = vld [vmem:[#allocation128_spill] sm:$0xff]  ;;  %v19646_v25 = vld [vmem:[#allocation130_spill] sm:$0xff]  ;;  %v11402_v47 = vmax.f32 %v18130_v31, 0.0  ;;  %v11406_v8 = vmax.f32 %v18142_v13, 0.0 }
 0xfd7   :  { %11468 = vst [vmem:[#allocation10 + $0x98] sm:$0xff] %v11387_v39  ;;  %11469 = vst [vmem:[#allocation10 + $0xa0] sm:$0xff] %v11388_v22  ;;  %v11399_v60 = vmax.f32 %v19645_v49, 0.0  ;;  %v11400_v5 = vmax.f32 %v19646_v25, 0.0  ;;  %v19647_v44 = vld [vmem:[#allocation132_spill] sm:$0xff]  ;;  %v19648_v18 = vld [vmem:[#allocation134_spill] sm:$0xff] }
 0xfd8   :  { %11470 = vst [vmem:[#allocation10 + $0xa8] sm:$0xff] %v11389_v40  ;;  %v11401_v48 = vmax.f32 %v19647_v44, 0.0  ;;  %11471 = vst [vmem:[#allocation10 + $0xb0] sm:$0xff] %v11390_v38  ;;  %v11403_v58 = vmax.f32 %v19648_v18, 0.0  ;;  %v19649_v33 = vld [vmem:[#allocation136_spill] sm:$0xff]  ;;  %v19650_v23 = vld [vmem:[#allocation137_spill] sm:$0xff] }
 0xfd9   :  { %11472 = vst [vmem:[#allocation10 + $0xb8] sm:$0xff] %v11391_v41  ;;  %11473 = vst [vmem:[#allocation10 + $0xc0] sm:$0xff] %v11392_v20  ;;  %v11404_v11 = vmax.f32 %v19649_v33, 0.0  ;;  %v11405_v63 = vmax.f32 %v19650_v23, 0.0  ;;  %v19651_v26 = vld [vmem:[#allocation135_spill] sm:$0xff]  ;;  %v19652_v43 = vld [vmem:[#allocation53_spill] sm:$0xff] }
 0xfda   :  { %11474 = vst [vmem:[#allocation10 + $0xc8] sm:$0xff] %v11393_v0  ;;  %11475 = vst [vmem:[#allocation10 + $0xd0] sm:$0xff] %v11394_v30  ;;  %v11407_v55 = vmax.f32 %v19651_v26, 0.0  ;;  %v11408_v14 = vmax.f32 %v19652_v43, 0.0  ;;  %v19653_v35 = vld [vmem:[#allocation55_spill] sm:$0xff]  ;;  %v11410_v31 = vmax.f32 %v18154_v19, 0.0 }
 0xfdb   :  { %11476 = vst [vmem:[#allocation10 + $0xd8] sm:$0xff] %v11395_v3  ;;  %11477 = vst [vmem:[#allocation10 + $0xe0] sm:$0xff] %v11396_v24  ;;  %v11409_v37 = vmax.f32 %v19653_v35, 0.0  ;;  %v19654_v51 = vld [vmem:[#allocation69_spill] sm:$0xff]  ;;  %v19655_v46 = vld [vmem:[#allocation71_spill] sm:$0xff]  ;;  %v11414_v13 = vmax.f32 %v18166_v27, 0.0 }
 0xfdc   :  { %11478 = vst [vmem:[#allocation10 + $0xe8] sm:$0xff] %v11397_v52  ;;  %11479 = vst [vmem:[#allocation10 + $0xf0] sm:$0xff] %v11398_v61  ;;  %v11411_v62 = vmax.f32 %v19654_v51, 0.0  ;;  %v11412_v39 = vmax.f32 %v19655_v46, 0.0  ;;  %v19656_v22 = vld [vmem:[#allocation73_spill] sm:$0xff]  ;;  %v19657_v38 = vld [vmem:[#allocation75_spill] sm:$0xff] }
 0xfdd   :  { %11480 = vst [vmem:[#allocation10 + $0xf8] sm:$0xff] %v11399_v60  ;;  %11481 = vst [vmem:[#allocation10 + $0x100] sm:$0xff] %v11400_v5  ;;  %v11413_v40 = vmax.f32 %v19656_v22, 0.0  ;;  %v11415_v41 = vmax.f32 %v19657_v38, 0.0  ;;  %v19658_v2 = vld [vmem:[#allocation77_spill] sm:$0xff]  ;;  %v19659_v4 = vld [vmem:[#allocation79_spill] sm:$0xff] }
 0xfde   :  { %11482 = vst [vmem:[#allocation10 + $0x108] sm:$0xff] %v11401_v48  ;;  %11483 = vst [vmem:[#allocation10 + $0x110] sm:$0xff] %v11402_v47  ;;  %v11416_v20 = vmax.f32 %v19658_v2, 0.0  ;;  %v11417_v0 = vmax.f32 %v19659_v4, 0.0  ;;  %v11418_v19 = vmax.f32 %v18178_v56, 0.0  ;;  %v19660_v30 = vld [vmem:[#allocation81_spill] sm:$0xff] }
 0xfdf   :  { %11484 = vst [vmem:[#allocation10 + $0x118] sm:$0xff] %v11403_v58  ;;  %11485 = vst [vmem:[#allocation10 + $0x120] sm:$0xff] %v11404_v11  ;;  %v11419_v10 = vmax.f32 %v19660_v30, 0.0  ;;  %v19661_v3 = vld [vmem:[#allocation83_spill] sm:$0xff]  ;;  %v11422_v27 = vmax.f32 %v18190_v45, 0.0  ;;  %v19665_v25 = vld [vmem:[#allocation97_spill] sm:$0xff] }
 0xfe0   :  { %11486 = vst [vmem:[#allocation10 + $0x128] sm:$0xff] %v11405_v63  ;;  %11487 = vst [vmem:[#allocation10 + $0x130] sm:$0xff] %v11406_v8  ;;  %v11420_v53 = vmax.f32 %v19661_v3, 0.0  ;;  %v19662_v24 = vld [vmem:[#allocation87_spill] sm:$0xff]  ;;  %v11425_v5 = vmax.f32 %v19665_v25, 0.0  ;;  %v11426_v56 = vmax.f32 %v18202_v16, 0.0 }
 0xfe1   :  { %11488 = vst [vmem:[#allocation10 + $0x138] sm:$0xff] %v11407_v55  ;;  %11489 = vst [vmem:[#allocation10 + $0x140] sm:$0xff] %v11408_v14  ;;  %v11421_v7 = vmax.f32 %v19662_v24, 0.0  ;;  %v19663_v52 = vld [vmem:[#allocation91_spill] sm:$0xff]  ;;  %v19666_v44 = vld [vmem:[#allocation57_spill] sm:$0xff]  ;;  %v11430_v45 = vmax.f32 %v18214_v9, 0.0 }
 0xfe2   :  { %11490 = vst [vmem:[#allocation10 + $0x148] sm:$0xff] %v11409_v37  ;;  %11491 = vst [vmem:[#allocation10 + $0x150] sm:$0xff] %v11410_v31  ;;  %v11423_v61 = vmax.f32 %v19663_v52, 0.0  ;;  %v19664_v49 = vld [vmem:[#allocation95_spill] sm:$0xff]  ;;  %v11427_v48 = vmax.f32 %v19666_v44, 0.0  ;;  %v19668_v58 = vld [vmem:[#allocation61_spill] sm:$0xff] }
 0xfe3   :  { %11492 = vst [vmem:[#allocation10 + $0x158] sm:$0xff] %v11411_v62  ;;  %11493 = vst [vmem:[#allocation10 + $0x160] sm:$0xff] %v11412_v39  ;;  %v11424_v60 = vmax.f32 %v19664_v49, 0.0  ;;  %v19667_v47 = vld [vmem:[#allocation59_spill] sm:$0xff]  ;;  %v11429_v33 = vmax.f32 %v19668_v58, 0.0  ;;  %v11431_v11 = vmax.f32 %v18217_v32, 0.0 }
 0xfe4   :  { %11494 = vst [vmem:[#allocation10 + $0x168] sm:$0xff] %v11413_v40  ;;  %11495 = vst [vmem:[#allocation10 + $0x170] sm:$0xff] %v11414_v13  ;;  %v11428_v18 = vmax.f32 %v19667_v47, 0.0  ;;  %v11432_v23 = vmax.f32 %v18220_v1, 0.0  ;;  %v19669_v63 = vld [vmem:[#allocation63_spill] sm:$0xff]  ;;  %v11434_v16 = vmax.f32 %v18226_v28, 0.0 }
 0xfe5   :  { %11496 = vst [vmem:[#allocation10 + $0x178] sm:$0xff] %v11415_v41  ;;  %11497 = vst [vmem:[#allocation10 + $0x180] sm:$0xff] %v11416_v20  ;;  %v11433_v8 = vmax.f32 %v19669_v63, 0.0  ;;  %v11435_v26 = vmax.f32 %v18229_v34, 0.0  ;;  %v11436_v55 = vmax.f32 %v18232_v57, 0.0  ;;  %v11437_v43 = vmax.f32 %v18235_v6, 0.0 }
 0xfe6   :  { %11498 = vst [vmem:[#allocation10 + $0x188] sm:$0xff] %v11417_v0  ;;  %11499 = vst [vmem:[#allocation10 + $0x190] sm:$0xff] %v11418_v19  ;;  %v11438_v32 = vmax.f32 %v18238_v36, 0.0  ;;  %v11439_v9 = vmax.f32 %v18241_v54, 0.0  ;;  %v11440_v1 = vmax.f32 %v18244_v42, 0.0  ;;  %v11441_v28 = vmax.f32 %v18247_v12, 0.0 }
 0xfe7   :  { %11500 = vst [vmem:[#allocation10 + $0x198] sm:$0xff] %v11419_v10  ;;  %11501 = vst [vmem:[#allocation10 + $0x1a0] sm:$0xff] %v11420_v53  ;;  %v11442_v34 = vmax.f32 %v18250_v50, 0.0  ;;  %v11443_v57 = vmax.f32 %v18253_v21, 0.0  ;;  %v11444_v6 = vmax.f32 %v18256_v59, 0.0  ;;  %v11445_v14 = vmax.f32 %v18259_v17, 0.0 }
 0xfe8   :  { %11502 = vst [vmem:[#allocation10 + $0x1a8] sm:$0xff] %v11421_v7  ;;  %11503 = vst [vmem:[#allocation10 + $0x1b0] sm:$0xff] %v11422_v27  ;;  %v11446_v42 = vmax.f32 %v18262_v29, 0.0  ;;  %v11447_v36 = vmax.f32 %v18265_v15, 0.0 }
 0xfe9   :  { %11504 = vst [vmem:[#allocation10 + $0x1b8] sm:$0xff] %v11423_v61  ;;  %11505 = vst [vmem:[#allocation10 + $0x1c0] sm:$0xff] %v11424_v60 }
 0xfea   :  { %11506 = vst [vmem:[#allocation10 + $0x1c8] sm:$0xff] %v11425_v5  ;;  %11507 = vst [vmem:[#allocation10 + $0x1d0] sm:$0xff] %v11426_v56 }
 0xfeb   :  { %11508 = vst [vmem:[#allocation10 + $0x1d8] sm:$0xff] %v11427_v48  ;;  %11509 = vst [vmem:[#allocation10 + $0x1e0] sm:$0xff] %v11428_v18 }
 0xfec   :  { %11510 = vst [vmem:[#allocation10 + $0x1e8] sm:$0xff] %v11429_v33  ;;  %11511 = vst [vmem:[#allocation10 + $0x1f0] sm:$0xff] %v11430_v45 }
 0xfed   :  { %11512 = vst [vmem:[#allocation10 + $0x1f8] sm:$0xff] %v11431_v11  ;;  %11513 = vst [vmem:[#allocation10 + $0x200] sm:$0xff] %v11432_v23 }
 0xfee   :  { %11514 = vst [vmem:[#allocation10 + $0x208] sm:$0xff] %v11433_v8  ;;  %11515 = vst [vmem:[#allocation10 + $0x210] sm:$0xff] %v11434_v16 }
 0xfef   :  { %11516 = vst [vmem:[#allocation10 + $0x218] sm:$0xff] %v11435_v26  ;;  %11517 = vst [vmem:[#allocation10 + $0x220] sm:$0xff] %v11436_v55 }
 0xff0   :  { %11518 = vst [vmem:[#allocation10 + $0x228] sm:$0xff] %v11437_v43  ;;  %11519 = vst [vmem:[#allocation10 + $0x230] sm:$0xff] %v11438_v32 }
 0xff1   :  { %11520 = vst [vmem:[#allocation10 + $0x238] sm:$0xff] %v11439_v9  ;;  %11521 = vst [vmem:[#allocation10 + $0x240] sm:$0xff] %v11440_v1 }
 0xff2   :  { %11522 = vst [vmem:[#allocation10 + $0x248] sm:$0xff] %v11441_v28  ;;  %11523 = vst [vmem:[#allocation10 + $0x250] sm:$0xff] %v11442_v34 }
 0xff3   :  { %11524 = vst [vmem:[#allocation10 + $0x258] sm:$0xff] %v11443_v57  ;;  %11525 = vst [vmem:[#allocation10 + $0x260] sm:$0xff] %v11444_v6 }
 0xff4   :  { %11526 = vst [vmem:[#allocation10 + $0x268] sm:$0xff] %v11445_v14  ;;  %11527 = vst [vmem:[#allocation10 + $0x270] sm:$0xff] %v11446_v42 }
 0xff5   :  { %11528 = vst [vmem:[#allocation10 + $0x278] sm:$0xff] %v11447_v36 }
 0xff6   :  { %14115 = shalt.err (!%p14112_p0)
}
 0xff7   :  { %s14116_s2 = scalar_lea.hbm %s18370_s8, 10368 }
 0xff8   :  { %p14117_p1 = scmp.ne.s32.totalorder %s18370_s8, %s14116_s2  ;;  %p14120_p2 = scmp.lt.u32.totalorder %s14116_s2, %s18370_s8 }
 0xffa   :  { %p14122_p3 = pnand %p14120_p2, %p14117_p1 }
 0xffc   :  { %14125 = shalt.err (!%p14122_p3)
}
 0xffd   :  { %11541 = dma.vmem_to_hbm [thread:$0]  %s11536_s7, 10368, %s18370_s8, [#allocation6], %s14134_s17, %s14134_s17, %s14135_s18  }
 0xffe   :  { %14130 = dma.done.wait [#allocation6], 10368  }
 0xfff   :  { %14131 = vsyncadd [#allocation6], 4294956928 }
0x1000   :  { %11545 = vsyncpa [#allocation5], 1 }
0x1001   :  { %11546 = vsyncpa [#allocation8], 1 }
0x1002   :  { %11547 = vsyncpa [#allocation6], 1 }

</bundles_post_ra>
